<compile_context>
chip_gen: v7x
topology: tpu7x:2x2x1
jax: 0.10.0
libtpu: 0.0.40
codegen_flags: <defaults>
</compile_context>

<pallas_src>
import functools

import jax
import jax.numpy as jnp
from jax.experimental import pallas as pl
from jax.experimental.pallas import tpu as pltpu


# ---------------------------------------------------------------------------
# Static network geometry.  fc1 = Linear(64, ...) forces the flattened
# feature size to 64 = 32 channels x length 2, which implies input length 544.
# ---------------------------------------------------------------------------
L_IN, C_IN = 544, 2
CONV_CFG = [(5, 2, 128), (5, 128, 128), (3, 128, 64), (2, 64, 32)]  # (K,Cin,Cout)

# Per-batch row strides of the activation buffers (batch folded into rows).
# The chain S2 = S1/4, S3 = S2/4 makes every conv tap a single global
# stride-4 read across the whole batch tile.
S1R = 144      # pooled1 rows per batch element (0..134 valid, rest junk)
S2R = 36       # pooled2 rows per batch element (0..32 valid)
S3R = 9        # pooled3 rows per batch element (0..7 valid)
XQ_ROWS = 152  # packed-input rows per batch element (136 data + zero pad)

# bf16 conv-weight slab (W_ROWS x 256) row offsets.
W1_BASE = 0                     # 2 x (8, 256): fused [even|odd] conv1 weights
W2_BASE = 16                    # 5 taps x (128, 128)
W3_BASE = W2_BASE + 5 * 128     # 656 : 3 taps x (128, 64)
W4_BASE = W3_BASE + 3 * 128     # 1040: 2 taps x (64, 32)
W_ROWS = W4_BASE + 2 * 64       # 1168
W_COLS = 256

# f32 slab (F_ROWS x 128) row offsets: BN scale/shift rows + MLP head.
F_AFF = 0        # rows 0..7: s1,t1,s2,t2,s3,t3,s4,t4
F_F1E = 8        # fc1 rows for flatten length-index 0   (32, 128)
F_F1O = 40       # fc1 rows for flatten length-index 1   (32, 128)
F_FB1 = 72
F_FW2 = 80       # (128, 128), cols 64.. zero
F_FB2 = 208
F_FW3 = 216      # (128, 128), rows 64.. and cols 7.. zero
F_FB3 = 344
F_ROWS = 352


# ---------------------------------------------------------------------------
# Fully fused forward kernel: 4 x (conv+BN+ReLU+pool) -> flatten -> MLP head.
# One BT-sized batch tile per grid step.
# ---------------------------------------------------------------------------
def _fused_forward_kernel(xq_ref, w_ref, f_ref, o_ref,
                          a1_ref, a2_ref, a3_ref, *, bt):
    f32, bf16 = jnp.float32, jnp.bfloat16

    # ---- block 1: conv1 (K=5, Cin=2) + BN + ReLU + maxpool(2) --------------
    # Packed input: xq[b, q, 2r + c] = x[b, 4q + r, c].  Even/odd conv
    # outputs at pool position p both read packed rows p and p+1; even and
    # odd weight sets are concatenated along N, so block 1 is two (M,8)@(8,256)
    # MXU pushes and the maxpool is a max of the two 128-lane halves.
    n1 = bt * S1R
    xa = xq_ref[:, pl.ds(0, S1R), :].reshape(n1, 4 * C_IN).astype(bf16)
    xb = xq_ref[:, pl.ds(1, S1R), :].reshape(n1, 4 * C_IN).astype(bf16)
    acc = jnp.dot(xa, w_ref[pl.ds(W1_BASE, 8), :], preferred_element_type=f32)
    acc = acc + jnp.dot(xb, w_ref[pl.ds(W1_BASE + 8, 8), :],
                        preferred_element_type=f32)
    s1 = f_ref[0:1, :]
    t1 = f_ref[1:2, :]
    ye = jnp.maximum(acc[:, 0:128] * s1 + t1, 0.0)
    yo = jnp.maximum(acc[:, 128:256] * s1 + t1, 0.0)
    a1_ref[pl.ds(0, n1), :] = jnp.maximum(ye, yo)          # pooled1
    a1_ref[pl.ds(n1, 8), :] = jnp.zeros((8, 128), f32)      # guard rows

    # ---- generic stride-2 conv + affine + ReLU + maxpool(2) ----------------
    # Batch is folded into M (per-batch input stride = 4 * per-batch output
    # stride), so each tap/phase is one global stride-4 read and one matmul.
    def conv_block(in_ref, w_base, cin, cout, K, n_rows, aff_row):
        s = f_ref[aff_row:aff_row + 1, 0:cout]
        t = f_ref[aff_row + 1:aff_row + 2, 0:cout]
        ae = jnp.zeros((n_rows, cout), f32)
        ao = jnp.zeros((n_rows, cout), f32)
        for k in range(K):                                  # static unroll
            wk = w_ref[pl.ds(w_base + k * cin, cin), 0:cout]   # (cin, cout)
            xe = in_ref[pl.ds(k, n_rows, stride=4), :].astype(bf16)
            xo = in_ref[pl.ds(k + 2, n_rows, stride=4), :].astype(bf16)
            ae = ae + jnp.dot(xe, wk, preferred_element_type=f32)
            ao = ao + jnp.dot(xo, wk, preferred_element_type=f32)
        ye = jnp.maximum(ae * s + t, 0.0)
        yo = jnp.maximum(ao * s + t, 0.0)
        return jnp.maximum(ye, yo)                          # (n_rows, cout)

    n2 = bt * S2R
    a2_ref[pl.ds(0, n2), :] = conv_block(a1_ref, W2_BASE, 128, 128, 5, n2, 2)
    a2_ref[pl.ds(n2, 8), :] = jnp.zeros((8, 128), f32)       # guard rows

    n3 = bt * S3R
    a3_ref[...] = conv_block(a2_ref, W3_BASE, 128, 64, 3, n3, 4)

    # ---- block 4: conv4 (K=2, Cin=64) + BN + ReLU + maxpool(2) -------------
    s4 = f_ref[6:7, 0:32]
    t4 = f_ref[7:8, 0:32]

    def conv4(j):                                           # conv4 output j
        acc4 = jnp.zeros((bt, 32), f32)
        for k in range(2):
            wk = w_ref[pl.ds(W4_BASE + k * 64, 64), 0:32]
            xk = a3_ref[pl.ds(2 * j + k, bt, stride=S3R), :].astype(bf16)
            acc4 = acc4 + jnp.dot(xk, wk, preferred_element_type=f32)
        return jnp.maximum(acc4 * s4 + t4, 0.0)             # (bt, 32)

    p4_0 = jnp.maximum(conv4(0), conv4(1))                  # length index 0
    p4_1 = jnp.maximum(conv4(2), conv4(3))                  # length index 1

    # ---- flatten (torch channel-major) + MLP head (Dropout = identity) -----
    # fc1 weight rows were pre-split by the flatten length index, so no
    # in-kernel transpose; fc2/fc3 are padded to 128 lanes so the final store
    # is one dense (bt, 128) slab.
    h = jnp.dot(p4_0, f_ref[F_F1E:F_F1E + 32, :], preferred_element_type=f32)
    h = h + jnp.dot(p4_1, f_ref[F_F1O:F_F1O + 32, :], preferred_element_type=f32)
    h = jnp.maximum(h + f_ref[F_FB1:F_FB1 + 1, :], 0.0)      # (bt, 128)
    h = jnp.dot(h, f_ref[F_FW2:F_FW2 + 128, :], preferred_element_type=f32)
    h = jnp.maximum(h + f_ref[F_FB2:F_FB2 + 1, :], 0.0)      # cols 64.. are 0
    z = jnp.dot(h, f_ref[F_FW3:F_FW3 + 128, :], preferred_element_type=f32)
    z = z + f_ref[F_FB3:F_FB3 + 1, :]
    o_ref[...] = 1.0 / (1.0 + jnp.exp(-z))                   # (bt, 128)


# ---------------------------------------------------------------------------
# Wrapper-side (trace-time) packing of all weights into two slabs.
# ---------------------------------------------------------------------------
def pack_kernel_operands(params):
    f32, bf16 = jnp.float32, jnp.bfloat16
    (w1, s1, t1), (w2, s2, t2), (w3, s3, t3), (w4, s4, t4) = params["convs"]
    c1 = w1.shape[-1]

    # conv1 weights for the (L/4, 8)-packed input layout, even|odd fused.
    zer = lambda n: jnp.zeros((n, c1), f32)
    U0 = w1[0:4].reshape(8, c1)                            # taps 0..3, xq[p]
    U1 = jnp.concatenate([w1[4], zer(6)], axis=0)          # tap 4,    xq[p+1]
    T0 = jnp.concatenate([zer(4), w1[0:2].reshape(4, c1)], axis=0)
    T1 = jnp.concatenate([w1[2:5].reshape(6, c1), zer(2)], axis=0)
    w1cat0 = jnp.concatenate([U0, T0], axis=1)             # (8, 256)
    w1cat1 = jnp.concatenate([U1, T1], axis=1)             # (8, 256)

    def pad_cols(a, cols):
        return jnp.pad(a, ((0, 0), (0, cols - a.shape[1])))

    wslab = jnp.zeros((W_ROWS, W_COLS), f32)
    wslab = wslab.at[0:8].set(w1cat0)
    wslab = wslab.at[8:16].set(w1cat1)
    wslab = wslab.at[W2_BASE:W2_BASE + 5 * 128].set(
        pad_cols(w2.reshape(5 * 128, 128), W_COLS))
    wslab = wslab.at[W3_BASE:W3_BASE + 3 * 128].set(
        pad_cols(w3.reshape(3 * 128, 64), W_COLS))
    wslab = wslab.at[W4_BASE:W4_BASE + 2 * 64].set(
        pad_cols(w4.reshape(2 * 64, 32), W_COLS))
    wslab = wslab.astype(bf16)

    (fw1, fb1), (fw2, fb2), (fw3, fb3) = params["fcs"]
    f1e = fw1[0::2, :]      # fc1 rows for flatten length index 0
    f1o = fw1[1::2, :]      # fc1 rows for flatten length index 1

    fslab = jnp.zeros((F_ROWS, 128), f32)
    for r, vec in enumerate([s1, t1, s2, t2, s3, t3, s4, t4]):
        v = vec.reshape(-1)
        fslab = fslab.at[F_AFF + r, 0:v.shape[0]].set(v)
    fslab = fslab.at[F_F1E:F_F1E + 32].set(f1e)
    fslab = fslab.at[F_F1O:F_F1O + 32].set(f1o)
    fslab = fslab.at[F_FB1, 0:fb1.shape[-1]].set(fb1.reshape(-1))
    fslab = fslab.at[F_FW2:F_FW2 + 128, 0:64].set(fw2)
    fslab = fslab.at[F_FB2, 0:fb2.shape[-1]].set(fb2.reshape(-1))
    fslab = fslab.at[F_FW3:F_FW3 + 64, 0:7].set(fw3)
    fslab = fslab.at[F_FB3, 0:fb3.shape[-1]].set(fb3.reshape(-1))
    return wslab, fslab


def detection_model_forward(x, params, batch_tile=8):
    """x: (B, L_IN, 2) f32  ->  (B, 7) f32, one fused Pallas kernel."""
    B = x.shape[0]
    assert x.shape == (B, L_IN, C_IN)
    bt = max(1, min(batch_tile, B))
    n_tiles = pl.cdiv(B, bt)
    b_pad = n_tiles * bt

    wslab, fslab = pack_kernel_operands(params)

    # Free contiguous relayout xq[b, q, 2r + c] = x[b, 4q + r, c], then pad
    # batch to a multiple of the tile and rows to XQ_ROWS (zero pad rows only
    # ever feed junk output positions that are never read back).
    xq = x.reshape(B, L_IN // 4, 4 * C_IN)
    xq = jnp.pad(xq, ((0, b_pad - B), (0, XQ_ROWS - L_IN // 4), (0, 0)))

    out = pl.pallas_call(
        functools.partial(_fused_forward_kernel, bt=bt),
        out_shape=jax.ShapeDtypeStruct((b_pad, 128), jnp.float32),
        grid_spec=pltpu.PrefetchScalarGridSpec(
            num_scalar_prefetch=0,
            grid=(n_tiles,),
            in_specs=[
                pl.BlockSpec((bt, XQ_ROWS, 4 * C_IN), lambda g: (g, 0, 0)),
                pl.BlockSpec((W_ROWS, W_COLS), lambda g: (0, 0)),
                pl.BlockSpec((F_ROWS, 128), lambda g: (0, 0)),
            ],
            out_specs=pl.BlockSpec((bt, 128), lambda g: (g, 0)),
            scratch_shapes=[
                pltpu.VMEM((bt * S1R + 8, 128), jnp.float32),   # pooled1
                pltpu.VMEM((bt * S2R + 8, 128), jnp.float32),   # pooled2
                pltpu.VMEM((bt * S3R, 64), jnp.float32),        # pooled3
            ]),
        compiler_params=pltpu.CompilerParams(
            dimension_semantics=("parallel",)),
    )(xq, wslab, fslab)
    return out[:B, :7]


# ---------------------------------------------------------------------------
# Parameters (deterministic synthetic init; shapes follow the torch module).
# ---------------------------------------------------------------------------
def init_params(key):
    eps = 1e-5
    convs = []
    for (k, cin, cout) in CONV_CFG:
        key, kw, kb, kg, kbe, km, kv = jax.random.split(key, 7)
        w = jax.random.normal(kw, (k, cin, cout), jnp.float32) * (cin * k) ** -0.5
        b = 0.05 * jax.random.normal(kb, (cout,), jnp.float32)
        gamma = 1.0 + 0.1 * jax.random.normal(kg, (cout,), jnp.float32)
        beta = 0.1 * jax.random.normal(kbe, (cout,), jnp.float32)
        rmean = 0.1 * jax.random.normal(km, (cout,), jnp.float32)
        rvar = 1.0 + 0.1 * jax.random.uniform(kv, (cout,), jnp.float32)
        scale = gamma / jnp.sqrt(rvar + eps)           # BN (eval) folded
        shift = beta + (b - rmean) * scale             # with conv bias
        convs.append((w, scale.reshape(1, cout), shift.reshape(1, cout)))

    fcs = []
    for fin, fout in [(64, 128), (128, 64), (64, 7)]:
        key, kw, kb = jax.random.split(key, 3)
        w = jax.random.normal(kw, (fin, fout), jnp.float32) * fin ** -0.5
        b = 0.05 * jax.random.normal(kb, (fout,), jnp.float32)
        fcs.append((w, b.reshape(1, fout)))
    return {"convs": convs, "fcs": fcs}


# ---------------------------------------------------------------------------
# Pure-JAX f32 reference for the sanity check.
# ---------------------------------------------------------------------------
def reference_forward(x, params):
    act = x
    for (w, scale, shift) in params["convs"]:
        y = jax.lax.conv_general_dilated(
            act, w, window_strides=(2,), padding="VALID",
            dimension_numbers=("NWC", "WIO", "NWC"))
        y = jnp.maximum(y * scale + shift, 0.0)
        B, L, C = y.shape
        lp = L // 2
        act = jnp.max(y[:, :2 * lp, :].reshape(B, lp, 2, C), axis=2)
    B = act.shape[0]
    feat = jnp.transpose(act, (0, 2, 1)).reshape(B, -1)
    (w1, b1), (w2, b2), (w3, b3) = params["fcs"]
    h = jnp.maximum(feat @ w1 + b1, 0.0)
    h = jnp.maximum(h @ w2 + b2, 0.0)
    return jax.nn.sigmoid(h @ w3 + b3)


if __name__ == "__main__":
    B = 16
    key = jax.random.PRNGKey(0)
    kx, kp = jax.random.split(key)
    x = jax.random.normal(kx, (B, L_IN, C_IN), dtype=jnp.float32)
    params = init_params(kp)

    fwd = jax.jit(lambda xx: detection_model_forward(xx, params))
    out = jax.block_until_ready(fwd(x))

    assert out.shape == (B, 7), out.shape
    ref = jax.block_until_ready(reference_forward(x, params))
    max_err = float(jnp.max(jnp.abs(out - ref)))
    # conv matmuls run in bf16 (f32 accumulation); compare against the f32
    # reference with a correspondingly relaxed tolerance.
    assert max_err < 3e-2, f"mismatch vs reference: {max_err}"

    print("KERNEL_OK")
</pallas_src>

<mosaic_0001>
module attributes {stable_mosaic.version = 11 : i64} {
  func.func @_fused_forward_kernel(%arg0: i32, %arg1: memref<8x152x8xf32, #tpu.memory_space<vmem>>, %arg2: memref<1168x256xbf16, #tpu.memory_space<vmem>>, %arg3: memref<352x128xf32, #tpu.memory_space<vmem>>, %arg4: memref<8x128xf32, #tpu.memory_space<vmem>>, %arg5: memref<1160x128xf32, #tpu.memory_space<vmem>>, %arg6: memref<296x128xf32, #tpu.memory_space<vmem>>, %arg7: memref<72x64xf32, #tpu.memory_space<vmem>>) attributes {dimension_semantics = [#tpu.dimension_semantics<parallel>], iteration_bounds = array<i64: 2>, scalar_prefetch = 0 : i64, scratch_operands = 3 : i64, tpu.core_type = #tpu.core_type<tc>, window_params = [{transform_indices = @transform_0, window_bounds = array<i64: 8, 152, 8>}, {pipeline_mode = #tpu.pipeline_mode<synchronous>, transform_indices = @transform_1, window_bounds = array<i64: 1168, 256>}, {pipeline_mode = #tpu.pipeline_mode<synchronous>, transform_indices = @transform_2, window_bounds = array<i64: 352, 128>}, {transform_indices = @transform_3, window_bounds = array<i64: 8, 128>}]} {
    %c0 = arith.constant 0 : index
    %c0_0 = arith.constant 0 : index
    %c0_1 = arith.constant 0 : index
    %0 = vector.load %arg1[%c0, %c0_0, %c0_1] : memref<8x152x8xf32, #tpu.memory_space<vmem>>, vector<8x144x8xf32>
    %1 = vector.shape_cast %0 : vector<8x144x8xf32> to vector<1152x8xf32>
    %2 = arith.truncf %1 : vector<1152x8xf32> to vector<1152x8xbf16>
    %c0_2 = arith.constant 0 : index
    %c1 = arith.constant 1 : index
    %c0_3 = arith.constant 0 : index
    %3 = vector.load %arg1[%c0_2, %c1, %c0_3] : memref<8x152x8xf32, #tpu.memory_space<vmem>>, vector<8x144x8xf32>
    %4 = vector.shape_cast %3 : vector<8x144x8xf32> to vector<1152x8xf32>
    %5 = arith.truncf %4 : vector<1152x8xf32> to vector<1152x8xbf16>
    %c0_4 = arith.constant 0 : index
    %c0_5 = arith.constant 0 : index
    %6 = vector.load %arg2[%c0_4, %c0_5] : memref<1168x256xbf16, #tpu.memory_space<vmem>>, vector<8x256xbf16>
    %cst = arith.constant dense<0.000000e+00> : vector<1152x256xf32>
    %7 = tpu.matmul %2, %6, %cst {dimension_numbers = #tpu.dot_dimension_numbers<[1], [0], [0], [1], [0, 0, 1, 1], [], []>} : vector<1152x8xbf16>, vector<8x256xbf16>, vector<1152x256xf32> -> vector<1152x256xf32>
    %c8 = arith.constant 8 : index
    %c0_6 = arith.constant 0 : index
    %8 = vector.load %arg2[%c8, %c0_6] : memref<1168x256xbf16, #tpu.memory_space<vmem>>, vector<8x256xbf16>
    %cst_7 = arith.constant dense<0.000000e+00> : vector<1152x256xf32>
    %9 = tpu.matmul %5, %8, %cst_7 {dimension_numbers = #tpu.dot_dimension_numbers<[1], [0], [0], [1], [0, 0, 1, 1], [], []>} : vector<1152x8xbf16>, vector<8x256xbf16>, vector<1152x256xf32> -> vector<1152x256xf32>
    %10 = arith.addf %7, %9 : vector<1152x256xf32>
    %c0_8 = arith.constant 0 : index
    %c0_9 = arith.constant 0 : index
    %11 = vector.load %arg3[%c0_8, %c0_9] : memref<352x128xf32, #tpu.memory_space<vmem>>, vector<1x128xf32>
    %c1_10 = arith.constant 1 : index
    %c0_11 = arith.constant 0 : index
    %12 = vector.load %arg3[%c1_10, %c0_11] : memref<352x128xf32, #tpu.memory_space<vmem>>, vector<1x128xf32>
    %13 = vector.extract_strided_slice %10 {offsets = [0, 0], sizes = [1152, 128], strides = [1, 1]} : vector<1152x256xf32> to vector<1152x128xf32>
    %14 = vector.broadcast %11 : vector<1x128xf32> to vector<1152x128xf32>
    %15 = arith.mulf %13, %14 : vector<1152x128xf32>
    %16 = vector.broadcast %12 : vector<1x128xf32> to vector<1152x128xf32>
    %17 = arith.addf %15, %16 : vector<1152x128xf32>
    %cst_12 = arith.constant 0.000000e+00 : f32
    %18 = vector.broadcast %cst_12 : f32 to vector<1152x128xf32>
    %19 = arith.maximumf %17, %18 : vector<1152x128xf32>
    %20 = vector.extract_strided_slice %10 {offsets = [0, 128], sizes = [1152, 128], strides = [1, 1]} : vector<1152x256xf32> to vector<1152x128xf32>
    %21 = vector.broadcast %11 : vector<1x128xf32> to vector<1152x128xf32>
    %22 = arith.mulf %20, %21 : vector<1152x128xf32>
    %23 = vector.broadcast %12 : vector<1x128xf32> to vector<1152x128xf32>
    %24 = arith.addf %22, %23 : vector<1152x128xf32>
    %cst_13 = arith.constant 0.000000e+00 : f32
    %25 = vector.broadcast %cst_13 : f32 to vector<1152x128xf32>
    %26 = arith.maximumf %24, %25 : vector<1152x128xf32>
    %27 = arith.maximumf %19, %26 : vector<1152x128xf32>
    %c0_14 = arith.constant 0 : index
    %c0_15 = arith.constant 0 : index
    %28 = vector.load %arg5[%c0_14, %c0_15] : memref<1160x128xf32, #tpu.memory_space<vmem>>, vector<1152x128xf32>
    tpu.vector_store %arg5[%c0_14, %c0_15], %27 {strides = array<i32>} : memref<1160x128xf32, #tpu.memory_space<vmem>>, vector<1152x128xf32>,
    %cst_16 = arith.constant 0.000000e+00 : f32
    %29 = vector.broadcast %cst_16 : f32 to vector<8x128xf32>
    %c1152 = arith.constant 1152 : index
    %c0_17 = arith.constant 0 : index
    %30 = vector.load %arg5[%c1152, %c0_17] : memref<1160x128xf32, #tpu.memory_space<vmem>>, vector<8x128xf32>
    tpu.vector_store %arg5[%c1152, %c0_17], %29 {strides = array<i32>} : memref<1160x128xf32, #tpu.memory_space<vmem>>, vector<8x128xf32>,
    %c2 = arith.constant 2 : index
    %c0_18 = arith.constant 0 : index
    %31 = vector.load %arg3[%c2, %c0_18] : memref<352x128xf32, #tpu.memory_space<vmem>>, vector<1x128xf32>
    %c3 = arith.constant 3 : index
    %c0_19 = arith.constant 0 : index
    %32 = vector.load %arg3[%c3, %c0_19] : memref<352x128xf32, #tpu.memory_space<vmem>>, vector<1x128xf32>
    %cst_20 = arith.constant 0.000000e+00 : f32
    %33 = vector.broadcast %cst_20 : f32 to vector<288x128xf32>
    %cst_21 = arith.constant 0.000000e+00 : f32
    %34 = vector.broadcast %cst_21 : f32 to vector<288x128xf32>
    %c16 = arith.constant 16 : index
    %c0_22 = arith.constant 0 : index
    %35 = vector.load %arg2[%c16, %c0_22] : memref<1168x256xbf16, #tpu.memory_space<vmem>>, vector<128x128xbf16>
    %c0_23 = arith.constant 0 : index
    %c0_24 = arith.constant 0 : index
    %36 = tpu.strided_load %arg5[%c0_23, %c0_24] {strides = array<i32: 4, 1>} : memref<1160x128xf32, #tpu.memory_space<vmem>>, vector<288x128xf32>
    %37 = arith.truncf %36 : vector<288x128xf32> to vector<288x128xbf16>
    %c2_25 = arith.constant 2 : index
    %c0_26 = arith.constant 0 : index
    %38 = tpu.strided_load %arg5[%c2_25, %c0_26] {strides = array<i32: 4, 1>} : memref<1160x128xf32, #tpu.memory_space<vmem>>, vector<288x128xf32>
    %39 = arith.truncf %38 : vector<288x128xf32> to vector<288x128xbf16>
    %cst_27 = arith.constant dense<0.000000e+00> : vector<288x128xf32>
    %40 = tpu.matmul %37, %35, %cst_27 {dimension_numbers = #tpu.dot_dimension_numbers<[1], [0], [0], [1], [0, 0, 1, 1], [], []>} : vector<288x128xbf16>, vector<128x128xbf16>, vector<288x128xf32> -> vector<288x128xf32>
    %41 = arith.addf %33, %40 : vector<288x128xf32>
    %cst_28 = arith.constant dense<0.000000e+00> : vector<288x128xf32>
    %42 = tpu.matmul %39, %35, %cst_28 {dimension_numbers = #tpu.dot_dimension_numbers<[1], [0], [0], [1], [0, 0, 1, 1], [], []>} : vector<288x128xbf16>, vector<128x128xbf16>, vector<288x128xf32> -> vector<288x128xf32>
    %43 = arith.addf %34, %42 : vector<288x128xf32>
    %c144 = arith.constant 144 : index
    %c0_29 = arith.constant 0 : index
    %44 = vector.load %arg2[%c144, %c0_29] : memref<1168x256xbf16, #tpu.memory_space<vmem>>, vector<128x128xbf16>
    %c1_30 = arith.constant 1 : index
    %c0_31 = arith.constant 0 : index
    %45 = tpu.strided_load %arg5[%c1_30, %c0_31] {strides = array<i32: 4, 1>} : memref<1160x128xf32, #tpu.memory_space<vmem>>, vector<288x128xf32>
    %46 = arith.truncf %45 : vector<288x128xf32> to vector<288x128xbf16>
    %c3_32 = arith.constant 3 : index
    %c0_33 = arith.constant 0 : index
    %47 = tpu.strided_load %arg5[%c3_32, %c0_33] {strides = array<i32: 4, 1>} : memref<1160x128xf32, #tpu.memory_space<vmem>>, vector<288x128xf32>
    %48 = arith.truncf %47 : vector<288x128xf32> to vector<288x128xbf16>
    %cst_34 = arith.constant dense<0.000000e+00> : vector<288x128xf32>
    %49 = tpu.matmul %46, %44, %cst_34 {dimension_numbers = #tpu.dot_dimension_numbers<[1], [0], [0], [1], [0, 0, 1, 1], [], []>} : vector<288x128xbf16>, vector<128x128xbf16>, vector<288x128xf32> -> vector<288x128xf32>
    %50 = arith.addf %41, %49 : vector<288x128xf32>
    %cst_35 = arith.constant dense<0.000000e+00> : vector<288x128xf32>
    %51 = tpu.matmul %48, %44, %cst_35 {dimension_numbers = #tpu.dot_dimension_numbers<[1], [0], [0], [1], [0, 0, 1, 1], [], []>} : vector<288x128xbf16>, vector<128x128xbf16>, vector<288x128xf32> -> vector<288x128xf32>
    %52 = arith.addf %43, %51 : vector<288x128xf32>
    %c272 = arith.constant 272 : index
    %c0_36 = arith.constant 0 : index
    %53 = vector.load %arg2[%c272, %c0_36] : memref<1168x256xbf16, #tpu.memory_space<vmem>>, vector<128x128xbf16>
    %c2_37 = arith.constant 2 : index
    %c0_38 = arith.constant 0 : index
    %54 = tpu.strided_load %arg5[%c2_37, %c0_38] {strides = array<i32: 4, 1>} : memref<1160x128xf32, #tpu.memory_space<vmem>>, vector<288x128xf32>
    %55 = arith.truncf %54 : vector<288x128xf32> to vector<288x128xbf16>
    %c4 = arith.constant 4 : index
    %c0_39 = arith.constant 0 : index
    %56 = tpu.strided_load %arg5[%c4, %c0_39] {strides = array<i32: 4, 1>} : memref<1160x128xf32, #tpu.memory_space<vmem>>, vector<288x128xf32>
    %57 = arith.truncf %56 : vector<288x128xf32> to vector<288x128xbf16>
    %cst_40 = arith.constant dense<0.000000e+00> : vector<288x128xf32>
    %58 = tpu.matmul %55, %53, %cst_40 {dimension_numbers = #tpu.dot_dimension_numbers<[1], [0], [0], [1], [0, 0, 1, 1], [], []>} : vector<288x128xbf16>, vector<128x128xbf16>, vector<288x128xf32> -> vector<288x128xf32>
    %59 = arith.addf %50, %58 : vector<288x128xf32>
    %cst_41 = arith.constant dense<0.000000e+00> : vector<288x128xf32>
    %60 = tpu.matmul %57, %53, %cst_41 {dimension_numbers = #tpu.dot_dimension_numbers<[1], [0], [0], [1], [0, 0, 1, 1], [], []>} : vector<288x128xbf16>, vector<128x128xbf16>, vector<288x128xf32> -> vector<288x128xf32>
    %61 = arith.addf %52, %60 : vector<288x128xf32>
    %c400 = arith.constant 400 : index
    %c0_42 = arith.constant 0 : index
    %62 = vector.load %arg2[%c400, %c0_42] : memref<1168x256xbf16, #tpu.memory_space<vmem>>, vector<128x128xbf16>
    %c3_43 = arith.constant 3 : index
    %c0_44 = arith.constant 0 : index
    %63 = tpu.strided_load %arg5[%c3_43, %c0_44] {strides = array<i32: 4, 1>} : memref<1160x128xf32, #tpu.memory_space<vmem>>, vector<288x128xf32>
    %64 = arith.truncf %63 : vector<288x128xf32> to vector<288x128xbf16>
    %c5 = arith.constant 5 : index
    %c0_45 = arith.constant 0 : index
    %65 = tpu.strided_load %arg5[%c5, %c0_45] {strides = array<i32: 4, 1>} : memref<1160x128xf32, #tpu.memory_space<vmem>>, vector<288x128xf32>
    %66 = arith.truncf %65 : vector<288x128xf32> to vector<288x128xbf16>
    %cst_46 = arith.constant dense<0.000000e+00> : vector<288x128xf32>
    %67 = tpu.matmul %64, %62, %cst_46 {dimension_numbers = #tpu.dot_dimension_numbers<[1], [0], [0], [1], [0, 0, 1, 1], [], []>} : vector<288x128xbf16>, vector<128x128xbf16>, vector<288x128xf32> -> vector<288x128xf32>
    %68 = arith.addf %59, %67 : vector<288x128xf32>
    %cst_47 = arith.constant dense<0.000000e+00> : vector<288x128xf32>
    %69 = tpu.matmul %66, %62, %cst_47 {dimension_numbers = #tpu.dot_dimension_numbers<[1], [0], [0], [1], [0, 0, 1, 1], [], []>} : vector<288x128xbf16>, vector<128x128xbf16>, vector<288x128xf32> -> vector<288x128xf32>
    %70 = arith.addf %61, %69 : vector<288x128xf32>
    %c528 = arith.constant 528 : index
    %c0_48 = arith.constant 0 : index
    %71 = vector.load %arg2[%c528, %c0_48] : memref<1168x256xbf16, #tpu.memory_space<vmem>>, vector<128x128xbf16>
    %c4_49 = arith.constant 4 : index
    %c0_50 = arith.constant 0 : index
    %72 = tpu.strided_load %arg5[%c4_49, %c0_50] {strides = array<i32: 4, 1>} : memref<1160x128xf32, #tpu.memory_space<vmem>>, vector<288x128xf32>
    %73 = arith.truncf %72 : vector<288x128xf32> to vector<288x128xbf16>
    %c6 = arith.constant 6 : index
    %c0_51 = arith.constant 0 : index
    %74 = tpu.strided_load %arg5[%c6, %c0_51] {strides = array<i32: 4, 1>} : memref<1160x128xf32, #tpu.memory_space<vmem>>, vector<288x128xf32>
    %75 = arith.truncf %74 : vector<288x128xf32> to vector<288x128xbf16>
    %cst_52 = arith.constant dense<0.000000e+00> : vector<288x128xf32>
    %76 = tpu.matmul %73, %71, %cst_52 {dimension_numbers = #tpu.dot_dimension_numbers<[1], [0], [0], [1], [0, 0, 1, 1], [], []>} : vector<288x128xbf16>, vector<128x128xbf16>, vector<288x128xf32> -> vector<288x128xf32>
    %77 = arith.addf %68, %76 : vector<288x128xf32>
    %cst_53 = arith.constant dense<0.000000e+00> : vector<288x128xf32>
    %78 = tpu.matmul %75, %71, %cst_53 {dimension_numbers = #tpu.dot_dimension_numbers<[1], [0], [0], [1], [0, 0, 1, 1], [], []>} : vector<288x128xbf16>, vector<128x128xbf16>, vector<288x128xf32> -> vector<288x128xf32>
    %79 = arith.addf %70, %78 : vector<288x128xf32>
    %80 = vector.broadcast %31 : vector<1x128xf32> to vector<288x128xf32>
    %81 = arith.mulf %77, %80 : vector<288x128xf32>
    %82 = vector.broadcast %32 : vector<1x128xf32> to vector<288x128xf32>
    %83 = arith.addf %81, %82 : vector<288x128xf32>
    %cst_54 = arith.constant 0.000000e+00 : f32
    %84 = vector.broadcast %cst_54 : f32 to vector<288x128xf32>
    %85 = arith.maximumf %83, %84 : vector<288x128xf32>
    %86 = vector.broadcast %31 : vector<1x128xf32> to vector<288x128xf32>
    %87 = arith.mulf %79, %86 : vector<288x128xf32>
    %88 = vector.broadcast %32 : vector<1x128xf32> to vector<288x128xf32>
    %89 = arith.addf %87, %88 : vector<288x128xf32>
    %cst_55 = arith.constant 0.000000e+00 : f32
    %90 = vector.broadcast %cst_55 : f32 to vector<288x128xf32>
    %91 = arith.maximumf %89, %90 : vector<288x128xf32>
    %92 = arith.maximumf %85, %91 : vector<288x128xf32>
    %c0_56 = arith.constant 0 : index
    %c0_57 = arith.constant 0 : index
    %93 = vector.load %arg6[%c0_56, %c0_57] : memref<296x128xf32, #tpu.memory_space<vmem>>, vector<288x128xf32>
    tpu.vector_store %arg6[%c0_56, %c0_57], %92 {strides = array<i32>} : memref<296x128xf32, #tpu.memory_space<vmem>>, vector<288x128xf32>,
    %cst_58 = arith.constant 0.000000e+00 : f32
    %94 = vector.broadcast %cst_58 : f32 to vector<8x128xf32>
    %c288 = arith.constant 288 : index
    %c0_59 = arith.constant 0 : index
    %95 = vector.load %arg6[%c288, %c0_59] : memref<296x128xf32, #tpu.memory_space<vmem>>, vector<8x128xf32>
    tpu.vector_store %arg6[%c288, %c0_59], %94 {strides = array<i32>} : memref<296x128xf32, #tpu.memory_space<vmem>>, vector<8x128xf32>,
    %c4_60 = arith.constant 4 : index
    %c0_61 = arith.constant 0 : index
    %96 = vector.load %arg3[%c4_60, %c0_61] : memref<352x128xf32, #tpu.memory_space<vmem>>, vector<1x64xf32>
    %c5_62 = arith.constant 5 : index
    %c0_63 = arith.constant 0 : index
    %97 = vector.load %arg3[%c5_62, %c0_63] : memref<352x128xf32, #tpu.memory_space<vmem>>, vector<1x64xf32>
    %cst_64 = arith.constant 0.000000e+00 : f32
    %98 = vector.broadcast %cst_64 : f32 to vector<72x64xf32>
    %cst_65 = arith.constant 0.000000e+00 : f32
    %99 = vector.broadcast %cst_65 : f32 to vector<72x64xf32>
    %c656 = arith.constant 656 : index
    %c0_66 = arith.constant 0 : index
    %100 = vector.load %arg2[%c656, %c0_66] : memref<1168x256xbf16, #tpu.memory_space<vmem>>, vector<128x64xbf16>
    %c0_67 = arith.constant 0 : index
    %c0_68 = arith.constant 0 : index
    %101 = tpu.strided_load %arg6[%c0_67, %c0_68] {strides = array<i32: 4, 1>} : memref<296x128xf32, #tpu.memory_space<vmem>>, vector<72x128xf32>
    %102 = arith.truncf %101 : vector<72x128xf32> to vector<72x128xbf16>
    %c2_69 = arith.constant 2 : index
    %c0_70 = arith.constant 0 : index
    %103 = tpu.strided_load %arg6[%c2_69, %c0_70] {strides = array<i32: 4, 1>} : memref<296x128xf32, #tpu.memory_space<vmem>>, vector<72x128xf32>
    %104 = arith.truncf %103 : vector<72x128xf32> to vector<72x128xbf16>
    %cst_71 = arith.constant dense<0.000000e+00> : vector<72x64xf32>
    %105 = tpu.matmul %102, %100, %cst_71 {dimension_numbers = #tpu.dot_dimension_numbers<[1], [0], [0], [1], [0, 0, 1, 1], [], []>} : vector<72x128xbf16>, vector<128x64xbf16>, vector<72x64xf32> -> vector<72x64xf32>
    %106 = arith.addf %98, %105 : vector<72x64xf32>
    %cst_72 = arith.constant dense<0.000000e+00> : vector<72x64xf32>
    %107 = tpu.matmul %104, %100, %cst_72 {dimension_numbers = #tpu.dot_dimension_numbers<[1], [0], [0], [1], [0, 0, 1, 1], [], []>} : vector<72x128xbf16>, vector<128x64xbf16>, vector<72x64xf32> -> vector<72x64xf32>
    %108 = arith.addf %99, %107 : vector<72x64xf32>
    %c784 = arith.constant 784 : index
    %c0_73 = arith.constant 0 : index
    %109 = vector.load %arg2[%c784, %c0_73] : memref<1168x256xbf16, #tpu.memory_space<vmem>>, vector<128x64xbf16>
    %c1_74 = arith.constant 1 : index
    %c0_75 = arith.constant 0 : index
    %110 = tpu.strided_load %arg6[%c1_74, %c0_75] {strides = array<i32: 4, 1>} : memref<296x128xf32, #tpu.memory_space<vmem>>, vector<72x128xf32>
    %111 = arith.truncf %110 : vector<72x128xf32> to vector<72x128xbf16>
    %c3_76 = arith.constant 3 : index
    %c0_77 = arith.constant 0 : index
    %112 = tpu.strided_load %arg6[%c3_76, %c0_77] {strides = array<i32: 4, 1>} : memref<296x128xf32, #tpu.memory_space<vmem>>, vector<72x128xf32>
    %113 = arith.truncf %112 : vector<72x128xf32> to vector<72x128xbf16>
    %cst_78 = arith.constant dense<0.000000e+00> : vector<72x64xf32>
    %114 = tpu.matmul %111, %109, %cst_78 {dimension_numbers = #tpu.dot_dimension_numbers<[1], [0], [0], [1], [0, 0, 1, 1], [], []>} : vector<72x128xbf16>, vector<128x64xbf16>, vector<72x64xf32> -> vector<72x64xf32>
    %115 = arith.addf %106, %114 : vector<72x64xf32>
    %cst_79 = arith.constant dense<0.000000e+00> : vector<72x64xf32>
    %116 = tpu.matmul %113, %109, %cst_79 {dimension_numbers = #tpu.dot_dimension_numbers<[1], [0], [0], [1], [0, 0, 1, 1], [], []>} : vector<72x128xbf16>, vector<128x64xbf16>, vector<72x64xf32> -> vector<72x64xf32>
    %117 = arith.addf %108, %116 : vector<72x64xf32>
    %c912 = arith.constant 912 : index
    %c0_80 = arith.constant 0 : index
    %118 = vector.load %arg2[%c912, %c0_80] : memref<1168x256xbf16, #tpu.memory_space<vmem>>, vector<128x64xbf16>
    %c2_81 = arith.constant 2 : index
    %c0_82 = arith.constant 0 : index
    %119 = tpu.strided_load %arg6[%c2_81, %c0_82] {strides = array<i32: 4, 1>} : memref<296x128xf32, #tpu.memory_space<vmem>>, vector<72x128xf32>
    %120 = arith.truncf %119 : vector<72x128xf32> to vector<72x128xbf16>
    %c4_83 = arith.constant 4 : index
    %c0_84 = arith.constant 0 : index
    %121 = tpu.strided_load %arg6[%c4_83, %c0_84] {strides = array<i32: 4, 1>} : memref<296x128xf32, #tpu.memory_space<vmem>>, vector<72x128xf32>
    %122 = arith.truncf %121 : vector<72x128xf32> to vector<72x128xbf16>
    %cst_85 = arith.constant dense<0.000000e+00> : vector<72x64xf32>
    %123 = tpu.matmul %120, %118, %cst_85 {dimension_numbers = #tpu.dot_dimension_numbers<[1], [0], [0], [1], [0, 0, 1, 1], [], []>} : vector<72x128xbf16>, vector<128x64xbf16>, vector<72x64xf32> -> vector<72x64xf32>
    %124 = arith.addf %115, %123 : vector<72x64xf32>
    %cst_86 = arith.constant dense<0.000000e+00> : vector<72x64xf32>
    %125 = tpu.matmul %122, %118, %cst_86 {dimension_numbers = #tpu.dot_dimension_numbers<[1], [0], [0], [1], [0, 0, 1, 1], [], []>} : vector<72x128xbf16>, vector<128x64xbf16>, vector<72x64xf32> -> vector<72x64xf32>
    %126 = arith.addf %117, %125 : vector<72x64xf32>
    %127 = vector.broadcast %96 : vector<1x64xf32> to vector<72x64xf32>
    %128 = arith.mulf %124, %127 : vector<72x64xf32>
    %129 = vector.broadcast %97 : vector<1x64xf32> to vector<72x64xf32>
    %130 = arith.addf %128, %129 : vector<72x64xf32>
    %cst_87 = arith.constant 0.000000e+00 : f32
    %131 = vector.broadcast %cst_87 : f32 to vector<72x64xf32>
    %132 = arith.maximumf %130, %131 : vector<72x64xf32>
    %133 = vector.broadcast %96 : vector<1x64xf32> to vector<72x64xf32>
    %134 = arith.mulf %126, %133 : vector<72x64xf32>
    %135 = vector.broadcast %97 : vector<1x64xf32> to vector<72x64xf32>
    %136 = arith.addf %134, %135 : vector<72x64xf32>
    %cst_88 = arith.constant 0.000000e+00 : f32
    %137 = vector.broadcast %cst_88 : f32 to vector<72x64xf32>
    %138 = arith.maximumf %136, %137 : vector<72x64xf32>
    %139 = arith.maximumf %132, %138 : vector<72x64xf32>
    %c0_89 = arith.constant 0 : index
    %c0_90 = arith.constant 0 : index
    %140 = vector.load %arg7[%c0_89, %c0_90] : memref<72x64xf32, #tpu.memory_space<vmem>>, vector<72x64xf32>
    tpu.vector_store %arg7[%c0_89, %c0_90], %139 {strides = array<i32>} : memref<72x64xf32, #tpu.memory_space<vmem>>, vector<72x64xf32>,
    %c6_91 = arith.constant 6 : index
    %c0_92 = arith.constant 0 : index
    %141 = vector.load %arg3[%c6_91, %c0_92] : memref<352x128xf32, #tpu.memory_space<vmem>>, vector<1x32xf32>
    %c7 = arith.constant 7 : index
    %c0_93 = arith.constant 0 : index
    %142 = vector.load %arg3[%c7, %c0_93] : memref<352x128xf32, #tpu.memory_space<vmem>>, vector<1x32xf32>
    %cst_94 = arith.constant 0.000000e+00 : f32
    %143 = vector.broadcast %cst_94 : f32 to vector<8x32xf32>
    %c1040 = arith.constant 1040 : index
    %c0_95 = arith.constant 0 : index
    %144 = vector.load %arg2[%c1040, %c0_95] : memref<1168x256xbf16, #tpu.memory_space<vmem>>, vector<64x32xbf16>
    %c0_96 = arith.constant 0 : index
    %c0_97 = arith.constant 0 : index
    %145 = tpu.strided_load %arg7[%c0_96, %c0_97] {strides = array<i32: 9, 1>} : memref<72x64xf32, #tpu.memory_space<vmem>>, vector<8x64xf32>
    %146 = arith.truncf %145 : vector<8x64xf32> to vector<8x64xbf16>
    %cst_98 = arith.constant dense<0.000000e+00> : vector<8x32xf32>
    %147 = tpu.matmul %146, %144, %cst_98 {dimension_numbers = #tpu.dot_dimension_numbers<[1], [0], [0], [1], [0, 0, 1, 1], [], []>} : vector<8x64xbf16>, vector<64x32xbf16>, vector<8x32xf32> -> vector<8x32xf32>
    %148 = arith.addf %143, %147 : vector<8x32xf32>
    %c1104 = arith.constant 1104 : index
    %c0_99 = arith.constant 0 : index
    %149 = vector.load %arg2[%c1104, %c0_99] : memref<1168x256xbf16, #tpu.memory_space<vmem>>, vector<64x32xbf16>
    %c1_100 = arith.constant 1 : index
    %c0_101 = arith.constant 0 : index
    %150 = tpu.strided_load %arg7[%c1_100, %c0_101] {strides = array<i32: 9, 1>} : memref<72x64xf32, #tpu.memory_space<vmem>>, vector<8x64xf32>
    %151 = arith.truncf %150 : vector<8x64xf32> to vector<8x64xbf16>
    %cst_102 = arith.constant dense<0.000000e+00> : vector<8x32xf32>
    %152 = tpu.matmul %151, %149, %cst_102 {dimension_numbers = #tpu.dot_dimension_numbers<[1], [0], [0], [1], [0, 0, 1, 1], [], []>} : vector<8x64xbf16>, vector<64x32xbf16>, vector<8x32xf32> -> vector<8x32xf32>
    %153 = arith.addf %148, %152 : vector<8x32xf32>
    %154 = vector.broadcast %141 : vector<1x32xf32> to vector<8x32xf32>
    %155 = arith.mulf %153, %154 : vector<8x32xf32>
    %156 = vector.broadcast %142 : vector<1x32xf32> to vector<8x32xf32>
    %157 = arith.addf %155, %156 : vector<8x32xf32>
    %cst_103 = arith.constant 0.000000e+00 : f32
    %158 = vector.broadcast %cst_103 : f32 to vector<8x32xf32>
    %159 = arith.maximumf %157, %158 : vector<8x32xf32>
    %cst_104 = arith.constant 0.000000e+00 : f32
    %160 = vector.broadcast %cst_104 : f32 to vector<8x32xf32>
    %c1040_105 = arith.constant 1040 : index
    %c0_106 = arith.constant 0 : index
    %161 = vector.load %arg2[%c1040_105, %c0_106] : memref<1168x256xbf16, #tpu.memory_space<vmem>>, vector<64x32xbf16>
    %c2_107 = arith.constant 2 : index
    %c0_108 = arith.constant 0 : index
    %162 = tpu.strided_load %arg7[%c2_107, %c0_108] {strides = array<i32: 9, 1>} : memref<72x64xf32, #tpu.memory_space<vmem>>, vector<8x64xf32>
    %163 = arith.truncf %162 : vector<8x64xf32> to vector<8x64xbf16>
    %cst_109 = arith.constant dense<0.000000e+00> : vector<8x32xf32>
    %164 = tpu.matmul %163, %161, %cst_109 {dimension_numbers = #tpu.dot_dimension_numbers<[1], [0], [0], [1], [0, 0, 1, 1], [], []>} : vector<8x64xbf16>, vector<64x32xbf16>, vector<8x32xf32> -> vector<8x32xf32>
    %165 = arith.addf %160, %164 : vector<8x32xf32>
    %c1104_110 = arith.constant 1104 : index
    %c0_111 = arith.constant 0 : index
    %166 = vector.load %arg2[%c1104_110, %c0_111] : memref<1168x256xbf16, #tpu.memory_space<vmem>>, vector<64x32xbf16>
    %c3_112 = arith.constant 3 : index
    %c0_113 = arith.constant 0 : index
    %167 = tpu.strided_load %arg7[%c3_112, %c0_113] {strides = array<i32: 9, 1>} : memref<72x64xf32, #tpu.memory_space<vmem>>, vector<8x64xf32>
    %168 = arith.truncf %167 : vector<8x64xf32> to vector<8x64xbf16>
    %cst_114 = arith.constant dense<0.000000e+00> : vector<8x32xf32>
    %169 = tpu.matmul %168, %166, %cst_114 {dimension_numbers = #tpu.dot_dimension_numbers<[1], [0], [0], [1], [0, 0, 1, 1], [], []>} : vector<8x64xbf16>, vector<64x32xbf16>, vector<8x32xf32> -> vector<8x32xf32>
    %170 = arith.addf %165, %169 : vector<8x32xf32>
    %171 = vector.broadcast %141 : vector<1x32xf32> to vector<8x32xf32>
    %172 = arith.mulf %170, %171 : vector<8x32xf32>
    %173 = vector.broadcast %142 : vector<1x32xf32> to vector<8x32xf32>
    %174 = arith.addf %172, %173 : vector<8x32xf32>
    %cst_115 = arith.constant 0.000000e+00 : f32
    %175 = vector.broadcast %cst_115 : f32 to vector<8x32xf32>
    %176 = arith.maximumf %174, %175 : vector<8x32xf32>
    %177 = arith.maximumf %159, %176 : vector<8x32xf32>
    %cst_116 = arith.constant 0.000000e+00 : f32
    %178 = vector.broadcast %cst_116 : f32 to vector<8x32xf32>
    %c1040_117 = arith.constant 1040 : index
    %c0_118 = arith.constant 0 : index
    %179 = vector.load %arg2[%c1040_117, %c0_118] : memref<1168x256xbf16, #tpu.memory_space<vmem>>, vector<64x32xbf16>
    %c4_119 = arith.constant 4 : index
    %c0_120 = arith.constant 0 : index
    %180 = tpu.strided_load %arg7[%c4_119, %c0_120] {strides = array<i32: 9, 1>} : memref<72x64xf32, #tpu.memory_space<vmem>>, vector<8x64xf32>
    %181 = arith.truncf %180 : vector<8x64xf32> to vector<8x64xbf16>
    %cst_121 = arith.constant dense<0.000000e+00> : vector<8x32xf32>
    %182 = tpu.matmul %181, %179, %cst_121 {dimension_numbers = #tpu.dot_dimension_numbers<[1], [0], [0], [1], [0, 0, 1, 1], [], []>} : vector<8x64xbf16>, vector<64x32xbf16>, vector<8x32xf32> -> vector<8x32xf32>
    %183 = arith.addf %178, %182 : vector<8x32xf32>
    %c1104_122 = arith.constant 1104 : index
    %c0_123 = arith.constant 0 : index
    %184 = vector.load %arg2[%c1104_122, %c0_123] : memref<1168x256xbf16, #tpu.memory_space<vmem>>, vector<64x32xbf16>
    %c5_124 = arith.constant 5 : index
    %c0_125 = arith.constant 0 : index
    %185 = tpu.strided_load %arg7[%c5_124, %c0_125] {strides = array<i32: 9, 1>} : memref<72x64xf32, #tpu.memory_space<vmem>>, vector<8x64xf32>
    %186 = arith.truncf %185 : vector<8x64xf32> to vector<8x64xbf16>
    %cst_126 = arith.constant dense<0.000000e+00> : vector<8x32xf32>
    %187 = tpu.matmul %186, %184, %cst_126 {dimension_numbers = #tpu.dot_dimension_numbers<[1], [0], [0], [1], [0, 0, 1, 1], [], []>} : vector<8x64xbf16>, vector<64x32xbf16>, vector<8x32xf32> -> vector<8x32xf32>
    %188 = arith.addf %183, %187 : vector<8x32xf32>
    %189 = vector.broadcast %141 : vector<1x32xf32> to vector<8x32xf32>
    %190 = arith.mulf %188, %189 : vector<8x32xf32>
    %191 = vector.broadcast %142 : vector<1x32xf32> to vector<8x32xf32>
    %192 = arith.addf %190, %191 : vector<8x32xf32>
    %cst_127 = arith.constant 0.000000e+00 : f32
    %193 = vector.broadcast %cst_127 : f32 to vector<8x32xf32>
    %194 = arith.maximumf %192, %193 : vector<8x32xf32>
    %cst_128 = arith.constant 0.000000e+00 : f32
    %195 = vector.broadcast %cst_128 : f32 to vector<8x32xf32>
    %c1040_129 = arith.constant 1040 : index
    %c0_130 = arith.constant 0 : index
    %196 = vector.load %arg2[%c1040_129, %c0_130] : memref<1168x256xbf16, #tpu.memory_space<vmem>>, vector<64x32xbf16>
    %c6_131 = arith.constant 6 : index
    %c0_132 = arith.constant 0 : index
    %197 = tpu.strided_load %arg7[%c6_131, %c0_132] {strides = array<i32: 9, 1>} : memref<72x64xf32, #tpu.memory_space<vmem>>, vector<8x64xf32>
    %198 = arith.truncf %197 : vector<8x64xf32> to vector<8x64xbf16>
    %cst_133 = arith.constant dense<0.000000e+00> : vector<8x32xf32>
    %199 = tpu.matmul %198, %196, %cst_133 {dimension_numbers = #tpu.dot_dimension_numbers<[1], [0], [0], [1], [0, 0, 1, 1], [], []>} : vector<8x64xbf16>, vector<64x32xbf16>, vector<8x32xf32> -> vector<8x32xf32>
    %200 = arith.addf %195, %199 : vector<8x32xf32>
    %c1104_134 = arith.constant 1104 : index
    %c0_135 = arith.constant 0 : index
    %201 = vector.load %arg2[%c1104_134, %c0_135] : memref<1168x256xbf16, #tpu.memory_space<vmem>>, vector<64x32xbf16>
    %c7_136 = arith.constant 7 : index
    %c0_137 = arith.constant 0 : index
    %202 = tpu.strided_load %arg7[%c7_136, %c0_137] {strides = array<i32: 9, 1>} : memref<72x64xf32, #tpu.memory_space<vmem>>, vector<8x64xf32>
    %203 = arith.truncf %202 : vector<8x64xf32> to vector<8x64xbf16>
    %cst_138 = arith.constant dense<0.000000e+00> : vector<8x32xf32>
    %204 = tpu.matmul %203, %201, %cst_138 {dimension_numbers = #tpu.dot_dimension_numbers<[1], [0], [0], [1], [0, 0, 1, 1], [], []>} : vector<8x64xbf16>, vector<64x32xbf16>, vector<8x32xf32> -> vector<8x32xf32>
    %205 = arith.addf %200, %204 : vector<8x32xf32>
    %206 = vector.broadcast %141 : vector<1x32xf32> to vector<8x32xf32>
    %207 = arith.mulf %205, %206 : vector<8x32xf32>
    %208 = vector.broadcast %142 : vector<1x32xf32> to vector<8x32xf32>
    %209 = arith.addf %207, %208 : vector<8x32xf32>
    %cst_139 = arith.constant 0.000000e+00 : f32
    %210 = vector.broadcast %cst_139 : f32 to vector<8x32xf32>
    %211 = arith.maximumf %209, %210 : vector<8x32xf32>
    %212 = arith.maximumf %194, %211 : vector<8x32xf32>
    %c8_140 = arith.constant 8 : index
    %c0_141 = arith.constant 0 : index
    %213 = vector.load %arg3[%c8_140, %c0_141] : memref<352x128xf32, #tpu.memory_space<vmem>>, vector<32x128xf32>
    %cst_142 = arith.constant dense<0.000000e+00> : vector<8x128xf32>
    %214 = tpu.matmul %177, %213, %cst_142 {dimension_numbers = #tpu.dot_dimension_numbers<[1], [0], [0], [1], [0, 0, 1, 1], [], []>} : vector<8x32xf32>, vector<32x128xf32>, vector<8x128xf32> -> vector<8x128xf32>
    %c40 = arith.constant 40 : index
    %c0_143 = arith.constant 0 : index
    %215 = vector.load %arg3[%c40, %c0_143] : memref<352x128xf32, #tpu.memory_space<vmem>>, vector<32x128xf32>
    %cst_144 = arith.constant dense<0.000000e+00> : vector<8x128xf32>
    %216 = tpu.matmul %212, %215, %cst_144 {dimension_numbers = #tpu.dot_dimension_numbers<[1], [0], [0], [1], [0, 0, 1, 1], [], []>} : vector<8x32xf32>, vector<32x128xf32>, vector<8x128xf32> -> vector<8x128xf32>
    %217 = arith.addf %214, %216 : vector<8x128xf32>
    %c72 = arith.constant 72 : index
    %c0_145 = arith.constant 0 : index
    %218 = vector.load %arg3[%c72, %c0_145] : memref<352x128xf32, #tpu.memory_space<vmem>>, vector<1x128xf32>
    %219 = vector.broadcast %218 : vector<1x128xf32> to vector<8x128xf32>
    %220 = arith.addf %217, %219 : vector<8x128xf32>
    %cst_146 = arith.constant 0.000000e+00 : f32
    %221 = vector.broadcast %cst_146 : f32 to vector<8x128xf32>
    %222 = arith.maximumf %220, %221 : vector<8x128xf32>
    %c80 = arith.constant 80 : index
    %c0_147 = arith.constant 0 : index
    %223 = vector.load %arg3[%c80, %c0_147] : memref<352x128xf32, #tpu.memory_space<vmem>>, vector<128x128xf32>
    %cst_148 = arith.constant dense<0.000000e+00> : vector<8x128xf32>
    %224 = tpu.matmul %222, %223, %cst_148 {dimension_numbers = #tpu.dot_dimension_numbers<[1], [0], [0], [1], [0, 0, 1, 1], [], []>} : vector<8x128xf32>, vector<128x128xf32>, vector<8x128xf32> -> vector<8x128xf32>
    %c208 = arith.constant 208 : index
    %c0_149 = arith.constant 0 : index
    %225 = vector.load %arg3[%c208, %c0_149] : memref<352x128xf32, #tpu.memory_space<vmem>>, vector<1x128xf32>
    %226 = vector.broadcast %225 : vector<1x128xf32> to vector<8x128xf32>
    %227 = arith.addf %224, %226 : vector<8x128xf32>
    %cst_150 = arith.constant 0.000000e+00 : f32
    %228 = vector.broadcast %cst_150 : f32 to vector<8x128xf32>
    %229 = arith.maximumf %227, %228 : vector<8x128xf32>
    %c216 = arith.constant 216 : index
    %c0_151 = arith.constant 0 : index
    %230 = vector.load %arg3[%c216, %c0_151] : memref<352x128xf32, #tpu.memory_space<vmem>>, vector<128x128xf32>
    %cst_152 = arith.constant dense<0.000000e+00> : vector<8x128xf32>
    %231 = tpu.matmul %229, %230, %cst_152 {dimension_numbers = #tpu.dot_dimension_numbers<[1], [0], [0], [1], [0, 0, 1, 1], [], []>} : vector<8x128xf32>, vector<128x128xf32>, vector<8x128xf32> -> vector<8x128xf32>
    %c344 = arith.constant 344 : index
    %c0_153 = arith.constant 0 : index
    %232 = vector.load %arg3[%c344, %c0_153] : memref<352x128xf32, #tpu.memory_space<vmem>>, vector<1x128xf32>
    %233 = vector.broadcast %232 : vector<1x128xf32> to vector<8x128xf32>
    %234 = arith.addf %231, %233 : vector<8x128xf32>
    %cst_154 = arith.constant 0.000000e+00 : f32
    %235 = vector.broadcast %cst_154 : f32 to vector<8x128xf32>
    %236 = arith.subf %235, %234 : vector<8x128xf32>
    %237 = math.exp %236 : vector<8x128xf32>
    %cst_155 = arith.constant 1.000000e+00 : f32
    %238 = vector.broadcast %cst_155 : f32 to vector<8x128xf32>
    %239 = arith.addf %238, %237 : vector<8x128xf32>
    %cst_156 = arith.constant 1.000000e+00 : f32
    %240 = vector.broadcast %cst_156 : f32 to vector<8x128xf32>
    %241 = arith.divf %240, %239 : vector<8x128xf32>
    %c0_157 = arith.constant 0 : index
    %c0_158 = arith.constant 0 : index
    %242 = vector.load %arg4[%c0_157, %c0_158] : memref<8x128xf32, #tpu.memory_space<vmem>>, vector<8x128xf32>
    tpu.vector_store %arg4[%c0_157, %c0_158], %241 {strides = array<i32>} : memref<8x128xf32, #tpu.memory_space<vmem>>, vector<8x128xf32>,
    return
  }
  func.func @transform_0(%arg0: i32) -> (i32, i32, i32) {
    %c0_i32 = arith.constant 0 : i32
    %c0_i32_0 = arith.constant 0 : i32
    %c0_i32_1 = arith.constant 0 : i32
    return %arg0, %c0_i32, %c0_i32_0 : i32, i32, i32
  }
  func.func @transform_1(%arg0: i32) -> (i32, i32) {
    %c0_i32 = arith.constant 0 : i32
    %c0_i32_0 = arith.constant 0 : i32
    %c0_i32_1 = arith.constant 0 : i32
    return %c0_i32, %c0_i32_0 : i32, i32
  }
  func.func @transform_2(%arg0: i32) -> (i32, i32) {
    %c0_i32 = arith.constant 0 : i32
    %c0_i32_0 = arith.constant 0 : i32
    %c0_i32_1 = arith.constant 0 : i32
    return %c0_i32, %c0_i32_0 : i32, i32
  }
  func.func @transform_3(%arg0: i32) -> (i32, i32) {
    %c0_i32 = arith.constant 0 : i32
    %c0_i32_0 = arith.constant 0 : i32
    return %arg0, %c0_i32 : i32, i32
  }
}

</mosaic_0001>

<bundles_post_ra>
// kernel: _lambda_.1
= control target key start
LH: loop header
LB: loop body
LE: loop exit
PB: predicated region body
PF: predicated region fallthrough
CT: control target
= control target key end

     0   :  { %s11143_s12 = smov 0   ;;  %s13812_s0 = inlined_call_operand.vmem [shape: f32[16,152,8], index: 0, kind: input, shape index: {}]   ;;  %s13813_s1 = inlined_call_operand.vmem [shape: bf16[1168,256], index: 1, kind: input, shape index: {}]   ;;  %s13814_s2 = inlined_call_operand.vmem [shape: f32[352,128], index: 2, kind: input, shape index: {}]   ;;  %s13815_s3 = inlined_call_operand.vmem [shape: f32[16,128], index: 3, kind: output, shape index: {}]  }
   0x1 LB: > { %s11149_s13 = sadd.s32 4294967295, %s11117_s12   ;;  %p8671_p0 = scmp.ge.s32.totalorder %s11117_s12, 1  ;;  %s11117_s12 = sphi %s11143_s12, %s13_s12  }
   0x2   : > { %p139_p1 = scmp.lt.s32.totalorder %s11117_s12, 3 }
   0x4   : > { %p140_p2 = pnand %p8671_p0, %p139_p1 }
   0x6   : > { %143 = sbr.rel (%p140_p2) target bundleno = 3728 (0xe90), region = 32 }
   0xd   : > { %v608_v0 = vld [vmem:[%s13813_s1 + $0x8] sm:$0xff]  ;;  %vm831_vm0 = vcmask 1043456   ;;  %v607_v1 = vld [vmem:[%s13813_s1] sm:$0xff]  ;;  %s8672_s18 = sshll.u32 %s11149_s13, 3  ;;  %v11119_v4 = vmov 0   ;;  %vm614_vm1 = vcmask 64512  }
   0xe   : > { %v8676_v2 = vcombine.high %v608_v0, %v608_v0  ;;  %v8675_v3 = vcombine.low %v608_v0, %v608_v0  ;;  %870 = vmatprep.mubr.bf16.mxu0 %v11119_v4  ;;  %v8751_v5 = vcombine.high %v607_v1, %v607_v1  ;;  %p164_p3 = scmp.lt.s32.totalorder %s8672_s18, 15  ;;  %v8750_v7 = vcombine.low %v607_v1, %v607_v1  ;;  %p170_p4 = scmp.lt.s32.totalorder %s11149_s13, 1 }
   0xf   : > { %vm11121_vm2 = vmmov 0   ;;  %vm7797_vm3 = vcmask 523264   ;;  %vm8270_vm4 = vcmask 261120  }
  0x10   : > { %8677 = vmatprep.subr.msk.bf16.mxu0 %vm831_vm0, %v8676_v2  ;;  %v833_v6 = vsel %vm831_vm0, %v8675_v3, 0  ;;  %s13823_s18 = smov (!%p164_p3, %s8672_s18), 15  ;;  %v1813_v11 = vsel %vm831_vm0, %v8750_v7, 0  ;;  %s13825_s13 = smov (!%p170_p4, %s11149_s13), 1 }
  0x11   : > { %839 = vmatpush1.bf16.msra.mxu0 %v833_v6  ;;  %s10998_s19 = smul.u32 152, %s13823_s18  ;;  %s8674_s30 = sshll.u32 %s13825_s13, 3 }
  0x12   : > { %8752 = vmatprep.subr.msk.bf16.mxu0 %vm831_vm0, %v8751_v5  ;;  %s173_s6 = scalar_lea.vmem %s13815_s3, %s8674_s30 }
  0x13   : > { %s11167_s22 = scalar_lea.vmem %s13812_s0, %s10998_s19 }
  0x14   : > { %v391_v8 = vld [vmem:[%s11167_s22 + $0x1] sm:$0xff]  ;;  %v392_v9 = vld [vmem:[%s11167_s22 + $0x9] sm:$0xff]  ;;  %v393_v12 = vld [vmem:[%s11167_s22 + $0x11] sm:$0xff] }
  0x15   : > { %v535_v10 = vpack.c.bf16 %v392_v9, %v391_v8  ;;  %v394_v13 = vld [vmem:[%s11167_s22 + $0x19] sm:$0xff]  ;;  %v395_v15 = vld [vmem:[%s11167_s22 + $0x21] sm:$0xff]  ;;  %v396_v16 = vld [vmem:[%s11167_s22 + $0x29] sm:$0xff] }
  0x16   : > { %v536_v14 = vpack.c.bf16 %v394_v13, %v393_v12  ;;  %v537_v17 = vpack.c.bf16 %v396_v16, %v395_v15  ;;  %v397_v18 = vld [vmem:[%s11167_s22 + $0x31] sm:$0xff]  ;;  %v398_v19 = vld [vmem:[%s11167_s22 + $0x39] sm:$0xff]  ;;  %v399_v21 = vld [vmem:[%s11167_s22 + $0x41] sm:$0xff] }
  0x17   : > { %8678 = vmatmul.mubr.msk.bf16.vlgmr.msra.gmra.mrb[0].mxu0 %vm614_vm1, %v535_v10  ;;  %v538_v20 = vpack.c.bf16 %v398_v19, %v397_v18  ;;  %v400_v22 = vld [vmem:[%s11167_s22 + $0x49] sm:$0xff]  ;;  %v401_v24 = vld [vmem:[%s11167_s22 + $0x51] sm:$0xff]  ;;  %v402_v25 = vld [vmem:[%s11167_s22 + $0x59] sm:$0xff] }
  0x18   : > { %1819 = vmatpush1.bf16.msra.mxu0 %v1813_v11  ;;  %880 = vmatprep.mubr.bf16.mxu0 %v11119_v4  ;;  %v539_v23 = vpack.c.bf16 %v400_v22, %v399_v21  ;;  %v540_v26 = vpack.c.bf16 %v402_v25, %v401_v24  ;;  %v403_v27 = vld [vmem:[%s11167_s22 + $0x61] sm:$0xff]  ;;  %v404_v28 = vld [vmem:[%s11167_s22 + $0x69] sm:$0xff]  ;;  %v405_v30 = vld [vmem:[%s11167_s22 + $0x71] sm:$0xff] }
  0x19   : > { %v541_v29 = vpack.c.bf16 %v404_v28, %v403_v27  ;;  %v406_v31 = vld [vmem:[%s11167_s22 + $0x79] sm:$0xff]  ;;  %v407_v33 = vld [vmem:[%s11167_s22 + $0x81] sm:$0xff]  ;;  %v408_v34 = vld [vmem:[%s11167_s22 + $0x89] sm:$0xff] }
  0x1a   : > { %v542_v32 = vpack.c.bf16 %v406_v31, %v405_v30  ;;  %v543_v35 = vpack.c.bf16 %v408_v34, %v407_v33  ;;  %v409_v36 = vld [vmem:[%s11167_s22 + $0x99] sm:$0xff]  ;;  %v410_v37 = vld [vmem:[%s11167_s22 + $0xa1] sm:$0xff]  ;;  %v411_v39 = vld [vmem:[%s11167_s22 + $0xa9] sm:$0xff] }
  0x1b   : > { %v544_v38 = vpack.c.bf16 %v410_v37, %v409_v36  ;;  %v412_v40 = vld [vmem:[%s11167_s22 + $0xb1] sm:$0xff]  ;;  %v413_v42 = vld [vmem:[%s11167_s22 + $0xb9] sm:$0xff]  ;;  %v414_v43 = vld [vmem:[%s11167_s22 + $0xc1] sm:$0xff] }
  0x1c   : > { %v545_v41 = vpack.c.bf16 %v412_v40, %v411_v39  ;;  %v546_v44 = vpack.c.bf16 %v414_v43, %v413_v42  ;;  %v415_v45 = vld [vmem:[%s11167_s22 + $0xc9] sm:$0xff]  ;;  %v416_v46 = vld [vmem:[%s11167_s22 + $0xd1] sm:$0xff]  ;;  %v417_v48 = vld [vmem:[%s11167_s22 + $0xd9] sm:$0xff] }
  0x1d   : > { %v547_v47 = vpack.c.bf16 %v416_v46, %v415_v45  ;;  %v418_v49 = vld [vmem:[%s11167_s22 + $0xe1] sm:$0xff]  ;;  %v419_v51 = vld [vmem:[%s11167_s22 + $0xe9] sm:$0xff]  ;;  %v420_v52 = vld [vmem:[%s11167_s22 + $0xf1] sm:$0xff] }
  0x1e   : > { %v548_v50 = vpack.c.bf16 %v418_v49, %v417_v48  ;;  %v549_v53 = vpack.c.bf16 %v420_v52, %v419_v51  ;;  %v421_v54 = vld [vmem:[%s11167_s22 + $0xf9] sm:$0xff]  ;;  %v422_v55 = vld [vmem:[%s11167_s22 + $0x101] sm:$0xff]  ;;  %v423_v57 = vld [vmem:[%s11167_s22 + $0x109] sm:$0xff] }
  0x1f   : > { %8679 = vmatmul.mubr.msk.bf16.gmra.mrb[4].mxu0 %vm614_vm1, %v536_v14  ;;  %v550_v56 = vpack.c.bf16 %v422_v55, %v421_v54  ;;  %v424_v58 = vld [vmem:[%s11167_s22 + $0x111] sm:$0xff]  ;;  %v425_v60 = vld [vmem:[%s11167_s22 + $0x119] sm:$0xff]  ;;  %v426_v61 = vld [vmem:[%s11167_s22 + $0x121] sm:$0xff] }
  0x20   : > { %890 = vmatprep.mubr.bf16.mxu0 %v11119_v4  ;;  %v551_v59 = vpack.c.bf16 %v424_v58, %v423_v57  ;;  %v552_v62 = vpack.c.bf16 %v426_v61, %v425_v60  ;;  %v427_v63 = vld [vmem:[%s11167_s22 + $0x131] sm:$0xff]  ;;  %v428_v0 = vld [vmem:[%s11167_s22 + $0x139] sm:$0xff]  ;;  %v429_v2 = vld [vmem:[%s11167_s22 + $0x141] sm:$0xff] }
  0x21   : > { %v553_v1 = vpack.c.bf16 %v428_v0, %v427_v63  ;;  %v430_v3 = vld [vmem:[%s11167_s22 + $0x149] sm:$0xff]  ;;  %v431_v6 = vld [vmem:[%s11167_s22 + $0x151] sm:$0xff]  ;;  %v432_v7 = vld [vmem:[%s11167_s22 + $0x159] sm:$0xff] }
  0x22   : > { %v554_v5 = vpack.c.bf16 %v430_v3, %v429_v2  ;;  %v555_v8 = vpack.c.bf16 %v432_v7, %v431_v6  ;;  %v433_v9 = vld [vmem:[%s11167_s22 + $0x161] sm:$0xff]  ;;  %v434_v10 = vld [vmem:[%s11167_s22 + $0x169] sm:$0xff]  ;;  %v435_v12 = vld [vmem:[%s11167_s22 + $0x171] sm:$0xff] }
  0x23   : > { %v556_v11 = vpack.c.bf16 %v434_v10, %v433_v9  ;;  %v436_v13 = vld [vmem:[%s11167_s22 + $0x179] sm:$0xff]  ;;  %v437_v15 = vld [vmem:[%s11167_s22 + $0x181] sm:$0xff]  ;;  %v438_v16 = vld [vmem:[%s11167_s22 + $0x189] sm:$0xff] }
  0x24   : > { %v557_v14 = vpack.c.bf16 %v436_v13, %v435_v12  ;;  %v439_v18 = vld [vmem:[%s11167_s22 + $0x191] sm:$0xff]  ;;  %v440_v19 = vld [vmem:[%s11167_s22 + $0x199] sm:$0xff]  ;;  %v441_v21 = vld [vmem:[%s11167_s22 + $0x1a1] sm:$0xff] }
  0x25   : > { %v442_v22 = vld [vmem:[%s11167_s22 + $0x1a9] sm:$0xff]  ;;  %v443_v24 = vld [vmem:[%s11167_s22 + $0x1b1] sm:$0xff]  ;;  %v444_v25 = vld [vmem:[%s11167_s22 + $0x1b9] sm:$0xff] }
  0x26   : > { %v445_v27 = vld [vmem:[%s11167_s22 + $0x1c9] sm:$0xff]  ;;  %v446_v28 = vld [vmem:[%s11167_s22 + $0x1d1] sm:$0xff]  ;;  %v447_v30 = vld [vmem:[%s11167_s22 + $0x1d9] sm:$0xff] }
  0x27   : > { %8680 = vmatmul.mubr.msk.bf16.gmra.mrb[8].mxu0 %vm614_vm1, %v537_v17  ;;  %v558_v17 = vpack.c.bf16 %v438_v16, %v437_v15  ;;  %v448_v31 = vld [vmem:[%s11167_s22 + $0x1e1] sm:$0xff]  ;;  %v449_v33 = vld [vmem:[%s11167_s22 + $0x1e9] sm:$0xff]  ;;  %v450_v34 = vld [vmem:[%s11167_s22 + $0x1f1] sm:$0xff] }
  0x28   : > { %900 = vmatprep.mubr.bf16.mxu0 %v11119_v4  ;;  %v451_v36 = vld [vmem:[%s11167_s22 + $0x1f9] sm:$0xff]  ;;  %v452_v37 = vld [vmem:[%s11167_s22 + $0x201] sm:$0xff]  ;;  %v453_v39 = vld [vmem:[%s11167_s22 + $0x209] sm:$0xff] }
  0x29   : > { %v454_v40 = vld [vmem:[%s11167_s22 + $0x211] sm:$0xff]  ;;  %v455_v42 = vld [vmem:[%s11167_s22 + $0x219] sm:$0xff]  ;;  %v456_v43 = vld [vmem:[%s11167_s22 + $0x221] sm:$0xff] }
  0x2a   : > { %v457_v45 = vld [vmem:[%s11167_s22 + $0x229] sm:$0xff]  ;;  %v458_v46 = vld [vmem:[%s11167_s22 + $0x231] sm:$0xff]  ;;  %v459_v48 = vld [vmem:[%s11167_s22 + $0x239] sm:$0xff] }
  0x2b   : > { %v460_v49 = vld [vmem:[%s11167_s22 + $0x241] sm:$0xff]  ;;  %v461_v51 = vld [vmem:[%s11167_s22 + $0x249] sm:$0xff]  ;;  %v462_v52 = vld [vmem:[%s11167_s22 + $0x251] sm:$0xff] }
  0x2c   : > { %v463_v54 = vld [vmem:[%s11167_s22 + $0x261] sm:$0xff]  ;;  %v464_v55 = vld [vmem:[%s11167_s22 + $0x269] sm:$0xff]  ;;  %v465_v57 = vld [vmem:[%s11167_s22 + $0x271] sm:$0xff] }
  0x2d   : > { %v466_v58 = vld [vmem:[%s11167_s22 + $0x279] sm:$0xff]  ;;  %v467_v60 = vld [vmem:[%s11167_s22 + $0x281] sm:$0xff]  ;;  %v468_v61 = vld [vmem:[%s11167_s22 + $0x289] sm:$0xff] }
  0x2e   : > { %v469_v63 = vld [vmem:[%s11167_s22 + $0x291] sm:$0xff]  ;;  %v470_v0 = vld [vmem:[%s11167_s22 + $0x299] sm:$0xff]  ;;  %v471_v2 = vld [vmem:[%s11167_s22 + $0x2a1] sm:$0xff] }
  0x2f   : > { %8681 = vmatmul.mubr.msk.bf16.gmra.mrb[12].mxu0 %vm614_vm1, %v538_v20  ;;  %v559_v20 = vpack.c.bf16 %v440_v19, %v439_v18  ;;  %v472_v3 = vld [vmem:[%s11167_s22 + $0x2a9] sm:$0xff]  ;;  %v473_v6 = vld [vmem:[%s11167_s22 + $0x2b1] sm:$0xff]  ;;  %v474_v7 = vld [vmem:[%s11167_s22 + $0x2b9] sm:$0xff] }
  0x30   : > { %910 = vmatprep.mubr.bf16.mxu0 %v11119_v4  ;;  %v475_v9 = vld [vmem:[%s11167_s22 + $0x2c1] sm:$0xff]  ;;  %v476_v10 = vld [vmem:[%s11167_s22 + $0x2c9] sm:$0xff]  ;;  %v477_v12 = vld [vmem:[%s11167_s22 + $0x2d1] sm:$0xff] }
  0x31   : > { %v478_v13 = vld [vmem:[%s11167_s22 + $0x2d9] sm:$0xff]  ;;  %v479_v15 = vld [vmem:[%s11167_s22 + $0x2e1] sm:$0xff]  ;;  %v480_v16 = vld [vmem:[%s11167_s22 + $0x2e9] sm:$0xff] }
  0x32   : > { %v481_v18 = vld [vmem:[%s11167_s22 + $0x2f9] sm:$0xff]  ;;  %v482_v19 = vld [vmem:[%s11167_s22 + $0x301] sm:$0xff] }
  0x37   : > { %8682 = vmatmul.mubr.msk.bf16.gmra.mrb[16].mxu0 %vm614_vm1, %v539_v23  ;;  %v560_v23 = vpack.c.bf16 %v442_v22, %v441_v21  ;;  %v483_v21 = vld [vmem:[%s11167_s22 + $0x309] sm:$0xff]  ;;  %v484_v22 = vld [vmem:[%s11167_s22 + $0x311] sm:$0xff] }
  0x38   : > { %920 = vmatprep.mubr.bf16.mxu0 %v11119_v4 }
  0x3f   : > { %8683 = vmatmul.mubr.msk.bf16.gmra.mrb[20].mxu0 %vm614_vm1, %v540_v26  ;;  %v561_v26 = vpack.c.bf16 %v444_v25, %v443_v24  ;;  %v485_v24 = vld [vmem:[%s11167_s22 + $0x319] sm:$0xff]  ;;  %v486_v25 = vld [vmem:[%s11167_s22 + $0x321] sm:$0xff] }
  0x40   : > { %930 = vmatprep.mubr.bf16.mxu0 %v11119_v4 }
  0x47   : > { %8684 = vmatmul.mubr.msk.bf16.gmra.mrb[24].mxu0 %vm614_vm1, %v541_v29  ;;  %v562_v29 = vpack.c.bf16 %v446_v28, %v445_v27  ;;  %v487_v27 = vld [vmem:[%s11167_s22 + $0x329] sm:$0xff]  ;;  %v488_v28 = vld [vmem:[%s11167_s22 + $0x331] sm:$0xff] }
  0x48   : > { %940 = vmatprep.mubr.bf16.mxu0 %v11119_v4 }
  0x4f   : > { %8685 = vmatmul.mubr.msk.bf16.gmra.mrb[28].mxu0 %vm614_vm1, %v542_v32  ;;  %v563_v32 = vpack.c.bf16 %v448_v31, %v447_v30  ;;  %v489_v30 = vld [vmem:[%s11167_s22 + $0x339] sm:$0xff]  ;;  %v490_v31 = vld [vmem:[%s11167_s22 + $0x341] sm:$0xff] }
  0x50   : > { %950 = vmatprep.mubr.bf16.mxu0 %v11119_v4 }
  0x57   : > { %8686 = vmatmul.mubr.msk.bf16.gmra.mrb[32].mxu0 %vm614_vm1, %v543_v35  ;;  %v564_v35 = vpack.c.bf16 %v450_v34, %v449_v33  ;;  %v491_v33 = vld [vmem:[%s11167_s22 + $0x349] sm:$0xff]  ;;  %v492_v34 = vld [vmem:[%s11167_s22 + $0x351] sm:$0xff] }
  0x58   : > { %960 = vmatprep.mubr.bf16.mxu0 %v11119_v4 }
  0x5f   : > { %8687 = vmatmul.mubr.msk.bf16.gmra.mrb[36].mxu0 %vm614_vm1, %v544_v38  ;;  %v565_v38 = vpack.c.bf16 %v452_v37, %v451_v36  ;;  %v493_v36 = vld [vmem:[%s11167_s22 + $0x359] sm:$0xff]  ;;  %v494_v37 = vld [vmem:[%s11167_s22 + $0x361] sm:$0xff] }
  0x60   : > { %970 = vmatprep.mubr.bf16.mxu0 %v11119_v4 }
  0x67   : > { %8688 = vmatmul.mubr.msk.bf16.gmra.mrb[40].mxu0 %vm614_vm1, %v545_v41  ;;  %v566_v41 = vpack.c.bf16 %v454_v40, %v453_v39  ;;  %v495_v39 = vld [vmem:[%s11167_s22 + $0x369] sm:$0xff]  ;;  %v496_v40 = vld [vmem:[%s11167_s22 + $0x371] sm:$0xff] }
  0x68   : > { %980 = vmatprep.mubr.bf16.mxu0 %v11119_v4 }
  0x6f   : > { %8689 = vmatmul.mubr.msk.bf16.gmra.mrb[44].mxu0 %vm614_vm1, %v546_v44  ;;  %v567_v44 = vpack.c.bf16 %v456_v43, %v455_v42  ;;  %v497_v42 = vld [vmem:[%s11167_s22 + $0x379] sm:$0xff]  ;;  %v498_v43 = vld [vmem:[%s11167_s22 + $0x381] sm:$0xff] }
  0x70   : > { %990 = vmatprep.mubr.bf16.mxu0 %v11119_v4 }
  0x77   : > { %8690 = vmatmul.mubr.msk.bf16.gmra.mrb[48].mxu0 %vm614_vm1, %v547_v47  ;;  %v568_v47 = vpack.c.bf16 %v458_v46, %v457_v45  ;;  %v499_v45 = vld [vmem:[%s11167_s22 + $0x391] sm:$0xff]  ;;  %v500_v46 = vld [vmem:[%s11167_s22 + $0x399] sm:$0xff] }
  0x78   : > { %1000 = vmatprep.mubr.bf16.mxu0 %v11119_v4 }
  0x7f   : > { %8691 = vmatmul.mubr.msk.bf16.gmra.mrb[52].mxu0 %vm614_vm1, %v548_v50  ;;  %v569_v50 = vpack.c.bf16 %v460_v49, %v459_v48  ;;  %v501_v48 = vld [vmem:[%s11167_s22 + $0x3a1] sm:$0xff]  ;;  %v502_v49 = vld [vmem:[%s11167_s22 + $0x3a9] sm:$0xff] }
  0x80   : > { %1010 = vmatprep.mubr.bf16.mxu0 %v11119_v4 }
  0x87   : > { %8692 = vmatmul.mubr.msk.bf16.gmra.mrb[56].mxu0 %vm614_vm1, %v549_v53  ;;  %v570_v53 = vpack.c.bf16 %v462_v52, %v461_v51  ;;  %v503_v51 = vld [vmem:[%s11167_s22 + $0x3b1] sm:$0xff]  ;;  %v504_v52 = vld [vmem:[%s11167_s22 + $0x3b9] sm:$0xff] }
  0x88   : > { %1020 = vmatprep.mubr.bf16.mxu0 %v11119_v4 }
  0x8f   : > { %8693 = vmatmul.mubr.msk.bf16.gmra.mrb[60].mxu0 %vm614_vm1, %v550_v56  ;;  %v571_v56 = vpack.c.bf16 %v464_v55, %v463_v54  ;;  %v505_v54 = vld [vmem:[%s11167_s22 + $0x3c1] sm:$0xff]  ;;  %v506_v55 = vld [vmem:[%s11167_s22 + $0x3c9] sm:$0xff] }
  0x90   : > { %1030 = vmatprep.mubr.bf16.mxu0 %v11119_v4 }
  0x97   : > { %8694 = vmatmul.mubr.msk.bf16.gmra.mrb[64].mxu0 %vm614_vm1, %v551_v59  ;;  %v572_v59 = vpack.c.bf16 %v466_v58, %v465_v57  ;;  %v507_v57 = vld [vmem:[%s11167_s22 + $0x3d1] sm:$0xff]  ;;  %v508_v58 = vld [vmem:[%s11167_s22 + $0x3d9] sm:$0xff] }
  0x98   : > { %1040 = vmatprep.mubr.bf16.mxu0 %v11119_v4 }
  0x9f   : > { %8695 = vmatmul.mubr.msk.bf16.gmra.mrb[68].mxu0 %vm614_vm1, %v552_v62  ;;  %v573_v62 = vpack.c.bf16 %v468_v61, %v467_v60  ;;  %v509_v60 = vld [vmem:[%s11167_s22 + $0x3e1] sm:$0xff]  ;;  %v510_v61 = vld [vmem:[%s11167_s22 + $0x3e9] sm:$0xff] }
  0xa0   : > { %1050 = vmatprep.mubr.bf16.mxu0 %v11119_v4 }
  0xa7   : > { %8696 = vmatmul.mubr.msk.bf16.gmra.mrb[72].mxu0 %vm614_vm1, %v553_v1  ;;  %v574_v1 = vpack.c.bf16 %v470_v0, %v469_v63  ;;  %v511_v63 = vld [vmem:[%s11167_s22 + $0x3f1] sm:$0xff]  ;;  %v512_v0 = vld [vmem:[%s11167_s22 + $0x3f9] sm:$0xff] }
  0xa8   : > { %1060 = vmatprep.mubr.bf16.mxu0 %v11119_v4 }
  0xaf   : > { %8697 = vmatmul.mubr.msk.bf16.gmra.mrb[76].mxu0 %vm614_vm1, %v554_v5  ;;  %v575_v5 = vpack.c.bf16 %v472_v3, %v471_v2  ;;  %v513_v2 = vld [vmem:[%s11167_s22 + $0x401] sm:$0xff]  ;;  %v514_v3 = vld [vmem:[%s11167_s22 + $0x409] sm:$0xff] }
  0xb0   : > { %1070 = vmatprep.mubr.bf16.mxu0 %v11119_v4 }
  0xb7   : > { %8698 = vmatmul.mubr.msk.bf16.gmra.mrb[80].mxu0 %vm614_vm1, %v555_v8  ;;  %v576_v8 = vpack.c.bf16 %v474_v7, %v473_v6  ;;  %v515_v6 = vld [vmem:[%s11167_s22 + $0x411] sm:$0xff]  ;;  %v516_v7 = vld [vmem:[%s11167_s22 + $0x419] sm:$0xff] }
  0xb8   : > { %1080 = vmatprep.mubr.bf16.mxu0 %v11119_v4 }
  0xbf   : > { %8699 = vmatmul.mubr.msk.bf16.gmra.mrb[84].mxu0 %vm614_vm1, %v556_v11  ;;  %v577_v11 = vpack.c.bf16 %v476_v10, %v475_v9  ;;  %v517_v9 = vld [vmem:[%s11167_s22 + $0x429] sm:$0xff]  ;;  %v518_v10 = vld [vmem:[%s11167_s22 + $0x431] sm:$0xff] }
  0xc0   : > { %1090 = vmatprep.mubr.bf16.mxu0 %v11119_v4 }
  0xc7   : > { %8700 = vmatmul.mubr.msk.bf16.gmra.mrb[88].mxu0 %vm614_vm1, %v557_v14  ;;  %v578_v14 = vpack.c.bf16 %v478_v13, %v477_v12  ;;  %v519_v12 = vld [vmem:[%s11167_s22 + $0x439] sm:$0xff]  ;;  %v520_v13 = vld [vmem:[%s11167_s22 + $0x441] sm:$0xff] }
  0xc8   : > { %1100 = vmatprep.mubr.bf16.mxu0 %v11119_v4 }
  0xcf   : > { %8701 = vmatmul.mubr.msk.bf16.gmra.mrb[92].mxu0 %vm614_vm1, %v558_v17  ;;  %v579_v17 = vpack.c.bf16 %v480_v16, %v479_v15  ;;  %v599_v16 = vpack.c.bf16 %v520_v13, %v519_v12  ;;  %v180_v12 = vld [vmem:[%s11167_s22 + $0x28] sm:$0xff] }
  0xd0   : > { %1110 = vmatprep.mubr.bf16.mxu0 %v11119_v4 }
  0xd7   : > { %8702 = vmatmul.mubr.msk.bf16.gmra.mrb[96].mxu0 %vm614_vm1, %v559_v20  ;;  %v580_v20 = vpack.c.bf16 %v482_v19, %v481_v18  ;;  %v521_v19 = vld [vmem:[%s11167_s22 + $0x449] sm:$0xff] }
  0xd8   : > { %1120 = vmatprep.mubr.bf16.mxu0 %v11119_v4 }
  0xdf   : > { %8703 = vmatmul.mubr.msk.bf16.gmra.mrb[100].mxu0 %vm614_vm1, %v560_v23  ;;  %v581_v23 = vpack.c.bf16 %v484_v22, %v483_v21 }
  0xe0   : > { %1130 = vmatprep.mubr.bf16.mxu0 %v11119_v4 }
  0xe7   : > { %8704 = vmatmul.mubr.msk.bf16.gmra.mrb[104].mxu0 %vm614_vm1, %v561_v26  ;;  %v582_v26 = vpack.c.bf16 %v486_v25, %v485_v24 }
  0xe8   : > { %1140 = vmatprep.mubr.bf16.mxu0 %v11119_v4 }
  0xef   : > { %8705 = vmatmul.mubr.msk.bf16.gmra.mrb[108].mxu0 %vm614_vm1, %v562_v29  ;;  %v583_v29 = vpack.c.bf16 %v488_v28, %v487_v27  ;;  %v524_v27 = vld [vmem:[%s11167_s22 + $0x461] sm:$0xff] }
  0xf0   : > { %1150 = vmatprep.mubr.bf16.mxu0 %v11119_v4 }
  0xf7   : > { %8706 = vmatmul.mubr.msk.bf16.gmra.mrb[112].mxu0 %vm614_vm1, %v563_v32  ;;  %v584_v32 = vpack.c.bf16 %v490_v31, %v489_v30 }
  0xf8   : > { %1160 = vmatprep.mubr.bf16.mxu0 %v11119_v4 }
  0xff   : > { %8707 = vmatmul.mubr.msk.bf16.gmra.mrb[116].mxu0 %vm614_vm1, %v564_v35  ;;  %v585_v35 = vpack.c.bf16 %v492_v34, %v491_v33  ;;  %v525_v33 = vld [vmem:[%s11167_s22 + $0x469] sm:$0xff]  ;;  %v526_v34 = vld [vmem:[%s11167_s22 + $0x471] sm:$0xff] }
 0x100   : > { %1170 = vmatprep.mubr.bf16.mxu0 %v11119_v4 }
 0x107   : > { %8708 = vmatmul.mubr.msk.bf16.gmra.mrb[120].mxu0 %vm614_vm1, %v565_v38  ;;  %v586_v38 = vpack.c.bf16 %v494_v37, %v493_v36  ;;  %v602_v37 = vpack.c.bf16 %v526_v34, %v525_v33  ;;  %v186_v33 = vld [vmem:[%s11167_s22 + $0x58] sm:$0xff] }
 0x108   : > { %1180 = vmatprep.mubr.bf16.mxu0 %v11119_v4 }
 0x10f   : > { %8709 = vmatmul.mubr.msk.bf16.gmra.mrb[124].mxu0 %vm614_vm1, %v566_v41  ;;  %v587_v41 = vpack.c.bf16 %v496_v40, %v495_v39  ;;  %v527_v40 = vld [vmem:[%s11167_s22 + $0x479] sm:$0xff] }
 0x110   : > { %1190 = vmatprep.mubr.bf16.mxu0 %v11119_v4 }
 0x117   : > { %8710 = vmatmul.mubr.msk.bf16.gmra.mrb[128].mxu0 %vm614_vm1, %v567_v44  ;;  %v588_v44 = vpack.c.bf16 %v498_v43, %v497_v42 }
 0x118   : > { %1200 = vmatprep.mubr.bf16.mxu0 %v11119_v4 }
 0x11f   : > { %8711 = vmatmul.mubr.msk.bf16.gmra.mrb[132].mxu0 %vm614_vm1, %v568_v47  ;;  %v589_v47 = vpack.c.bf16 %v500_v46, %v499_v45 }
 0x120   : > { %1210 = vmatprep.mubr.bf16.mxu0 %v11119_v4 }
 0x127   : > { %8712 = vmatmul.mubr.msk.bf16.gmra.mrb[136].mxu0 %vm614_vm1, %v569_v50  ;;  %v590_v50 = vpack.c.bf16 %v502_v49, %v501_v48  ;;  %v530_v48 = vld [vmem:[%s11167_s22 + $0x491] sm:$0xff] }
 0x128   : > { %1220 = vmatprep.mubr.bf16.mxu0 %v11119_v4 }
 0x12f   : > { %8713 = vmatmul.mubr.msk.bf16.gmra.mrb[140].mxu0 %vm614_vm1, %v570_v53  ;;  %v591_v53 = vpack.c.bf16 %v504_v52, %v503_v51 }
 0x130   : > { %1230 = vmatprep.mubr.bf16.mxu0 %v11119_v4 }
 0x137   : > { %8714 = vmatmul.mubr.msk.bf16.gmra.mrb[144].mxu0 %vm614_vm1, %v571_v56  ;;  %v592_v56 = vpack.c.bf16 %v506_v55, %v505_v54  ;;  %v531_v54 = vld [vmem:[%s11167_s22 + $0x499] sm:$0xff]  ;;  %v532_v55 = vld [vmem:[%s11167_s22 + $0x4a1] sm:$0xff] }
 0x138   : > { %1240 = vmatprep.mubr.bf16.mxu0 %v11119_v4 }
 0x13f   : > { %8715 = vmatmul.mubr.msk.bf16.gmra.mrb[148].mxu0 %vm614_vm1, %v572_v59  ;;  %v593_v59 = vpack.c.bf16 %v508_v58, %v507_v57  ;;  %v605_v58 = vpack.c.bf16 %v532_v55, %v531_v54  ;;  %v192_v54 = vld [vmem:[%s11167_s22 + $0x88] sm:$0xff] }
 0x140   : > { %1250 = vmatprep.mubr.bf16.mxu0 %v11119_v4 }
 0x147   : > { %8716 = vmatmul.mubr.msk.bf16.gmra.mrb[152].mxu0 %vm614_vm1, %v573_v62  ;;  %v594_v62 = vpack.c.bf16 %v510_v61, %v509_v60  ;;  %v533_v61 = vld [vmem:[%s11167_s22 + $0x4a9] sm:$0xff] }
 0x148   : > { %1260 = vmatprep.mubr.bf16.mxu0 %v11119_v4 }
 0x14f   : > { %8717 = vmatmul.mubr.msk.bf16.gmra.mrb[156].mxu0 %vm614_vm1, %v574_v1  ;;  %v595_v1 = vpack.c.bf16 %v512_v0, %v511_v63 }
 0x150   : > { %1270 = vmatprep.mubr.bf16.mxu0 %v11119_v4 }
 0x157   : > { %8718 = vmatmul.mubr.msk.bf16.gmra.mrb[160].mxu0 %vm614_vm1, %v575_v5  ;;  %v596_v5 = vpack.c.bf16 %v514_v3, %v513_v2 }
 0x158   : > { %1280 = vmatprep.mubr.bf16.mxu0 %v11119_v4 }
 0x15f   : > { %8719 = vmatmul.mubr.msk.bf16.gmra.mrb[164].mxu0 %vm614_vm1, %v576_v8  ;;  %v597_v8 = vpack.c.bf16 %v516_v7, %v515_v6  ;;  %v176_v6 = vld [vmem:[%s11167_s22 + $0x8] sm:$0xff] }
 0x160   : > { %1290 = vmatprep.mubr.bf16.mxu0 %v11119_v4 }
 0x167   : > { %8720 = vmatmul.mubr.msk.bf16.gmra.mrb[168].mxu0 %vm614_vm1, %v577_v11  ;;  %v598_v11 = vpack.c.bf16 %v518_v10, %v517_v9  ;;  %v178_v9 = vld [vmem:[%s11167_s22 + $0x18] sm:$0xff] }
 0x168   : > { %1300 = vmatprep.mubr.bf16.mxu0 %v11119_v4 }
 0x16f   : > { %8721 = vmatmul.mubr.msk.bf16.gmra.mrb[172].mxu0 %vm614_vm1, %v578_v14 }
 0x170   : > { %1310 = vmatprep.mubr.bf16.mxu0 %v11119_v4 }
 0x177   : > { %8722 = vmatmul.mubr.msk.bf16.gmra.mrb[176].mxu0 %vm614_vm1, %v579_v17 }
 0x178   : > { %1320 = vmatprep.mubr.bf16.mxu0 %v11119_v4 }
 0x17f   : > { %8723 = vmatmul.mubr.msk.bf16.gmra.mrb[180].mxu0 %vm614_vm1, %v580_v20  ;;  %v522_v20 = vld [vmem:[%s11167_s22 + $0x451] sm:$0xff] }
 0x180   : > { %1330 = vmatprep.mubr.bf16.mxu0 %v11119_v4 }
 0x187   : > { %8724 = vmatmul.mubr.msk.bf16.gmra.mrb[184].mxu0 %vm614_vm1, %v581_v23  ;;  %v600_v23 = vpack.c.bf16 %v522_v20, %v521_v19  ;;  %v182_v19 = vld [vmem:[%s11167_s22 + $0x38] sm:$0xff] }
 0x188   : > { %1340 = vmatprep.mubr.bf16.mxu0 %v11119_v4 }
 0x18f   : > { %8725 = vmatmul.mubr.msk.bf16.gmra.mrb[188].mxu0 %vm614_vm1, %v582_v26  ;;  %v523_v26 = vld [vmem:[%s11167_s22 + $0x459] sm:$0xff] }
 0x190   : > { %1350 = vmatprep.mubr.bf16.mxu0 %v11119_v4  ;;  %v601_v30 = vpack.c.bf16 %v524_v27, %v523_v26  ;;  %v184_v26 = vld [vmem:[%s11167_s22 + $0x48] sm:$0xff] }
 0x197   : > { %8726 = vmatmul.mubr.msk.bf16.gmra.mrb[192].mxu0 %vm614_vm1, %v583_v29 }
 0x198   : > { %1360 = vmatprep.mubr.bf16.mxu0 %v11119_v4 }
 0x19f   : > { %8727 = vmatmul.mubr.msk.bf16.gmra.mrb[196].mxu0 %vm614_vm1, %v584_v32 }
 0x1a0   : > { %1370 = vmatprep.mubr.bf16.mxu0 %v11119_v4 }
 0x1a7   : > { %8728 = vmatmul.mubr.msk.bf16.gmra.mrb[200].mxu0 %vm614_vm1, %v585_v35 }
 0x1a8   : > { %1380 = vmatprep.mubr.bf16.mxu0 %v11119_v4 }
 0x1af   : > { %8729 = vmatmul.mubr.msk.bf16.gmra.mrb[204].mxu0 %vm614_vm1, %v586_v38 }
 0x1b0   : > { %1390 = vmatprep.mubr.bf16.mxu0 %v11119_v4 }
 0x1b7   : > { %8730 = vmatmul.mubr.msk.bf16.gmra.mrb[208].mxu0 %vm614_vm1, %v587_v41  ;;  %v528_v41 = vld [vmem:[%s11167_s22 + $0x481] sm:$0xff] }
 0x1b8   : > { %1400 = vmatprep.mubr.bf16.mxu0 %v11119_v4 }
 0x1bf   : > { %8731 = vmatmul.mubr.msk.bf16.gmra.mrb[212].mxu0 %vm614_vm1, %v588_v44  ;;  %v603_v44 = vpack.c.bf16 %v528_v41, %v527_v40  ;;  %v188_v40 = vld [vmem:[%s11167_s22 + $0x68] sm:$0xff] }
 0x1c0   : > { %1410 = vmatprep.mubr.bf16.mxu0 %v11119_v4 }
 0x1c7   : > { %8732 = vmatmul.mubr.msk.bf16.gmra.mrb[216].mxu0 %vm614_vm1, %v589_v47  ;;  %v529_v47 = vld [vmem:[%s11167_s22 + $0x489] sm:$0xff] }
 0x1c8   : > { %1420 = vmatprep.mubr.bf16.mxu0 %v11119_v4  ;;  %v604_v51 = vpack.c.bf16 %v530_v48, %v529_v47  ;;  %v190_v47 = vld [vmem:[%s11167_s22 + $0x78] sm:$0xff] }
 0x1cf   : > { %8733 = vmatmul.mubr.msk.bf16.gmra.mrb[220].mxu0 %vm614_vm1, %v590_v50 }
 0x1d0   : > { %1430 = vmatprep.mubr.bf16.mxu0 %v11119_v4 }
 0x1d7   : > { %8734 = vmatmul.mubr.msk.bf16.gmra.mrb[224].mxu0 %vm614_vm1, %v591_v53 }
 0x1d8   : > { %1440 = vmatprep.mubr.bf16.mxu0 %v11119_v4 }
 0x1df   : > { %8735 = vmatmul.mubr.msk.bf16.gmra.mrb[228].mxu0 %vm614_vm1, %v592_v56 }
 0x1e0   : > { %1450 = vmatprep.mubr.bf16.mxu0 %v11119_v4 }
 0x1e7   : > { %8736 = vmatmul.mubr.msk.bf16.gmra.mrb[232].mxu0 %vm614_vm1, %v593_v59 }
 0x1e8   : > { %1460 = vmatprep.mubr.bf16.mxu0 %v11119_v4 }
 0x1ef   : > { %8737 = vmatmul.mubr.msk.bf16.gmra.mrb[236].mxu0 %vm614_vm1, %v594_v62  ;;  %v534_v62 = vld [vmem:[%s11167_s22 + $0x4b1] sm:$0xff] }
 0x1f0   : > { %1470 = vmatprep.mubr.bf16.mxu0 %v11119_v4 }
 0x1f7   : > { %8738 = vmatmul.mubr.msk.bf16.gmra.mrb[240].mxu0 %vm614_vm1, %v595_v1  ;;  %v606_v1 = vpack.c.bf16 %v534_v62, %v533_v61  ;;  %v194_v61 = vld [vmem:[%s11167_s22 + $0xa0] sm:$0xff] }
 0x1f8   : > { %1480 = vmatprep.mubr.bf16.mxu0 %v11119_v4 }
 0x1ff   : > { %8739 = vmatmul.mubr.msk.bf16.gmra.mrb[244].mxu0 %vm614_vm1, %v596_v5  ;;  %v175_v5 = vld [vmem:[%s11167_s22] sm:$0xff] }
 0x200   : > { %1490 = vmatprep.mubr.bf16.mxu0 %v11119_v4  ;;  %v319_v7 = vpack.c.bf16 %v176_v6, %v175_v5  ;;  %v196_v5 = vld [vmem:[%s11167_s22 + $0xb0] sm:$0xff] }
 0x207   : > { %8740 = vmatmul.mubr.msk.bf16.gmra.mrb[248].mxu0 %vm614_vm1, %v597_v8  ;;  %v177_v8 = vld [vmem:[%s11167_s22 + $0x10] sm:$0xff] }
 0x208   : > { %1500 = vmatprep.mubr.bf16.mxu0 %v11119_v4  ;;  %v320_v10 = vpack.c.bf16 %v178_v9, %v177_v8  ;;  %v198_v8 = vld [vmem:[%s11167_s22 + $0xc0] sm:$0xff] }
 0x20f   : > { %8741 = vmatmul.mubr.msk.bf16.gmra.mrb[252].mxu0 %vm614_vm1, %v598_v11  ;;  %v179_v11 = vld [vmem:[%s11167_s22 + $0x20] sm:$0xff] }
 0x210   : > { %1510 = vmatprep.mubr.bf16.mxu0 %v11119_v4  ;;  %v321_v13 = vpack.c.bf16 %v180_v12, %v179_v11  ;;  %v200_v11 = vld [vmem:[%s11167_s22 + $0xd0] sm:$0xff] }
 0x212   : > { %v11428_v14 = vpop.f32.mrb[148].mxu0 }
 0x213   : > { %v11430_v15 = vpop.f32.mrb[149].mxu0 }
 0x214   : > { %v11432_v17 = vpop.f32.mrb[150].mxu0 }
 0x215   : > { %v11434_v18 = vpop.f32.mrb[151].mxu0 }
 0x217   : > { %8742 = vmatmul.mubr.msk.bf16.gmra.mrb[148].mxu0 %vm614_vm1, %v599_v16  ;;  %v181_v16 = vld [vmem:[%s11167_s22 + $0x30] sm:$0xff] }
 0x218   : > { %1520 = vmatprep.mubr.bf16.mxu0 %v11119_v4  ;;  %v322_v20 = vpack.c.bf16 %v182_v19, %v181_v16  ;;  %v202_v16 = vld [vmem:[%s11167_s22 + $0xe0] sm:$0xff] }
 0x21a   : > { %v11440_v21 = vpop.f32.mrb[152].mxu0 }
 0x21b   : > { %v11442_v22 = vpop.f32.mrb[153].mxu0 }
 0x21c   : > { %v11444_v24 = vpop.f32.mrb[154].mxu0 }
 0x21d   : > { %v11446_v25 = vpop.f32.mrb[155].mxu0 }
 0x21f   : > { %8743 = vmatmul.mubr.msk.bf16.gmra.mrb[152].mxu0 %vm614_vm1, %v600_v23  ;;  %v183_v23 = vld [vmem:[%s11167_s22 + $0x40] sm:$0xff] }
 0x220   : > { %1530 = vmatprep.mubr.bf16.mxu0 %v11119_v4  ;;  %v323_v27 = vpack.c.bf16 %v184_v26, %v183_v23  ;;  %v204_v23 = vld [vmem:[%s11167_s22 + $0xf0] sm:$0xff] }
 0x222   : > { %v11452_v28 = vpop.f32.mrb[156].mxu0 }
 0x223   : > { %v11454_v29 = vpop.f32.mrb[157].mxu0 }
 0x224   : > { %v11456_v31 = vpop.f32.mrb[158].mxu0 }
 0x225   : > { %v11458_v32 = vpop.f32.mrb[159].mxu0 }
 0x227   : > { %8744 = vmatmul.mubr.msk.bf16.gmra.mrb[156].mxu0 %vm614_vm1, %v601_v30  ;;  %v185_v30 = vld [vmem:[%s11167_s22 + $0x50] sm:$0xff] }
 0x228   : > { %1540 = vmatprep.mubr.bf16.mxu0 %v11119_v4  ;;  %v324_v34 = vpack.c.bf16 %v186_v33, %v185_v30  ;;  %v206_v30 = vld [vmem:[%s11167_s22 + $0x100] sm:$0xff] }
 0x22a   : > { %v11464_v35 = vpop.f32.mrb[160].mxu0 }
 0x22b   : > { %v11466_v36 = vpop.f32.mrb[161].mxu0 }
 0x22c   : > { %v11468_v38 = vpop.f32.mrb[162].mxu0 }
 0x22d   : > { %v11470_v39 = vpop.f32.mrb[163].mxu0 }
 0x22f   : > { %8745 = vmatmul.mubr.msk.bf16.gmra.mrb[160].mxu0 %vm614_vm1, %v602_v37  ;;  %v187_v37 = vld [vmem:[%s11167_s22 + $0x60] sm:$0xff] }
 0x230   : > { %1550 = vmatprep.mubr.bf16.mxu0 %v11119_v4  ;;  %v325_v41 = vpack.c.bf16 %v188_v40, %v187_v37  ;;  %v208_v37 = vld [vmem:[%s11167_s22 + $0x110] sm:$0xff] }
 0x232   : > { %v11476_v42 = vpop.f32.mrb[164].mxu0 }
 0x233   : > { %v11478_v43 = vpop.f32.mrb[165].mxu0 }
 0x234   : > { %v11480_v45 = vpop.f32.mrb[166].mxu0 }
 0x235   : > { %v11482_v46 = vpop.f32.mrb[167].mxu0 }
 0x237   : > { %8746 = vmatmul.mubr.msk.bf16.gmra.mrb[164].mxu0 %vm614_vm1, %v603_v44  ;;  %v189_v44 = vld [vmem:[%s11167_s22 + $0x70] sm:$0xff] }
 0x238   : > { %1560 = vmatprep.mubr.bf16.mxu0 %v11119_v4  ;;  %v326_v48 = vpack.c.bf16 %v190_v47, %v189_v44  ;;  %v209_v44 = vld [vmem:[%s11167_s22 + $0x118] sm:$0xff]  ;;  %v210_v47 = vld [vmem:[%s11167_s22 + $0x120] sm:$0xff] }
 0x23a   : > { %v11488_v49 = vpop.f32.mrb[168].mxu0 }
 0x23b   : > { %v11490_v50 = vpop.f32.mrb[169].mxu0 }
 0x23c   : > { %v11492_v52 = vpop.f32.mrb[170].mxu0 }
 0x23d   : > { %v11494_v53 = vpop.f32.mrb[171].mxu0 }
 0x23f   : > { %8747 = vmatmul.mubr.msk.bf16.gmra.mrb[168].mxu0 %vm614_vm1, %v604_v51  ;;  %v191_v51 = vld [vmem:[%s11167_s22 + $0x80] sm:$0xff] }
 0x240   : > { %1570 = vmatprep.mubr.bf16.mxu0 %v11119_v4  ;;  %v327_v55 = vpack.c.bf16 %v192_v54, %v191_v51  ;;  %v336_v51 = vpack.c.bf16 %v210_v47, %v209_v44  ;;  %v11017_v54 = vld [vmem:[%s13813_s1 + $0xb0] ss:$8 sps:$4 sm:$0xff]   ;;  %v225_v44 = vld [vmem:[%s11167_s22 + $0x1a0] sm:$0xff]  ;;  %v226_v47 = vld [vmem:[%s11167_s22 + $0x1a8] sm:$0xff] }
 0x242   : > { %v11500_v56 = vpop.f32.mrb[172].mxu0 }
 0x243   : > { %v11502_v57 = vpop.f32.mrb[173].mxu0 }
 0x244   : > { %v11504_v59 = vpop.f32.mrb[174].mxu0 }
 0x245   : > { %v11506_v60 = vpop.f32.mrb[175].mxu0 }
 0x247   : > { %8748 = vmatmul.mubr.msk.bf16.gmra.mrb[172].mxu0 %vm614_vm1, %v605_v58  ;;  %v193_v58 = vld [vmem:[%s11167_s22 + $0x98] sm:$0xff] }
 0x248   : > { %1580 = vmatprep.mubr.bf16.mxu0 %v11119_v4  ;;  %v328_v62 = vpack.c.bf16 %v194_v61, %v193_v58  ;;  %v212_v58 = vld [vmem:[%s11167_s22 + $0x138] sm:$0xff]  ;;  %v11018_v61 = vld [vmem:[%s13813_s1 + $0xc0] ss:$8 sps:$4 sm:$0xff]  }
 0x24a   : > { %v11512_v63 = vpop.f32.mrb[176].mxu0 }
 0x24b   : > { %v11514_v0 = vpop.f32.mrb[177].mxu0 }
 0x24c   : > { %v11516_v2 = vpop.f32.mrb[178].mxu0 }
 0x24d   : > { %v11518_v3 = vpop.f32.mrb[179].mxu0 }
 0x24f   : > { %8749 = vmatmul.mubr.msk.bf16.gmra.mrb[176].mxu0 %vm614_vm1, %v606_v1  ;;  %v195_v1 = vld [vmem:[%s11167_s22 + $0xa8] sm:$0xff] }
 0x250   : > { %1850 = vmatprep.mubr.bf16.mxu0 %v11119_v4  ;;  %v329_v6 = vpack.c.bf16 %v196_v5, %v195_v1  ;;  %v11019_v1 = vld [vmem:[%s13813_s1 + $0xd0] ss:$8 sps:$4 sm:$0xff]   ;;  %v213_v5 = vld [vmem:[%s11167_s22 + $0x140] sm:$0xff] }
 0x257   : > { %8753 = vmatmul.mubr.msk.bf16.vlgmr.msra.gmra.mrb[0].mxu0 %vm614_vm1, %v319_v7  ;;  %v197_v7 = vld [vmem:[%s11167_s22 + $0xb8] sm:$0xff] }
 0x258   : > { %1860 = vmatprep.mubr.bf16.mxu0 %v11119_v4  ;;  %v330_v9 = vpack.c.bf16 %v198_v8, %v197_v7  ;;  %v11020_v7 = vld [vmem:[%s13813_s1 + $0xe0] ss:$8 sps:$4 sm:$0xff]  }
 0x25f   : > { %8754 = vmatmul.mubr.msk.bf16.gmra.mrb[4].mxu0 %vm614_vm1, %v320_v10  ;;  %v199_v10 = vld [vmem:[%s11167_s22 + $0xc8] sm:$0xff] }
 0x260   : > { %1870 = vmatprep.mubr.bf16.mxu0 %v11119_v4  ;;  %v331_v12 = vpack.c.bf16 %v200_v11, %v199_v10  ;;  %v215_v10 = vld [vmem:[%s11167_s22 + $0x150] sm:$0xff]  ;;  %v216_v11 = vld [vmem:[%s11167_s22 + $0x158] sm:$0xff] }
 0x267   : > { %8755 = vmatmul.mubr.msk.bf16.gmra.mrb[8].mxu0 %vm614_vm1, %v321_v13  ;;  %v201_v13 = vld [vmem:[%s11167_s22 + $0xd8] sm:$0xff] }
 0x268   : > { %1880 = vmatprep.mubr.bf16.mxu0 %v11119_v4  ;;  %v332_v19 = vpack.c.bf16 %v202_v16, %v201_v13  ;;  %v339_v13 = vpack.c.bf16 %v216_v11, %v215_v10  ;;  %v217_v16 = vld [vmem:[%s11167_s22 + $0x160] sm:$0xff] }
 0x26f   : > { %8756 = vmatmul.mubr.msk.bf16.gmra.mrb[12].mxu0 %vm614_vm1, %v322_v20  ;;  %v203_v20 = vld [vmem:[%s11167_s22 + $0xe8] sm:$0xff] }
 0x270   : > { %1890 = vmatprep.mubr.bf16.mxu0 %v11119_v4  ;;  %v333_v26 = vpack.c.bf16 %v204_v23, %v203_v20  ;;  %v219_v23 = vld [vmem:[%s11167_s22 + $0x170] sm:$0xff] }
 0x277   : > { %8757 = vmatmul.mubr.msk.bf16.gmra.mrb[16].mxu0 %vm614_vm1, %v323_v27  ;;  %v205_v27 = vld [vmem:[%s11167_s22 + $0xf8] sm:$0xff] }
 0x278   : > { %1900 = vmatprep.mubr.bf16.mxu0 %v11119_v4  ;;  %v334_v33 = vpack.c.bf16 %v206_v30, %v205_v27  ;;  %v221_v30 = vld [vmem:[%s11167_s22 + $0x180] sm:$0xff] }
 0x27f   : > { %8758 = vmatmul.mubr.msk.bf16.gmra.mrb[20].mxu0 %vm614_vm1, %v324_v34  ;;  %v207_v34 = vld [vmem:[%s11167_s22 + $0x108] sm:$0xff] }
 0x280   : > { %1910 = vmatprep.mubr.bf16.mxu0 %v11119_v4  ;;  %v335_v40 = vpack.c.bf16 %v208_v37, %v207_v34  ;;  %v223_v37 = vld [vmem:[%s11167_s22 + $0x190] sm:$0xff] }
 0x287   : > { %8759 = vmatmul.mubr.msk.bf16.gmra.mrb[24].mxu0 %vm614_vm1, %v325_v41  ;;  %v11015_v41 = vld [vmem:[%s13813_s1 + $0x90] ss:$8 sps:$4 sm:$0xff]  }
 0x288   : > { %1920 = vmatprep.mubr.bf16.mxu0 %v11119_v4  ;;  %9342 = vmatprep.subr.bf16.mxu1 %v11015_v41 }
 0x289   : > { %9343 = vmatpush3.bf16.msra.mxu1 %v11015_v41 }
 0x28f   : > { %8760 = vmatmul.mubr.msk.bf16.gmra.mrb[28].mxu0 %vm614_vm1, %v326_v48  ;;  %v11016_v48 = vld [vmem:[%s13813_s1 + $0xa0] ss:$8 sps:$4 sm:$0xff]  }
 0x290   : > { %1930 = vmatprep.mubr.bf16.mxu0 %v11119_v4  ;;  %9344 = vmatprep.subr.bf16.mxu1 %v11016_v48 }
 0x291   : > { %9345 = vmatpush3.bf16.msra.mxu1 %v11016_v48  ;;  %v344_v48 = vpack.c.bf16 %v226_v47, %v225_v44 }
 0x292   : > { %9346 = vmatprep.subr.bf16.mxu1 %v11017_v54 }
 0x295   : > { %9347 = vmatpush3.bf16.msra.mxu1 %v11017_v54  ;;  %v228_v54 = vld [vmem:[%s11167_s22 + $0x1b8] sm:$0xff] }
 0x296   : > { %9348 = vmatprep.subr.bf16.mxu1 %v11018_v61 }
 0x297   : > { %8761 = vmatmul.mubr.msk.bf16.gmra.mrb[32].mxu0 %vm614_vm1, %v327_v55  ;;  %v211_v55 = vld [vmem:[%s11167_s22 + $0x130] sm:$0xff] }
 0x298   : > { %1940 = vmatprep.mubr.bf16.mxu0 %v11119_v4 }
 0x299   : > { %9349 = vmatpush3.bf16.msra.mxu1 %v11018_v61  ;;  %v229_v61 = vld [vmem:[%s11167_s22 + $0x1c8] sm:$0xff] }
 0x29a   : > { %9350 = vmatprep.subr.bf16.mxu1 %v11019_v1 }
 0x29d   : > { %9351 = vmatpush3.bf16.msra.mxu1 %v11019_v1 }
 0x29e   : > { %9352 = vmatprep.subr.bf16.mxu1 %v11020_v7 }
 0x29f   : > { %8762 = vmatmul.mubr.msk.bf16.gmra.mrb[36].mxu0 %vm614_vm1, %v328_v62  ;;  %v337_v62 = vpack.c.bf16 %v212_v58, %v211_v55  ;;  %v11656_v58 = vld [vmem:[%s13814_s2] ss:$0 sm:$0xff] }
 0x2a0   : > { %1950 = vmatprep.mubr.bf16.mxu0 %v11119_v4 }
 0x2a1   : > { %9353 = vmatpush3.bf16.msra.mxu1 %v11020_v7 }
 0x2a7   : > { %8763 = vmatmul.mubr.msk.bf16.gmra.mrb[40].mxu0 %vm614_vm1, %v329_v6  ;;  %v214_v6 = vld [vmem:[%s11167_s22 + $0x148] sm:$0xff] }
 0x2a8   : > { %1960 = vmatprep.mubr.bf16.mxu0 %v11119_v4  ;;  %v338_v8 = vpack.c.bf16 %v214_v6, %v213_v5  ;;  %v11664_v5 = vld [vmem:[%s13814_s2 + $0x1] ss:$0 sm:$0xff] }
 0x2af   : > { %8764 = vmatmul.mubr.msk.bf16.gmra.mrb[44].mxu0 %vm614_vm1, %v330_v9  ;;  %v11021_v9 = vld [vmem:[%s13813_s1 + $0xf0] ss:$8 sps:$4 sm:$0xff]  }
 0x2b0   : > { %1970 = vmatprep.mubr.bf16.mxu0 %v11119_v4  ;;  %9354 = vmatprep.subr.bf16.mxu1 %v11021_v9 }
 0x2b1   : > { %9355 = vmatpush3.bf16.msra.mxu1 %v11021_v9 }
 0x2b7   : > { %8765 = vmatmul.mubr.msk.bf16.gmra.mrb[48].mxu0 %vm614_vm1, %v331_v12  ;;  %v11022_v12 = vld [vmem:[%s13813_s1 + $0x100] ss:$8 sps:$4 sm:$0xff]  }
 0x2b8   : > { %1980 = vmatprep.mubr.bf16.mxu0 %v11119_v4  ;;  %9356 = vmatprep.subr.bf16.mxu1 %v11022_v12 }
 0x2b9   : > { %9357 = vmatpush3.bf16.msra.mxu1 %v11022_v12 }
 0x2bf   : > { %8766 = vmatmul.mubr.msk.bf16.gmra.mrb[52].mxu0 %vm614_vm1, %v332_v19  ;;  %v218_v19 = vld [vmem:[%s11167_s22 + $0x168] sm:$0xff] }
 0x2c0   : > { %1990 = vmatprep.mubr.bf16.mxu0 %v11119_v4  ;;  %v340_v20 = vpack.c.bf16 %v218_v19, %v217_v16 }
 0x2c7   : > { %8767 = vmatmul.mubr.msk.bf16.gmra.mrb[56].mxu0 %vm614_vm1, %v333_v26  ;;  %v220_v26 = vld [vmem:[%s11167_s22 + $0x178] sm:$0xff] }
 0x2c8   : > { %2000 = vmatprep.mubr.bf16.mxu0 %v11119_v4  ;;  %v341_v27 = vpack.c.bf16 %v220_v26, %v219_v23 }
 0x2cf   : > { %8768 = vmatmul.mubr.msk.bf16.gmra.mrb[60].mxu0 %vm614_vm1, %v334_v33  ;;  %v222_v33 = vld [vmem:[%s11167_s22 + $0x188] sm:$0xff] }
 0x2d0   : > { %2010 = vmatprep.mubr.bf16.mxu0 %v11119_v4  ;;  %v342_v34 = vpack.c.bf16 %v222_v33, %v221_v30  ;;  %v231_v30 = vld [vmem:[%s11167_s22 + $0x1d8] sm:$0xff]  ;;  %v232_v33 = vld [vmem:[%s11167_s22 + $0x1e0] sm:$0xff] }
 0x2d7   : > { %8769 = vmatmul.mubr.msk.bf16.gmra.mrb[64].mxu0 %vm614_vm1, %v335_v40  ;;  %v224_v40 = vld [vmem:[%s11167_s22 + $0x198] sm:$0xff] }
 0x2d8   : > { %2020 = vmatprep.mubr.bf16.mxu0 %v11119_v4  ;;  %v343_v41 = vpack.c.bf16 %v224_v40, %v223_v37 }
 0x2df   : > { %8770 = vmatmul.mubr.msk.bf16.gmra.mrb[68].mxu0 %vm614_vm1, %v336_v51  ;;  %v227_v51 = vld [vmem:[%s11167_s22 + $0x1b0] sm:$0xff] }
 0x2e0   : > { %2030 = vmatprep.mubr.bf16.mxu0 %v11119_v4  ;;  %v345_v55 = vpack.c.bf16 %v228_v54, %v227_v51 }
 0x2e7   : > { %8771 = vmatmul.mubr.msk.bf16.gmra.mrb[72].mxu0 %vm614_vm1, %v337_v62  ;;  %v230_v62 = vld [vmem:[%s11167_s22 + $0x1d0] sm:$0xff] }
 0x2e8   : > { %2040 = vmatprep.mubr.bf16.mxu0 %v11119_v4 }
 0x2ef   : > { %8772 = vmatmul.mubr.msk.bf16.gmra.mrb[76].mxu0 %vm614_vm1, %v338_v8  ;;  %v346_v8 = vpack.c.bf16 %v230_v62, %v229_v61 }
 0x2f0   : > { %2050 = vmatprep.mubr.bf16.mxu0 %v11119_v4 }
 0x2f7   : > { %8773 = vmatmul.mubr.msk.bf16.gmra.mrb[80].mxu0 %vm614_vm1, %v339_v13 }
 0x2f8   : > { %2060 = vmatprep.mubr.bf16.mxu0 %v11119_v4 }
 0x2ff   : > { %8774 = vmatmul.mubr.msk.bf16.gmra.mrb[84].mxu0 %vm614_vm1, %v340_v20 }
 0x300   : > { %2070 = vmatprep.mubr.bf16.mxu0 %v11119_v4 }
 0x307   : > { %8775 = vmatmul.mubr.msk.bf16.gmra.mrb[88].mxu0 %vm614_vm1, %v341_v27 }
 0x308   : > { %2080 = vmatprep.mubr.bf16.mxu0 %v11119_v4 }
 0x30f   : > { %8776 = vmatmul.mubr.msk.bf16.gmra.mrb[92].mxu0 %vm614_vm1, %v342_v34 }
 0x310   : > { %2090 = vmatprep.mubr.bf16.mxu0 %v11119_v4 }
 0x317   : > { %8777 = vmatmul.mubr.msk.bf16.gmra.mrb[96].mxu0 %vm614_vm1, %v343_v41 }
 0x318   : > { %2100 = vmatprep.mubr.bf16.mxu0 %v11119_v4 }
 0x31f   : > { %8778 = vmatmul.mubr.msk.bf16.gmra.mrb[100].mxu0 %vm614_vm1, %v344_v48  ;;  %v347_v48 = vpack.c.bf16 %v232_v33, %v231_v30 }
 0x320   : > { %2110 = vmatprep.mubr.bf16.mxu0 %v11119_v4 }
 0x327   : > { %8779 = vmatmul.mubr.msk.bf16.gmra.mrb[104].mxu0 %vm614_vm1, %v345_v55 }
 0x328   : > { %2120 = vmatprep.mubr.bf16.mxu0 %v11119_v4 }
 0x32a   : > { %v1852_v1 = vpop.f32.mrb[0].mxu0 }
 0x32b   : > { %v2577_v6 = vmul.f32 %v11656_v58, %v1852_v1  ;;  %v1854_v7 = vpop.f32.mrb[1].mxu0 }
 0x32c   : > { %v3013_v9 = vmul.f32 %v11656_v58, %v1854_v7  ;;  %v1856_v10 = vpop.f32.mrb[2].mxu0 }
 0x32d   : > { %v2725_v11 = vadd.f32 %v11664_v5, %v2577_v6  ;;  %v2578_v12 = vmul.f32 %v11656_v58, %v1856_v10  ;;  %v1858_v13 = vpop.f32.mrb[3].mxu0 }
 0x32e   : > { %v3157_v16 = vadd.f32 %v11664_v5, %v3013_v9  ;;  %v3014_v19 = vmul.f32 %v11656_v58, %v1858_v13  ;;  %v234_v13 = vld [vmem:[%s11167_s22 + $0x1f0] sm:$0xff] }
 0x32f   : > { %v2869_v20 = vmax.f32 %v2725_v11, 0.0  ;;  %v2726_v23 = vadd.f32 %v11664_v5, %v2578_v12  ;;  %8780 = vmatmul.mubr.msk.bf16.gmra.mrb[108].mxu0 %vm614_vm1, %v346_v8  ;;  %v233_v12 = vld [vmem:[%s11167_s22 + $0x1e8] sm:$0xff] }
 0x330   : > { %v3301_v26 = vmax.f32 %v3157_v16, 0.0  ;;  %v3158_v27 = vadd.f32 %v11664_v5, %v3014_v19  ;;  %2130 = vmatprep.mubr.bf16.mxu0 %v11119_v4  ;;  %v348_v30 = vpack.c.bf16 %v234_v13, %v233_v12 }
 0x331   : > { %v2870_v34 = vmax.f32 %v2726_v23, 0.0 }
 0x332   : > { %v3445_v37 = vmax.f32 %v2869_v20, %v3301_v26  ;;  %v3302_v40 = vmax.f32 %v3158_v27, 0.0  ;;  %v1862_v41 = vpop.f32.mrb[4].mxu0 }
 0x333   : > { %v2579_v44 = vmul.f32 %v11656_v58, %v1862_v41  ;;  %v1864_v47 = vpop.f32.mrb[5].mxu0 }
 0x334   : > { %3589 = vst [vmem:[#allocation2] sm:$0xff] %v3445_v37  ;;  %v3446_v51 = vmax.f32 %v2870_v34, %v3302_v40  ;;  %v3015_v54 = vmul.f32 %v11656_v58, %v1864_v47  ;;  %v1866_v55 = vpop.f32.mrb[6].mxu0 }
 0x335   : > { %v2727_v61 = vadd.f32 %v11664_v5, %v2579_v44  ;;  %v2580_v62 = vmul.f32 %v11656_v58, %v1866_v55  ;;  %v1868_v1 = vpop.f32.mrb[7].mxu0 }
 0x336   : > { %3590 = vst [vmem:[#allocation2 + $0x8] sm:$0xff] %v3446_v51  ;;  %v3159_v6 = vadd.f32 %v11664_v5, %v3015_v54  ;;  %v3016_v7 = vmul.f32 %v11656_v58, %v1868_v1  ;;  %v236_v1 = vld [vmem:[%s11167_s22 + $0x200] sm:$0xff] }
 0x337   : > { %v2871_v8 = vmax.f32 %v2727_v61, 0.0  ;;  %v2728_v9 = vadd.f32 %v11664_v5, %v2580_v62  ;;  %8781 = vmatmul.mubr.msk.bf16.gmra.mrb[112].mxu0 %vm614_vm1, %v347_v48  ;;  %v235_v62 = vld [vmem:[%s11167_s22 + $0x1f8] sm:$0xff] }
 0x338   : > { %v3303_v10 = vmax.f32 %v3159_v6, 0.0  ;;  %v3160_v11 = vadd.f32 %v11664_v5, %v3016_v7  ;;  %2140 = vmatprep.mubr.bf16.mxu0 %v11119_v4  ;;  %v349_v12 = vpack.c.bf16 %v236_v1, %v235_v62 }
 0x339   : > { %v2872_v16 = vmax.f32 %v2728_v9, 0.0 }
 0x33a   : > { %v3447_v19 = vmax.f32 %v2871_v8, %v3303_v10  ;;  %v3304_v20 = vmax.f32 %v3160_v11, 0.0  ;;  %v1872_v23 = vpop.f32.mrb[8].mxu0 }
 0x33b   : > { %v2581_v26 = vmul.f32 %v11656_v58, %v1872_v23  ;;  %v1874_v27 = vpop.f32.mrb[9].mxu0 }
 0x33c   : > { %3591 = vst [vmem:[#allocation2 + $0x10] sm:$0xff] %v3447_v19  ;;  %v3448_v33 = vmax.f32 %v2872_v16, %v3304_v20  ;;  %v3017_v34 = vmul.f32 %v11656_v58, %v1874_v27  ;;  %v1876_v37 = vpop.f32.mrb[10].mxu0 }
 0x33d   : > { %v2729_v40 = vadd.f32 %v11664_v5, %v2581_v26  ;;  %v2582_v41 = vmul.f32 %v11656_v58, %v1876_v37  ;;  %v1878_v44 = vpop.f32.mrb[11].mxu0 }
 0x33e   : > { %3592 = vst [vmem:[#allocation2 + $0x18] sm:$0xff] %v3448_v33  ;;  %v3161_v47 = vadd.f32 %v11664_v5, %v3017_v34  ;;  %v3018_v48 = vmul.f32 %v11656_v58, %v1878_v44  ;;  %v238_v44 = vld [vmem:[%s11167_s22 + $0x210] sm:$0xff] }
 0x33f   : > { %v2873_v51 = vmax.f32 %v2729_v40, 0.0  ;;  %v2730_v54 = vadd.f32 %v11664_v5, %v2582_v41  ;;  %8782 = vmatmul.mubr.msk.bf16.gmra.mrb[116].mxu0 %vm614_vm1, %v348_v30  ;;  %v237_v41 = vld [vmem:[%s11167_s22 + $0x208] sm:$0xff] }
 0x340   : > { %v3305_v55 = vmax.f32 %v3161_v47, 0.0  ;;  %v3162_v61 = vadd.f32 %v11664_v5, %v3018_v48  ;;  %2150 = vmatprep.mubr.bf16.mxu0 %v11119_v4  ;;  %v350_v62 = vpack.c.bf16 %v238_v44, %v237_v41 }
 0x341   : > { %v2874_v6 = vmax.f32 %v2730_v54, 0.0 }
 0x342   : > { %v3449_v7 = vmax.f32 %v2873_v51, %v3305_v55  ;;  %v3306_v8 = vmax.f32 %v3162_v61, 0.0  ;;  %v1882_v9 = vpop.f32.mrb[12].mxu0 }
 0x343   : > { %v2583_v10 = vmul.f32 %v11656_v58, %v1882_v9  ;;  %v1884_v11 = vpop.f32.mrb[13].mxu0 }
 0x344   : > { %3593 = vst [vmem:[#allocation2 + $0x20] sm:$0xff] %v3449_v7  ;;  %v3450_v13 = vmax.f32 %v2874_v6, %v3306_v8  ;;  %v3019_v16 = vmul.f32 %v11656_v58, %v1884_v11  ;;  %v1886_v19 = vpop.f32.mrb[14].mxu0 }
 0x345   : > { %v2731_v20 = vadd.f32 %v11664_v5, %v2583_v10  ;;  %v2584_v23 = vmul.f32 %v11656_v58, %v1886_v19  ;;  %v1888_v26 = vpop.f32.mrb[15].mxu0 }
 0x346   : > { %3594 = vst [vmem:[#allocation2 + $0x28] sm:$0xff] %v3450_v13  ;;  %v3163_v27 = vadd.f32 %v11664_v5, %v3019_v16  ;;  %v3020_v30 = vmul.f32 %v11656_v58, %v1888_v26  ;;  %v240_v26 = vld [vmem:[%s11167_s22 + $0x220] sm:$0xff] }
 0x347   : > { %v2875_v33 = vmax.f32 %v2731_v20, 0.0  ;;  %v2732_v34 = vadd.f32 %v11664_v5, %v2584_v23  ;;  %8783 = vmatmul.mubr.msk.bf16.gmra.mrb[120].mxu0 %vm614_vm1, %v349_v12  ;;  %v239_v23 = vld [vmem:[%s11167_s22 + $0x218] sm:$0xff] }
 0x348   : > { %v3307_v37 = vmax.f32 %v3163_v27, 0.0  ;;  %v3164_v40 = vadd.f32 %v11664_v5, %v3020_v30  ;;  %2160 = vmatprep.mubr.bf16.mxu0 %v11119_v4  ;;  %v351_v41 = vpack.c.bf16 %v240_v26, %v239_v23 }
 0x349   : > { %v2876_v47 = vmax.f32 %v2732_v34, 0.0 }
 0x34a   : > { %v3451_v48 = vmax.f32 %v2875_v33, %v3307_v37  ;;  %v3308_v51 = vmax.f32 %v3164_v40, 0.0  ;;  %v1892_v54 = vpop.f32.mrb[16].mxu0 }
 0x34b   : > { %v2585_v55 = vmul.f32 %v11656_v58, %v1892_v54  ;;  %v1894_v61 = vpop.f32.mrb[17].mxu0 }
 0x34c   : > { %3595 = vst [vmem:[#allocation2 + $0x30] sm:$0xff] %v3451_v48  ;;  %v3452_v1 = vmax.f32 %v2876_v47, %v3308_v51  ;;  %v3021_v6 = vmul.f32 %v11656_v58, %v1894_v61  ;;  %v1896_v7 = vpop.f32.mrb[18].mxu0  ;;  %v3948_v61 = vld [vmem:[#allocation2 + $0x1] ss:$4 sm:$0xff] }
 0x34d   : > { %v2733_v8 = vadd.f32 %v11664_v5, %v2585_v55  ;;  %v2586_v9 = vmul.f32 %v11656_v58, %v1896_v7  ;;  %v1898_v10 = vpop.f32.mrb[19].mxu0 }
 0x34e   : > { %3596 = vst [vmem:[#allocation2 + $0x38] sm:$0xff] %v3452_v1  ;;  %v3165_v11 = vadd.f32 %v11664_v5, %v3021_v6  ;;  %v3022_v12 = vmul.f32 %v11656_v58, %v1898_v10 }
 0x34f   : > { %v2877_v13 = vmax.f32 %v2733_v8, 0.0  ;;  %v2734_v16 = vadd.f32 %v11664_v5, %v2586_v9  ;;  %8784 = vmatmul.mubr.msk.bf16.gmra.mrb[124].mxu0 %vm614_vm1, %v350_v62 }
 0x350   : > { %v3309_v19 = vmax.f32 %v3165_v11, 0.0  ;;  %v3166_v20 = vadd.f32 %v11664_v5, %v3022_v12  ;;  %2170 = vmatprep.mubr.bf16.mxu0 %v11119_v4  ;;  %v241_v12 = vld [vmem:[%s11167_s22 + $0x228] sm:$0xff] }
 0x351   : > { %v2878_v27 = vmax.f32 %v2734_v16, 0.0 }
 0x352   : > { %v3453_v30 = vmax.f32 %v2877_v13, %v3309_v19  ;;  %v3310_v33 = vmax.f32 %v3166_v20, 0.0  ;;  %v1902_v34 = vpop.f32.mrb[20].mxu0  ;;  %v242_v13 = vld [vmem:[%s11167_s22 + $0x230] sm:$0xff] }
 0x353   : > { %v2587_v37 = vmul.f32 %v11656_v58, %v1902_v34  ;;  %v1904_v40 = vpop.f32.mrb[21].mxu0 }
 0x354   : > { %3597 = vst [vmem:[#allocation2 + $0x40] sm:$0xff] %v3453_v30  ;;  %v3454_v44 = vmax.f32 %v2878_v27, %v3310_v33  ;;  %v3023_v47 = vmul.f32 %v11656_v58, %v1904_v40  ;;  %v1906_v48 = vpop.f32.mrb[22].mxu0  ;;  %v352_v30 = vpack.c.bf16 %v242_v13, %v241_v12 }
 0x355   : > { %v2735_v51 = vadd.f32 %v11664_v5, %v2587_v37  ;;  %v2588_v54 = vmul.f32 %v11656_v58, %v1906_v48  ;;  %v1908_v55 = vpop.f32.mrb[23].mxu0  ;;  %v3950_v62 = vld [vmem:[#allocation2 + $0x21] ss:$4 sm:$0xff] }
 0x356   : > { %3598 = vst [vmem:[#allocation2 + $0x48] sm:$0xff] %v3454_v44  ;;  %v3167_v1 = vadd.f32 %v11664_v5, %v3023_v47  ;;  %v3024_v6 = vmul.f32 %v11656_v58, %v1908_v55  ;;  %v4019_v7 = vpack.c.bf16 %v3950_v62, %v3948_v61  ;;  %v243_v62 = vld [vmem:[%s11167_s22 + $0x238] sm:$0xff] }
 0x357   : > { %v2879_v8 = vmax.f32 %v2735_v51, 0.0  ;;  %v2736_v9 = vadd.f32 %v11664_v5, %v2588_v54  ;;  %8785 = vmatmul.mubr.msk.bf16.gmra.mrb[128].mxu0 %vm614_vm1, %v351_v41 }
 0x358   : > { %v3311_v10 = vmax.f32 %v3167_v1, 0.0  ;;  %v3168_v11 = vadd.f32 %v11664_v5, %v3024_v6  ;;  %9358 = vmatprep.mubr.bf16.mxu1 %v4019_v7  ;;  %2180 = vmatprep.mubr.bf16.mxu0 %v11119_v4  ;;  %v244_v1 = vld [vmem:[%s11167_s22 + $0x240] sm:$0xff] }
 0x359   : > { %v2880_v16 = vmax.f32 %v2736_v9, 0.0  ;;  %v353_v12 = vpack.c.bf16 %v244_v1, %v243_v62 }
 0x35a   : > { %v3455_v19 = vmax.f32 %v2879_v8, %v3311_v10  ;;  %v3312_v20 = vmax.f32 %v3168_v11, 0.0  ;;  %v1912_v23 = vpop.f32.mrb[24].mxu0 }
 0x35b   : > { %v2589_v26 = vmul.f32 %v11656_v58, %v1912_v23  ;;  %v1914_v27 = vpop.f32.mrb[25].mxu0 }
 0x35c   : > { %3599 = vst [vmem:[#allocation2 + $0x50] sm:$0xff] %v3455_v19  ;;  %v3456_v33 = vmax.f32 %v2880_v16, %v3312_v20  ;;  %v3025_v34 = vmul.f32 %v11656_v58, %v1914_v27  ;;  %v1916_v37 = vpop.f32.mrb[26].mxu0 }
 0x35d   : > { %v2737_v40 = vadd.f32 %v11664_v5, %v2589_v26  ;;  %v2590_v41 = vmul.f32 %v11656_v58, %v1916_v37  ;;  %v1918_v44 = vpop.f32.mrb[27].mxu0 }
 0x35e   : > { %3600 = vst [vmem:[#allocation2 + $0x58] sm:$0xff] %v3456_v33  ;;  %v3169_v47 = vadd.f32 %v11664_v5, %v3025_v34  ;;  %v3026_v48 = vmul.f32 %v11656_v58, %v1918_v44  ;;  %v246_v44 = vld [vmem:[%s11167_s22 + $0x250] sm:$0xff] }
 0x35f   : > { %v2881_v51 = vmax.f32 %v2737_v40, 0.0  ;;  %v2738_v54 = vadd.f32 %v11664_v5, %v2590_v41  ;;  %8786 = vmatmul.mubr.msk.bf16.gmra.mrb[132].mxu0 %vm614_vm1, %v352_v30  ;;  %v245_v41 = vld [vmem:[%s11167_s22 + $0x248] sm:$0xff] }
 0x360   : > { %v3313_v55 = vmax.f32 %v3169_v47, 0.0  ;;  %v3170_v61 = vadd.f32 %v11664_v5, %v3026_v48  ;;  %2190 = vmatprep.mubr.bf16.mxu0 %v11119_v4  ;;  %v354_v62 = vpack.c.bf16 %v246_v44, %v245_v41 }
 0x361   : > { %v2882_v6 = vmax.f32 %v2738_v54, 0.0 }
 0x362   : > { %v3457_v7 = vmax.f32 %v2881_v51, %v3313_v55  ;;  %v3314_v8 = vmax.f32 %v3170_v61, 0.0  ;;  %v1922_v9 = vpop.f32.mrb[28].mxu0 }
 0x363   : > { %v2591_v10 = vmul.f32 %v11656_v58, %v1922_v9  ;;  %v1924_v11 = vpop.f32.mrb[29].mxu0 }
 0x364   : > { %3601 = vst [vmem:[#allocation2 + $0x60] sm:$0xff] %v3457_v7  ;;  %v3458_v13 = vmax.f32 %v2882_v6, %v3314_v8  ;;  %v3027_v16 = vmul.f32 %v11656_v58, %v1924_v11  ;;  %v1926_v19 = vpop.f32.mrb[30].mxu0 }
 0x365   : > { %v2739_v20 = vadd.f32 %v11664_v5, %v2591_v10  ;;  %v2592_v23 = vmul.f32 %v11656_v58, %v1926_v19  ;;  %v1928_v26 = vpop.f32.mrb[31].mxu0 }
 0x366   : > { %3602 = vst [vmem:[#allocation2 + $0x68] sm:$0xff] %v3458_v13  ;;  %v3171_v27 = vadd.f32 %v11664_v5, %v3027_v16  ;;  %v3028_v30 = vmul.f32 %v11656_v58, %v1928_v26  ;;  %v248_v26 = vld [vmem:[%s11167_s22 + $0x268] sm:$0xff] }
 0x367   : > { %v2883_v33 = vmax.f32 %v2739_v20, 0.0  ;;  %v2740_v34 = vadd.f32 %v11664_v5, %v2592_v23  ;;  %8787 = vmatmul.mubr.msk.bf16.gmra.mrb[136].mxu0 %vm614_vm1, %v353_v12  ;;  %v247_v23 = vld [vmem:[%s11167_s22 + $0x260] sm:$0xff] }
 0x368   : > { %v3315_v37 = vmax.f32 %v3171_v27, 0.0  ;;  %v3172_v40 = vadd.f32 %v11664_v5, %v3028_v30  ;;  %2200 = vmatprep.mubr.bf16.mxu0 %v11119_v4  ;;  %v355_v41 = vpack.c.bf16 %v248_v26, %v247_v23 }
 0x369   : > { %v2884_v47 = vmax.f32 %v2740_v34, 0.0 }
 0x36a   : > { %v3459_v48 = vmax.f32 %v2883_v33, %v3315_v37  ;;  %v3316_v51 = vmax.f32 %v3172_v40, 0.0  ;;  %v1932_v54 = vpop.f32.mrb[32].mxu0 }
 0x36b   : > { %v2593_v55 = vmul.f32 %v11656_v58, %v1932_v54  ;;  %v1934_v61 = vpop.f32.mrb[33].mxu0 }
 0x36c   : > { %3603 = vst [vmem:[#allocation2 + $0x70] sm:$0xff] %v3459_v48  ;;  %v3460_v1 = vmax.f32 %v2884_v47, %v3316_v51  ;;  %v3029_v6 = vmul.f32 %v11656_v58, %v1934_v61  ;;  %v1936_v7 = vpop.f32.mrb[34].mxu0  ;;  %v3952_v61 = vld [vmem:[#allocation2 + $0x41] ss:$4 sm:$0xff] }
 0x36d   : > { %v2741_v8 = vadd.f32 %v11664_v5, %v2593_v55  ;;  %v2594_v9 = vmul.f32 %v11656_v58, %v1936_v7  ;;  %v1938_v10 = vpop.f32.mrb[35].mxu0 }
 0x36e   : > { %3604 = vst [vmem:[#allocation2 + $0x78] sm:$0xff] %v3460_v1  ;;  %v3173_v11 = vadd.f32 %v11664_v5, %v3029_v6  ;;  %v3030_v12 = vmul.f32 %v11656_v58, %v1938_v10 }
 0x36f   : > { %v2885_v13 = vmax.f32 %v2741_v8, 0.0  ;;  %v2742_v16 = vadd.f32 %v11664_v5, %v2594_v9  ;;  %8788 = vmatmul.mubr.msk.bf16.gmra.mrb[140].mxu0 %vm614_vm1, %v354_v62 }
 0x370   : > { %v3317_v19 = vmax.f32 %v3173_v11, 0.0  ;;  %v3174_v20 = vadd.f32 %v11664_v5, %v3030_v12  ;;  %2210 = vmatprep.mubr.bf16.mxu0 %v11119_v4  ;;  %v249_v12 = vld [vmem:[%s11167_s22 + $0x270] sm:$0xff] }
 0x371   : > { %v2886_v27 = vmax.f32 %v2742_v16, 0.0 }
 0x372   : > { %v3461_v30 = vmax.f32 %v2885_v13, %v3317_v19  ;;  %v3318_v33 = vmax.f32 %v3174_v20, 0.0  ;;  %v1942_v34 = vpop.f32.mrb[36].mxu0  ;;  %v250_v13 = vld [vmem:[%s11167_s22 + $0x278] sm:$0xff] }
 0x373   : > { %v2595_v37 = vmul.f32 %v11656_v58, %v1942_v34  ;;  %v1944_v40 = vpop.f32.mrb[37].mxu0 }
 0x374   : > { %3605 = vst [vmem:[#allocation2 + $0x80] sm:$0xff] %v3461_v30  ;;  %v3462_v44 = vmax.f32 %v2886_v27, %v3318_v33  ;;  %v3031_v47 = vmul.f32 %v11656_v58, %v1944_v40  ;;  %v1946_v48 = vpop.f32.mrb[38].mxu0  ;;  %v356_v30 = vpack.c.bf16 %v250_v13, %v249_v12 }
 0x375   : > { %v2743_v51 = vadd.f32 %v11664_v5, %v2595_v37  ;;  %v2596_v54 = vmul.f32 %v11656_v58, %v1946_v48  ;;  %v1948_v55 = vpop.f32.mrb[39].mxu0  ;;  %v3954_v62 = vld [vmem:[#allocation2 + $0x61] ss:$4 sm:$0xff] }
 0x376   : > { %3606 = vst [vmem:[#allocation2 + $0x88] sm:$0xff] %v3462_v44  ;;  %v3175_v1 = vadd.f32 %v11664_v5, %v3031_v47  ;;  %v3032_v6 = vmul.f32 %v11656_v58, %v1948_v55  ;;  %v4020_v7 = vpack.c.bf16 %v3954_v62, %v3952_v61  ;;  %v251_v62 = vld [vmem:[%s11167_s22 + $0x280] sm:$0xff] }
 0x377   : > { %v2887_v8 = vmax.f32 %v2743_v51, 0.0  ;;  %v2744_v9 = vadd.f32 %v11664_v5, %v2596_v54  ;;  %8789 = vmatmul.mubr.msk.bf16.gmra.mrb[144].mxu0 %vm614_vm1, %v355_v41 }
 0x378   : > { %v3319_v10 = vmax.f32 %v3175_v1, 0.0  ;;  %v3176_v11 = vadd.f32 %v11664_v5, %v3032_v6  ;;  %9359 = vmatmul.mubr.bf16.vlgmr.msra.gmra.mrb[0].mxu1 %v4020_v7  ;;  %2220 = vmatprep.mubr.bf16.mxu0 %v11119_v4  ;;  %v252_v1 = vld [vmem:[%s11167_s22 + $0x288] sm:$0xff] }
 0x379   : > { %v2888_v16 = vmax.f32 %v2744_v9, 0.0  ;;  %v357_v12 = vpack.c.bf16 %v252_v1, %v251_v62 }
 0x37a   : > { %v3463_v19 = vmax.f32 %v2887_v8, %v3319_v10  ;;  %v3320_v20 = vmax.f32 %v3176_v11, 0.0  ;;  %v1952_v23 = vpop.f32.mrb[40].mxu0 }
 0x37b   : > { %v2597_v26 = vmul.f32 %v11656_v58, %v1952_v23  ;;  %v1954_v27 = vpop.f32.mrb[41].mxu0 }
 0x37c   : > { %3607 = vst [vmem:[#allocation2 + $0x90] sm:$0xff] %v3463_v19  ;;  %v3464_v33 = vmax.f32 %v2888_v16, %v3320_v20  ;;  %v3033_v34 = vmul.f32 %v11656_v58, %v1954_v27  ;;  %v1956_v37 = vpop.f32.mrb[42].mxu0 }
 0x37d   : > { %v2745_v40 = vadd.f32 %v11664_v5, %v2597_v26  ;;  %v2598_v41 = vmul.f32 %v11656_v58, %v1956_v37  ;;  %v1958_v44 = vpop.f32.mrb[43].mxu0 }
 0x37e   : > { %3608 = vst [vmem:[#allocation2 + $0x98] sm:$0xff] %v3464_v33  ;;  %v3177_v47 = vadd.f32 %v11664_v5, %v3033_v34  ;;  %v3034_v48 = vmul.f32 %v11656_v58, %v1958_v44  ;;  %v254_v44 = vld [vmem:[%s11167_s22 + $0x298] sm:$0xff] }
 0x37f   : > { %v2889_v51 = vmax.f32 %v2745_v40, 0.0  ;;  %v2746_v54 = vadd.f32 %v11664_v5, %v2598_v41  ;;  %8790 = vmatmul.mubr.msk.bf16.gmra.mrb[0].mxu0 %vm614_vm1, %v356_v30  ;;  %v253_v41 = vld [vmem:[%s11167_s22 + $0x290] sm:$0xff] }
 0x380   : > { %v3321_v55 = vmax.f32 %v3177_v47, 0.0  ;;  %v3178_v61 = vadd.f32 %v11664_v5, %v3034_v48  ;;  %2230 = vmatprep.mubr.bf16.mxu0 %v11119_v4  ;;  %v358_v62 = vpack.c.bf16 %v254_v44, %v253_v41 }
 0x381   : > { %v2890_v6 = vmax.f32 %v2746_v54, 0.0 }
 0x382   : > { %v3465_v7 = vmax.f32 %v2889_v51, %v3321_v55  ;;  %v3322_v8 = vmax.f32 %v3178_v61, 0.0  ;;  %v1962_v9 = vpop.f32.mrb[44].mxu0 }
 0x383   : > { %v2599_v10 = vmul.f32 %v11656_v58, %v1962_v9  ;;  %v1964_v11 = vpop.f32.mrb[45].mxu0 }
 0x384   : > { %3609 = vst [vmem:[#allocation2 + $0xa0] sm:$0xff] %v3465_v7  ;;  %v3466_v13 = vmax.f32 %v2890_v6, %v3322_v8  ;;  %v3035_v16 = vmul.f32 %v11656_v58, %v1964_v11  ;;  %v1966_v19 = vpop.f32.mrb[46].mxu0 }
 0x385   : > { %v2747_v20 = vadd.f32 %v11664_v5, %v2599_v10  ;;  %v2600_v23 = vmul.f32 %v11656_v58, %v1966_v19  ;;  %v1968_v26 = vpop.f32.mrb[47].mxu0 }
 0x386   : > { %3610 = vst [vmem:[#allocation2 + $0xa8] sm:$0xff] %v3466_v13  ;;  %v3179_v27 = vadd.f32 %v11664_v5, %v3035_v16  ;;  %v3036_v30 = vmul.f32 %v11656_v58, %v1968_v26  ;;  %v256_v26 = vld [vmem:[%s11167_s22 + $0x2a8] sm:$0xff] }
 0x387   : > { %v2891_v33 = vmax.f32 %v2747_v20, 0.0  ;;  %v2748_v34 = vadd.f32 %v11664_v5, %v2600_v23  ;;  %8791 = vmatmul.mubr.msk.bf16.gmra.mrb[4].mxu0 %vm614_vm1, %v357_v12  ;;  %v255_v23 = vld [vmem:[%s11167_s22 + $0x2a0] sm:$0xff] }
 0x388   : > { %v3323_v37 = vmax.f32 %v3179_v27, 0.0  ;;  %v3180_v40 = vadd.f32 %v11664_v5, %v3036_v30  ;;  %2240 = vmatprep.mubr.bf16.mxu0 %v11119_v4  ;;  %v359_v41 = vpack.c.bf16 %v256_v26, %v255_v23 }
 0x389   : > { %v2892_v47 = vmax.f32 %v2748_v34, 0.0 }
 0x38a   : > { %v3467_v48 = vmax.f32 %v2891_v33, %v3323_v37  ;;  %v3324_v51 = vmax.f32 %v3180_v40, 0.0  ;;  %v1972_v54 = vpop.f32.mrb[48].mxu0 }
 0x38b   : > { %v2601_v55 = vmul.f32 %v11656_v58, %v1972_v54  ;;  %v1974_v61 = vpop.f32.mrb[49].mxu0 }
 0x38c   : > { %3611 = vst [vmem:[#allocation2 + $0xb0] sm:$0xff] %v3467_v48  ;;  %v3468_v1 = vmax.f32 %v2892_v47, %v3324_v51  ;;  %v3037_v6 = vmul.f32 %v11656_v58, %v1974_v61  ;;  %v1976_v7 = vpop.f32.mrb[50].mxu0  ;;  %v3956_v61 = vld [vmem:[#allocation2 + $0x81] ss:$4 sm:$0xff] }
 0x38d   : > { %v2749_v8 = vadd.f32 %v11664_v5, %v2601_v55  ;;  %v2602_v9 = vmul.f32 %v11656_v58, %v1976_v7  ;;  %v1978_v10 = vpop.f32.mrb[51].mxu0 }
 0x38e   : > { %3612 = vst [vmem:[#allocation2 + $0xb8] sm:$0xff] %v3468_v1  ;;  %v3181_v11 = vadd.f32 %v11664_v5, %v3037_v6  ;;  %v3038_v12 = vmul.f32 %v11656_v58, %v1978_v10 }
 0x38f   : > { %v2893_v13 = vmax.f32 %v2749_v8, 0.0  ;;  %v2750_v16 = vadd.f32 %v11664_v5, %v2602_v9  ;;  %8792 = vmatmul.mubr.msk.bf16.gmra.mrb[8].mxu0 %vm614_vm1, %v358_v62 }
 0x390   : > { %v3325_v19 = vmax.f32 %v3181_v11, 0.0  ;;  %v3182_v20 = vadd.f32 %v11664_v5, %v3038_v12  ;;  %2250 = vmatprep.mubr.bf16.mxu0 %v11119_v4  ;;  %v257_v12 = vld [vmem:[%s11167_s22 + $0x2b0] sm:$0xff] }
 0x391   : > { %v2894_v27 = vmax.f32 %v2750_v16, 0.0 }
 0x392   : > { %v3469_v30 = vmax.f32 %v2893_v13, %v3325_v19  ;;  %v3326_v33 = vmax.f32 %v3182_v20, 0.0  ;;  %v1982_v34 = vpop.f32.mrb[52].mxu0  ;;  %v258_v13 = vld [vmem:[%s11167_s22 + $0x2b8] sm:$0xff] }
 0x393   : > { %v2603_v37 = vmul.f32 %v11656_v58, %v1982_v34  ;;  %v1984_v40 = vpop.f32.mrb[53].mxu0 }
 0x394   : > { %3613 = vst [vmem:[#allocation2 + $0xc0] sm:$0xff] %v3469_v30  ;;  %v3470_v44 = vmax.f32 %v2894_v27, %v3326_v33  ;;  %v3039_v47 = vmul.f32 %v11656_v58, %v1984_v40  ;;  %v1986_v48 = vpop.f32.mrb[54].mxu0  ;;  %v360_v30 = vpack.c.bf16 %v258_v13, %v257_v12 }
 0x395   : > { %v2751_v51 = vadd.f32 %v11664_v5, %v2603_v37  ;;  %v2604_v54 = vmul.f32 %v11656_v58, %v1986_v48  ;;  %v1988_v55 = vpop.f32.mrb[55].mxu0  ;;  %v3958_v62 = vld [vmem:[#allocation2 + $0xa1] ss:$4 sm:$0xff] }
 0x396   : > { %3614 = vst [vmem:[#allocation2 + $0xc8] sm:$0xff] %v3470_v44  ;;  %v3183_v1 = vadd.f32 %v11664_v5, %v3039_v47  ;;  %v3040_v6 = vmul.f32 %v11656_v58, %v1988_v55  ;;  %v4021_v7 = vpack.c.bf16 %v3958_v62, %v3956_v61  ;;  %v259_v62 = vld [vmem:[%s11167_s22 + $0x2c0] sm:$0xff] }
 0x397   : > { %v2895_v8 = vmax.f32 %v2751_v51, 0.0  ;;  %v2752_v9 = vadd.f32 %v11664_v5, %v2604_v54  ;;  %8793 = vmatmul.mubr.msk.bf16.gmra.mrb[12].mxu0 %vm614_vm1, %v359_v41 }
 0x398   : > { %v3327_v10 = vmax.f32 %v3183_v1, 0.0  ;;  %v3184_v11 = vadd.f32 %v11664_v5, %v3040_v6  ;;  %9362 = vmatprep.mubr.bf16.mxu1 %v4021_v7  ;;  %2260 = vmatprep.mubr.bf16.mxu0 %v11119_v4  ;;  %v260_v1 = vld [vmem:[%s11167_s22 + $0x2c8] sm:$0xff] }
 0x399   : > { %v2896_v16 = vmax.f32 %v2752_v9, 0.0  ;;  %v361_v12 = vpack.c.bf16 %v260_v1, %v259_v62 }
 0x39a   : > { %v3471_v19 = vmax.f32 %v2895_v8, %v3327_v10  ;;  %v3328_v20 = vmax.f32 %v3184_v11, 0.0  ;;  %v1992_v23 = vpop.f32.mrb[56].mxu0 }
 0x39b   : > { %v2605_v26 = vmul.f32 %v11656_v58, %v1992_v23  ;;  %v1994_v27 = vpop.f32.mrb[57].mxu0 }
 0x39c   : > { %3615 = vst [vmem:[#allocation2 + $0xd0] sm:$0xff] %v3471_v19  ;;  %v3472_v33 = vmax.f32 %v2896_v16, %v3328_v20  ;;  %v3041_v34 = vmul.f32 %v11656_v58, %v1994_v27  ;;  %v1996_v37 = vpop.f32.mrb[58].mxu0 }
 0x39d   : > { %v2753_v40 = vadd.f32 %v11664_v5, %v2605_v26  ;;  %v2606_v41 = vmul.f32 %v11656_v58, %v1996_v37  ;;  %v1998_v44 = vpop.f32.mrb[59].mxu0 }
 0x39e   : > { %3616 = vst [vmem:[#allocation2 + $0xd8] sm:$0xff] %v3472_v33  ;;  %v3185_v47 = vadd.f32 %v11664_v5, %v3041_v34  ;;  %v3042_v48 = vmul.f32 %v11656_v58, %v1998_v44  ;;  %v262_v44 = vld [vmem:[%s11167_s22 + $0x2d8] sm:$0xff] }
 0x39f   : > { %v2897_v51 = vmax.f32 %v2753_v40, 0.0  ;;  %v2754_v54 = vadd.f32 %v11664_v5, %v2606_v41  ;;  %8794 = vmatmul.mubr.msk.bf16.gmra.mrb[16].mxu0 %vm614_vm1, %v360_v30  ;;  %v261_v41 = vld [vmem:[%s11167_s22 + $0x2d0] sm:$0xff] }
 0x3a0   : > { %v3329_v55 = vmax.f32 %v3185_v47, 0.0  ;;  %v3186_v61 = vadd.f32 %v11664_v5, %v3042_v48  ;;  %2270 = vmatprep.mubr.bf16.mxu0 %v11119_v4  ;;  %v362_v62 = vpack.c.bf16 %v262_v44, %v261_v41 }
 0x3a1   : > { %v2898_v6 = vmax.f32 %v2754_v54, 0.0 }
 0x3a2   : > { %v3473_v7 = vmax.f32 %v2897_v51, %v3329_v55  ;;  %v3330_v8 = vmax.f32 %v3186_v61, 0.0  ;;  %v2002_v9 = vpop.f32.mrb[60].mxu0 }
 0x3a3   : > { %v2607_v10 = vmul.f32 %v11656_v58, %v2002_v9  ;;  %v2004_v11 = vpop.f32.mrb[61].mxu0 }
 0x3a4   : > { %3617 = vst [vmem:[#allocation2 + $0xe0] sm:$0xff] %v3473_v7  ;;  %v3474_v13 = vmax.f32 %v2898_v6, %v3330_v8  ;;  %v3043_v16 = vmul.f32 %v11656_v58, %v2004_v11  ;;  %v2006_v19 = vpop.f32.mrb[62].mxu0 }
 0x3a5   : > { %v2755_v20 = vadd.f32 %v11664_v5, %v2607_v10  ;;  %v2608_v23 = vmul.f32 %v11656_v58, %v2006_v19  ;;  %v2008_v26 = vpop.f32.mrb[63].mxu0 }
 0x3a6   : > { %3618 = vst [vmem:[#allocation2 + $0xe8] sm:$0xff] %v3474_v13  ;;  %v3187_v27 = vadd.f32 %v11664_v5, %v3043_v16  ;;  %v3044_v30 = vmul.f32 %v11656_v58, %v2008_v26  ;;  %v264_v26 = vld [vmem:[%s11167_s22 + $0x2e8] sm:$0xff] }
 0x3a7   : > { %v2899_v33 = vmax.f32 %v2755_v20, 0.0  ;;  %v2756_v34 = vadd.f32 %v11664_v5, %v2608_v23  ;;  %8795 = vmatmul.mubr.msk.bf16.gmra.mrb[20].mxu0 %vm614_vm1, %v361_v12  ;;  %v263_v23 = vld [vmem:[%s11167_s22 + $0x2e0] sm:$0xff] }
 0x3a8   : > { %v3331_v37 = vmax.f32 %v3187_v27, 0.0  ;;  %v3188_v40 = vadd.f32 %v11664_v5, %v3044_v30  ;;  %2280 = vmatprep.mubr.bf16.mxu0 %v11119_v4  ;;  %v363_v41 = vpack.c.bf16 %v264_v26, %v263_v23 }
 0x3a9   : > { %v2900_v47 = vmax.f32 %v2756_v34, 0.0 }
 0x3aa   : > { %v3475_v48 = vmax.f32 %v2899_v33, %v3331_v37  ;;  %v3332_v51 = vmax.f32 %v3188_v40, 0.0  ;;  %v2012_v54 = vpop.f32.mrb[64].mxu0 }
 0x3ab   : > { %v2609_v55 = vmul.f32 %v11656_v58, %v2012_v54  ;;  %v2014_v61 = vpop.f32.mrb[65].mxu0 }
 0x3ac   : > { %3619 = vst [vmem:[#allocation2 + $0xf0] sm:$0xff] %v3475_v48  ;;  %v3476_v1 = vmax.f32 %v2900_v47, %v3332_v51  ;;  %v3045_v6 = vmul.f32 %v11656_v58, %v2014_v61  ;;  %v2016_v7 = vpop.f32.mrb[66].mxu0  ;;  %v3960_v61 = vld [vmem:[#allocation2 + $0xc1] ss:$4 sm:$0xff] }
 0x3ad   : > { %v2757_v8 = vadd.f32 %v11664_v5, %v2609_v55  ;;  %v2610_v9 = vmul.f32 %v11656_v58, %v2016_v7  ;;  %v2018_v10 = vpop.f32.mrb[67].mxu0 }
 0x3ae   : > { %3620 = vst [vmem:[#allocation2 + $0xf8] sm:$0xff] %v3476_v1  ;;  %v3189_v11 = vadd.f32 %v11664_v5, %v3045_v6  ;;  %v3046_v12 = vmul.f32 %v11656_v58, %v2018_v10 }
 0x3af   : > { %v2901_v13 = vmax.f32 %v2757_v8, 0.0  ;;  %v2758_v16 = vadd.f32 %v11664_v5, %v2610_v9  ;;  %8796 = vmatmul.mubr.msk.bf16.gmra.mrb[24].mxu0 %vm614_vm1, %v362_v62 }
 0x3b0   : > { %v3333_v19 = vmax.f32 %v3189_v11, 0.0  ;;  %v3190_v20 = vadd.f32 %v11664_v5, %v3046_v12  ;;  %2290 = vmatprep.mubr.bf16.mxu0 %v11119_v4  ;;  %v265_v12 = vld [vmem:[%s11167_s22 + $0x2f8] sm:$0xff] }
 0x3b1   : > { %v2902_v27 = vmax.f32 %v2758_v16, 0.0 }
 0x3b2   : > { %v3477_v30 = vmax.f32 %v2901_v13, %v3333_v19  ;;  %v3334_v33 = vmax.f32 %v3190_v20, 0.0  ;;  %v2022_v34 = vpop.f32.mrb[68].mxu0  ;;  %v266_v13 = vld [vmem:[%s11167_s22 + $0x300] sm:$0xff] }
 0x3b3   : > { %v2611_v37 = vmul.f32 %v11656_v58, %v2022_v34  ;;  %v2024_v40 = vpop.f32.mrb[69].mxu0 }
 0x3b4   : > { %3621 = vst [vmem:[#allocation2 + $0x100] sm:$0xff] %v3477_v30  ;;  %v3478_v44 = vmax.f32 %v2902_v27, %v3334_v33  ;;  %v3047_v47 = vmul.f32 %v11656_v58, %v2024_v40  ;;  %v2026_v48 = vpop.f32.mrb[70].mxu0  ;;  %v364_v30 = vpack.c.bf16 %v266_v13, %v265_v12 }
 0x3b5   : > { %v2759_v51 = vadd.f32 %v11664_v5, %v2611_v37  ;;  %v2612_v54 = vmul.f32 %v11656_v58, %v2026_v48  ;;  %v2028_v55 = vpop.f32.mrb[71].mxu0  ;;  %v3962_v62 = vld [vmem:[#allocation2 + $0xe1] ss:$4 sm:$0xff] }
 0x3b6   : > { %3622 = vst [vmem:[#allocation2 + $0x108] sm:$0xff] %v3478_v44  ;;  %v3191_v1 = vadd.f32 %v11664_v5, %v3047_v47  ;;  %v3048_v6 = vmul.f32 %v11656_v58, %v2028_v55  ;;  %v4022_v7 = vpack.c.bf16 %v3962_v62, %v3960_v61  ;;  %v267_v62 = vld [vmem:[%s11167_s22 + $0x308] sm:$0xff] }
 0x3b7   : > { %v2903_v8 = vmax.f32 %v2759_v51, 0.0  ;;  %v2760_v9 = vadd.f32 %v11664_v5, %v2612_v54  ;;  %8797 = vmatmul.mubr.msk.bf16.gmra.mrb[28].mxu0 %vm614_vm1, %v363_v41 }
 0x3b8   : > { %v3335_v10 = vmax.f32 %v3191_v1, 0.0  ;;  %v3192_v11 = vadd.f32 %v11664_v5, %v3048_v6  ;;  %9363 = vmatmul.mubr.bf16.gmra.mrb[4].mxu1 %v4022_v7  ;;  %2300 = vmatprep.mubr.bf16.mxu0 %v11119_v4  ;;  %v268_v1 = vld [vmem:[%s11167_s22 + $0x310] sm:$0xff] }
 0x3b9   : > { %v2904_v16 = vmax.f32 %v2760_v9, 0.0  ;;  %v365_v12 = vpack.c.bf16 %v268_v1, %v267_v62 }
 0x3ba   : > { %v3479_v19 = vmax.f32 %v2903_v8, %v3335_v10  ;;  %v3336_v20 = vmax.f32 %v3192_v11, 0.0  ;;  %v2032_v23 = vpop.f32.mrb[72].mxu0 }
 0x3bb   : > { %v2613_v26 = vmul.f32 %v11656_v58, %v2032_v23  ;;  %v2034_v27 = vpop.f32.mrb[73].mxu0 }
 0x3bc   : > { %3623 = vst [vmem:[#allocation2 + $0x110] sm:$0xff] %v3479_v19  ;;  %v3480_v33 = vmax.f32 %v2904_v16, %v3336_v20  ;;  %v3049_v34 = vmul.f32 %v11656_v58, %v2034_v27  ;;  %v2036_v37 = vpop.f32.mrb[74].mxu0 }
 0x3bd   : > { %v2761_v40 = vadd.f32 %v11664_v5, %v2613_v26  ;;  %v2614_v41 = vmul.f32 %v11656_v58, %v2036_v37  ;;  %v2038_v44 = vpop.f32.mrb[75].mxu0 }
 0x3be   : > { %3624 = vst [vmem:[#allocation2 + $0x118] sm:$0xff] %v3480_v33  ;;  %v3193_v47 = vadd.f32 %v11664_v5, %v3049_v34  ;;  %v3050_v48 = vmul.f32 %v11656_v58, %v2038_v44  ;;  %v270_v44 = vld [vmem:[%s11167_s22 + $0x320] sm:$0xff] }
 0x3bf   : > { %v2905_v51 = vmax.f32 %v2761_v40, 0.0  ;;  %v2762_v54 = vadd.f32 %v11664_v5, %v2614_v41  ;;  %8798 = vmatmul.mubr.msk.bf16.gmra.mrb[180].mxu0 %vm614_vm1, %v364_v30  ;;  %v269_v41 = vld [vmem:[%s11167_s22 + $0x318] sm:$0xff] }
 0x3c0   : > { %v3337_v55 = vmax.f32 %v3193_v47, 0.0  ;;  %v3194_v61 = vadd.f32 %v11664_v5, %v3050_v48  ;;  %2310 = vmatprep.mubr.bf16.mxu0 %v11119_v4  ;;  %v366_v62 = vpack.c.bf16 %v270_v44, %v269_v41 }
 0x3c1   : > { %v2906_v6 = vmax.f32 %v2762_v54, 0.0 }
 0x3c2   : > { %v3481_v7 = vmax.f32 %v2905_v51, %v3337_v55  ;;  %v3338_v8 = vmax.f32 %v3194_v61, 0.0  ;;  %v2042_v9 = vpop.f32.mrb[76].mxu0 }
 0x3c3   : > { %v2615_v10 = vmul.f32 %v11656_v58, %v2042_v9  ;;  %v2044_v11 = vpop.f32.mrb[77].mxu0 }
 0x3c4   : > { %3625 = vst [vmem:[#allocation2 + $0x120] sm:$0xff] %v3481_v7  ;;  %v3482_v13 = vmax.f32 %v2906_v6, %v3338_v8  ;;  %v3051_v16 = vmul.f32 %v11656_v58, %v2044_v11  ;;  %v2046_v19 = vpop.f32.mrb[78].mxu0  ;;  %v11916_v7 = vld [vmem:[%s13814_s2 + $0x1] ss:$0 sm:$0xff] }
 0x3c5   : > { %v2763_v20 = vadd.f32 %v11664_v5, %v2615_v10  ;;  %v2616_v23 = vmul.f32 %v11656_v58, %v2046_v19  ;;  %v2048_v26 = vpop.f32.mrb[79].mxu0 }
 0x3c6   : > { %3626 = vst [vmem:[#allocation2 + $0x128] sm:$0xff] %v3482_v13  ;;  %v3195_v27 = vadd.f32 %v11664_v5, %v3051_v16  ;;  %v3052_v30 = vmul.f32 %v11656_v58, %v2048_v26  ;;  %v11909_v58 = vld [vmem:[%s13814_s2] ss:$0 sm:$0xff]  ;;  %v272_v26 = vld [vmem:[%s11167_s22 + $0x330] sm:$0xff] }
 0x3c7   : > { %v2907_v33 = vmax.f32 %v2763_v20, 0.0  ;;  %v2764_v34 = vadd.f32 %v11664_v5, %v2616_v23  ;;  %8799 = vmatmul.mubr.msk.bf16.gmra.mrb[184].mxu0 %vm614_vm1, %v365_v12  ;;  %v271_v23 = vld [vmem:[%s11167_s22 + $0x328] sm:$0xff] }
 0x3c8   : > { %v3339_v37 = vmax.f32 %v3195_v27, 0.0  ;;  %v3196_v40 = vadd.f32 %v11664_v5, %v3052_v30  ;;  %2320 = vmatprep.mubr.bf16.mxu0 %v11119_v4  ;;  %v367_v41 = vpack.c.bf16 %v272_v26, %v271_v23 }
 0x3c9   : > { %v2908_v47 = vmax.f32 %v2764_v34, 0.0 }
 0x3ca   : > { %v3483_v48 = vmax.f32 %v2907_v33, %v3339_v37  ;;  %v3340_v51 = vmax.f32 %v3196_v40, 0.0  ;;  %v2052_v54 = vpop.f32.mrb[80].mxu0 }
 0x3cb   : > { %v2617_v55 = vmul.f32 %v11909_v58, %v2052_v54  ;;  %v2054_v61 = vpop.f32.mrb[81].mxu0 }
 0x3cc   : > { %3627 = vst [vmem:[#allocation2 + $0x130] sm:$0xff] %v3483_v48  ;;  %v3484_v1 = vmax.f32 %v2908_v47, %v3340_v51  ;;  %v3053_v5 = vmul.f32 %v11909_v58, %v2054_v61  ;;  %v2056_v6 = vpop.f32.mrb[82].mxu0  ;;  %v3964_v61 = vld [vmem:[#allocation2 + $0x101] ss:$4 sm:$0xff] }
 0x3cd   : > { %v2765_v8 = vadd.f32 %v11916_v7, %v2617_v55  ;;  %v2618_v9 = vmul.f32 %v11909_v58, %v2056_v6  ;;  %v2058_v10 = vpop.f32.mrb[83].mxu0 }
 0x3ce   : > { %3628 = vst [vmem:[#allocation2 + $0x138] sm:$0xff] %v3484_v1  ;;  %v3197_v11 = vadd.f32 %v11916_v7, %v3053_v5  ;;  %v3054_v12 = vmul.f32 %v11909_v58, %v2058_v10 }
 0x3cf   : > { %v2909_v13 = vmax.f32 %v2765_v8, 0.0  ;;  %v2766_v16 = vadd.f32 %v11916_v7, %v2618_v9  ;;  %8800 = vmatmul.mubr.msk.bf16.gmra.mrb[188].mxu0 %vm614_vm1, %v366_v62 }
 0x3d0   : > { %v3341_v19 = vmax.f32 %v3197_v11, 0.0  ;;  %v3198_v20 = vadd.f32 %v11916_v7, %v3054_v12  ;;  %2330 = vmatprep.mubr.bf16.mxu0 %v11119_v4  ;;  %v273_v12 = vld [vmem:[%s11167_s22 + $0x338] sm:$0xff] }
 0x3d1   : > { %v2910_v27 = vmax.f32 %v2766_v16, 0.0 }
 0x3d2   : > { %v3485_v30 = vmax.f32 %v2909_v13, %v3341_v19  ;;  %v3342_v33 = vmax.f32 %v3198_v20, 0.0  ;;  %v2062_v34 = vpop.f32.mrb[84].mxu0  ;;  %v274_v13 = vld [vmem:[%s11167_s22 + $0x340] sm:$0xff] }
 0x3d3   : > { %v2619_v37 = vmul.f32 %v11909_v58, %v2062_v34  ;;  %v2064_v40 = vpop.f32.mrb[85].mxu0 }
 0x3d4   : > { %3629 = vst [vmem:[#allocation2 + $0x140] sm:$0xff] %v3485_v30  ;;  %v3486_v44 = vmax.f32 %v2910_v27, %v3342_v33  ;;  %v3055_v47 = vmul.f32 %v11909_v58, %v2064_v40  ;;  %v2066_v48 = vpop.f32.mrb[86].mxu0  ;;  %v368_v30 = vpack.c.bf16 %v274_v13, %v273_v12 }
 0x3d5   : > { %v2767_v51 = vadd.f32 %v11916_v7, %v2619_v37  ;;  %v2620_v54 = vmul.f32 %v11909_v58, %v2066_v48  ;;  %v2068_v55 = vpop.f32.mrb[87].mxu0  ;;  %v3966_v62 = vld [vmem:[#allocation2 + $0x121] ss:$4 sm:$0xff] }
 0x3d6   : > { %3630 = vst [vmem:[#allocation2 + $0x148] sm:$0xff] %v3486_v44  ;;  %v3199_v1 = vadd.f32 %v11916_v7, %v3055_v47  ;;  %v3056_v5 = vmul.f32 %v11909_v58, %v2068_v55  ;;  %v4023_v6 = vpack.c.bf16 %v3966_v62, %v3964_v61  ;;  %v275_v62 = vld [vmem:[%s11167_s22 + $0x348] sm:$0xff] }
 0x3d7   : > { %v2911_v8 = vmax.f32 %v2767_v51, 0.0  ;;  %v2768_v9 = vadd.f32 %v11916_v7, %v2620_v54  ;;  %8801 = vmatmul.mubr.msk.bf16.gmra.mrb[192].mxu0 %vm614_vm1, %v367_v41 }
 0x3d8   : > { %v3343_v10 = vmax.f32 %v3199_v1, 0.0  ;;  %v3200_v11 = vadd.f32 %v11916_v7, %v3056_v5  ;;  %9366 = vmatprep.mubr.bf16.mxu1 %v4023_v6  ;;  %2340 = vmatprep.mubr.bf16.mxu0 %v11119_v4  ;;  %v276_v1 = vld [vmem:[%s11167_s22 + $0x350] sm:$0xff] }
 0x3d9   : > { %v2912_v16 = vmax.f32 %v2768_v9, 0.0  ;;  %v369_v12 = vpack.c.bf16 %v276_v1, %v275_v62 }
 0x3da   : > { %v3487_v19 = vmax.f32 %v2911_v8, %v3343_v10  ;;  %v3344_v20 = vmax.f32 %v3200_v11, 0.0  ;;  %v2072_v23 = vpop.f32.mrb[88].mxu0 }
 0x3db   : > { %v2621_v26 = vmul.f32 %v11909_v58, %v2072_v23  ;;  %v2074_v27 = vpop.f32.mrb[89].mxu0 }
 0x3dc   : > { %3631 = vst [vmem:[#allocation2 + $0x150] sm:$0xff] %v3487_v19  ;;  %v3488_v33 = vmax.f32 %v2912_v16, %v3344_v20  ;;  %v3057_v34 = vmul.f32 %v11909_v58, %v2074_v27  ;;  %v2076_v37 = vpop.f32.mrb[90].mxu0 }
 0x3dd   : > { %v2769_v40 = vadd.f32 %v11916_v7, %v2621_v26  ;;  %v2622_v41 = vmul.f32 %v11909_v58, %v2076_v37  ;;  %v2078_v44 = vpop.f32.mrb[91].mxu0 }
 0x3de   : > { %3632 = vst [vmem:[#allocation2 + $0x158] sm:$0xff] %v3488_v33  ;;  %v3201_v47 = vadd.f32 %v11916_v7, %v3057_v34  ;;  %v3058_v48 = vmul.f32 %v11909_v58, %v2078_v44  ;;  %v278_v44 = vld [vmem:[%s11167_s22 + $0x360] sm:$0xff] }
 0x3df   : > { %v2913_v51 = vmax.f32 %v2769_v40, 0.0  ;;  %v2770_v54 = vadd.f32 %v11916_v7, %v2622_v41  ;;  %8802 = vmatmul.mubr.msk.bf16.gmra.mrb[196].mxu0 %vm614_vm1, %v368_v30  ;;  %v277_v41 = vld [vmem:[%s11167_s22 + $0x358] sm:$0xff] }
 0x3e0   : > { %v3345_v55 = vmax.f32 %v3201_v47, 0.0  ;;  %v3202_v61 = vadd.f32 %v11916_v7, %v3058_v48  ;;  %2350 = vmatprep.mubr.bf16.mxu0 %v11119_v4  ;;  %v370_v62 = vpack.c.bf16 %v278_v44, %v277_v41 }
 0x3e1   : > { %v2914_v5 = vmax.f32 %v2770_v54, 0.0 }
 0x3e2   : > { %v3489_v6 = vmax.f32 %v2913_v51, %v3345_v55  ;;  %v3346_v8 = vmax.f32 %v3202_v61, 0.0  ;;  %v2082_v9 = vpop.f32.mrb[92].mxu0 }
 0x3e3   : > { %v2623_v10 = vmul.f32 %v11909_v58, %v2082_v9  ;;  %v2084_v11 = vpop.f32.mrb[93].mxu0 }
 0x3e4   : > { %3633 = vst [vmem:[#allocation2 + $0x160] sm:$0xff] %v3489_v6  ;;  %v3490_v13 = vmax.f32 %v2914_v5, %v3346_v8  ;;  %v3059_v16 = vmul.f32 %v11909_v58, %v2084_v11  ;;  %v2086_v19 = vpop.f32.mrb[94].mxu0 }
 0x3e5   : > { %v2771_v20 = vadd.f32 %v11916_v7, %v2623_v10  ;;  %v2624_v23 = vmul.f32 %v11909_v58, %v2086_v19  ;;  %v2088_v26 = vpop.f32.mrb[95].mxu0 }
 0x3e6   : > { %3634 = vst [vmem:[#allocation2 + $0x168] sm:$0xff] %v3490_v13  ;;  %v3203_v27 = vadd.f32 %v11916_v7, %v3059_v16  ;;  %v3060_v30 = vmul.f32 %v11909_v58, %v2088_v26  ;;  %v280_v26 = vld [vmem:[%s11167_s22 + $0x370] sm:$0xff] }
 0x3e7   : > { %v2915_v33 = vmax.f32 %v2771_v20, 0.0  ;;  %v2772_v34 = vadd.f32 %v11916_v7, %v2624_v23  ;;  %8803 = vmatmul.mubr.msk.bf16.gmra.mrb[200].mxu0 %vm614_vm1, %v369_v12  ;;  %v279_v23 = vld [vmem:[%s11167_s22 + $0x368] sm:$0xff] }
 0x3e8   : > { %v3347_v37 = vmax.f32 %v3203_v27, 0.0  ;;  %v3204_v40 = vadd.f32 %v11916_v7, %v3060_v30  ;;  %2360 = vmatprep.mubr.bf16.mxu0 %v11119_v4  ;;  %v371_v41 = vpack.c.bf16 %v280_v26, %v279_v23 }
 0x3e9   : > { %v2916_v47 = vmax.f32 %v2772_v34, 0.0 }
 0x3ea   : > { %v3491_v48 = vmax.f32 %v2915_v33, %v3347_v37  ;;  %v3348_v51 = vmax.f32 %v3204_v40, 0.0  ;;  %v2092_v54 = vpop.f32.mrb[96].mxu0 }
 0x3eb   : > { %v2625_v55 = vmul.f32 %v11909_v58, %v2092_v54  ;;  %v2094_v61 = vpop.f32.mrb[97].mxu0 }
 0x3ec   : > { %3635 = vst [vmem:[#allocation2 + $0x170] sm:$0xff] %v3491_v48  ;;  %v3492_v1 = vmax.f32 %v2916_v47, %v3348_v51  ;;  %v3061_v5 = vmul.f32 %v11909_v58, %v2094_v61  ;;  %v2096_v6 = vpop.f32.mrb[98].mxu0  ;;  %v3968_v61 = vld [vmem:[#allocation2 + $0x141] ss:$4 sm:$0xff] }
 0x3ed   : > { %v2773_v8 = vadd.f32 %v11916_v7, %v2625_v55  ;;  %v2626_v9 = vmul.f32 %v11909_v58, %v2096_v6  ;;  %v2098_v10 = vpop.f32.mrb[99].mxu0 }
 0x3ee   : > { %3636 = vst [vmem:[#allocation2 + $0x178] sm:$0xff] %v3492_v1  ;;  %v3205_v11 = vadd.f32 %v11916_v7, %v3061_v5  ;;  %v3062_v12 = vmul.f32 %v11909_v58, %v2098_v10 }
 0x3ef   : > { %v2917_v13 = vmax.f32 %v2773_v8, 0.0  ;;  %v2774_v16 = vadd.f32 %v11916_v7, %v2626_v9  ;;  %8804 = vmatmul.mubr.msk.bf16.gmra.mrb[204].mxu0 %vm614_vm1, %v370_v62 }
 0x3f0   : > { %v3349_v19 = vmax.f32 %v3205_v11, 0.0  ;;  %v3206_v20 = vadd.f32 %v11916_v7, %v3062_v12  ;;  %2370 = vmatprep.mubr.bf16.mxu0 %v11119_v4  ;;  %v281_v12 = vld [vmem:[%s11167_s22 + $0x378] sm:$0xff] }
 0x3f1   : > { %v2918_v27 = vmax.f32 %v2774_v16, 0.0 }
 0x3f2   : > { %v3493_v30 = vmax.f32 %v2917_v13, %v3349_v19  ;;  %v3350_v33 = vmax.f32 %v3206_v20, 0.0  ;;  %v2102_v34 = vpop.f32.mrb[100].mxu0  ;;  %v282_v13 = vld [vmem:[%s11167_s22 + $0x380] sm:$0xff] }
 0x3f3   : > { %v2627_v37 = vmul.f32 %v11909_v58, %v2102_v34  ;;  %v2104_v40 = vpop.f32.mrb[101].mxu0 }
 0x3f4   : > { %3637 = vst [vmem:[#allocation2 + $0x180] sm:$0xff] %v3493_v30  ;;  %v3494_v44 = vmax.f32 %v2918_v27, %v3350_v33  ;;  %v3063_v47 = vmul.f32 %v11909_v58, %v2104_v40  ;;  %v2106_v48 = vpop.f32.mrb[102].mxu0  ;;  %v372_v30 = vpack.c.bf16 %v282_v13, %v281_v12 }
 0x3f5   : > { %v2775_v51 = vadd.f32 %v11916_v7, %v2627_v37  ;;  %v2628_v54 = vmul.f32 %v11909_v58, %v2106_v48  ;;  %v2108_v55 = vpop.f32.mrb[103].mxu0  ;;  %v3970_v62 = vld [vmem:[#allocation2 + $0x161] ss:$4 sm:$0xff] }
 0x3f6   : > { %3638 = vst [vmem:[#allocation2 + $0x188] sm:$0xff] %v3494_v44  ;;  %v3207_v1 = vadd.f32 %v11916_v7, %v3063_v47  ;;  %v3064_v5 = vmul.f32 %v11909_v58, %v2108_v55  ;;  %v4024_v6 = vpack.c.bf16 %v3970_v62, %v3968_v61  ;;  %v283_v62 = vld [vmem:[%s11167_s22 + $0x390] sm:$0xff] }
 0x3f7   : > { %v2919_v8 = vmax.f32 %v2775_v51, 0.0  ;;  %v2776_v9 = vadd.f32 %v11916_v7, %v2628_v54  ;;  %8805 = vmatmul.mubr.msk.bf16.gmra.mrb[208].mxu0 %vm614_vm1, %v371_v41 }
 0x3f8   : > { %v3351_v10 = vmax.f32 %v3207_v1, 0.0  ;;  %v3208_v11 = vadd.f32 %v11916_v7, %v3064_v5  ;;  %9367 = vmatmul.mubr.bf16.gmra.mrb[8].mxu1 %v4024_v6  ;;  %2380 = vmatprep.mubr.bf16.mxu0 %v11119_v4  ;;  %v284_v1 = vld [vmem:[%s11167_s22 + $0x398] sm:$0xff] }
 0x3f9   : > { %v2920_v16 = vmax.f32 %v2776_v9, 0.0  ;;  %v373_v12 = vpack.c.bf16 %v284_v1, %v283_v62 }
 0x3fa   : > { %v3495_v19 = vmax.f32 %v2919_v8, %v3351_v10  ;;  %v3352_v20 = vmax.f32 %v3208_v11, 0.0  ;;  %v2112_v23 = vpop.f32.mrb[104].mxu0 }
 0x3fb   : > { %v2629_v26 = vmul.f32 %v11909_v58, %v2112_v23  ;;  %v2114_v27 = vpop.f32.mrb[105].mxu0 }
 0x3fc   : > { %3639 = vst [vmem:[#allocation2 + $0x190] sm:$0xff] %v3495_v19  ;;  %v3496_v33 = vmax.f32 %v2920_v16, %v3352_v20  ;;  %v3065_v34 = vmul.f32 %v11909_v58, %v2114_v27  ;;  %v2116_v37 = vpop.f32.mrb[106].mxu0 }
 0x3fd   : > { %v2777_v40 = vadd.f32 %v11916_v7, %v2629_v26  ;;  %v2630_v41 = vmul.f32 %v11909_v58, %v2116_v37  ;;  %v2118_v44 = vpop.f32.mrb[107].mxu0 }
 0x3fe   : > { %3640 = vst [vmem:[#allocation2 + $0x198] sm:$0xff] %v3496_v33  ;;  %v3209_v47 = vadd.f32 %v11916_v7, %v3065_v34  ;;  %v3066_v48 = vmul.f32 %v11909_v58, %v2118_v44  ;;  %v286_v44 = vld [vmem:[%s11167_s22 + $0x3a8] sm:$0xff] }
 0x3ff   : > { %v2921_v51 = vmax.f32 %v2777_v40, 0.0  ;;  %v2778_v54 = vadd.f32 %v11916_v7, %v2630_v41  ;;  %8806 = vmatmul.mubr.msk.bf16.gmra.mrb[212].mxu0 %vm614_vm1, %v372_v30  ;;  %v285_v41 = vld [vmem:[%s11167_s22 + $0x3a0] sm:$0xff] }
 0x400   : > { %v3353_v55 = vmax.f32 %v3209_v47, 0.0  ;;  %v3210_v61 = vadd.f32 %v11916_v7, %v3066_v48  ;;  %2390 = vmatprep.mubr.bf16.mxu0 %v11119_v4  ;;  %v374_v62 = vpack.c.bf16 %v286_v44, %v285_v41 }
 0x401   : > { %v2922_v5 = vmax.f32 %v2778_v54, 0.0 }
 0x402   : > { %v3497_v6 = vmax.f32 %v2921_v51, %v3353_v55  ;;  %v3354_v8 = vmax.f32 %v3210_v61, 0.0  ;;  %v2122_v9 = vpop.f32.mrb[108].mxu0 }
 0x403   : > { %v2631_v10 = vmul.f32 %v11909_v58, %v2122_v9  ;;  %v2124_v11 = vpop.f32.mrb[109].mxu0 }
 0x404   : > { %3641 = vst [vmem:[#allocation2 + $0x1a0] sm:$0xff] %v3497_v6  ;;  %v3498_v13 = vmax.f32 %v2922_v5, %v3354_v8  ;;  %v3067_v16 = vmul.f32 %v11909_v58, %v2124_v11  ;;  %v2126_v19 = vpop.f32.mrb[110].mxu0 }
 0x405   : > { %v2779_v20 = vadd.f32 %v11916_v7, %v2631_v10  ;;  %v2632_v23 = vmul.f32 %v11909_v58, %v2126_v19  ;;  %v2128_v26 = vpop.f32.mrb[111].mxu0 }
 0x406   : > { %3642 = vst [vmem:[#allocation2 + $0x1a8] sm:$0xff] %v3498_v13  ;;  %v3211_v27 = vadd.f32 %v11916_v7, %v3067_v16  ;;  %v3068_v30 = vmul.f32 %v11909_v58, %v2128_v26  ;;  %v288_v26 = vld [vmem:[%s11167_s22 + $0x3b8] sm:$0xff] }
 0x407   : > { %v2923_v33 = vmax.f32 %v2779_v20, 0.0  ;;  %v2780_v34 = vadd.f32 %v11916_v7, %v2632_v23  ;;  %8807 = vmatmul.mubr.msk.bf16.gmra.mrb[216].mxu0 %vm614_vm1, %v373_v12  ;;  %v287_v23 = vld [vmem:[%s11167_s22 + $0x3b0] sm:$0xff] }
 0x408   : > { %v3355_v37 = vmax.f32 %v3211_v27, 0.0  ;;  %v3212_v40 = vadd.f32 %v11916_v7, %v3068_v30  ;;  %2400 = vmatprep.mubr.bf16.mxu0 %v11119_v4  ;;  %v375_v41 = vpack.c.bf16 %v288_v26, %v287_v23 }
 0x409   : > { %v2924_v47 = vmax.f32 %v2780_v34, 0.0 }
 0x40a   : > { %v3499_v48 = vmax.f32 %v2923_v33, %v3355_v37  ;;  %v3356_v51 = vmax.f32 %v3212_v40, 0.0  ;;  %v2132_v54 = vpop.f32.mrb[112].mxu0 }
 0x40b   : > { %v2633_v55 = vmul.f32 %v11909_v58, %v2132_v54  ;;  %v2134_v61 = vpop.f32.mrb[113].mxu0 }
 0x40c   : > { %3643 = vst [vmem:[#allocation2 + $0x1b0] sm:$0xff] %v3499_v48  ;;  %v3500_v1 = vmax.f32 %v2924_v47, %v3356_v51  ;;  %v3069_v5 = vmul.f32 %v11909_v58, %v2134_v61  ;;  %v2136_v6 = vpop.f32.mrb[114].mxu0  ;;  %v3972_v61 = vld [vmem:[#allocation2 + $0x181] ss:$4 sm:$0xff] }
 0x40d   : > { %v2781_v8 = vadd.f32 %v11916_v7, %v2633_v55  ;;  %v2634_v9 = vmul.f32 %v11909_v58, %v2136_v6  ;;  %v2138_v10 = vpop.f32.mrb[115].mxu0 }
 0x40e   : > { %3644 = vst [vmem:[#allocation2 + $0x1b8] sm:$0xff] %v3500_v1  ;;  %v3213_v11 = vadd.f32 %v11916_v7, %v3069_v5  ;;  %v3070_v12 = vmul.f32 %v11909_v58, %v2138_v10 }
 0x40f   : > { %v2925_v13 = vmax.f32 %v2781_v8, 0.0  ;;  %v2782_v16 = vadd.f32 %v11916_v7, %v2634_v9  ;;  %8808 = vmatmul.mubr.msk.bf16.gmra.mrb[220].mxu0 %vm614_vm1, %v374_v62 }
 0x410   : > { %v3357_v19 = vmax.f32 %v3213_v11, 0.0  ;;  %v3214_v20 = vadd.f32 %v11916_v7, %v3070_v12  ;;  %2410 = vmatprep.mubr.bf16.mxu0 %v11119_v4  ;;  %v289_v12 = vld [vmem:[%s11167_s22 + $0x3c0] sm:$0xff] }
 0x411   : > { %v2926_v27 = vmax.f32 %v2782_v16, 0.0 }
 0x412   : > { %v3501_v30 = vmax.f32 %v2925_v13, %v3357_v19  ;;  %v3358_v33 = vmax.f32 %v3214_v20, 0.0  ;;  %v2142_v34 = vpop.f32.mrb[116].mxu0  ;;  %v290_v13 = vld [vmem:[%s11167_s22 + $0x3c8] sm:$0xff] }
 0x413   : > { %v2635_v37 = vmul.f32 %v11909_v58, %v2142_v34  ;;  %v2144_v40 = vpop.f32.mrb[117].mxu0 }
 0x414   : > { %3645 = vst [vmem:[#allocation2 + $0x1c0] sm:$0xff] %v3501_v30  ;;  %v3502_v44 = vmax.f32 %v2926_v27, %v3358_v33  ;;  %v3071_v47 = vmul.f32 %v11909_v58, %v2144_v40  ;;  %v2146_v48 = vpop.f32.mrb[118].mxu0  ;;  %v376_v30 = vpack.c.bf16 %v290_v13, %v289_v12 }
 0x415   : > { %v2783_v51 = vadd.f32 %v11916_v7, %v2635_v37  ;;  %v2636_v54 = vmul.f32 %v11909_v58, %v2146_v48  ;;  %v2148_v55 = vpop.f32.mrb[119].mxu0  ;;  %v3974_v62 = vld [vmem:[#allocation2 + $0x1a1] ss:$4 sm:$0xff] }
 0x416   : > { %3646 = vst [vmem:[#allocation2 + $0x1c8] sm:$0xff] %v3502_v44  ;;  %v3215_v1 = vadd.f32 %v11916_v7, %v3071_v47  ;;  %v3072_v5 = vmul.f32 %v11909_v58, %v2148_v55  ;;  %v4025_v6 = vpack.c.bf16 %v3974_v62, %v3972_v61  ;;  %v291_v62 = vld [vmem:[%s11167_s22 + $0x3d0] sm:$0xff] }
 0x417   : > { %v2927_v8 = vmax.f32 %v2783_v51, 0.0  ;;  %v2784_v9 = vadd.f32 %v11916_v7, %v2636_v54  ;;  %8809 = vmatmul.mubr.msk.bf16.gmra.mrb[224].mxu0 %vm614_vm1, %v375_v41 }
 0x418   : > { %v3359_v10 = vmax.f32 %v3215_v1, 0.0  ;;  %v3216_v11 = vadd.f32 %v11916_v7, %v3072_v5  ;;  %9370 = vmatprep.mubr.bf16.mxu1 %v4025_v6  ;;  %2420 = vmatprep.mubr.bf16.mxu0 %v11119_v4  ;;  %v292_v1 = vld [vmem:[%s11167_s22 + $0x3d8] sm:$0xff] }
 0x419   : > { %v2928_v16 = vmax.f32 %v2784_v9, 0.0  ;;  %v377_v12 = vpack.c.bf16 %v292_v1, %v291_v62 }
 0x41a   : > { %v3503_v19 = vmax.f32 %v2927_v8, %v3359_v10  ;;  %v3360_v20 = vmax.f32 %v3216_v11, 0.0  ;;  %v2152_v23 = vpop.f32.mrb[120].mxu0 }
 0x41b   : > { %v2637_v26 = vmul.f32 %v11909_v58, %v2152_v23  ;;  %v2154_v27 = vpop.f32.mrb[121].mxu0 }
 0x41c   : > { %3647 = vst [vmem:[#allocation2 + $0x1d0] sm:$0xff] %v3503_v19  ;;  %v3504_v33 = vmax.f32 %v2928_v16, %v3360_v20  ;;  %v3073_v34 = vmul.f32 %v11909_v58, %v2154_v27  ;;  %v2156_v37 = vpop.f32.mrb[122].mxu0 }
 0x41d   : > { %v2785_v40 = vadd.f32 %v11916_v7, %v2637_v26  ;;  %v2638_v41 = vmul.f32 %v11909_v58, %v2156_v37  ;;  %v2158_v44 = vpop.f32.mrb[123].mxu0 }
 0x41e   : > { %3648 = vst [vmem:[#allocation2 + $0x1d8] sm:$0xff] %v3504_v33  ;;  %v3217_v47 = vadd.f32 %v11916_v7, %v3073_v34  ;;  %v3074_v48 = vmul.f32 %v11909_v58, %v2158_v44  ;;  %v294_v44 = vld [vmem:[%s11167_s22 + $0x3e8] sm:$0xff] }
 0x41f   : > { %v2929_v51 = vmax.f32 %v2785_v40, 0.0  ;;  %v2786_v54 = vadd.f32 %v11916_v7, %v2638_v41  ;;  %8810 = vmatmul.mubr.msk.bf16.gmra.mrb[228].mxu0 %vm614_vm1, %v376_v30  ;;  %v293_v41 = vld [vmem:[%s11167_s22 + $0x3e0] sm:$0xff] }
 0x420   : > { %v3361_v55 = vmax.f32 %v3217_v47, 0.0  ;;  %v3218_v61 = vadd.f32 %v11916_v7, %v3074_v48  ;;  %2430 = vmatprep.mubr.bf16.mxu0 %v11119_v4  ;;  %v378_v62 = vpack.c.bf16 %v294_v44, %v293_v41 }
 0x421   : > { %v2930_v5 = vmax.f32 %v2786_v54, 0.0 }
 0x422   : > { %v3505_v6 = vmax.f32 %v2929_v51, %v3361_v55  ;;  %v3362_v8 = vmax.f32 %v3218_v61, 0.0  ;;  %v2162_v9 = vpop.f32.mrb[124].mxu0 }
 0x423   : > { %v2639_v10 = vmul.f32 %v11909_v58, %v2162_v9  ;;  %v2164_v11 = vpop.f32.mrb[125].mxu0 }
 0x424   : > { %3649 = vst [vmem:[#allocation2 + $0x1e0] sm:$0xff] %v3505_v6  ;;  %v3506_v13 = vmax.f32 %v2930_v5, %v3362_v8  ;;  %v3075_v16 = vmul.f32 %v11909_v58, %v2164_v11  ;;  %v2166_v19 = vpop.f32.mrb[126].mxu0 }
 0x425   : > { %v2787_v20 = vadd.f32 %v11916_v7, %v2639_v10  ;;  %v2640_v23 = vmul.f32 %v11909_v58, %v2166_v19  ;;  %v2168_v26 = vpop.f32.mrb[127].mxu0 }
 0x426   : > { %3650 = vst [vmem:[#allocation2 + $0x1e8] sm:$0xff] %v3506_v13  ;;  %v3219_v27 = vadd.f32 %v11916_v7, %v3075_v16  ;;  %v3076_v30 = vmul.f32 %v11909_v58, %v2168_v26  ;;  %v296_v26 = vld [vmem:[%s11167_s22 + $0x3f8] sm:$0xff] }
 0x427   : > { %v2931_v33 = vmax.f32 %v2787_v20, 0.0  ;;  %v2788_v34 = vadd.f32 %v11916_v7, %v2640_v23  ;;  %8811 = vmatmul.mubr.msk.bf16.gmra.mrb[232].mxu0 %vm614_vm1, %v377_v12  ;;  %v295_v23 = vld [vmem:[%s11167_s22 + $0x3f0] sm:$0xff] }
 0x428   : > { %v3363_v37 = vmax.f32 %v3219_v27, 0.0  ;;  %v3220_v40 = vadd.f32 %v11916_v7, %v3076_v30  ;;  %2440 = vmatprep.mubr.bf16.mxu0 %v11119_v4  ;;  %v379_v41 = vpack.c.bf16 %v296_v26, %v295_v23 }
 0x429   : > { %v2932_v47 = vmax.f32 %v2788_v34, 0.0 }
 0x42a   : > { %v3507_v48 = vmax.f32 %v2931_v33, %v3363_v37  ;;  %v3364_v51 = vmax.f32 %v3220_v40, 0.0  ;;  %v2172_v54 = vpop.f32.mrb[128].mxu0 }
 0x42b   : > { %v2641_v55 = vmul.f32 %v11909_v58, %v2172_v54  ;;  %v2174_v61 = vpop.f32.mrb[129].mxu0 }
 0x42c   : > { %3651 = vst [vmem:[#allocation2 + $0x1f0] sm:$0xff] %v3507_v48  ;;  %v3508_v1 = vmax.f32 %v2932_v47, %v3364_v51  ;;  %v3077_v5 = vmul.f32 %v11909_v58, %v2174_v61  ;;  %v2176_v6 = vpop.f32.mrb[130].mxu0  ;;  %v3976_v61 = vld [vmem:[#allocation2 + $0x1c1] ss:$4 sm:$0xff] }
 0x42d   : > { %v2789_v8 = vadd.f32 %v11916_v7, %v2641_v55  ;;  %v2642_v9 = vmul.f32 %v11909_v58, %v2176_v6  ;;  %v2178_v10 = vpop.f32.mrb[131].mxu0 }
 0x42e   : > { %3652 = vst [vmem:[#allocation2 + $0x1f8] sm:$0xff] %v3508_v1  ;;  %v3221_v11 = vadd.f32 %v11916_v7, %v3077_v5  ;;  %v3078_v12 = vmul.f32 %v11909_v58, %v2178_v10 }
 0x42f   : > { %v2933_v13 = vmax.f32 %v2789_v8, 0.0  ;;  %v2790_v16 = vadd.f32 %v11916_v7, %v2642_v9  ;;  %8812 = vmatmul.mubr.msk.bf16.gmra.mrb[236].mxu0 %vm614_vm1, %v378_v62 }
 0x430   : > { %v3365_v19 = vmax.f32 %v3221_v11, 0.0  ;;  %v3222_v20 = vadd.f32 %v11916_v7, %v3078_v12  ;;  %2450 = vmatprep.mubr.bf16.mxu0 %v11119_v4  ;;  %v297_v12 = vld [vmem:[%s11167_s22 + $0x400] sm:$0xff] }
 0x431   : > { %v2934_v27 = vmax.f32 %v2790_v16, 0.0 }
 0x432   : > { %v3509_v30 = vmax.f32 %v2933_v13, %v3365_v19  ;;  %v3366_v33 = vmax.f32 %v3222_v20, 0.0  ;;  %v2182_v34 = vpop.f32.mrb[132].mxu0  ;;  %v298_v13 = vld [vmem:[%s11167_s22 + $0x408] sm:$0xff] }
 0x433   : > { %v2643_v37 = vmul.f32 %v11909_v58, %v2182_v34  ;;  %v2184_v40 = vpop.f32.mrb[133].mxu0 }
 0x434   : > { %3653 = vst [vmem:[#allocation2 + $0x200] sm:$0xff] %v3509_v30  ;;  %v3510_v44 = vmax.f32 %v2934_v27, %v3366_v33  ;;  %v3079_v47 = vmul.f32 %v11909_v58, %v2184_v40  ;;  %v2186_v48 = vpop.f32.mrb[134].mxu0  ;;  %v380_v30 = vpack.c.bf16 %v298_v13, %v297_v12 }
 0x435   : > { %v2791_v51 = vadd.f32 %v11916_v7, %v2643_v37  ;;  %v2644_v54 = vmul.f32 %v11909_v58, %v2186_v48  ;;  %v2188_v55 = vpop.f32.mrb[135].mxu0  ;;  %v3978_v62 = vld [vmem:[#allocation2 + $0x1e1] ss:$4 sm:$0xff] }
 0x436   : > { %3654 = vst [vmem:[#allocation2 + $0x208] sm:$0xff] %v3510_v44  ;;  %v3223_v1 = vadd.f32 %v11916_v7, %v3079_v47  ;;  %v3080_v5 = vmul.f32 %v11909_v58, %v2188_v55  ;;  %v4026_v6 = vpack.c.bf16 %v3978_v62, %v3976_v61  ;;  %v299_v62 = vld [vmem:[%s11167_s22 + $0x410] sm:$0xff] }
 0x437   : > { %v2935_v8 = vmax.f32 %v2791_v51, 0.0  ;;  %v2792_v9 = vadd.f32 %v11916_v7, %v2644_v54  ;;  %8813 = vmatmul.mubr.msk.bf16.gmra.mrb[240].mxu0 %vm614_vm1, %v379_v41 }
 0x438   : > { %v3367_v10 = vmax.f32 %v3223_v1, 0.0  ;;  %v3224_v11 = vadd.f32 %v11916_v7, %v3080_v5  ;;  %9371 = vmatmul.mubr.bf16.gmra.mrb[12].mxu1 %v4026_v6  ;;  %2460 = vmatprep.mubr.bf16.mxu0 %v11119_v4  ;;  %v300_v1 = vld [vmem:[%s11167_s22 + $0x418] sm:$0xff] }
 0x439   : > { %v2936_v16 = vmax.f32 %v2792_v9, 0.0  ;;  %v381_v12 = vpack.c.bf16 %v300_v1, %v299_v62 }
 0x43a   : > { %v3511_v19 = vmax.f32 %v2935_v8, %v3367_v10  ;;  %v3368_v20 = vmax.f32 %v3224_v11, 0.0  ;;  %v2192_v23 = vpop.f32.mrb[136].mxu0 }
 0x43b   : > { %v2645_v26 = vmul.f32 %v11909_v58, %v2192_v23  ;;  %v2194_v27 = vpop.f32.mrb[137].mxu0 }
 0x43c   : > { %3655 = vst [vmem:[#allocation2 + $0x210] sm:$0xff] %v3511_v19  ;;  %v3512_v33 = vmax.f32 %v2936_v16, %v3368_v20  ;;  %v3081_v34 = vmul.f32 %v11909_v58, %v2194_v27  ;;  %v2196_v37 = vpop.f32.mrb[138].mxu0 }
 0x43d   : > { %v2793_v40 = vadd.f32 %v11916_v7, %v2645_v26  ;;  %v2646_v41 = vmul.f32 %v11909_v58, %v2196_v37  ;;  %v2198_v44 = vpop.f32.mrb[139].mxu0 }
 0x43e   : > { %3656 = vst [vmem:[#allocation2 + $0x218] sm:$0xff] %v3512_v33  ;;  %v3225_v47 = vadd.f32 %v11916_v7, %v3081_v34  ;;  %v3082_v48 = vmul.f32 %v11909_v58, %v2198_v44  ;;  %v302_v44 = vld [vmem:[%s11167_s22 + $0x430] sm:$0xff] }
 0x43f   : > { %v2937_v51 = vmax.f32 %v2793_v40, 0.0  ;;  %v2794_v54 = vadd.f32 %v11916_v7, %v2646_v41  ;;  %8814 = vmatmul.mubr.msk.bf16.gmra.mrb[244].mxu0 %vm614_vm1, %v380_v30  ;;  %v301_v41 = vld [vmem:[%s11167_s22 + $0x428] sm:$0xff] }
 0x440   : > { %v3369_v55 = vmax.f32 %v3225_v47, 0.0  ;;  %v3226_v61 = vadd.f32 %v11916_v7, %v3082_v48  ;;  %2470 = vmatprep.mubr.bf16.mxu0 %v11119_v4  ;;  %v382_v62 = vpack.c.bf16 %v302_v44, %v301_v41 }
 0x441   : > { %v2938_v5 = vmax.f32 %v2794_v54, 0.0 }
 0x442   : > { %v3513_v6 = vmax.f32 %v2937_v51, %v3369_v55  ;;  %v3370_v8 = vmax.f32 %v3226_v61, 0.0  ;;  %v2202_v9 = vpop.f32.mrb[140].mxu0 }
 0x443   : > { %v2647_v10 = vmul.f32 %v11909_v58, %v2202_v9  ;;  %v2204_v11 = vpop.f32.mrb[141].mxu0 }
 0x444   : > { %3657 = vst [vmem:[#allocation2 + $0x220] sm:$0xff] %v3513_v6  ;;  %v3514_v13 = vmax.f32 %v2938_v5, %v3370_v8  ;;  %v3083_v16 = vmul.f32 %v11909_v58, %v2204_v11  ;;  %v2206_v19 = vpop.f32.mrb[142].mxu0 }
 0x445   : > { %v2795_v20 = vadd.f32 %v11916_v7, %v2647_v10  ;;  %v2648_v23 = vmul.f32 %v11909_v58, %v2206_v19  ;;  %v2208_v26 = vpop.f32.mrb[143].mxu0 }
 0x446   : > { %3658 = vst [vmem:[#allocation2 + $0x228] sm:$0xff] %v3514_v13  ;;  %v3227_v27 = vadd.f32 %v11916_v7, %v3083_v16  ;;  %v3084_v30 = vmul.f32 %v11909_v58, %v2208_v26  ;;  %v304_v26 = vld [vmem:[%s11167_s22 + $0x440] sm:$0xff] }
 0x447   : > { %v2939_v33 = vmax.f32 %v2795_v20, 0.0  ;;  %v2796_v34 = vadd.f32 %v11916_v7, %v2648_v23  ;;  %8815 = vmatmul.mubr.msk.bf16.gmra.mrb[248].mxu0 %vm614_vm1, %v381_v12  ;;  %v303_v23 = vld [vmem:[%s11167_s22 + $0x438] sm:$0xff] }
 0x448   : > { %v3371_v37 = vmax.f32 %v3227_v27, 0.0  ;;  %v3228_v40 = vadd.f32 %v11916_v7, %v3084_v30  ;;  %2480 = vmatprep.mubr.bf16.mxu0 %v11119_v4  ;;  %v383_v41 = vpack.c.bf16 %v304_v26, %v303_v23 }
 0x449   : > { %v2940_v47 = vmax.f32 %v2796_v34, 0.0 }
 0x44a   : > { %v3515_v48 = vmax.f32 %v2939_v33, %v3371_v37  ;;  %v3372_v51 = vmax.f32 %v3228_v40, 0.0  ;;  %v2212_v54 = vpop.f32.mrb[144].mxu0 }
 0x44b   : > { %v2649_v55 = vmul.f32 %v11909_v58, %v2212_v54  ;;  %v2214_v61 = vpop.f32.mrb[145].mxu0 }
 0x44c   : > { %3659 = vst [vmem:[#allocation2 + $0x230] sm:$0xff] %v3515_v48  ;;  %v3516_v1 = vmax.f32 %v2940_v47, %v3372_v51  ;;  %v3085_v5 = vmul.f32 %v11909_v58, %v2214_v61  ;;  %v2216_v6 = vpop.f32.mrb[146].mxu0  ;;  %v3980_v61 = vld [vmem:[#allocation2 + $0x201] ss:$4 sm:$0xff] }
 0x44d   : > { %v2797_v8 = vadd.f32 %v11916_v7, %v2649_v55  ;;  %v2650_v9 = vmul.f32 %v11909_v58, %v2216_v6  ;;  %v2218_v10 = vpop.f32.mrb[147].mxu0 }
 0x44e   : > { %3660 = vst [vmem:[#allocation2 + $0x238] sm:$0xff] %v3516_v1  ;;  %v3229_v11 = vadd.f32 %v11916_v7, %v3085_v5  ;;  %v3086_v12 = vmul.f32 %v11909_v58, %v2218_v10  ;;  %v306_v10 = vld [vmem:[%s11167_s22 + $0x450] sm:$0xff] }
 0x44f   : > { %v2941_v13 = vmax.f32 %v2797_v8, 0.0  ;;  %v2798_v16 = vadd.f32 %v11916_v7, %v2650_v9  ;;  %8816 = vmatmul.mubr.msk.bf16.gmra.mrb[252].mxu0 %vm614_vm1, %v382_v62  ;;  %v305_v9 = vld [vmem:[%s11167_s22 + $0x448] sm:$0xff] }
 0x450   : > { %v3373_v19 = vmax.f32 %v3229_v11, 0.0  ;;  %v3230_v20 = vadd.f32 %v11916_v7, %v3086_v12  ;;  %2490 = vmatprep.mubr.bf16.mxu0 %v11119_v4  ;;  %v384_v26 = vpack.c.bf16 %v306_v10, %v305_v9 }
 0x451   : > { %v2942_v27 = vmax.f32 %v2798_v16, 0.0 }
 0x452   : > { %v3517_v30 = vmax.f32 %v2941_v13, %v3373_v19  ;;  %v3374_v33 = vmax.f32 %v3230_v20, 0.0  ;;  %v2222_v34 = vpop.f32.mrb[0].mxu0 }
 0x453   : > { %v2223_v37 = vadd.f32 %v2222_v34, %v11428_v14  ;;  %v2224_v40 = vpop.f32.mrb[1].mxu0 }
 0x454   : > { %3661 = vst [vmem:[#allocation2 + $0x240] sm:$0xff] %v3517_v30  ;;  %v3518_v44 = vmax.f32 %v2942_v27, %v3374_v33  ;;  %v2225_v47 = vadd.f32 %v2224_v40, %v11430_v15  ;;  %v2226_v48 = vpop.f32.mrb[2].mxu0 }
 0x455   : > { %v2651_v51 = vmul.f32 %v11909_v58, %v2223_v37  ;;  %v2227_v54 = vadd.f32 %v2226_v48, %v11432_v17  ;;  %v2228_v55 = vpop.f32.mrb[3].mxu0  ;;  %v3982_v62 = vld [vmem:[#allocation2 + $0x221] ss:$4 sm:$0xff] }
 0x456   : > { %3662 = vst [vmem:[#allocation2 + $0x248] sm:$0xff] %v3518_v44  ;;  %v3087_v1 = vmul.f32 %v11909_v58, %v2225_v47  ;;  %v2229_v14 = vadd.f32 %v2228_v55, %v11434_v18  ;;  %v4027_v5 = vpack.c.bf16 %v3982_v62, %v3980_v61  ;;  %v308_v55 = vld [vmem:[%s11167_s22 + $0x460] sm:$0xff] }
 0x457   : > { %v2799_v6 = vadd.f32 %v11916_v7, %v2651_v51  ;;  %v2652_v15 = vmul.f32 %v11909_v58, %v2227_v54  ;;  %8817 = vmatmul.mubr.msk.bf16.gmra.mrb[148].mxu0 %vm614_vm1, %v383_v41 }
 0x458   : > { %v3231_v8 = vadd.f32 %v11916_v7, %v3087_v1  ;;  %v3088_v17 = vmul.f32 %v11909_v58, %v2229_v14  ;;  %9374 = vmatprep.mubr.bf16.mxu1 %v4027_v5  ;;  %2500 = vmatprep.mubr.bf16.mxu0 %v11119_v4 }
 0x459   : > { %v2943_v11 = vmax.f32 %v2799_v6, 0.0  ;;  %v2800_v12 = vadd.f32 %v11916_v7, %v2652_v15 }
 0x45a   : > { %v3375_v18 = vmax.f32 %v3231_v8, 0.0  ;;  %v3232_v13 = vadd.f32 %v11916_v7, %v3088_v17  ;;  %v2232_v16 = vpop.f32.mrb[4].mxu0 }
 0x45b   : > { %v2944_v19 = vmax.f32 %v2800_v12, 0.0  ;;  %v2233_v20 = vadd.f32 %v2232_v16, %v11440_v21  ;;  %v2234_v23 = vpop.f32.mrb[5].mxu0 }
 0x45c   : > { %v3519_v27 = vmax.f32 %v2943_v11, %v3375_v18  ;;  %v3376_v30 = vmax.f32 %v3232_v13, 0.0  ;;  %v2235_v33 = vadd.f32 %v2234_v23, %v11442_v22  ;;  %v2236_v34 = vpop.f32.mrb[6].mxu0 }
 0x45d   : > { %v2653_v37 = vmul.f32 %v11909_v58, %v2233_v20  ;;  %v2237_v40 = vadd.f32 %v2236_v34, %v11444_v24  ;;  %v2238_v41 = vpop.f32.mrb[7].mxu0  ;;  %v307_v24 = vld [vmem:[%s11167_s22 + $0x458] sm:$0xff] }
 0x45e   : > { %3663 = vst [vmem:[#allocation2 + $0x250] sm:$0xff] %v3519_v27  ;;  %v3520_v44 = vmax.f32 %v2944_v19, %v3376_v30  ;;  %v3089_v47 = vmul.f32 %v11909_v58, %v2235_v33  ;;  %v2239_v21 = vadd.f32 %v2238_v41, %v11446_v25  ;;  %v385_v8 = vpack.c.bf16 %v308_v55, %v307_v24  ;;  %v309_v27 = vld [vmem:[%s11167_s22 + $0x468] sm:$0xff] }
 0x45f   : > { %v2801_v48 = vadd.f32 %v11916_v7, %v2653_v37  ;;  %v2654_v51 = vmul.f32 %v11909_v58, %v2237_v40  ;;  %8818 = vmatmul.mubr.msk.bf16.gmra.mrb[152].mxu0 %vm614_vm1, %v384_v26 }
 0x460   : > { %3664 = vst [vmem:[#allocation2 + $0x258] sm:$0xff] %v3520_v44  ;;  %v3233_v22 = vadd.f32 %v11916_v7, %v3089_v47  ;;  %v3090_v54 = vmul.f32 %v11909_v58, %v2239_v21  ;;  %2510 = vmatprep.mubr.bf16.mxu0 %v11119_v4 }
 0x461   : > { %v2945_v61 = vmax.f32 %v2801_v48, 0.0  ;;  %v2802_v62 = vadd.f32 %v11916_v7, %v2654_v51 }
 0x462   : > { %v3377_v1 = vmax.f32 %v3233_v22, 0.0  ;;  %v3234_v25 = vadd.f32 %v11916_v7, %v3090_v54  ;;  %v2242_v14 = vpop.f32.mrb[8].mxu0 }
 0x463   : > { %v2946_v5 = vmax.f32 %v2802_v62, 0.0  ;;  %v2243_v6 = vadd.f32 %v2242_v14, %v11452_v28  ;;  %v2244_v15 = vpop.f32.mrb[9].mxu0  ;;  %v12159_v28 = vld [vmem:[%s13814_s2] ss:$0 sm:$0xff] }
 0x464   : > { %v3521_v17 = vmax.f32 %v2945_v61, %v3377_v1  ;;  %v3378_v9 = vmax.f32 %v3234_v25, 0.0  ;;  %v2245_v10 = vadd.f32 %v2244_v15, %v11454_v29  ;;  %v2246_v11 = vpop.f32.mrb[10].mxu0 }
 0x465   : > { %v2655_v12 = vmul.f32 %v11909_v58, %v2243_v6  ;;  %v2247_v18 = vadd.f32 %v2246_v11, %v11456_v31  ;;  %v2248_v13 = vpop.f32.mrb[11].mxu0  ;;  %v12169_v31 = vld [vmem:[%s13814_s2 + $0x1] ss:$0 sm:$0xff] }
 0x466   : > { %3665 = vst [vmem:[#allocation2 + $0x260] sm:$0xff] %v3521_v17  ;;  %v3522_v16 = vmax.f32 %v2946_v5, %v3378_v9  ;;  %v3091_v19 = vmul.f32 %v12159_v28, %v2245_v10  ;;  %v2249_v20 = vadd.f32 %v2248_v13, %v11458_v32  ;;  %v310_v32 = vld [vmem:[%s11167_s22 + $0x470] sm:$0xff]  ;;  %v312_v5 = vld [vmem:[%s11167_s22 + $0x480] sm:$0xff] }
 0x467   : > { %v2803_v29 = vadd.f32 %v11916_v7, %v2655_v12  ;;  %v2656_v58 = vmul.f32 %v12159_v28, %v2247_v18  ;;  %8819 = vmatmul.mubr.msk.bf16.gmra.mrb[156].mxu0 %vm614_vm1, %v385_v8  ;;  %v386_v47 = vpack.c.bf16 %v310_v32, %v309_v27 }
 0x468   : > { %3666 = vst [vmem:[#allocation2 + $0x268] sm:$0xff] %v3522_v16  ;;  %v3235_v23 = vadd.f32 %v12169_v31, %v3091_v19  ;;  %v3092_v26 = vmul.f32 %v12159_v28, %v2249_v20  ;;  %2520 = vmatprep.mubr.bf16.mxu0 %v11119_v4 }
 0x469   : > { %v2947_v30 = vmax.f32 %v2803_v29, 0.0  ;;  %v2804_v7 = vadd.f32 %v12169_v31, %v2656_v58 }
 0x46a   : > { %v3379_v33 = vmax.f32 %v3235_v23, 0.0  ;;  %v3236_v34 = vadd.f32 %v12169_v31, %v3092_v26  ;;  %v2252_v37 = vpop.f32.mrb[12].mxu0 }
 0x46b   : > { %v2948_v40 = vmax.f32 %v2804_v7, 0.0  ;;  %v2253_v41 = vadd.f32 %v2252_v37, %v11464_v35  ;;  %v2254_v44 = vpop.f32.mrb[13].mxu0  ;;  %v314_v37 = vld [vmem:[%s11167_s22 + $0x490] sm:$0xff] }
 0x46c   : > { %v3523_v21 = vmax.f32 %v2947_v30, %v3379_v33  ;;  %v3380_v48 = vmax.f32 %v3236_v34, 0.0  ;;  %v2255_v51 = vadd.f32 %v2254_v44, %v11466_v36  ;;  %v2256_v22 = vpop.f32.mrb[14].mxu0  ;;  %v313_v34 = vld [vmem:[%s11167_s22 + $0x488] sm:$0xff] }
 0x46d   : > { %v2657_v54 = vmul.f32 %v12159_v28, %v2253_v41  ;;  %v2257_v24 = vadd.f32 %v2256_v22, %v11468_v38  ;;  %v2258_v55 = vpop.f32.mrb[15].mxu0  ;;  %v311_v38 = vld [vmem:[%s11167_s22 + $0x478] sm:$0xff]  ;;  %v388_v22 = vpack.c.bf16 %v314_v37, %v313_v34 }
 0x46e   : > { %3667 = vst [vmem:[#allocation2 + $0x270] sm:$0xff] %v3523_v21  ;;  %v3524_v61 = vmax.f32 %v2948_v40, %v3380_v48  ;;  %v3093_v62 = vmul.f32 %v12159_v28, %v2255_v51  ;;  %v2259_v35 = vadd.f32 %v2258_v55, %v11470_v39  ;;  %v387_v12 = vpack.c.bf16 %v312_v5, %v311_v38 }
 0x46f   : > { %v2805_v1 = vadd.f32 %v12169_v31, %v2657_v54  ;;  %v2658_v25 = vmul.f32 %v12159_v28, %v2257_v24  ;;  %8820 = vmatmul.mubr.msk.bf16.gmra.mrb[160].mxu0 %vm614_vm1, %v386_v47 }
 0x470   : > { %3668 = vst [vmem:[#allocation2 + $0x278] sm:$0xff] %v3524_v61  ;;  %v3237_v36 = vadd.f32 %v12169_v31, %v3093_v62  ;;  %v3094_v14 = vmul.f32 %v12159_v28, %v2259_v35  ;;  %2530 = vmatprep.mubr.bf16.mxu0 %v11119_v4 }
 0x471   : > { %v2949_v6 = vmax.f32 %v2805_v1, 0.0  ;;  %v2806_v15 = vadd.f32 %v12169_v31, %v2658_v25 }
 0x472   : > { %v3381_v8 = vmax.f32 %v3237_v36, 0.0  ;;  %v3238_v39 = vadd.f32 %v12169_v31, %v3094_v14  ;;  %v2262_v17 = vpop.f32.mrb[16].mxu0 }
 0x473   : > { %v2950_v9 = vmax.f32 %v2806_v15, 0.0  ;;  %v2263_v10 = vadd.f32 %v2262_v17, %v11476_v42  ;;  %v2264_v11 = vpop.f32.mrb[17].mxu0 }
 0x474   : > { %v3525_v18 = vmax.f32 %v2949_v6, %v3381_v8  ;;  %v3382_v13 = vmax.f32 %v3238_v39, 0.0  ;;  %v2265_v16 = vadd.f32 %v2264_v11, %v11478_v43  ;;  %v2266_v19 = vpop.f32.mrb[18].mxu0  ;;  %v3984_v43 = vld [vmem:[#allocation2 + $0x241] ss:$4 sm:$0xff] }
 0x475   : > { %v2659_v20 = vmul.f32 %v12159_v28, %v2263_v10  ;;  %v2267_v29 = vadd.f32 %v2266_v19, %v11480_v45  ;;  %v2268_v58 = vpop.f32.mrb[19].mxu0  ;;  %v316_v6 = vld [vmem:[%s11167_s22 + $0x4a0] sm:$0xff] }
 0x476   : > { %3669 = vst [vmem:[#allocation2 + $0x280] sm:$0xff] %v3525_v18  ;;  %v3526_v23 = vmax.f32 %v2950_v9, %v3382_v13  ;;  %v3095_v26 = vmul.f32 %v12159_v28, %v2265_v16  ;;  %v2269_v42 = vadd.f32 %v2268_v58, %v11482_v46 }
 0x477   : > { %v2807_v27 = vadd.f32 %v12169_v31, %v2659_v20  ;;  %v2660_v32 = vmul.f32 %v12159_v28, %v2267_v29  ;;  %8821 = vmatmul.mubr.msk.bf16.gmra.mrb[164].mxu0 %vm614_vm1, %v387_v12  ;;  %v3986_v30 = vld [vmem:[#allocation2 + $0x261] ss:$4 sm:$0xff] }
 0x478   : > { %3670 = vst [vmem:[#allocation2 + $0x288] sm:$0xff] %v3526_v23  ;;  %v3239_v45 = vadd.f32 %v12169_v31, %v3095_v26  ;;  %v3096_v7 = vmul.f32 %v12159_v28, %v2269_v42  ;;  %v4028_v33 = vpack.c.bf16 %v3986_v30, %v3984_v43  ;;  %2540 = vmatprep.mubr.bf16.mxu0 %v11119_v4  ;;  %v318_v43 = vld [vmem:[%s11167_s22 + $0x4b0] sm:$0xff] }
 0x479   : > { %v2951_v40 = vmax.f32 %v2807_v27, 0.0  ;;  %v2808_v46 = vadd.f32 %v12169_v31, %v2660_v32 }
 0x47a   : > { %v3383_v41 = vmax.f32 %v3239_v45, 0.0  ;;  %v3240_v44 = vadd.f32 %v12169_v31, %v3096_v7  ;;  %v2272_v47 = vpop.f32.mrb[20].mxu0  ;;  %9375 = vmatmul.mubr.bf16.gmra.mrb[16].mxu1 %v4028_v33 }
 0x47b   : > { %v2952_v21 = vmax.f32 %v2808_v46, 0.0  ;;  %v2273_v48 = vadd.f32 %v2272_v47, %v11488_v49  ;;  %v2274_v51 = vpop.f32.mrb[21].mxu0 }
 0x47c   : > { %v3527_v54 = vmax.f32 %v2951_v40, %v3383_v41  ;;  %v3384_v24 = vmax.f32 %v3240_v44, 0.0  ;;  %v2275_v55 = vadd.f32 %v2274_v51, %v11490_v50  ;;  %v2276_v61 = vpop.f32.mrb[22].mxu0 }
 0x47d   : > { %v2661_v62 = vmul.f32 %v12159_v28, %v2273_v48  ;;  %v2277_v35 = vadd.f32 %v2276_v61, %v11492_v52  ;;  %v2278_v1 = vpop.f32.mrb[23].mxu0  ;;  %v315_v52 = vld [vmem:[%s11167_s22 + $0x498] sm:$0xff] }
 0x47e   : > { %3671 = vst [vmem:[#allocation2 + $0x290] sm:$0xff] %v3527_v54  ;;  %v3528_v25 = vmax.f32 %v2952_v21, %v3384_v24  ;;  %v3097_v36 = vmul.f32 %v12159_v28, %v2275_v55  ;;  %v2279_v49 = vadd.f32 %v2278_v1, %v11494_v53  ;;  %v389_v12 = vpack.c.bf16 %v316_v6, %v315_v52 }
 0x47f   : > { %v2809_v14 = vadd.f32 %v12169_v31, %v2661_v62  ;;  %v2662_v38 = vmul.f32 %v12159_v28, %v2277_v35  ;;  %8822 = vmatmul.mubr.msk.bf16.gmra.mrb[168].mxu0 %vm614_vm1, %v388_v22 }
 0x480   : > { %3672 = vst [vmem:[#allocation2 + $0x298] sm:$0xff] %v3528_v25  ;;  %v3241_v50 = vadd.f32 %v12169_v31, %v3097_v36  ;;  %v3098_v5 = vmul.f32 %v12159_v28, %v2279_v49  ;;  %2550 = vmatprep.mubr.bf16.mxu0 %v11119_v4 }
 0x481   : > { %v2953_v15 = vmax.f32 %v2809_v14, 0.0  ;;  %v2810_v8 = vadd.f32 %v12169_v31, %v2662_v38 }
 0x482   : > { %v3385_v39 = vmax.f32 %v3241_v50, 0.0  ;;  %v3242_v53 = vadd.f32 %v12169_v31, %v3098_v5  ;;  %v2282_v17 = vpop.f32.mrb[24].mxu0 }
 0x483   : > { %v2954_v9 = vmax.f32 %v2810_v8, 0.0  ;;  %v2283_v10 = vadd.f32 %v2282_v17, %v11500_v56  ;;  %v2284_v11 = vpop.f32.mrb[25].mxu0 }
 0x484   : > { %v3529_v18 = vmax.f32 %v2953_v15, %v3385_v39  ;;  %v3386_v13 = vmax.f32 %v3242_v53, 0.0  ;;  %v2285_v16 = vadd.f32 %v2284_v11, %v11502_v57  ;;  %v2286_v19 = vpop.f32.mrb[26].mxu0 }
 0x485   : > { %v2663_v20 = vmul.f32 %v12159_v28, %v2283_v10  ;;  %v2287_v29 = vadd.f32 %v2286_v19, %v11504_v59  ;;  %v2288_v58 = vpop.f32.mrb[27].mxu0  ;;  %v317_v59 = vld [vmem:[%s11167_s22 + $0x4a8] sm:$0xff] }
 0x486   : > { %3673 = vst [vmem:[#allocation2 + $0x2a0] sm:$0xff] %v3529_v18  ;;  %v3530_v23 = vmax.f32 %v2954_v9, %v3386_v13  ;;  %v3099_v26 = vmul.f32 %v12159_v28, %v2285_v16  ;;  %v2289_v56 = vadd.f32 %v2288_v58, %v11506_v60  ;;  %v390_v46 = vpack.c.bf16 %v318_v43, %v317_v59 }
 0x487   : > { %v2811_v42 = vadd.f32 %v12169_v31, %v2663_v20  ;;  %v2664_v27 = vmul.f32 %v12159_v28, %v2287_v29  ;;  %8823 = vmatmul.mubr.msk.bf16.gmra.mrb[172].mxu0 %vm614_vm1, %v389_v12  ;;  %v3988_v10 = vld [vmem:[#allocation2 + $0x281] ss:$4 sm:$0xff] }
 0x488   : > { %3674 = vst [vmem:[#allocation2 + $0x2a8] sm:$0xff] %v3530_v23  ;;  %v3243_v57 = vadd.f32 %v12169_v31, %v3099_v26  ;;  %v3100_v32 = vmul.f32 %v12159_v28, %v2289_v56  ;;  %2560 = vmatprep.mubr.bf16.mxu0 %v11119_v4 }
 0x489   : > { %v2955_v30 = vmax.f32 %v2811_v42, 0.0  ;;  %v2812_v45 = vadd.f32 %v12169_v31, %v2664_v27 }
 0x48a   : > { %v3387_v7 = vmax.f32 %v3243_v57, 0.0  ;;  %v3244_v60 = vadd.f32 %v12169_v31, %v3100_v32  ;;  %v2292_v33 = vpop.f32.mrb[28].mxu0 }
 0x48b   : > { %v2956_v34 = vmax.f32 %v2812_v45, 0.0  ;;  %v2293_v37 = vadd.f32 %v2292_v33, %v11512_v63  ;;  %v2294_v40 = vpop.f32.mrb[29].mxu0 }
 0x48c   : > { %v3531_v41 = vmax.f32 %v2955_v30, %v3387_v7  ;;  %v3388_v44 = vmax.f32 %v3244_v60, 0.0  ;;  %v2295_v47 = vadd.f32 %v2294_v40, %v11514_v0  ;;  %v2296_v21 = vpop.f32.mrb[30].mxu0 }
 0x48d   : > { %v2665_v4 = vmul.f32 %v12159_v28, %v2293_v37  ;;  %v2297_v48 = vadd.f32 %v2296_v21, %v11516_v2  ;;  %v2298_v51 = vpop.f32.mrb[31].mxu0 }
 0x48e   : > { %3675 = vst [vmem:[#allocation2 + $0x2b0] sm:$0xff] %v3531_v41  ;;  %v3532_v22 = vmax.f32 %v2956_v34, %v3388_v44  ;;  %v3101_v54 = vmul.f32 %v12159_v28, %v2295_v47  ;;  %v2299_v24 = vadd.f32 %v2298_v51, %v11518_v3 }
 0x48f   : > { %v2813_v63 = vadd.f32 %v12169_v31, %v2665_v4  ;;  %v2666_v55 = vmul.f32 %v12159_v28, %v2297_v48  ;;  %8824 = vmatmul.mubr.msk.bf16.gmra.mrb[176].mxu0 %vm614_vm1, %v390_v46 }
 0x490   : > { %3676 = vst [vmem:[#allocation2 + $0x2b8] sm:$0xff] %v3532_v22  ;;  %v3245_v0 = vadd.f32 %v12169_v31, %v3101_v54  ;;  %v3102_v61 = vmul.f32 %v12159_v28, %v2299_v24 }
 0x491   : > { %v2957_v62 = vmax.f32 %v2813_v63, 0.0  ;;  %v2814_v2 = vadd.f32 %v12169_v31, %v2666_v55 }
 0x492   : > { %v3389_v35 = vmax.f32 %v3245_v0, 0.0  ;;  %v3246_v1 = vadd.f32 %v12169_v31, %v3102_v61  ;;  %v2302_v25 = vpop.f32.mrb[180].mxu0 }
 0x493   : > { %v2958_v36 = vmax.f32 %v2814_v2, 0.0  ;;  %v2667_v3 = vmul.f32 %v12159_v28, %v2302_v25  ;;  %v2304_v49 = vpop.f32.mrb[181].mxu0 }
 0x494   : > { %v3533_v14 = vmax.f32 %v2957_v62, %v3389_v35  ;;  %v3390_v38 = vmax.f32 %v3246_v1, 0.0  ;;  %v3103_v50 = vmul.f32 %v12159_v28, %v2304_v49  ;;  %v2306_v5 = vpop.f32.mrb[182].mxu0 }
 0x495   : > { %v2815_v52 = vadd.f32 %v12169_v31, %v2667_v3  ;;  %v2668_v6 = vmul.f32 %v12159_v28, %v2306_v5  ;;  %v2308_v15 = vpop.f32.mrb[183].mxu0 }
 0x496   : > { %3677 = vst [vmem:[#allocation2 + $0x2c0] sm:$0xff] %v3533_v14  ;;  %v3534_v8 = vmax.f32 %v2958_v36, %v3390_v38  ;;  %v3247_v39 = vadd.f32 %v12169_v31, %v3103_v50  ;;  %v3104_v53 = vmul.f32 %v12159_v28, %v2308_v15 }
 0x497   : > { %v2959_v17 = vmax.f32 %v2815_v52, 0.0  ;;  %v2816_v9 = vadd.f32 %v12169_v31, %v2668_v6  ;;  %v3990_v11 = vld [vmem:[#allocation2 + $0x2a1] ss:$4 sm:$0xff] }
 0x498   : > { %3678 = vst [vmem:[#allocation2 + $0x2c8] sm:$0xff] %v3534_v8  ;;  %v3391_v12 = vmax.f32 %v3247_v39, 0.0  ;;  %v3248_v18 = vadd.f32 %v12169_v31, %v3104_v53  ;;  %v4029_v13 = vpack.c.bf16 %v3990_v11, %v3988_v10 }
 0x499   : > { %v2960_v16 = vmax.f32 %v2816_v9, 0.0 }
 0x49a   : > { %v3535_v19 = vmax.f32 %v2959_v17, %v3391_v12  ;;  %v3392_v20 = vmax.f32 %v3248_v18, 0.0  ;;  %v2312_v29 = vpop.f32.mrb[184].mxu0  ;;  %9378 = vmatprep.mubr.bf16.mxu1 %v4029_v13 }
 0x49b   : > { %v2669_v58 = vmul.f32 %v12159_v28, %v2312_v29  ;;  %v2314_v23 = vpop.f32.mrb[185].mxu0 }
 0x49c   : > { %3679 = vst [vmem:[#allocation2 + $0x2d0] sm:$0xff] %v3535_v19  ;;  %v3536_v26 = vmax.f32 %v2960_v16, %v3392_v20  ;;  %v3105_v56 = vmul.f32 %v12159_v28, %v2314_v23  ;;  %v2316_v42 = vpop.f32.mrb[186].mxu0 }
 0x49d   : > { %v2817_v27 = vadd.f32 %v12169_v31, %v2669_v58  ;;  %v2670_v57 = vmul.f32 %v12159_v28, %v2316_v42  ;;  %v2318_v32 = vpop.f32.mrb[187].mxu0 }
 0x49e   : > { %3680 = vst [vmem:[#allocation2 + $0x2d8] sm:$0xff] %v3536_v26  ;;  %v3249_v59 = vadd.f32 %v12169_v31, %v3105_v56  ;;  %v3106_v43 = vmul.f32 %v12159_v28, %v2318_v32 }
 0x49f   : > { %v2961_v30 = vmax.f32 %v2817_v27, 0.0  ;;  %v2818_v45 = vadd.f32 %v12169_v31, %v2670_v57 }
 0x4a0   : > { %v3393_v7 = vmax.f32 %v3249_v59, 0.0  ;;  %v3250_v60 = vadd.f32 %v12169_v31, %v3106_v43 }
 0x4a1   : > { %v2962_v33 = vmax.f32 %v2818_v45, 0.0 }
 0x4a2   : > { %v3537_v34 = vmax.f32 %v2961_v30, %v3393_v7  ;;  %v3394_v37 = vmax.f32 %v3250_v60, 0.0  ;;  %v2322_v40 = vpop.f32.mrb[188].mxu0 }
 0x4a3   : > { %v2671_v46 = vmul.f32 %v12159_v28, %v2322_v40  ;;  %v2324_v41 = vpop.f32.mrb[189].mxu0 }
 0x4a4   : > { %3681 = vst [vmem:[#allocation2 + $0x2e0] sm:$0xff] %v3537_v34  ;;  %v3538_v44 = vmax.f32 %v2962_v33, %v3394_v37  ;;  %v3107_v47 = vmul.f32 %v12159_v28, %v2324_v41  ;;  %v2326_v21 = vpop.f32.mrb[190].mxu0 }
 0x4a5   : > { %v2819_v4 = vadd.f32 %v12169_v31, %v2671_v46  ;;  %v2672_v48 = vmul.f32 %v12159_v28, %v2326_v21  ;;  %v2328_v51 = vpop.f32.mrb[191].mxu0  ;;  %v3992_v58 = vld [vmem:[#allocation2 + $0x2c1] ss:$4 sm:$0xff] }
 0x4a6   : > { %3682 = vst [vmem:[#allocation2 + $0x2e8] sm:$0xff] %v3538_v44  ;;  %v3251_v22 = vadd.f32 %v12169_v31, %v3107_v47  ;;  %v3108_v54 = vmul.f32 %v12159_v28, %v2328_v51 }
 0x4a7   : > { %v2963_v24 = vmax.f32 %v2819_v4, 0.0  ;;  %v2820_v63 = vadd.f32 %v12169_v31, %v2672_v48  ;;  %v11023_v4 = vld [vmem:[%s13813_s1 + $0x10] ss:$8 sps:$4 sm:$0xff]  }
 0x4a8   : > { %v3395_v55 = vmax.f32 %v3251_v22, 0.0  ;;  %v3252_v0 = vadd.f32 %v12169_v31, %v3108_v54  ;;  %9394 = vmatprep.subr.bf16.mxu1 %v11023_v4 }
 0x4a9   : > { %v2964_v61 = vmax.f32 %v2820_v63, 0.0  ;;  %9395 = vmatpush3.bf16.msra.mxu1 %v11023_v4  ;;  %v11026_v4 = vld [vmem:[%s13813_s1 + $0x40] ss:$8 sps:$4 sm:$0xff]  }
 0x4aa   : > { %v3539_v62 = vmax.f32 %v2963_v24, %v3395_v55  ;;  %v3396_v2 = vmax.f32 %v3252_v0, 0.0  ;;  %v2332_v35 = vpop.f32.mrb[192].mxu0 }
 0x4ab   : > { %v2673_v1 = vmul.f32 %v12159_v28, %v2332_v35  ;;  %v2334_v25 = vpop.f32.mrb[193].mxu0 }
 0x4ac   : > { %3683 = vst [vmem:[#allocation2 + $0x2f0] sm:$0xff] %v3539_v62  ;;  %v3540_v36 = vmax.f32 %v2964_v61, %v3396_v2  ;;  %v3109_v3 = vmul.f32 %v12159_v28, %v2334_v25  ;;  %v2336_v49 = vpop.f32.mrb[194].mxu0 }
 0x4ad   : > { %v2821_v14 = vadd.f32 %v12169_v31, %v2673_v1  ;;  %v2674_v38 = vmul.f32 %v12159_v28, %v2336_v49  ;;  %v2338_v50 = vpop.f32.mrb[195].mxu0 }
 0x4ae   : > { %3684 = vst [vmem:[#allocation2 + $0x2f8] sm:$0xff] %v3540_v36  ;;  %v3253_v5 = vadd.f32 %v12169_v31, %v3109_v3  ;;  %v3110_v52 = vmul.f32 %v12159_v28, %v2338_v50 }
 0x4af   : > { %v2965_v6 = vmax.f32 %v2821_v14, 0.0  ;;  %v2822_v15 = vadd.f32 %v12169_v31, %v2674_v38  ;;  %v11024_v38 = vld [vmem:[%s13813_s1 + $0x20] ss:$8 sps:$4 sm:$0xff]  }
 0x4b0   : > { %v3397_v8 = vmax.f32 %v3253_v5, 0.0  ;;  %v3254_v39 = vadd.f32 %v12169_v31, %v3110_v52  ;;  %9396 = vmatprep.subr.bf16.mxu1 %v11024_v38 }
 0x4b1   : > { %v2966_v53 = vmax.f32 %v2822_v15, 0.0  ;;  %9397 = vmatpush3.bf16.msra.mxu1 %v11024_v38 }
 0x4b2   : > { %v3541_v17 = vmax.f32 %v2965_v6, %v3397_v8  ;;  %v3398_v9 = vmax.f32 %v3254_v39, 0.0  ;;  %v2342_v10 = vpop.f32.mrb[196].mxu0 }
 0x4b3   : > { %v2675_v11 = vmul.f32 %v12159_v28, %v2342_v10  ;;  %v2344_v12 = vpop.f32.mrb[197].mxu0 }
 0x4b4   : > { %3685 = vst [vmem:[#allocation2 + $0x300] sm:$0xff] %v3541_v17  ;;  %v3542_v18 = vmax.f32 %v2966_v53, %v3398_v9  ;;  %v3111_v13 = vmul.f32 %v12159_v28, %v2344_v12  ;;  %v2346_v16 = vpop.f32.mrb[198].mxu0 }
 0x4b5   : > { %v2823_v19 = vadd.f32 %v12169_v31, %v2675_v11  ;;  %v2676_v20 = vmul.f32 %v12159_v28, %v2346_v16  ;;  %v2348_v29 = vpop.f32.mrb[199].mxu0  ;;  %v3994_v23 = vld [vmem:[#allocation2 + $0x2e1] ss:$4 sm:$0xff] }
 0x4b6   : > { %3686 = vst [vmem:[#allocation2 + $0x308] sm:$0xff] %v3542_v18  ;;  %v3255_v26 = vadd.f32 %v12169_v31, %v3111_v13  ;;  %v3112_v56 = vmul.f32 %v12159_v28, %v2348_v29  ;;  %v4030_v42 = vpack.c.bf16 %v3994_v23, %v3992_v58  ;;  %v11025_v29 = vld [vmem:[%s13813_s1 + $0x30] ss:$8 sps:$4 sm:$0xff]  }
 0x4b7   : > { %v2967_v27 = vmax.f32 %v2823_v19, 0.0  ;;  %v2824_v57 = vadd.f32 %v12169_v31, %v2676_v20  ;;  %9398 = vmatprep.subr.bf16.mxu1 %v11025_v29 }
 0x4b8   : > { %v3399_v32 = vmax.f32 %v3255_v26, 0.0  ;;  %v3256_v59 = vadd.f32 %v12169_v31, %v3112_v56  ;;  %9379 = vmatmul.mubr.bf16.gmra.mrb[20].mxu1 %v4030_v42 }
 0x4b9   : > { %v2968_v43 = vmax.f32 %v2824_v57, 0.0  ;;  %9399 = vmatpush3.bf16.msra.mxu1 %v11025_v29 }
 0x4ba   : > { %v3543_v30 = vmax.f32 %v2967_v27, %v3399_v32  ;;  %v3400_v45 = vmax.f32 %v3256_v59, 0.0  ;;  %v2352_v7 = vpop.f32.mrb[200].mxu0  ;;  %9400 = vmatprep.subr.bf16.mxu1 %v11026_v4 }
 0x4bb   : > { %v2677_v60 = vmul.f32 %v12159_v28, %v2352_v7  ;;  %v2354_v33 = vpop.f32.mrb[201].mxu0 }
 0x4bc   : > { %3687 = vst [vmem:[#allocation2 + $0x310] sm:$0xff] %v3543_v30  ;;  %v3544_v34 = vmax.f32 %v2968_v43, %v3400_v45  ;;  %v3113_v37 = vmul.f32 %v12159_v28, %v2354_v33  ;;  %v2356_v40 = vpop.f32.mrb[202].mxu0 }
 0x4bd   : > { %v2825_v46 = vadd.f32 %v12169_v31, %v2677_v60  ;;  %v2678_v41 = vmul.f32 %v12159_v28, %v2356_v40  ;;  %v2358_v44 = vpop.f32.mrb[203].mxu0  ;;  %9401 = vmatpush3.bf16.msra.mxu1 %v11026_v4 }
 0x4be   : > { %3688 = vst [vmem:[#allocation2 + $0x318] sm:$0xff] %v3544_v34  ;;  %v3257_v47 = vadd.f32 %v12169_v31, %v3113_v37  ;;  %v3114_v21 = vmul.f32 %v12159_v28, %v2358_v44 }
 0x4bf   : > { %v2969_v48 = vmax.f32 %v2825_v46, 0.0  ;;  %v2826_v51 = vadd.f32 %v12169_v31, %v2678_v41 }
 0x4c0   : > { %v3401_v22 = vmax.f32 %v3257_v47, 0.0  ;;  %v3258_v54 = vadd.f32 %v12169_v31, %v3114_v21 }
 0x4c1   : > { %v2970_v24 = vmax.f32 %v2826_v51, 0.0 }
 0x4c2   : > { %v3545_v63 = vmax.f32 %v2969_v48, %v3401_v22  ;;  %v3402_v55 = vmax.f32 %v3258_v54, 0.0  ;;  %v2362_v0 = vpop.f32.mrb[204].mxu0 }
 0x4c3   : > { %v2679_v61 = vmul.f32 %v12159_v28, %v2362_v0  ;;  %v2364_v62 = vpop.f32.mrb[205].mxu0 }
 0x4c4   : > { %3689 = vst [vmem:[#allocation2 + $0x320] sm:$0xff] %v3545_v63  ;;  %v3546_v2 = vmax.f32 %v2970_v24, %v3402_v55  ;;  %v3115_v35 = vmul.f32 %v12159_v28, %v2364_v62  ;;  %v2366_v1 = vpop.f32.mrb[206].mxu0 }
 0x4c5   : > { %v2827_v25 = vadd.f32 %v12169_v31, %v2679_v61  ;;  %v2680_v36 = vmul.f32 %v12159_v28, %v2366_v1  ;;  %v2368_v3 = vpop.f32.mrb[207].mxu0  ;;  %v3996_v37 = vld [vmem:[#allocation2 + $0x301] ss:$4 sm:$0xff] }
 0x4c6   : > { %3690 = vst [vmem:[#allocation2 + $0x328] sm:$0xff] %v3546_v2  ;;  %v3259_v49 = vadd.f32 %v12169_v31, %v3115_v35  ;;  %v3116_v14 = vmul.f32 %v12159_v28, %v2368_v3 }
 0x4c7   : > { %v2971_v50 = vmax.f32 %v2827_v25, 0.0  ;;  %v2828_v5 = vadd.f32 %v12169_v31, %v2680_v36 }
 0x4c8   : > { %v3403_v52 = vmax.f32 %v3259_v49, 0.0  ;;  %v3260_v6 = vadd.f32 %v12169_v31, %v3116_v14 }
 0x4c9   : > { %v2972_v15 = vmax.f32 %v2828_v5, 0.0 }
 0x4ca   : > { %v3547_v8 = vmax.f32 %v2971_v50, %v3403_v52  ;;  %v3404_v39 = vmax.f32 %v3260_v6, 0.0  ;;  %v2372_v53 = vpop.f32.mrb[208].mxu0 }
 0x4cb   : > { %v2681_v17 = vmul.f32 %v12159_v28, %v2372_v53  ;;  %v2374_v9 = vpop.f32.mrb[209].mxu0 }
 0x4cc   : > { %3691 = vst [vmem:[#allocation2 + $0x330] sm:$0xff] %v3547_v8  ;;  %v3548_v10 = vmax.f32 %v2972_v15, %v3404_v39  ;;  %v3117_v11 = vmul.f32 %v12159_v28, %v2374_v9  ;;  %v2376_v12 = vpop.f32.mrb[210].mxu0 }
 0x4cd   : > { %v2829_v18 = vadd.f32 %v12169_v31, %v2681_v17  ;;  %v2682_v13 = vmul.f32 %v12159_v28, %v2376_v12  ;;  %v2378_v16 = vpop.f32.mrb[211].mxu0 }
 0x4ce   : > { %3692 = vst [vmem:[#allocation2 + $0x338] sm:$0xff] %v3548_v10  ;;  %v3261_v19 = vadd.f32 %v12169_v31, %v3117_v11  ;;  %v3118_v20 = vmul.f32 %v12159_v28, %v2378_v16  ;;  %v12352_v10 = vld [vmem:[%s13813_s1 + $0x50] ss:$8 sps:$4 sm:$0xff]  }
 0x4cf   : > { %v2973_v58 = vmax.f32 %v2829_v18, 0.0  ;;  %v2830_v23 = vadd.f32 %v12169_v31, %v2682_v13  ;;  %9402 = vmatprep.subr.bf16.mxu1 %v12352_v10 }
 0x4d0   : > { %v3405_v26 = vmax.f32 %v3261_v19, 0.0  ;;  %v3262_v56 = vadd.f32 %v12169_v31, %v3118_v20  ;;  %9403 = vmatpush3.bf16.msra.mxu1 %v12352_v10 }
 0x4d1   : > { %v2974_v42 = vmax.f32 %v2830_v23, 0.0 }
 0x4d2   : > { %v3549_v27 = vmax.f32 %v2973_v58, %v3405_v26  ;;  %v3406_v57 = vmax.f32 %v3262_v56, 0.0  ;;  %v2382_v32 = vpop.f32.mrb[212].mxu0 }
 0x4d3   : > { %v2683_v59 = vmul.f32 %v12159_v28, %v2382_v32  ;;  %v2384_v43 = vpop.f32.mrb[213].mxu0 }
 0x4d4   : > { %3693 = vst [vmem:[#allocation2 + $0x340] sm:$0xff] %v3549_v27  ;;  %v3550_v30 = vmax.f32 %v2974_v42, %v3406_v57  ;;  %v3119_v45 = vmul.f32 %v12159_v28, %v2384_v43  ;;  %v2386_v7 = vpop.f32.mrb[214].mxu0 }
 0x4d5   : > { %v2831_v60 = vadd.f32 %v12169_v31, %v2683_v59  ;;  %v2684_v33 = vmul.f32 %v12159_v28, %v2386_v7  ;;  %v2388_v34 = vpop.f32.mrb[215].mxu0  ;;  %v3998_v40 = vld [vmem:[#allocation2 + $0x321] ss:$4 sm:$0xff] }
 0x4d6   : > { %3694 = vst [vmem:[#allocation2 + $0x348] sm:$0xff] %v3550_v30  ;;  %v3263_v46 = vadd.f32 %v12169_v31, %v3119_v45  ;;  %v3120_v41 = vmul.f32 %v12159_v28, %v2388_v34  ;;  %v4031_v44 = vpack.c.bf16 %v3998_v40, %v3996_v37  ;;  %v12367_v30 = vld [vmem:[%s13813_s1 + $0x60] ss:$8 sps:$4 sm:$0xff]   ;;  %v12377_v37 = vld [vmem:[%s13813_s1 + $0x70] ss:$8 sps:$4 sm:$0xff]  }
 0x4d7   : > { %v2975_v47 = vmax.f32 %v2831_v60, 0.0  ;;  %v2832_v21 = vadd.f32 %v12169_v31, %v2684_v33  ;;  %9404 = vmatprep.subr.bf16.mxu1 %v12367_v30 }
 0x4d8   : > { %v3407_v48 = vmax.f32 %v3263_v46, 0.0  ;;  %v3264_v51 = vadd.f32 %v12169_v31, %v3120_v41  ;;  %9382 = vmatprep.mubr.bf16.mxu1 %v4031_v44  ;;  %9405 = vmatpush3.bf16.msra.mxu1 %v12367_v30  ;;  %v11120_v41 = vmov 0.0  }
 0x4d9   : > { %v2976_v22 = vmax.f32 %v2832_v21, 0.0  ;;  %3733 = vst [vmem:[#allocation2 + $0x480] sm:$0xff] %v11120_v41  ;;  %6967 = vst [vmem:[#allocation3 + $0x120] sm:$0xff] %v11120_v41  ;;  %9406 = vmatprep.subr.bf16.mxu1 %v12377_v37  ;;  %v12386_v21 = vld [vmem:[%s13813_s1 + $0x80] ss:$8 sps:$4 sm:$0xff]  }
 0x4da   : > { %v3551_v54 = vmax.f32 %v2975_v47, %v3407_v48  ;;  %v3408_v24 = vmax.f32 %v3264_v51, 0.0  ;;  %v2392_v63 = vpop.f32.mrb[216].mxu0 }
 0x4db   : > { %v2685_v55 = vmul.f32 %v12159_v28, %v2392_v63  ;;  %v2394_v0 = vpop.f32.mrb[217].mxu0 }
 0x4dc   : > { %3695 = vst [vmem:[#allocation2 + $0x350] sm:$0xff] %v3551_v54  ;;  %v3552_v61 = vmax.f32 %v2976_v22, %v3408_v24  ;;  %v3121_v62 = vmul.f32 %v12159_v28, %v2394_v0  ;;  %v2396_v2 = vpop.f32.mrb[218].mxu0  ;;  %9407 = vmatpush3.bf16.msra.mxu1 %v12377_v37 }
 0x4dd   : > { %v2833_v35 = vadd.f32 %v12169_v31, %v2685_v55  ;;  %v2686_v1 = vmul.f32 %v12159_v28, %v2396_v2  ;;  %v2398_v25 = vpop.f32.mrb[219].mxu0  ;;  %9408 = vmatprep.subr.bf16.mxu1 %v12386_v21 }
 0x4de   : > { %3696 = vst [vmem:[#allocation2 + $0x358] sm:$0xff] %v3552_v61  ;;  %v3265_v36 = vadd.f32 %v12169_v31, %v3121_v62  ;;  %v3122_v3 = vmul.f32 %v12159_v28, %v2398_v25 }
 0x4df   : > { %v2977_v49 = vmax.f32 %v2833_v35, 0.0  ;;  %v2834_v14 = vadd.f32 %v12169_v31, %v2686_v1 }
 0x4e0   : > { %v3409_v38 = vmax.f32 %v3265_v36, 0.0  ;;  %v3266_v50 = vadd.f32 %v12169_v31, %v3122_v3  ;;  %9409 = vmatpush3.bf16.msra.mxu1 %v12386_v21 }
 0x4e1   : > { %v2978_v5 = vmax.f32 %v2834_v14, 0.0 }
 0x4e2   : > { %v3553_v52 = vmax.f32 %v2977_v49, %v3409_v38  ;;  %v3410_v6 = vmax.f32 %v3266_v50, 0.0  ;;  %v2402_v15 = vpop.f32.mrb[220].mxu0 }
 0x4e3   : > { %v2687_v8 = vmul.f32 %v12159_v28, %v2402_v15  ;;  %v2404_v39 = vpop.f32.mrb[221].mxu0 }
 0x4e4   : > { %3697 = vst [vmem:[#allocation2 + $0x360] sm:$0xff] %v3553_v52  ;;  %v3554_v53 = vmax.f32 %v2978_v5, %v3410_v6  ;;  %v3123_v17 = vmul.f32 %v12159_v28, %v2404_v39  ;;  %v2406_v9 = vpop.f32.mrb[222].mxu0  ;;  %v12402_v5 = vld [vmem:[%s13813_s1 + $0x90] ss:$8 sps:$4 sm:$0xff]  }
 0x4e5   : > { %v2835_v11 = vadd.f32 %v12169_v31, %v2687_v8  ;;  %v2688_v12 = vmul.f32 %v12159_v28, %v2406_v9  ;;  %v2408_v18 = vpop.f32.mrb[223].mxu0  ;;  %v4000_v35 = vld [vmem:[#allocation2 + $0x341] ss:$4 sm:$0xff]  ;;  %9446 = vmatprep.subr.bf16.mxu1 %v12402_v5 }
 0x4e6   : > { %3698 = vst [vmem:[#allocation2 + $0x368] sm:$0xff] %v3554_v53  ;;  %v3267_v13 = vadd.f32 %v12169_v31, %v3123_v17  ;;  %v3124_v16 = vmul.f32 %v12159_v28, %v2408_v18 }
 0x4e7   : > { %v2979_v19 = vmax.f32 %v2835_v11, 0.0  ;;  %v2836_v20 = vadd.f32 %v12169_v31, %v2688_v12 }
 0x4e8   : > { %v3411_v29 = vmax.f32 %v3267_v13, 0.0  ;;  %v3268_v58 = vadd.f32 %v12169_v31, %v3124_v16 }
 0x4e9   : > { %v2980_v23 = vmax.f32 %v2836_v20, 0.0 }
 0x4ea   : > { %v3555_v26 = vmax.f32 %v2979_v19, %v3411_v29  ;;  %v3412_v56 = vmax.f32 %v3268_v58, 0.0  ;;  %v2412_v42 = vpop.f32.mrb[224].mxu0 }
 0x4eb   : > { %v2689_v27 = vmul.f32 %v12159_v28, %v2412_v42  ;;  %v2414_v57 = vpop.f32.mrb[225].mxu0 }
 0x4ec   : > { %3699 = vst [vmem:[#allocation2 + $0x370] sm:$0xff] %v3555_v26  ;;  %v3556_v32 = vmax.f32 %v2980_v23, %v3412_v56  ;;  %v3125_v59 = vmul.f32 %v12159_v28, %v2414_v57  ;;  %v2416_v43 = vpop.f32.mrb[226].mxu0 }
 0x4ed   : > { %v2837_v45 = vadd.f32 %v12169_v31, %v2689_v27  ;;  %v2690_v7 = vmul.f32 %v12159_v28, %v2416_v43  ;;  %v2418_v60 = vpop.f32.mrb[227].mxu0 }
 0x4ee   : > { %3700 = vst [vmem:[#allocation2 + $0x378] sm:$0xff] %v3556_v32  ;;  %v3269_v33 = vadd.f32 %v12169_v31, %v3125_v59  ;;  %v3126_v34 = vmul.f32 %v12159_v28, %v2418_v60 }
 0x4ef   : > { %v2981_v40 = vmax.f32 %v2837_v45, 0.0  ;;  %v2838_v46 = vadd.f32 %v12169_v31, %v2690_v7 }
 0x4f0   : > { %v3413_v44 = vmax.f32 %v3269_v33, 0.0  ;;  %v3270_v47 = vadd.f32 %v12169_v31, %v3126_v34 }
 0x4f1   : > { %v2982_v4 = vmax.f32 %v2838_v46, 0.0 }
 0x4f2   : > { %v3557_v48 = vmax.f32 %v2981_v40, %v3413_v44  ;;  %v3414_v51 = vmax.f32 %v3270_v47, 0.0  ;;  %v2422_v22 = vpop.f32.mrb[228].mxu0 }
 0x4f3   : > { %v2691_v54 = vmul.f32 %v12159_v28, %v2422_v22  ;;  %v2424_v24 = vpop.f32.mrb[229].mxu0 }
 0x4f4   : > { %3701 = vst [vmem:[#allocation2 + $0x380] sm:$0xff] %v3557_v48  ;;  %v3558_v63 = vmax.f32 %v2982_v4, %v3414_v51  ;;  %v3127_v55 = vmul.f32 %v12159_v28, %v2424_v24  ;;  %v2426_v0 = vpop.f32.mrb[230].mxu0 }
 0x4f5   : > { %v2839_v61 = vadd.f32 %v12169_v31, %v2691_v54  ;;  %v2692_v62 = vmul.f32 %v12159_v28, %v2426_v0  ;;  %v2428_v2 = vpop.f32.mrb[231].mxu0  ;;  %v4002_v1 = vld [vmem:[#allocation2 + $0x361] ss:$4 sm:$0xff] }
 0x4f6   : > { %3702 = vst [vmem:[#allocation2 + $0x388] sm:$0xff] %v3558_v63  ;;  %v3271_v25 = vadd.f32 %v12169_v31, %v3127_v55  ;;  %v3128_v36 = vmul.f32 %v12159_v28, %v2428_v2  ;;  %v4032_v3 = vpack.c.bf16 %v4002_v1, %v4000_v35  ;;  %v12425_v55 = vld [vmem:[%s13814_s2] ss:$0 sm:$0xff] }
 0x4f7   : > { %v2983_v49 = vmax.f32 %v2839_v61, 0.0  ;;  %v2840_v14 = vadd.f32 %v12169_v31, %v2692_v62 }
 0x4f8   : > { %v3415_v38 = vmax.f32 %v3271_v25, 0.0  ;;  %v3272_v50 = vadd.f32 %v12169_v31, %v3128_v36  ;;  %9383 = vmatmul.mubr.bf16.gmra.mrb[24].mxu1 %v4032_v3 }
 0x4f9   : > { %v2984_v52 = vmax.f32 %v2840_v14, 0.0 }
 0x4fa   : > { %v3559_v6 = vmax.f32 %v2983_v49, %v3415_v38  ;;  %v3416_v15 = vmax.f32 %v3272_v50, 0.0  ;;  %v2432_v8 = vpop.f32.mrb[232].mxu0 }
 0x4fb   : > { %v2693_v39 = vmul.f32 %v12159_v28, %v2432_v8  ;;  %v2434_v53 = vpop.f32.mrb[233].mxu0 }
 0x4fc   : > { %3703 = vst [vmem:[#allocation2 + $0x390] sm:$0xff] %v3559_v6  ;;  %v3560_v17 = vmax.f32 %v2984_v52, %v3416_v15  ;;  %v3129_v9 = vmul.f32 %v12159_v28, %v2434_v53  ;;  %v2436_v11 = vpop.f32.mrb[234].mxu0 }
 0x4fd   : > { %v2841_v12 = vadd.f32 %v12169_v31, %v2693_v39  ;;  %v2694_v18 = vmul.f32 %v12159_v28, %v2436_v11  ;;  %v2438_v13 = vpop.f32.mrb[235].mxu0 }
 0x4fe   : > { %3704 = vst [vmem:[#allocation2 + $0x398] sm:$0xff] %v3560_v17  ;;  %v3273_v16 = vadd.f32 %v12169_v31, %v3129_v9  ;;  %v3130_v19 = vmul.f32 %v12159_v28, %v2438_v13 }
 0x4ff   : > { %v2985_v20 = vmax.f32 %v2841_v12, 0.0  ;;  %v2842_v29 = vadd.f32 %v12169_v31, %v2694_v18 }
 0x500   : > { %v3417_v58 = vmax.f32 %v3273_v16, 0.0  ;;  %v3274_v23 = vadd.f32 %v12169_v31, %v3130_v19 }
 0x501   : > { %v2986_v26 = vmax.f32 %v2842_v29, 0.0 }
 0x502   : > { %v3561_v56 = vmax.f32 %v2985_v20, %v3417_v58  ;;  %v3418_v42 = vmax.f32 %v3274_v23, 0.0  ;;  %v2442_v27 = vpop.f32.mrb[236].mxu0 }
 0x503   : > { %v2695_v57 = vmul.f32 %v12159_v28, %v2442_v27  ;;  %v2444_v32 = vpop.f32.mrb[237].mxu0 }
 0x504   : > { %3705 = vst [vmem:[#allocation2 + $0x3a0] sm:$0xff] %v3561_v56  ;;  %v3562_v59 = vmax.f32 %v2986_v26, %v3418_v42  ;;  %v3131_v43 = vmul.f32 %v12159_v28, %v2444_v32  ;;  %v2446_v45 = vpop.f32.mrb[238].mxu0 }
 0x505   : > { %v2843_v7 = vadd.f32 %v12169_v31, %v2695_v57  ;;  %v2696_v60 = vmul.f32 %v12159_v28, %v2446_v45  ;;  %v2448_v33 = vpop.f32.mrb[239].mxu0  ;;  %v4004_v12 = vld [vmem:[#allocation2 + $0x381] ss:$4 sm:$0xff] }
 0x506   : > { %3706 = vst [vmem:[#allocation2 + $0x3a8] sm:$0xff] %v3562_v59  ;;  %v3275_v34 = vadd.f32 %v12169_v31, %v3131_v43  ;;  %v3132_v40 = vmul.f32 %v12159_v28, %v2448_v33 }
 0x507   : > { %v2987_v46 = vmax.f32 %v2843_v7, 0.0  ;;  %v2844_v41 = vadd.f32 %v12169_v31, %v2696_v60 }
 0x508   : > { %v3419_v44 = vmax.f32 %v3275_v34, 0.0  ;;  %v3276_v47 = vadd.f32 %v12169_v31, %v3132_v40 }
 0x509   : > { %v2988_v4 = vmax.f32 %v2844_v41, 0.0 }
 0x50a   : > { %v3563_v48 = vmax.f32 %v2987_v46, %v3419_v44  ;;  %v3420_v51 = vmax.f32 %v3276_v47, 0.0  ;;  %v2452_v22 = vpop.f32.mrb[240].mxu0 }
 0x50b   : > { %v2697_v54 = vmul.f32 %v12159_v28, %v2452_v22  ;;  %v2454_v24 = vpop.f32.mrb[241].mxu0  ;;  %v12433_v28 = vld [vmem:[%s13814_s2 + $0x1] ss:$0 sm:$0xff] }
 0x50c   : > { %3707 = vst [vmem:[#allocation2 + $0x3b0] sm:$0xff] %v3563_v48  ;;  %v3564_v63 = vmax.f32 %v2988_v4, %v3420_v51  ;;  %v3133_v0 = vmul.f32 %v12425_v55, %v2454_v24  ;;  %v2456_v61 = vpop.f32.mrb[242].mxu0 }
 0x50d   : > { %v2845_v62 = vadd.f32 %v12169_v31, %v2697_v54  ;;  %v2698_v2 = vmul.f32 %v12425_v55, %v2456_v61  ;;  %v2458_v35 = vpop.f32.mrb[243].mxu0 }
 0x50e   : > { %3708 = vst [vmem:[#allocation2 + $0x3b8] sm:$0xff] %v3564_v63  ;;  %v3277_v1 = vadd.f32 %v12433_v28, %v3133_v0  ;;  %v3134_v25 = vmul.f32 %v12425_v55, %v2458_v35 }
 0x50f   : > { %v2989_v36 = vmax.f32 %v2845_v62, 0.0  ;;  %v2846_v3 = vadd.f32 %v12433_v28, %v2698_v2 }
 0x510   : > { %v3421_v49 = vmax.f32 %v3277_v1, 0.0  ;;  %v3278_v14 = vadd.f32 %v12433_v28, %v3134_v25 }
 0x511   : > { %v2990_v31 = vmax.f32 %v2846_v3, 0.0 }
 0x512   : > { %v3565_v38 = vmax.f32 %v2989_v36, %v3421_v49  ;;  %v3422_v50 = vmax.f32 %v3278_v14, 0.0  ;;  %v2462_v52 = vpop.f32.mrb[244].mxu0 }
 0x513   : > { %v2699_v6 = vmul.f32 %v12425_v55, %v2462_v52  ;;  %v2464_v15 = vpop.f32.mrb[245].mxu0 }
 0x514   : > { %3709 = vst [vmem:[#allocation2 + $0x3c0] sm:$0xff] %v3565_v38  ;;  %v3566_v8 = vmax.f32 %v2990_v31, %v3422_v50  ;;  %v3135_v39 = vmul.f32 %v12425_v55, %v2464_v15  ;;  %v2466_v53 = vpop.f32.mrb[246].mxu0 }
 0x515   : > { %v2847_v17 = vadd.f32 %v12433_v28, %v2699_v6  ;;  %v2700_v9 = vmul.f32 %v12425_v55, %v2466_v53  ;;  %v2468_v11 = vpop.f32.mrb[247].mxu0  ;;  %v4006_v18 = vld [vmem:[#allocation2 + $0x3a1] ss:$4 sm:$0xff] }
 0x516   : > { %3710 = vst [vmem:[#allocation2 + $0x3c8] sm:$0xff] %v3566_v8  ;;  %v3279_v13 = vadd.f32 %v12433_v28, %v3135_v39  ;;  %v3136_v16 = vmul.f32 %v12425_v55, %v2468_v11  ;;  %v4033_v19 = vpack.c.bf16 %v4006_v18, %v4004_v12 }
 0x517   : > { %v2991_v20 = vmax.f32 %v2847_v17, 0.0  ;;  %v2848_v29 = vadd.f32 %v12433_v28, %v2700_v9 }
 0x518   : > { %v3423_v58 = vmax.f32 %v3279_v13, 0.0  ;;  %v3280_v23 = vadd.f32 %v12433_v28, %v3136_v16  ;;  %9386 = vmatprep.mubr.bf16.mxu1 %v4033_v19 }
 0x519   : > { %v2992_v26 = vmax.f32 %v2848_v29, 0.0 }
 0x51a   : > { %v3567_v56 = vmax.f32 %v2991_v20, %v3423_v58  ;;  %v3424_v42 = vmax.f32 %v3280_v23, 0.0  ;;  %v2472_v27 = vpop.f32.mrb[248].mxu0 }
 0x51b   : > { %v2701_v57 = vmul.f32 %v12425_v55, %v2472_v27  ;;  %v2474_v32 = vpop.f32.mrb[249].mxu0 }
 0x51c   : > { %3711 = vst [vmem:[#allocation2 + $0x3d0] sm:$0xff] %v3567_v56  ;;  %v3568_v59 = vmax.f32 %v2992_v26, %v3424_v42  ;;  %v3137_v43 = vmul.f32 %v12425_v55, %v2474_v32  ;;  %v2476_v45 = vpop.f32.mrb[250].mxu0 }
 0x51d   : > { %v2849_v7 = vadd.f32 %v12433_v28, %v2701_v57  ;;  %v2702_v60 = vmul.f32 %v12425_v55, %v2476_v45  ;;  %v2478_v33 = vpop.f32.mrb[251].mxu0 }
 0x51e   : > { %3712 = vst [vmem:[#allocation2 + $0x3d8] sm:$0xff] %v3568_v59  ;;  %v3281_v34 = vadd.f32 %v12433_v28, %v3137_v43  ;;  %v3138_v40 = vmul.f32 %v12425_v55, %v2478_v33 }
 0x51f   : > { %v2993_v46 = vmax.f32 %v2849_v7, 0.0  ;;  %v2850_v41 = vadd.f32 %v12433_v28, %v2702_v60 }
 0x520   : > { %v3425_v44 = vmax.f32 %v3281_v34, 0.0  ;;  %v3282_v47 = vadd.f32 %v12433_v28, %v3138_v40 }
 0x521   : > { %v2994_v4 = vmax.f32 %v2850_v41, 0.0 }
 0x522   : > { %v3569_v48 = vmax.f32 %v2993_v46, %v3425_v44  ;;  %v3426_v51 = vmax.f32 %v3282_v47, 0.0  ;;  %v2482_v22 = vpop.f32.mrb[252].mxu0 }
 0x523   : > { %v2703_v54 = vmul.f32 %v12425_v55, %v2482_v22  ;;  %v2484_v24 = vpop.f32.mrb[253].mxu0 }
 0x524   : > { %3713 = vst [vmem:[#allocation2 + $0x3e0] sm:$0xff] %v3569_v48  ;;  %v3570_v63 = vmax.f32 %v2994_v4, %v3426_v51  ;;  %v3139_v0 = vmul.f32 %v12425_v55, %v2484_v24  ;;  %v2486_v61 = vpop.f32.mrb[254].mxu0 }
 0x525   : > { %v2851_v62 = vadd.f32 %v12433_v28, %v2703_v54  ;;  %v2704_v2 = vmul.f32 %v12425_v55, %v2486_v61  ;;  %v2488_v35 = vpop.f32.mrb[255].mxu0  ;;  %v4008_v7 = vld [vmem:[#allocation2 + $0x3c1] ss:$4 sm:$0xff] }
 0x526   : > { %3714 = vst [vmem:[#allocation2 + $0x3e8] sm:$0xff] %v3570_v63  ;;  %v3283_v1 = vadd.f32 %v12433_v28, %v3139_v0  ;;  %v3140_v25 = vmul.f32 %v12425_v55, %v2488_v35 }
 0x527   : > { %v2995_v36 = vmax.f32 %v2851_v62, 0.0  ;;  %v2852_v3 = vadd.f32 %v12433_v28, %v2704_v2 }
 0x528   : > { %v3427_v49 = vmax.f32 %v3283_v1, 0.0  ;;  %v3284_v14 = vadd.f32 %v12433_v28, %v3140_v25 }
 0x529   : > { %v2996_v31 = vmax.f32 %v2852_v3, 0.0 }
 0x52a   : > { %v3571_v38 = vmax.f32 %v2995_v36, %v3427_v49  ;;  %v3428_v50 = vmax.f32 %v3284_v14, 0.0  ;;  %v2492_v52 = vpop.f32.mrb[148].mxu0 }
 0x52b   : > { %v2705_v6 = vmul.f32 %v12425_v55, %v2492_v52  ;;  %v2494_v15 = vpop.f32.mrb[149].mxu0 }
 0x52c   : > { %3715 = vst [vmem:[#allocation2 + $0x3f0] sm:$0xff] %v3571_v38  ;;  %v3572_v8 = vmax.f32 %v2996_v31, %v3428_v50  ;;  %v3141_v39 = vmul.f32 %v12425_v55, %v2494_v15  ;;  %v2496_v53 = vpop.f32.mrb[150].mxu0 }
 0x52d   : > { %v2853_v17 = vadd.f32 %v12433_v28, %v2705_v6  ;;  %v2706_v9 = vmul.f32 %v12425_v55, %v2496_v53  ;;  %v2498_v11 = vpop.f32.mrb[151].mxu0 }
 0x52e   : > { %3716 = vst [vmem:[#allocation2 + $0x3f8] sm:$0xff] %v3572_v8  ;;  %v3285_v12 = vadd.f32 %v12433_v28, %v3141_v39  ;;  %v3142_v18 = vmul.f32 %v12425_v55, %v2498_v11 }
 0x52f   : > { %v2997_v13 = vmax.f32 %v2853_v17, 0.0  ;;  %v2854_v16 = vadd.f32 %v12433_v28, %v2706_v9 }
 0x530   : > { %v3429_v19 = vmax.f32 %v3285_v12, 0.0  ;;  %v3286_v20 = vadd.f32 %v12433_v28, %v3142_v18 }
 0x531   : > { %v2998_v29 = vmax.f32 %v2854_v16, 0.0 }
 0x532   : > { %v3573_v58 = vmax.f32 %v2997_v13, %v3429_v19  ;;  %v3430_v23 = vmax.f32 %v3286_v20, 0.0  ;;  %v2502_v26 = vpop.f32.mrb[152].mxu0 }
 0x533   : > { %v2707_v56 = vmul.f32 %v12425_v55, %v2502_v26  ;;  %v2504_v42 = vpop.f32.mrb[153].mxu0 }
 0x534   : > { %3717 = vst [vmem:[#allocation2 + $0x400] sm:$0xff] %v3573_v58  ;;  %v3574_v27 = vmax.f32 %v2998_v29, %v3430_v23  ;;  %v3143_v57 = vmul.f32 %v12425_v55, %v2504_v42  ;;  %v2506_v32 = vpop.f32.mrb[154].mxu0 }
 0x535   : > { %v2855_v59 = vadd.f32 %v12433_v28, %v2707_v56  ;;  %v2708_v43 = vmul.f32 %v12425_v55, %v2506_v32  ;;  %v2508_v45 = vpop.f32.mrb[155].mxu0  ;;  %v4010_v60 = vld [vmem:[#allocation2 + $0x3e1] ss:$4 sm:$0xff] }
 0x536   : > { %3718 = vst [vmem:[#allocation2 + $0x408] sm:$0xff] %v3574_v27  ;;  %v3287_v33 = vadd.f32 %v12433_v28, %v3143_v57  ;;  %v3144_v34 = vmul.f32 %v12425_v55, %v2508_v45  ;;  %v4034_v40 = vpack.c.bf16 %v4010_v60, %v4008_v7 }
 0x537   : > { %v2999_v46 = vmax.f32 %v2855_v59, 0.0  ;;  %v2856_v41 = vadd.f32 %v12433_v28, %v2708_v43 }
 0x538   : > { %v3431_v44 = vmax.f32 %v3287_v33, 0.0  ;;  %v3288_v47 = vadd.f32 %v12433_v28, %v3144_v34  ;;  %9387 = vmatmul.mubr.bf16.gmra.mrb[28].mxu1 %v4034_v40 }
 0x539   : > { %v3000_v4 = vmax.f32 %v2856_v41, 0.0 }
 0x53a   : > { %v3575_v48 = vmax.f32 %v2999_v46, %v3431_v44  ;;  %v3432_v51 = vmax.f32 %v3288_v47, 0.0  ;;  %v2512_v22 = vpop.f32.mrb[156].mxu0 }
 0x53b   : > { %v2709_v54 = vmul.f32 %v12425_v55, %v2512_v22  ;;  %v2514_v24 = vpop.f32.mrb[157].mxu0 }
 0x53c   : > { %3719 = vst [vmem:[#allocation2 + $0x410] sm:$0xff] %v3575_v48  ;;  %v3576_v63 = vmax.f32 %v3000_v4, %v3432_v51  ;;  %v3145_v0 = vmul.f32 %v12425_v55, %v2514_v24  ;;  %v2516_v61 = vpop.f32.mrb[158].mxu0 }
 0x53d   : > { %v2857_v62 = vadd.f32 %v12433_v28, %v2709_v54  ;;  %v2710_v2 = vmul.f32 %v12425_v55, %v2516_v61  ;;  %v2518_v35 = vpop.f32.mrb[159].mxu0 }
 0x53e   : > { %3720 = vst [vmem:[#allocation2 + $0x418] sm:$0xff] %v3576_v63  ;;  %v3289_v1 = vadd.f32 %v12433_v28, %v3145_v0  ;;  %v3146_v25 = vmul.f32 %v12425_v55, %v2518_v35 }
 0x53f   : > { %v3001_v36 = vmax.f32 %v2857_v62, 0.0  ;;  %v2858_v3 = vadd.f32 %v12433_v28, %v2710_v2 }
 0x540   : > { %v3433_v49 = vmax.f32 %v3289_v1, 0.0  ;;  %v3290_v14 = vadd.f32 %v12433_v28, %v3146_v25 }
 0x541   : > { %v3002_v31 = vmax.f32 %v2858_v3, 0.0 }
 0x542   : > { %v3577_v38 = vmax.f32 %v3001_v36, %v3433_v49  ;;  %v3434_v50 = vmax.f32 %v3290_v14, 0.0  ;;  %v2522_v52 = vpop.f32.mrb[160].mxu0 }
 0x543   : > { %v2711_v6 = vmul.f32 %v12425_v55, %v2522_v52  ;;  %v2524_v15 = vpop.f32.mrb[161].mxu0 }
 0x544   : > { %3721 = vst [vmem:[#allocation2 + $0x420] sm:$0xff] %v3577_v38  ;;  %v3578_v8 = vmax.f32 %v3002_v31, %v3434_v50  ;;  %v3147_v39 = vmul.f32 %v12425_v55, %v2524_v15  ;;  %v2526_v53 = vpop.f32.mrb[162].mxu0 }
 0x545   : > { %v2859_v17 = vadd.f32 %v12433_v28, %v2711_v6  ;;  %v2712_v9 = vmul.f32 %v12425_v55, %v2526_v53  ;;  %v2528_v11 = vpop.f32.mrb[163].mxu0  ;;  %v4012_v62 = vld [vmem:[#allocation2 + $0x401] ss:$4 sm:$0xff] }
 0x546   : > { %3722 = vst [vmem:[#allocation2 + $0x428] sm:$0xff] %v3578_v8  ;;  %v3291_v12 = vadd.f32 %v12433_v28, %v3147_v39  ;;  %v3148_v18 = vmul.f32 %v12425_v55, %v2528_v11 }
 0x547   : > { %v3003_v13 = vmax.f32 %v2859_v17, 0.0  ;;  %v2860_v16 = vadd.f32 %v12433_v28, %v2712_v9 }
 0x548   : > { %v3435_v19 = vmax.f32 %v3291_v12, 0.0  ;;  %v3292_v20 = vadd.f32 %v12433_v28, %v3148_v18 }
 0x549   : > { %v3004_v29 = vmax.f32 %v2860_v16, 0.0 }
 0x54a   : > { %v3579_v58 = vmax.f32 %v3003_v13, %v3435_v19  ;;  %v3436_v23 = vmax.f32 %v3292_v20, 0.0  ;;  %v2532_v26 = vpop.f32.mrb[164].mxu0 }
 0x54b   : > { %v2713_v56 = vmul.f32 %v12425_v55, %v2532_v26  ;;  %v2534_v42 = vpop.f32.mrb[165].mxu0 }
 0x54c   : > { %3723 = vst [vmem:[#allocation2 + $0x430] sm:$0xff] %v3579_v58  ;;  %v3580_v27 = vmax.f32 %v3004_v29, %v3436_v23  ;;  %v3149_v57 = vmul.f32 %v12425_v55, %v2534_v42  ;;  %v2536_v32 = vpop.f32.mrb[166].mxu0 }
 0x54d   : > { %v2861_v59 = vadd.f32 %v12433_v28, %v2713_v56  ;;  %v2714_v43 = vmul.f32 %v12425_v55, %v2536_v32  ;;  %v2538_v45 = vpop.f32.mrb[167].mxu0 }
 0x54e   : > { %3724 = vst [vmem:[#allocation2 + $0x438] sm:$0xff] %v3580_v27  ;;  %v3293_v7 = vadd.f32 %v12433_v28, %v3149_v57  ;;  %v3150_v60 = vmul.f32 %v12425_v55, %v2538_v45 }
 0x54f   : > { %v3005_v33 = vmax.f32 %v2861_v59, 0.0  ;;  %v2862_v34 = vadd.f32 %v12433_v28, %v2714_v43 }
 0x550   : > { %v3437_v40 = vmax.f32 %v3293_v7, 0.0  ;;  %v3294_v46 = vadd.f32 %v12433_v28, %v3150_v60 }
 0x551   : > { %v3006_v41 = vmax.f32 %v2862_v34, 0.0 }
 0x552   : > { %v3581_v44 = vmax.f32 %v3005_v33, %v3437_v40  ;;  %v3438_v47 = vmax.f32 %v3294_v46, 0.0  ;;  %v2542_v4 = vpop.f32.mrb[168].mxu0 }
 0x553   : > { %v2715_v48 = vmul.f32 %v12425_v55, %v2542_v4  ;;  %v2544_v51 = vpop.f32.mrb[169].mxu0 }
 0x554   : > { %3725 = vst [vmem:[#allocation2 + $0x440] sm:$0xff] %v3581_v44  ;;  %v3582_v22 = vmax.f32 %v3006_v41, %v3438_v47  ;;  %v3151_v54 = vmul.f32 %v12425_v55, %v2544_v51  ;;  %v2546_v24 = vpop.f32.mrb[170].mxu0 }
 0x555   : > { %v2863_v63 = vadd.f32 %v12433_v28, %v2715_v48  ;;  %v2716_v0 = vmul.f32 %v12425_v55, %v2546_v24  ;;  %v2548_v61 = vpop.f32.mrb[171].mxu0  ;;  %v4014_v2 = vld [vmem:[#allocation2 + $0x421] ss:$4 sm:$0xff]  ;;  %v3754_v48 = vld [vmem:[#allocation2 + $0x20] ss:$4 sm:$0xff] }
 0x556   : > { %3726 = vst [vmem:[#allocation2 + $0x448] sm:$0xff] %v3582_v22  ;;  %v3295_v35 = vadd.f32 %v12433_v28, %v3151_v54  ;;  %v3152_v1 = vmul.f32 %v12425_v55, %v2548_v61  ;;  %v4035_v25 = vpack.c.bf16 %v4014_v2, %v4012_v62  ;;  %v3752_v24 = vld [vmem:[#allocation2] ss:$4 sm:$0xff] }
 0x557   : > { %v3007_v36 = vmax.f32 %v2863_v63, 0.0  ;;  %v2864_v3 = vadd.f32 %v12433_v28, %v2716_v0  ;;  %v3823_v63 = vpack.c.bf16 %v3754_v48, %v3752_v24  ;;  %v3762_v0 = vld [vmem:[#allocation2 + $0xa0] ss:$4 sm:$0xff] }
 0x558   : > { %v3439_v49 = vmax.f32 %v3295_v35, 0.0  ;;  %v3296_v14 = vadd.f32 %v12433_v28, %v3152_v1  ;;  %9390 = vmatprep.mubr.bf16.mxu1 %v4035_v25  ;;  %v3756_v61 = vld [vmem:[#allocation2 + $0x40] ss:$4 sm:$0xff] }
 0x559   : > { %v3008_v31 = vmax.f32 %v2864_v3, 0.0  ;;  %v3760_v2 = vld [vmem:[#allocation2 + $0x80] ss:$4 sm:$0xff] }
 0x55a   : > { %v3583_v38 = vmax.f32 %v3007_v36, %v3439_v49  ;;  %v3440_v50 = vmax.f32 %v3296_v14, 0.0  ;;  %v2552_v52 = vpop.f32.mrb[172].mxu0  ;;  %v11098_v35 = vld [vmem:[%s13813_s1 + $0xa0] ss:$8 sps:$4 sm:$0xff]   ;;  %v11099_v14 = vld [vmem:[%s13813_s1 + $0xb0] ss:$8 sps:$4 sm:$0xff]  }
 0x55b   : > { %v2717_v6 = vmul.f32 %v12425_v55, %v2552_v52  ;;  %v2554_v15 = vpop.f32.mrb[173].mxu0  ;;  %v3766_v1 = vld [vmem:[#allocation2 + $0xe0] ss:$4 sm:$0xff] }
 0x55c   : > { %3727 = vst [vmem:[#allocation2 + $0x450] sm:$0xff] %v3583_v38  ;;  %v3584_v8 = vmax.f32 %v3008_v31, %v3440_v50  ;;  %v3153_v39 = vmul.f32 %v12425_v55, %v2554_v15  ;;  %v2556_v53 = vpop.f32.mrb[174].mxu0  ;;  %v3770_v25 = vld [vmem:[#allocation2 + $0x120] ss:$4 sm:$0xff] }
 0x55d   : > { %v2865_v17 = vadd.f32 %v12433_v28, %v2717_v6  ;;  %v2718_v9 = vmul.f32 %v12425_v55, %v2556_v53  ;;  %v2558_v11 = vpop.f32.mrb[175].mxu0  ;;  %v3764_v36 = vld [vmem:[#allocation2 + $0xc0] ss:$4 sm:$0xff] }
 0x55e   : > { %3728 = vst [vmem:[#allocation2 + $0x458] sm:$0xff] %v3584_v8  ;;  %v3297_v12 = vadd.f32 %v12433_v28, %v3153_v39  ;;  %v3154_v18 = vmul.f32 %v12425_v55, %v2558_v11  ;;  %v3826_v3 = vpack.c.bf16 %v3766_v1, %v3764_v36  ;;  %v3768_v49 = vld [vmem:[#allocation2 + $0x100] ss:$4 sm:$0xff]  ;;  %v4052_v36 = vld [vmem:[#allocation2 + $0xe3] ss:$4 sm:$0xff] }
 0x55f   : > { %v3009_v13 = vmax.f32 %v2865_v17, 0.0  ;;  %v2866_v16 = vadd.f32 %v12433_v28, %v2718_v9  ;;  %v3827_v31 = vpack.c.bf16 %v3770_v25, %v3768_v49  ;;  %v3774_v38 = vld [vmem:[#allocation2 + $0x160] ss:$4 sm:$0xff]  ;;  %v4050_v49 = vld [vmem:[#allocation2 + $0xc3] ss:$4 sm:$0xff] }
 0x560   : > { %v3441_v19 = vmax.f32 %v3297_v12, 0.0  ;;  %v3298_v20 = vadd.f32 %v12433_v28, %v3154_v18  ;;  %v3778_v50 = vld [vmem:[#allocation2 + $0x1a0] ss:$4 sm:$0xff] }
 0x561   : > { %v3010_v29 = vmax.f32 %v2866_v16, 0.0  ;;  %v3772_v52 = vld [vmem:[#allocation2 + $0x140] ss:$4 sm:$0xff] }
 0x562   : > { %v3585_v58 = vmax.f32 %v3009_v13, %v3441_v19  ;;  %v3442_v23 = vmax.f32 %v3298_v20, 0.0  ;;  %v2562_v26 = vpop.f32.mrb[176].mxu0  ;;  %v3828_v6 = vpack.c.bf16 %v3774_v38, %v3772_v52  ;;  %v3776_v15 = vld [vmem:[#allocation2 + $0x180] ss:$4 sm:$0xff]  ;;  %v4060_v52 = vld [vmem:[#allocation2 + $0x163] ss:$4 sm:$0xff] }
 0x563   : > { %v2719_v56 = vmul.f32 %v12425_v55, %v2562_v26  ;;  %v2564_v42 = vpop.f32.mrb[177].mxu0  ;;  %v11101_v8 = vld [vmem:[%s13813_s1 + $0xd0] ss:$8 sps:$4 sm:$0xff]   ;;  %v3829_v39 = vpack.c.bf16 %v3778_v50, %v3776_v15  ;;  %v11102_v53 = vld [vmem:[%s13813_s1 + $0xe0] ss:$8 sps:$4 sm:$0xff]  }
 0x564   : > { %3729 = vst [vmem:[#allocation2 + $0x460] sm:$0xff] %v3585_v58  ;;  %v3586_v27 = vmax.f32 %v3010_v29, %v3442_v23  ;;  %v3155_v57 = vmul.f32 %v12425_v55, %v2564_v42  ;;  %v2566_v32 = vpop.f32.mrb[178].mxu0  ;;  %v3782_v17 = vld [vmem:[#allocation2 + $0x1e0] ss:$4 sm:$0xff]  ;;  %v4058_v15 = vld [vmem:[#allocation2 + $0x143] ss:$4 sm:$0xff] }
 0x565   : > { %v2867_v59 = vadd.f32 %v12433_v28, %v2719_v56  ;;  %v2720_v43 = vmul.f32 %v12425_v55, %v2566_v32  ;;  %v2568_v45 = vpop.f32.mrb[179].mxu0  ;;  %v4016_v51 = vld [vmem:[#allocation2 + $0x441] ss:$4 sm:$0xff]  ;;  %v3786_v9 = vld [vmem:[#allocation2 + $0x220] ss:$4 sm:$0xff] }
 0x566   : > { %3730 = vst [vmem:[#allocation2 + $0x468] sm:$0xff] %v3586_v27  ;;  %v3299_v7 = vadd.f32 %v12433_v28, %v3155_v57  ;;  %v3156_v60 = vmul.f32 %v12425_v55, %v2568_v45  ;;  %v3758_v55 = vld [vmem:[#allocation2 + $0x60] ss:$4 sm:$0xff] }
 0x567   : > { %v3011_v33 = vmax.f32 %v2867_v59, 0.0  ;;  %v2868_v34 = vadd.f32 %v12433_v28, %v2720_v43  ;;  %v3824_v62 = vpack.c.bf16 %v3758_v55, %v3756_v61  ;;  %v3780_v11 = vld [vmem:[#allocation2 + $0x1c0] ss:$4 sm:$0xff]  ;;  %v4038_v55 = vld [vmem:[#allocation2 + $0x3] ss:$4 sm:$0xff] }
 0x568   : > { %v3443_v40 = vmax.f32 %v3299_v7, 0.0  ;;  %v3300_v46 = vadd.f32 %v12433_v28, %v3156_v60  ;;  %v3825_v28 = vpack.c.bf16 %v3762_v0, %v3760_v2  ;;  %v3830_v12 = vpack.c.bf16 %v3782_v17, %v3780_v11  ;;  %v3784_v18 = vld [vmem:[#allocation2 + $0x200] ss:$4 sm:$0xff]  ;;  %v4044_v61 = vld [vmem:[#allocation2 + $0x63] ss:$4 sm:$0xff] }
 0x569   : > { %v3012_v41 = vmax.f32 %v2868_v34, 0.0  ;;  %v11103_v13 = vld [vmem:[%s13813_s1 + $0xf0] ss:$8 sps:$4 sm:$0xff]   ;;  %v3831_v16 = vpack.c.bf16 %v3786_v9, %v3784_v18  ;;  %v11104_v19 = vld [vmem:[%s13813_s1 + $0x100] ss:$8 sps:$4 sm:$0xff]  }
 0x56a   : > { %v3587_v44 = vmax.f32 %v3011_v33, %v3443_v40  ;;  %v3444_v47 = vmax.f32 %v3300_v46, 0.0  ;;  %v3790_v20 = vld [vmem:[#allocation2 + $0x260] ss:$4 sm:$0xff]  ;;  %v4042_v2 = vld [vmem:[#allocation2 + $0x43] ss:$4 sm:$0xff] }
 0x56b   : > { %v3794_v29 = vld [vmem:[#allocation2 + $0x2a0] ss:$4 sm:$0xff]  ;;  %v4068_v17 = vld [vmem:[#allocation2 + $0x1e3] ss:$4 sm:$0xff] }
 0x56c   : > { %3731 = vst [vmem:[#allocation2 + $0x470] sm:$0xff] %v3587_v44  ;;  %v3588_v4 = vmax.f32 %v3012_v41, %v3444_v47  ;;  %v3788_v58 = vld [vmem:[#allocation2 + $0x240] ss:$4 sm:$0xff]  ;;  %v4072_v9 = vld [vmem:[#allocation2 + $0x223] ss:$4 sm:$0xff] }
 0x56d   : > { %v3832_v23 = vpack.c.bf16 %v3790_v20, %v3788_v58  ;;  %v3792_v26 = vld [vmem:[#allocation2 + $0x280] ss:$4 sm:$0xff]  ;;  %v4066_v11 = vld [vmem:[#allocation2 + $0x1c3] ss:$4 sm:$0xff] }
 0x56e   : > { %3732 = vst [vmem:[#allocation2 + $0x478] sm:$0xff] %v3588_v4  ;;  %v11105_v56 = vld [vmem:[%s13813_s1 + $0x10] ss:$8 sps:$4 sm:$0xff]   ;;  %v3833_v42 = vpack.c.bf16 %v3794_v29, %v3792_v26  ;;  %v11106_v25 = vld [vmem:[%s13813_s1 + $0x20] ss:$8 sps:$4 sm:$0xff]  }
 0x56f   : > { %v3798_v27 = vld [vmem:[#allocation2 + $0x2e0] ss:$4 sm:$0xff]  ;;  %v4070_v18 = vld [vmem:[#allocation2 + $0x203] ss:$4 sm:$0xff] }
 0x570   : > { %v3802_v57 = vld [vmem:[#allocation2 + $0x320] ss:$4 sm:$0xff]  ;;  %v4078_v29 = vld [vmem:[#allocation2 + $0x283] ss:$4 sm:$0xff] }
 0x571   : > { %v3796_v32 = vld [vmem:[#allocation2 + $0x2c0] ss:$4 sm:$0xff]  ;;  %v4082_v26 = vld [vmem:[#allocation2 + $0x2c3] ss:$4 sm:$0xff] }
 0x572   : > { %v3834_v59 = vpack.c.bf16 %v3798_v27, %v3796_v32  ;;  %v3800_v43 = vld [vmem:[#allocation2 + $0x300] ss:$4 sm:$0xff]  ;;  %v4090_v32 = vld [vmem:[#allocation2 + $0x343] ss:$4 sm:$0xff] }
 0x573   : > { %v3835_v45 = vpack.c.bf16 %v3802_v57, %v3800_v43  ;;  %v3806_v7 = vld [vmem:[#allocation2 + $0x360] ss:$4 sm:$0xff]  ;;  %v4096_v57 = vld [vmem:[#allocation2 + $0x3a3] ss:$4 sm:$0xff] }
 0x574   : > { %v3810_v60 = vld [vmem:[#allocation2 + $0x3a0] ss:$4 sm:$0xff]  ;;  %v4094_v43 = vld [vmem:[#allocation2 + $0x383] ss:$4 sm:$0xff] }
 0x575   : > { %v4018_v22 = vld [vmem:[#allocation2 + $0x461] ss:$4 sm:$0xff]  ;;  %v3804_v33 = vld [vmem:[#allocation2 + $0x340] ss:$4 sm:$0xff] }
 0x576   : > { %v4036_v54 = vpack.c.bf16 %v4018_v22, %v4016_v51  ;;  %v3836_v34 = vpack.c.bf16 %v3806_v7, %v3804_v33  ;;  %v3808_v40 = vld [vmem:[#allocation2 + $0x380] ss:$4 sm:$0xff]  ;;  %v4100_v7 = vld [vmem:[#allocation2 + $0x3e3] ss:$4 sm:$0xff] }
 0x577   : > { %v3837_v46 = vpack.c.bf16 %v3810_v60, %v3808_v40  ;;  %v3814_v41 = vld [vmem:[#allocation2 + $0x3e0] ss:$4 sm:$0xff]  ;;  %v4104_v60 = vld [vmem:[#allocation2 + $0x423] ss:$4 sm:$0xff] }
 0x578   : > { %9391 = vmatmul.mubr.bf16.gmra.mrb[32].mxu1 %v4036_v54  ;;  %v3818_v44 = vld [vmem:[#allocation2 + $0x420] ss:$4 sm:$0xff]  ;;  %v4040_v54 = vld [vmem:[#allocation2 + $0x23] ss:$4 sm:$0xff] }
 0x579   : > { %9410 = vmatprep.mubr.bf16.mxu1 %v3823_v63  ;;  %v3812_v47 = vld [vmem:[#allocation2 + $0x3c0] ss:$4 sm:$0xff]  ;;  %v12552_v0 = vpack.c.bf16 %v4040_v54, %v4038_v55  ;;  %v4098_v33 = vld [vmem:[#allocation2 + $0x3c3] ss:$4 sm:$0xff]  ;;  %v3852_v54 = vld [vmem:[#allocation2 + $0xa2] ss:$4 sm:$0xff] }
 0x57a   : > { %v3838_v4 = vpack.c.bf16 %v3814_v41, %v3812_v47  ;;  %v3816_v48 = vld [vmem:[#allocation2 + $0x400] ss:$4 sm:$0xff]  ;;  %v4102_v40 = vld [vmem:[#allocation2 + $0x403] ss:$4 sm:$0xff]  ;;  %v3850_v55 = vld [vmem:[#allocation2 + $0x82] ss:$4 sm:$0xff] }
 0x57b   : > { %v3839_v51 = vpack.c.bf16 %v3818_v44, %v3816_v48  ;;  %v3822_v22 = vld [vmem:[#allocation2 + $0x460] ss:$4 sm:$0xff]  ;;  %v4108_v41 = vld [vmem:[#allocation2 + $0x463] ss:$4 sm:$0xff]  ;;  %v3844_v44 = vld [vmem:[#allocation2 + $0x22] ss:$4 sm:$0xff] }
 0x57c   : > { %v3820_v24 = vld [vmem:[#allocation2 + $0x440] ss:$4 sm:$0xff]  ;;  %v4106_v47 = vld [vmem:[#allocation2 + $0x443] ss:$4 sm:$0xff]  ;;  %v3842_v48 = vld [vmem:[#allocation2 + $0x2] ss:$4 sm:$0xff] }
 0x57d   : > { %v3840_v63 = vpack.c.bf16 %v3822_v22, %v3820_v24  ;;  %v11108_v50 = vld [vmem:[%s13813_s1 + $0x40] ss:$8 sps:$4 sm:$0xff]  }
 0x57e   : > { %v3848_v22 = vld [vmem:[#allocation2 + $0x62] ss:$4 sm:$0xff] }
 0x57f   : > { %v3846_v24 = vld [vmem:[#allocation2 + $0x42] ss:$4 sm:$0xff] }
 0x580   : > { %9411 = vmatmul.mubr.bf16.vlgmr.msra.gmra.mrb[0].mxu1 %v3824_v62  ;;  %v4048_v62 = vld [vmem:[#allocation2 + $0xa3] ss:$4 sm:$0xff] }
 0x581   : > { %9447 = vmatpush3.bf16.msra.mxu1 %v12402_v5  ;;  %9414 = vmatprep.mubr.bf16.mxu1 %v3825_v28  ;;  %v11100_v5 = vld [vmem:[%s13813_s1 + $0xc0] ss:$8 sps:$4 sm:$0xff]   ;;  %v12555_v28 = vpack.c.bf16 %v4044_v61, %v4042_v2  ;;  %v12648_v2 = vld [vmem:[%s13813_s1 + $0x130] ss:$8 sps:$4 sm:$0xff]  }
 0x582   : > { %9448 = vmatprep.subr.bf16.mxu1 %v11098_v35  ;;  %v12637_v61 = vld [vmem:[%s13813_s1 + $0x120] ss:$8 sps:$4 sm:$0xff]  }
 0x585   : > { %9449 = vmatpush3.bf16.msra.mxu1 %v11098_v35  ;;  %v4046_v35 = vld [vmem:[#allocation2 + $0x83] ss:$4 sm:$0xff] }
 0x586   : > { %9450 = vmatprep.subr.bf16.mxu1 %v11099_v14  ;;  %v12557_v1 = vpack.c.bf16 %v4048_v62, %v4046_v35  ;;  %v12639_v62 = vpack.c.bf16 %v3852_v54, %v3850_v55  ;;  %v3856_v35 = vld [vmem:[#allocation2 + $0xe2] ss:$4 sm:$0xff] }
 0x587   : > { %v3894_v54 = vld [vmem:[#allocation2 + $0x342] ss:$4 sm:$0xff] }
 0x588   : > { %9415 = vmatmul.mubr.bf16.gmra.mrb[4].mxu1 %v3826_v3  ;;  %v4056_v3 = vld [vmem:[#allocation2 + $0x123] ss:$4 sm:$0xff]  ;;  %v3898_v55 = vld [vmem:[#allocation2 + $0x382] ss:$4 sm:$0xff] }
 0x589   : > { %9418 = vmatprep.mubr.bf16.mxu1 %v3827_v31  ;;  %9451 = vmatpush3.bf16.msra.mxu1 %v11099_v14  ;;  %v12564_v14 = vpack.c.bf16 %v4052_v36, %v4050_v49  ;;  %v4054_v31 = vld [vmem:[#allocation2 + $0x103] ss:$4 sm:$0xff]  ;;  %v3854_v36 = vld [vmem:[#allocation2 + $0xc2] ss:$4 sm:$0xff] }
 0x58a   : > { %9452 = vmatprep.subr.bf16.mxu1 %v11100_v5  ;;  %v12569_v38 = vpack.c.bf16 %v4056_v3, %v4054_v31  ;;  %v12651_v3 = vpack.c.bf16 %v3856_v35, %v3854_v36  ;;  %v3858_v49 = vld [vmem:[#allocation2 + $0x102] ss:$4 sm:$0xff] }
 0x58b   : > { %v12657_v31 = vld [vmem:[%s13813_s1 + $0x140] ss:$8 sps:$4 sm:$0xff]  }
 0x58c   : > { %v3908_v36 = vld [vmem:[#allocation2 + $0x422] ss:$4 sm:$0xff] }
 0x58d   : > { %9453 = vmatpush3.bf16.msra.mxu1 %v11100_v5  ;;  %v11107_v5 = vld [vmem:[%s13813_s1 + $0x30] ss:$8 sps:$4 sm:$0xff]  }
 0x58e   : > { %9454 = vmatprep.subr.bf16.mxu1 %v11101_v8 }
 0x590   : > { %9419 = vmatmul.mubr.bf16.gmra.mrb[8].mxu1 %v3828_v6  ;;  %v4064_v6 = vld [vmem:[#allocation2 + $0x1a3] ss:$4 sm:$0xff] }
 0x591   : > { %9422 = vmatprep.mubr.bf16.mxu1 %v3829_v39  ;;  %9455 = vmatpush3.bf16.msra.mxu1 %v11101_v8  ;;  %v12576_v8 = vpack.c.bf16 %v4060_v52, %v4058_v15  ;;  %v4062_v39 = vld [vmem:[#allocation2 + $0x183] ss:$4 sm:$0xff]  ;;  %v3864_v52 = vld [vmem:[#allocation2 + $0x162] ss:$4 sm:$0xff] }
 0x592   : > { %9456 = vmatprep.subr.bf16.mxu1 %v11102_v53  ;;  %v3862_v15 = vld [vmem:[#allocation2 + $0x142] ss:$4 sm:$0xff] }
 0x595   : > { %9457 = vmatpush3.bf16.msra.mxu1 %v11102_v53  ;;  %v12579_v53 = vpack.c.bf16 %v4064_v6, %v4062_v39  ;;  %v3868_v6 = vld [vmem:[#allocation2 + $0x1a2] ss:$4 sm:$0xff]  ;;  %v12671_v39 = vpack.c.bf16 %v3864_v52, %v3862_v15 }
 0x596   : > { %9458 = vmatprep.subr.bf16.mxu1 %v11103_v13 }
 0x598   : > { %9423 = vmatmul.mubr.bf16.gmra.mrb[12].mxu1 %v3830_v12  ;;  %v12586_v12 = vpack.c.bf16 %v4068_v17, %v4066_v11  ;;  %v3866_v17 = vld [vmem:[#allocation2 + $0x182] ss:$4 sm:$0xff] }
 0x599   : > { %9426 = vmatprep.mubr.bf16.mxu1 %v3831_v16  ;;  %9459 = vmatpush3.bf16.msra.mxu1 %v11103_v13  ;;  %v12589_v13 = vpack.c.bf16 %v4072_v9, %v4070_v18  ;;  %v4080_v16 = vld [vmem:[#allocation2 + $0x2a3] ss:$4 sm:$0xff]  ;;  %v12679_v11 = vpack.c.bf16 %v3868_v6, %v3866_v17  ;;  %v3906_v6 = vld [vmem:[#allocation2 + $0x402] ss:$4 sm:$0xff] }
 0x59a   : > { %9460 = vmatprep.subr.bf16.mxu1 %v11104_v19  ;;  %v12604_v58 = vpack.c.bf16 %v4080_v16, %v4078_v29  ;;  %v12677_v9 = vld [vmem:[%s13813_s1 + $0x160] ss:$8 sps:$4 sm:$0xff]   ;;  %v12688_v18 = vld [vmem:[%s13813_s1 + $0x170] ss:$8 sps:$4 sm:$0xff]   ;;  %v3929_v15 = vpack.c.bf16 %v3908_v36, %v3906_v6 }
 0x59b   : > { %v3876_v16 = vld [vmem:[#allocation2 + $0x222] ss:$4 sm:$0xff]  ;;  %v4994_v6 = vld [vmem:[#allocation2 + $0x2e4] ss:$4 sm:$0xff] }
 0x59c   : > { %v3912_v17 = vld [vmem:[#allocation2 + $0x462] ss:$4 sm:$0xff] }
 0x59d   : > { %9461 = vmatpush3.bf16.msra.mxu1 %v11104_v19  ;;  %v4074_v19 = vld [vmem:[#allocation2 + $0x243] ss:$4 sm:$0xff] }
 0x59e   : > { %9498 = vmatprep.subr.bf16.mxu1 %v11105_v56 }
 0x5a0   : > { %9427 = vmatmul.mubr.bf16.gmra.mrb[16].mxu1 %v3832_v23  ;;  %v4088_v23 = vld [vmem:[#allocation2 + $0x323] ss:$4 sm:$0xff] }
 0x5a1   : > { %9430 = vmatprep.mubr.bf16.mxu1 %v3833_v42  ;;  %v4086_v42 = vld [vmem:[#allocation2 + $0x303] ss:$4 sm:$0xff] }
 0x5a2   : > { %v12610_v27 = vpack.c.bf16 %v4088_v23, %v4086_v42  ;;  %v12697_v23 = vld [vmem:[%s13813_s1 + $0x180] ss:$8 sps:$4 sm:$0xff]  }
 0x5a3   : > { %v3880_v42 = vld [vmem:[#allocation2 + $0x262] ss:$4 sm:$0xff] }
 0x5a8   : > { %9431 = vmatmul.mubr.bf16.gmra.mrb[20].mxu1 %v3834_v59 }
 0x5a9   : > { %9434 = vmatprep.mubr.bf16.mxu1 %v3835_v45  ;;  %v12616_v45 = vpack.c.bf16 %v4096_v57, %v4094_v43  ;;  %v3878_v57 = vld [vmem:[#allocation2 + $0x242] ss:$4 sm:$0xff] }
 0x5aa   : > { %v3882_v43 = vld [vmem:[#allocation2 + $0x282] ss:$4 sm:$0xff] }
 0x5b0   : > { %9435 = vmatmul.mubr.bf16.gmra.mrb[24].mxu1 %v3836_v34  ;;  %v12620_v34 = vpack.c.bf16 %v4100_v7, %v4098_v33  ;;  %v3892_v33 = vld [vmem:[#allocation2 + $0x322] ss:$4 sm:$0xff] }
 0x5b1   : > { %9438 = vmatprep.mubr.bf16.mxu1 %v3837_v46  ;;  %v12622_v46 = vpack.c.bf16 %v4104_v60, %v4102_v40  ;;  %v3888_v60 = vld [vmem:[#allocation2 + $0x2e2] ss:$4 sm:$0xff] }
 0x5b2   : > { %v3886_v40 = vld [vmem:[#allocation2 + $0x2c2] ss:$4 sm:$0xff] }
 0x5b8   : > { %9439 = vmatmul.mubr.bf16.gmra.mrb[28].mxu1 %v3838_v4  ;;  %v12626_v4 = vpack.c.bf16 %v4108_v41, %v4106_v47  ;;  %v3924_v41 = vpack.c.bf16 %v3888_v60, %v3886_v40  ;;  %v12781_v60 = vld [vmem:[%s13813_s1 + $0x1e0] ss:$8 sps:$4 sm:$0xff]   ;;  %v12792_v40 = vld [vmem:[%s13813_s1 + $0x1f0] ss:$8 sps:$4 sm:$0xff]  }
 0x5b9   : > { %9442 = vmatprep.mubr.bf16.mxu1 %v3839_v51  ;;  %v12628_v51 = vpack.c.bf16 %v3844_v44, %v3842_v48  ;;  %v3890_v44 = vld [vmem:[#allocation2 + $0x302] ss:$4 sm:$0xff] }
 0x5ba   : > { %v3925_v47 = vpack.c.bf16 %v3892_v33, %v3890_v44  ;;  %v3896_v48 = vld [vmem:[#allocation2 + $0x362] ss:$4 sm:$0xff]  ;;  %v4982_v44 = vld [vmem:[#allocation2 + $0x224] ss:$4 sm:$0xff] }
 0x5c0   : > { %9443 = vmatmul.mubr.bf16.gmra.mrb[32].mxu1 %v3840_v63  ;;  %v12632_v63 = vpack.c.bf16 %v3848_v22, %v3846_v24  ;;  %v3900_v22 = vld [vmem:[#allocation2 + $0x3a2] ss:$4 sm:$0xff]  ;;  %v3926_v24 = vpack.c.bf16 %v3896_v48, %v3894_v54 }
 0x5c1   : > { %9462 = vmatprep.mubr.bf16.mxu1 %v12552_v0  ;;  %v3927_v35 = vpack.c.bf16 %v3900_v22, %v3898_v55  ;;  %v4980_v22 = vld [vmem:[#allocation2 + $0x204] ss:$4 sm:$0xff] }
 0x5c2   : > { %v12801_v54 = vld [vmem:[%s13813_s1 + $0x200] ss:$8 sps:$4 sm:$0xff]  }
 0x5c3   : > { %v4986_v55 = vld [vmem:[#allocation2 + $0x264] ss:$4 sm:$0xff] }
 0x5c8   : > { %9463 = vmatmul.mubr.bf16.vlgmr.msra.gmra.mrb[36].mxu1 %v12555_v28 }
 0x5c9   : > { %9499 = vmatpush3.bf16.msra.mxu1 %v11105_v56  ;;  %9466 = vmatprep.mubr.bf16.mxu1 %v12557_v1 }
 0x5ca   : > { %9500 = vmatprep.subr.bf16.mxu1 %v11106_v25 }
 0x5cd   : > { %9501 = vmatpush3.bf16.msra.mxu1 %v11106_v25  ;;  %v3860_v25 = vld [vmem:[#allocation2 + $0x122] ss:$4 sm:$0xff] }
 0x5ce   : > { %9502 = vmatprep.subr.bf16.mxu1 %v11107_v5 }
 0x5d0   : > { %9467 = vmatmul.mubr.bf16.gmra.mrb[40].mxu1 %v12564_v14 }
 0x5d1   : > { %9470 = vmatprep.mubr.bf16.mxu1 %v12569_v38  ;;  %9503 = vmatpush3.bf16.msra.mxu1 %v11107_v5  ;;  %v12659_v5 = vpack.c.bf16 %v3860_v25, %v3858_v49  ;;  %v3904_v25 = vld [vmem:[#allocation2 + $0x3e2] ss:$4 sm:$0xff] }
 0x5d2   : > { %9504 = vmatprep.subr.bf16.mxu1 %v11108_v50  ;;  %v3902_v49 = vld [vmem:[#allocation2 + $0x3c2] ss:$4 sm:$0xff] }
 0x5d3   : > { %v3928_v52 = vpack.c.bf16 %v3904_v25, %v3902_v49  ;;  %v4984_v25 = vld [vmem:[#allocation2 + $0x244] ss:$4 sm:$0xff] }
 0x5d4   : > { %v12810_v36 = vpack.c.bf16 %v4986_v55, %v4984_v25  ;;  %v4988_v49 = vld [vmem:[#allocation2 + $0x284] ss:$4 sm:$0xff]  ;;  %v5558_v55 = vld [vmem:[#allocation2 + $0x1e5] ss:$4 sm:$0xff] }
 0x5d5   : > { %9505 = vmatpush3.bf16.msra.mxu1 %v11108_v50  ;;  %v12668_v50 = vld [vmem:[%s13813_s1 + $0x150] ss:$8 sps:$4 sm:$0xff]  }
 0x5d6   : > { %9506 = vmatprep.subr.bf16.mxu1 %v12352_v10  ;;  %v5556_v25 = vld [vmem:[#allocation2 + $0x1c5] ss:$4 sm:$0xff] }
 0x5d8   : > { %9471 = vmatmul.mubr.bf16.gmra.mrb[44].mxu1 %v12576_v8 }
 0x5d9   : > { %9474 = vmatprep.mubr.bf16.mxu1 %v12579_v53  ;;  %9507 = vmatpush3.bf16.msra.mxu1 %v12352_v10  ;;  %v12598_v10 = vld [vmem:[%s13813_s1 + $0x110] ss:$8 sps:$4 sm:$0xff]  }
 0x5da   : > { %9508 = vmatprep.subr.bf16.mxu1 %v12367_v30 }
 0x5dd   : > { %9509 = vmatpush3.bf16.msra.mxu1 %v12367_v30  ;;  %v4076_v30 = vld [vmem:[#allocation2 + $0x263] ss:$4 sm:$0xff] }
 0x5de   : > { %9510 = vmatprep.subr.bf16.mxu1 %v12377_v37  ;;  %v12601_v20 = vpack.c.bf16 %v4076_v30, %v4074_v19  ;;  %v3872_v30 = vld [vmem:[#allocation2 + $0x1e2] ss:$4 sm:$0xff] }
 0x5df   : > { %v3870_v19 = vld [vmem:[#allocation2 + $0x1c2] ss:$4 sm:$0xff] }
 0x5e0   : > { %9475 = vmatmul.mubr.bf16.gmra.mrb[48].mxu1 %v12586_v12  ;;  %v12691_v29 = vpack.c.bf16 %v3872_v30, %v3870_v19  ;;  %v3910_v30 = vld [vmem:[#allocation2 + $0x442] ss:$4 sm:$0xff]  ;;  %v4960_v19 = vld [vmem:[#allocation2 + $0xc4] ss:$4 sm:$0xff] }
 0x5e1   : > { %9478 = vmatprep.mubr.bf16.mxu1 %v12589_v13  ;;  %9511 = vmatpush3.bf16.msra.mxu1 %v12377_v37  ;;  %v4084_v37 = vld [vmem:[#allocation2 + $0x2e3] ss:$4 sm:$0xff] }
 0x5e2   : > { %9512 = vmatprep.subr.bf16.mxu1 %v12386_v21  ;;  %v12608_v56 = vpack.c.bf16 %v4084_v37, %v4082_v26  ;;  %v3874_v37 = vld [vmem:[#allocation2 + $0x202] ss:$4 sm:$0xff] }
 0x5e3   : > { %v3921_v26 = vpack.c.bf16 %v3876_v16, %v3874_v37  ;;  %v3930_v16 = vpack.c.bf16 %v3912_v17, %v3910_v30  ;;  %v4964_v37 = vld [vmem:[#allocation2 + $0x104] ss:$4 sm:$0xff] }
 0x5e4   : > { %v4992_v17 = vld [vmem:[#allocation2 + $0x2c4] ss:$4 sm:$0xff] }
 0x5e5   : > { %9513 = vmatpush3.bf16.msra.mxu1 %v12386_v21  ;;  %v4092_v21 = vld [vmem:[#allocation2 + $0x363] ss:$4 sm:$0xff]  ;;  %v12817_v30 = vpack.c.bf16 %v4994_v6, %v4992_v17  ;;  %v5560_v6 = vld [vmem:[#allocation2 + $0x205] ss:$4 sm:$0xff] }
 0x5e6   : > { %9550 = vmatprep.subr.bf16.mxu1 %v12598_v10  ;;  %v12614_v59 = vpack.c.bf16 %v4092_v21, %v4090_v32  ;;  %v3884_v21 = vld [vmem:[#allocation2 + $0x2a2] ss:$4 sm:$0xff]  ;;  %v3922_v32 = vpack.c.bf16 %v3880_v42, %v3878_v57  ;;  %v4974_v57 = vld [vmem:[#allocation2 + $0x1a4] ss:$4 sm:$0xff] }
 0x5e7   : > { %v3923_v7 = vpack.c.bf16 %v3884_v21, %v3882_v43  ;;  %v12772_v42 = vld [vmem:[%s13813_s1 + $0x1d0] ss:$8 sps:$4 sm:$0xff]  }
 0x5e8   : > { %9479 = vmatmul.mubr.bf16.gmra.mrb[52].mxu1 %v12601_v20  ;;  %v4970_v21 = vld [vmem:[#allocation2 + $0x164] ss:$4 sm:$0xff] }
 0x5e9   : > { %9482 = vmatprep.mubr.bf16.mxu1 %v12604_v58 }
 0x5f0   : > { %9483 = vmatmul.mubr.bf16.gmra.mrb[56].mxu1 %v12608_v56 }
 0x5f1   : > { %9486 = vmatprep.mubr.bf16.mxu1 %v12610_v27 }
 0x5f8   : > { %9487 = vmatmul.mubr.bf16.gmra.mrb[60].mxu1 %v12614_v59 }
 0x5f9   : > { %9490 = vmatprep.mubr.bf16.mxu1 %v12616_v45 }
 0x600   : > { %9491 = vmatmul.mubr.bf16.gmra.mrb[64].mxu1 %v12620_v34 }
 0x601   : > { %9494 = vmatprep.mubr.bf16.mxu1 %v12622_v46 }
 0x608   : > { %9495 = vmatmul.mubr.bf16.gmra.mrb[68].mxu1 %v12626_v4 }
 0x609   : > { %9514 = vmatprep.mubr.bf16.mxu1 %v12628_v51 }
 0x610   : > { %9515 = vmatmul.mubr.bf16.vlgmr.msra.gmra.mrb[36].mxu1 %v12632_v63 }
 0x611   : > { %9551 = vmatpush3.bf16.msra.mxu1 %v12598_v10  ;;  %9518 = vmatprep.mubr.bf16.mxu1 %v12639_v62 }
 0x612   : > { %9552 = vmatprep.subr.bf16.mxu1 %v12637_v61 }
 0x615   : > { %9553 = vmatpush3.bf16.msra.mxu1 %v12637_v61 }
 0x616   : > { %9554 = vmatprep.subr.bf16.mxu1 %v12648_v2 }
 0x618   : > { %9519 = vmatmul.mubr.bf16.gmra.mrb[40].mxu1 %v12651_v3 }
 0x619   : > { %9522 = vmatprep.mubr.bf16.mxu1 %v12659_v5  ;;  %9555 = vmatpush3.bf16.msra.mxu1 %v12648_v2 }
 0x61a   : > { %9556 = vmatprep.subr.bf16.mxu1 %v12657_v31 }
 0x61d   : > { %9557 = vmatpush3.bf16.msra.mxu1 %v12657_v31 }
 0x61e   : > { %9558 = vmatprep.subr.bf16.mxu1 %v12668_v50 }
 0x620   : > { %9523 = vmatmul.mubr.bf16.gmra.mrb[44].mxu1 %v12671_v39 }
 0x621   : > { %9526 = vmatprep.mubr.bf16.mxu1 %v12679_v11  ;;  %9559 = vmatpush3.bf16.msra.mxu1 %v12668_v50 }
 0x622   : > { %9560 = vmatprep.subr.bf16.mxu1 %v12677_v9 }
 0x625   : > { %9561 = vmatpush3.bf16.msra.mxu1 %v12677_v9 }
 0x626   : > { %9562 = vmatprep.subr.bf16.mxu1 %v12688_v18 }
 0x628   : > { %9527 = vmatmul.mubr.bf16.gmra.mrb[48].mxu1 %v12691_v29 }
 0x629   : > { %9530 = vmatprep.mubr.bf16.mxu1 %v3921_v26  ;;  %9563 = vmatpush3.bf16.msra.mxu1 %v12688_v18 }
 0x62a   : > { %9564 = vmatprep.subr.bf16.mxu1 %v12697_v23 }
 0x62d   : > { %9565 = vmatpush3.bf16.msra.mxu1 %v12697_v23 }
 0x62e   : > { %9602 = vmatprep.subr.bf16.mxu1 %v12598_v10 }
 0x630   : > { %9531 = vmatmul.mubr.bf16.gmra.mrb[52].mxu1 %v3922_v32 }
 0x631   : > { %9534 = vmatprep.mubr.bf16.mxu1 %v3923_v7 }
 0x638   : > { %9535 = vmatmul.mubr.bf16.gmra.mrb[56].mxu1 %v3924_v41 }
 0x639   : > { %9538 = vmatprep.mubr.bf16.mxu1 %v3925_v47 }
 0x640   : > { %9539 = vmatmul.mubr.bf16.gmra.mrb[60].mxu1 %v3926_v24 }
 0x641   : > { %9542 = vmatprep.mubr.bf16.mxu1 %v3927_v35 }
 0x648   : > { %9543 = vmatmul.mubr.bf16.gmra.mrb[64].mxu1 %v3928_v52 }
 0x649   : > { %9546 = vmatprep.mubr.bf16.mxu1 %v3929_v15 }
 0x650   : > { %9547 = vmatmul.mubr.bf16.gmra.mrb[68].mxu1 %v3930_v16 }
 0x651   : > { %9566 = vmatprep.mubr.bf16.mxu1 %v12628_v51  ;;  %v4950_v51 = vld [vmem:[#allocation2 + $0x24] ss:$4 sm:$0xff] }
 0x658   : > { %9567 = vmatmul.mubr.bf16.vlgmr.msra.gmra.mrb[0].mxu1 %v12632_v63  ;;  %v4948_v63 = vld [vmem:[#allocation2 + $0x4] ss:$4 sm:$0xff] }
 0x659   : > { %9603 = vmatpush3.bf16.msra.mxu1 %v12598_v10  ;;  %9570 = vmatprep.mubr.bf16.mxu1 %v12639_v62  ;;  %v12729_v10 = vld [vmem:[%s13813_s1 + $0x190] ss:$8 sps:$4 sm:$0xff]  }
 0x65a   : > { %9604 = vmatprep.subr.bf16.mxu1 %v12637_v61  ;;  %v4954_v62 = vld [vmem:[#allocation2 + $0x64] ss:$4 sm:$0xff] }
 0x65d   : > { %9605 = vmatpush3.bf16.msra.mxu1 %v12637_v61  ;;  %v12733_v61 = vpack.c.bf16 %v4950_v51, %v4948_v63  ;;  %v5002_v63 = vld [vmem:[#allocation2 + $0x364] ss:$4 sm:$0xff] }
 0x65e   : > { %9606 = vmatprep.subr.bf16.mxu1 %v12648_v2 }
 0x660   : > { %9571 = vmatmul.mubr.bf16.gmra.mrb[4].mxu1 %v12651_v3  ;;  %v4952_v3 = vld [vmem:[#allocation2 + $0x44] ss:$4 sm:$0xff] }
 0x661   : > { %9574 = vmatprep.mubr.bf16.mxu1 %v12659_v5  ;;  %9607 = vmatpush3.bf16.msra.mxu1 %v12648_v2  ;;  %v4958_v2 = vld [vmem:[#allocation2 + $0xa4] ss:$4 sm:$0xff] }
 0x662   : > { %9608 = vmatprep.subr.bf16.mxu1 %v12657_v31  ;;  %v4956_v5 = vld [vmem:[#allocation2 + $0x84] ss:$4 sm:$0xff] }
 0x665   : > { %9609 = vmatpush3.bf16.msra.mxu1 %v12657_v31  ;;  %v12736_v31 = vpack.c.bf16 %v4954_v62, %v4952_v3  ;;  %v5006_v62 = vld [vmem:[#allocation2 + $0x3a4] ss:$4 sm:$0xff] }
 0x666   : > { %9610 = vmatprep.subr.bf16.mxu1 %v12668_v50 }
 0x668   : > { %9575 = vmatmul.mubr.bf16.gmra.mrb[8].mxu1 %v12671_v39  ;;  %v12743_v39 = vpack.c.bf16 %v4958_v2, %v4956_v5  ;;  %v5000_v2 = vld [vmem:[#allocation2 + $0x344] ss:$4 sm:$0xff] }
 0x669   : > { %9578 = vmatprep.mubr.bf16.mxu1 %v12679_v11  ;;  %9611 = vmatpush3.bf16.msra.mxu1 %v12668_v50  ;;  %v12741_v50 = vld [vmem:[%s13813_s1 + $0x1a0] ss:$8 sps:$4 sm:$0xff]   ;;  %v12823_v3 = vpack.c.bf16 %v5002_v63, %v5000_v2 }
 0x66a   : > { %9612 = vmatprep.subr.bf16.mxu1 %v12677_v9  ;;  %v4962_v11 = vld [vmem:[#allocation2 + $0xe4] ss:$4 sm:$0xff]  ;;  %v5570_v63 = vld [vmem:[#allocation2 + $0x2a5] ss:$4 sm:$0xff] }
 0x66b   : > { %v5004_v5 = vld [vmem:[#allocation2 + $0x384] ss:$4 sm:$0xff] }
 0x66d   : > { %9613 = vmatpush3.bf16.msra.mxu1 %v12677_v9  ;;  %v12752_v9 = vld [vmem:[%s13813_s1 + $0x1b0] ss:$8 sps:$4 sm:$0xff]  }
 0x66e   : > { %9614 = vmatprep.subr.bf16.mxu1 %v12688_v18 }
 0x670   : > { %9579 = vmatmul.mubr.bf16.gmra.mrb[12].mxu1 %v12691_v29  ;;  %v12755_v29 = vpack.c.bf16 %v4962_v11, %v4960_v19  ;;  %v12825_v11 = vpack.c.bf16 %v5006_v62, %v5004_v5  ;;  %v5014_v19 = vld [vmem:[#allocation2 + $0x424] ss:$4 sm:$0xff]  ;;  %v5564_v62 = vld [vmem:[#allocation2 + $0x245] ss:$4 sm:$0xff] }
 0x671   : > { %9582 = vmatprep.mubr.bf16.mxu1 %v3921_v26  ;;  %9615 = vmatpush3.bf16.msra.mxu1 %v12688_v18  ;;  %v4966_v18 = vld [vmem:[#allocation2 + $0x124] ss:$4 sm:$0xff]  ;;  %v5568_v5 = vld [vmem:[#allocation2 + $0x285] ss:$4 sm:$0xff] }
 0x672   : > { %9616 = vmatprep.subr.bf16.mxu1 %v12697_v23  ;;  %v12763_v26 = vpack.c.bf16 %v4966_v18, %v4964_v37  ;;  %v5010_v18 = vld [vmem:[#allocation2 + $0x3e4] ss:$4 sm:$0xff] }
 0x673   : > { %v5008_v37 = vld [vmem:[#allocation2 + $0x3c4] ss:$4 sm:$0xff] }
 0x675   : > { %9617 = vmatpush3.bf16.msra.mxu1 %v12697_v23  ;;  %v12761_v23 = vld [vmem:[%s13813_s1 + $0x1c0] ss:$8 sps:$4 sm:$0xff]  }
 0x676   : > { %9654 = vmatprep.subr.bf16.mxu1 %v12729_v10 }
 0x678   : > { %9583 = vmatmul.mubr.bf16.gmra.mrb[16].mxu1 %v3922_v32  ;;  %v4968_v32 = vld [vmem:[#allocation2 + $0x144] ss:$4 sm:$0xff] }
 0x679   : > { %9586 = vmatprep.mubr.bf16.mxu1 %v3923_v7  ;;  %v12775_v43 = vpack.c.bf16 %v4970_v21, %v4968_v32  ;;  %v4972_v7 = vld [vmem:[#allocation2 + $0x184] ss:$4 sm:$0xff]  ;;  %v12829_v21 = vpack.c.bf16 %v5010_v18, %v5008_v37  ;;  %v5609_v18 = vpack.c.bf16 %v5570_v63, %v5568_v5  ;;  %v5578_v37 = vld [vmem:[#allocation2 + $0x325] ss:$4 sm:$0xff]  ;;  %v6156_v63 = vld [vmem:[#allocation2 + $0x306] ss:$4 sm:$0xff] }
 0x67a   : > { %v12783_v33 = vpack.c.bf16 %v4974_v57, %v4972_v7  ;;  %v5012_v57 = vld [vmem:[#allocation2 + $0x404] ss:$4 sm:$0xff]  ;;  %v6166_v5 = vld [vmem:[#allocation2 + $0x3a6] ss:$4 sm:$0xff] }
 0x67b   : > { %v12831_v32 = vpack.c.bf16 %v5014_v19, %v5012_v57  ;;  %v5018_v7 = vld [vmem:[#allocation2 + $0x464] ss:$4 sm:$0xff]  ;;  %v5574_v19 = vld [vmem:[#allocation2 + $0x2e5] ss:$4 sm:$0xff] }
 0x67c   : > { %v5572_v57 = vld [vmem:[#allocation2 + $0x2c5] ss:$4 sm:$0xff] }
 0x680   : > { %9587 = vmatmul.mubr.bf16.gmra.mrb[20].mxu1 %v3924_v41  ;;  %v4978_v41 = vld [vmem:[#allocation2 + $0x1e4] ss:$4 sm:$0xff] }
 0x681   : > { %9590 = vmatprep.mubr.bf16.mxu1 %v3925_v47  ;;  %v4976_v47 = vld [vmem:[#allocation2 + $0x1c4] ss:$4 sm:$0xff] }
 0x682   : > { %v12795_v48 = vpack.c.bf16 %v4978_v41, %v4976_v47  ;;  %v5016_v41 = vld [vmem:[#allocation2 + $0x444] ss:$4 sm:$0xff] }
 0x683   : > { %v12908_v47 = vld [vmem:[%s13813_s1 + $0x260] ss:$8 sps:$4 sm:$0xff]  }
 0x688   : > { %9591 = vmatmul.mubr.bf16.gmra.mrb[24].mxu1 %v3926_v24  ;;  %v12803_v24 = vpack.c.bf16 %v4982_v44, %v4980_v22  ;;  %v12835_v44 = vpack.c.bf16 %v5018_v7, %v5016_v41  ;;  %v5610_v7 = vpack.c.bf16 %v5574_v19, %v5572_v57  ;;  %v5576_v41 = vld [vmem:[#allocation2 + $0x305] ss:$4 sm:$0xff] }
 0x689   : > { %9594 = vmatprep.mubr.bf16.mxu1 %v3927_v35  ;;  %v4990_v35 = vld [vmem:[#allocation2 + $0x2a4] ss:$4 sm:$0xff] }
 0x690   : > { %9595 = vmatmul.mubr.bf16.gmra.mrb[28].mxu1 %v3928_v52  ;;  %v12813_v52 = vpack.c.bf16 %v4990_v35, %v4988_v49  ;;  %v5562_v35 = vld [vmem:[#allocation2 + $0x225] ss:$4 sm:$0xff]  ;;  %v5606_v49 = vpack.c.bf16 %v5558_v55, %v5556_v25  ;;  %v6144_v55 = vld [vmem:[#allocation2 + $0x246] ss:$4 sm:$0xff] }
 0x691   : > { %9598 = vmatprep.mubr.bf16.mxu1 %v3929_v15  ;;  %v4998_v15 = vld [vmem:[#allocation2 + $0x324] ss:$4 sm:$0xff]  ;;  %v5607_v17 = vpack.c.bf16 %v5562_v35, %v5560_v6  ;;  %v6148_v25 = vld [vmem:[#allocation2 + $0x286] ss:$4 sm:$0xff] }
 0x692   : > { %v6154_v6 = vld [vmem:[#allocation2 + $0x2e6] ss:$4 sm:$0xff] }
 0x698   : > { %9599 = vmatmul.mubr.bf16.gmra.mrb[32].mxu1 %v3930_v16  ;;  %v4996_v16 = vld [vmem:[#allocation2 + $0x304] ss:$4 sm:$0xff] }
 0x699   : > { %9618 = vmatprep.mubr.bf16.mxu1 %v12733_v61  ;;  %v12819_v51 = vpack.c.bf16 %v4998_v15, %v4996_v16  ;;  %v12922_v15 = vld [vmem:[%s13813_s1 + $0x280] ss:$8 sps:$4 sm:$0xff]  }
 0x69a   : > { %v5566_v16 = vld [vmem:[#allocation2 + $0x265] ss:$4 sm:$0xff] }
 0x69b   : > { %v5608_v2 = vpack.c.bf16 %v5566_v16, %v5564_v62 }
 0x6a0   : > { %9619 = vmatmul.mubr.bf16.vlgmr.msra.gmra.mrb[36].mxu1 %v12736_v31 }
 0x6a1   : > { %9655 = vmatpush3.bf16.msra.mxu1 %v12729_v10  ;;  %9622 = vmatprep.mubr.bf16.mxu1 %v12743_v39 }
 0x6a2   : > { %9656 = vmatprep.subr.bf16.mxu1 %v12741_v50 }
 0x6a5   : > { %9657 = vmatpush3.bf16.msra.mxu1 %v12741_v50 }
 0x6a6   : > { %9658 = vmatprep.subr.bf16.mxu1 %v12752_v9 }
 0x6a8   : > { %9623 = vmatmul.mubr.bf16.gmra.mrb[40].mxu1 %v12755_v29 }
 0x6a9   : > { %9626 = vmatprep.mubr.bf16.mxu1 %v12763_v26  ;;  %9659 = vmatpush3.bf16.msra.mxu1 %v12752_v9 }
 0x6aa   : > { %9660 = vmatprep.subr.bf16.mxu1 %v12761_v23 }
 0x6ad   : > { %9661 = vmatpush3.bf16.msra.mxu1 %v12761_v23 }
 0x6ae   : > { %9662 = vmatprep.subr.bf16.mxu1 %v12772_v42 }
 0x6b0   : > { %9627 = vmatmul.mubr.bf16.gmra.mrb[44].mxu1 %v12775_v43 }
 0x6b1   : > { %9630 = vmatprep.mubr.bf16.mxu1 %v12783_v33  ;;  %9663 = vmatpush3.bf16.msra.mxu1 %v12772_v42 }
 0x6b2   : > { %9664 = vmatprep.subr.bf16.mxu1 %v12781_v60 }
 0x6b5   : > { %9665 = vmatpush3.bf16.msra.mxu1 %v12781_v60 }
 0x6b6   : > { %9666 = vmatprep.subr.bf16.mxu1 %v12792_v40 }
 0x6b8   : > { %9631 = vmatmul.mubr.bf16.gmra.mrb[48].mxu1 %v12795_v48 }
 0x6b9   : > { %9634 = vmatprep.mubr.bf16.mxu1 %v12803_v24  ;;  %9667 = vmatpush3.bf16.msra.mxu1 %v12792_v40 }
 0x6ba   : > { %9668 = vmatprep.subr.bf16.mxu1 %v12801_v54 }
 0x6bd   : > { %9669 = vmatpush3.bf16.msra.mxu1 %v12801_v54 }
 0x6be   : > { %9706 = vmatprep.subr.bf16.mxu1 %v12729_v10 }
 0x6c0   : > { %9635 = vmatmul.mubr.bf16.gmra.mrb[52].mxu1 %v12810_v36 }
 0x6c1   : > { %9638 = vmatprep.mubr.bf16.mxu1 %v12813_v52 }
 0x6c8   : > { %9639 = vmatmul.mubr.bf16.gmra.mrb[56].mxu1 %v12817_v30 }
 0x6c9   : > { %9642 = vmatprep.mubr.bf16.mxu1 %v12819_v51 }
 0x6d0   : > { %9643 = vmatmul.mubr.bf16.gmra.mrb[60].mxu1 %v12823_v3 }
 0x6d1   : > { %9646 = vmatprep.mubr.bf16.mxu1 %v12825_v11 }
 0x6d8   : > { %9647 = vmatmul.mubr.bf16.gmra.mrb[64].mxu1 %v12829_v21 }
 0x6d9   : > { %9650 = vmatprep.mubr.bf16.mxu1 %v12831_v32 }
 0x6e0   : > { %9651 = vmatmul.mubr.bf16.gmra.mrb[68].mxu1 %v12835_v44 }
 0x6e1   : > { %9670 = vmatprep.mubr.bf16.mxu1 %v12552_v0  ;;  %v12864_v0 = vld [vmem:[%s13813_s1 + $0x210] ss:$8 sps:$4 sm:$0xff]  }
 0x6e8   : > { %9671 = vmatmul.mubr.bf16.vlgmr.msra.gmra.mrb[0].mxu1 %v12555_v28  ;;  %v5530_v28 = vld [vmem:[#allocation2 + $0x25] ss:$4 sm:$0xff] }
 0x6e9   : > { %9707 = vmatpush3.bf16.msra.mxu1 %v12729_v10  ;;  %9674 = vmatprep.mubr.bf16.mxu1 %v12557_v1  ;;  %v5528_v1 = vld [vmem:[#allocation2 + $0x5] ss:$4 sm:$0xff] }
 0x6ea   : > { %9708 = vmatprep.subr.bf16.mxu1 %v12741_v50 }
 0x6ed   : > { %9709 = vmatpush3.bf16.msra.mxu1 %v12741_v50  ;;  %v12901_v50 = vld [vmem:[%s13813_s1 + $0x250] ss:$8 sps:$4 sm:$0xff]  }
 0x6ee   : > { %9710 = vmatprep.subr.bf16.mxu1 %v12752_v9 }
 0x6f0   : > { %9675 = vmatmul.mubr.bf16.gmra.mrb[4].mxu1 %v12564_v14  ;;  %v5599_v14 = vpack.c.bf16 %v5530_v28, %v5528_v1  ;;  %v5611_v28 = vpack.c.bf16 %v5578_v37, %v5576_v41  ;;  %v5582_v1 = vld [vmem:[#allocation2 + $0x365] ss:$4 sm:$0xff]  ;;  %v6164_v37 = vld [vmem:[#allocation2 + $0x386] ss:$4 sm:$0xff] }
 0x6f1   : > { %9678 = vmatprep.mubr.bf16.mxu1 %v12569_v38  ;;  %9711 = vmatpush3.bf16.msra.mxu1 %v12752_v9  ;;  %v5534_v38 = vld [vmem:[#allocation2 + $0x65] ss:$4 sm:$0xff]  ;;  %v6193_v57 = vpack.c.bf16 %v6166_v5, %v6164_v37  ;;  %v6174_v41 = vld [vmem:[#allocation2 + $0x426] ss:$4 sm:$0xff] }
 0x6f2   : > { %9712 = vmatprep.subr.bf16.mxu1 %v12761_v23  ;;  %v5550_v9 = vld [vmem:[#allocation2 + $0x165] ss:$4 sm:$0xff] }
 0x6f5   : > { %9713 = vmatpush3.bf16.msra.mxu1 %v12761_v23  ;;  %v5554_v23 = vld [vmem:[#allocation2 + $0x1a5] ss:$4 sm:$0xff] }
 0x6f6   : > { %9714 = vmatprep.subr.bf16.mxu1 %v12772_v42 }
 0x6f8   : > { %9679 = vmatmul.mubr.bf16.gmra.mrb[8].mxu1 %v12576_v8  ;;  %v5538_v8 = vld [vmem:[#allocation2 + $0xa5] ss:$4 sm:$0xff] }
 0x6f9   : > { %9682 = vmatprep.mubr.bf16.mxu1 %v12579_v53  ;;  %9715 = vmatpush3.bf16.msra.mxu1 %v12772_v42  ;;  %v5532_v53 = vld [vmem:[#allocation2 + $0x45] ss:$4 sm:$0xff] }
 0x6fa   : > { %9716 = vmatprep.subr.bf16.mxu1 %v12781_v60  ;;  %v5548_v42 = vld [vmem:[#allocation2 + $0x145] ss:$4 sm:$0xff] }
 0x6fd   : > { %9717 = vmatpush3.bf16.msra.mxu1 %v12781_v60  ;;  %v5604_v60 = vpack.c.bf16 %v5550_v9, %v5548_v42  ;;  %v6136_v42 = vld [vmem:[#allocation2 + $0x1c6] ss:$4 sm:$0xff] }
 0x6fe   : > { %9718 = vmatprep.subr.bf16.mxu1 %v12792_v40 }
 0x700   : > { %9683 = vmatmul.mubr.bf16.gmra.mrb[12].mxu1 %v12586_v12  ;;  %v5600_v12 = vpack.c.bf16 %v5534_v38, %v5532_v53  ;;  %v5580_v38 = vld [vmem:[#allocation2 + $0x345] ss:$4 sm:$0xff] }
 0x701   : > { %9686 = vmatprep.mubr.bf16.mxu1 %v12589_v13  ;;  %9719 = vmatpush3.bf16.msra.mxu1 %v12792_v40  ;;  %v5536_v13 = vld [vmem:[#allocation2 + $0x85] ss:$4 sm:$0xff] }
 0x702   : > { %9720 = vmatprep.subr.bf16.mxu1 %v12801_v54  ;;  %v5552_v40 = vld [vmem:[#allocation2 + $0x185] ss:$4 sm:$0xff] }
 0x703   : > { %v5605_v22 = vpack.c.bf16 %v5554_v23, %v5552_v40  ;;  %v5584_v53 = vld [vmem:[#allocation2 + $0x385] ss:$4 sm:$0xff]  ;;  %v6142_v23 = vld [vmem:[#allocation2 + $0x226] ss:$4 sm:$0xff] }
 0x704   : > { %v6140_v40 = vld [vmem:[#allocation2 + $0x206] ss:$4 sm:$0xff] }
 0x705   : > { %9721 = vmatpush3.bf16.msra.mxu1 %v12801_v54  ;;  %v12915_v54 = vld [vmem:[%s13813_s1 + $0x270] ss:$8 sps:$4 sm:$0xff]  }
 0x706   : > { %9758 = vmatprep.subr.bf16.mxu1 %v12864_v0 }
 0x708   : > { %9687 = vmatmul.mubr.bf16.gmra.mrb[16].mxu1 %v12601_v20  ;;  %v12880_v20 = vld [vmem:[%s13813_s1 + $0x220] ss:$8 sps:$4 sm:$0xff]  }
 0x709   : > { %9690 = vmatprep.mubr.bf16.mxu1 %v12604_v58  ;;  %v5601_v58 = vpack.c.bf16 %v5538_v8, %v5536_v13  ;;  %v5612_v8 = vpack.c.bf16 %v5582_v1, %v5580_v38  ;;  %v5590_v13 = vld [vmem:[#allocation2 + $0x3e5] ss:$4 sm:$0xff] }
 0x710   : > { %9691 = vmatmul.mubr.bf16.gmra.mrb[20].mxu1 %v12608_v56  ;;  %v12887_v56 = vld [vmem:[%s13813_s1 + $0x230] ss:$8 sps:$4 sm:$0xff]  }
 0x711   : > { %9694 = vmatprep.mubr.bf16.mxu1 %v12610_v27  ;;  %v5542_v27 = vld [vmem:[#allocation2 + $0xe5] ss:$4 sm:$0xff] }
 0x718   : > { %9695 = vmatmul.mubr.bf16.gmra.mrb[24].mxu1 %v12614_v59  ;;  %v5546_v59 = vld [vmem:[#allocation2 + $0x125] ss:$4 sm:$0xff] }
 0x719   : > { %9698 = vmatprep.mubr.bf16.mxu1 %v12616_v45  ;;  %v5540_v45 = vld [vmem:[#allocation2 + $0xc5] ss:$4 sm:$0xff] }
 0x720   : > { %9699 = vmatmul.mubr.bf16.gmra.mrb[28].mxu1 %v12620_v34  ;;  %v5602_v34 = vpack.c.bf16 %v5542_v27, %v5540_v45  ;;  %v5588_v27 = vld [vmem:[#allocation2 + $0x3c5] ss:$4 sm:$0xff] }
 0x721   : > { %9702 = vmatprep.mubr.bf16.mxu1 %v12622_v46  ;;  %v5544_v46 = vld [vmem:[#allocation2 + $0x105] ss:$4 sm:$0xff] }
 0x722   : > { %v5603_v10 = vpack.c.bf16 %v5546_v59, %v5544_v46  ;;  %v5614_v59 = vpack.c.bf16 %v5590_v13, %v5588_v27  ;;  %v5592_v45 = vld [vmem:[#allocation2 + $0x405] ss:$4 sm:$0xff] }
 0x723   : > { %v5598_v46 = vld [vmem:[#allocation2 + $0x465] ss:$4 sm:$0xff] }
 0x724   : > { %v12967_v13 = vld [vmem:[%s13813_s1 + $0x310] ss:$8 sps:$4 sm:$0xff]  }
 0x725   : > { %v12981_v27 = vld [vmem:[%s13813_s1 + $0x330] ss:$8 sps:$4 sm:$0xff]  }
 0x728   : > { %9703 = vmatmul.mubr.bf16.gmra.mrb[32].mxu1 %v12626_v4  ;;  %v12894_v4 = vld [vmem:[%s13813_s1 + $0x240] ss:$8 sps:$4 sm:$0xff]  }
 0x729   : > { %9722 = vmatprep.mubr.bf16.mxu1 %v5599_v14  ;;  %v5586_v14 = vld [vmem:[#allocation2 + $0x3a5] ss:$4 sm:$0xff] }
 0x730   : > { %9723 = vmatmul.mubr.bf16.vlgmr.msra.gmra.mrb[36].mxu1 %v5600_v12  ;;  %v5613_v12 = vpack.c.bf16 %v5586_v14, %v5584_v53  ;;  %v6172_v14 = vld [vmem:[#allocation2 + $0x406] ss:$4 sm:$0xff] }
 0x731   : > { %9759 = vmatpush3.bf16.msra.mxu1 %v12864_v0  ;;  %9726 = vmatprep.mubr.bf16.mxu1 %v5601_v58  ;;  %v5594_v58 = vld [vmem:[#allocation2 + $0x425] ss:$4 sm:$0xff]  ;;  %v6195_v38 = vpack.c.bf16 %v6174_v41, %v6172_v14  ;;  %v6176_v53 = vld [vmem:[#allocation2 + $0x446] ss:$4 sm:$0xff] }
 0x732   : > { %9760 = vmatprep.subr.bf16.mxu1 %v12880_v20 }
 0x735   : > { %9761 = vmatpush3.bf16.msra.mxu1 %v12880_v20 }
 0x736   : > { %9762 = vmatprep.subr.bf16.mxu1 %v12887_v56 }
 0x738   : > { %9727 = vmatmul.mubr.bf16.gmra.mrb[40].mxu1 %v5602_v34  ;;  %v5615_v34 = vpack.c.bf16 %v5594_v58, %v5592_v45  ;;  %v12974_v58 = vld [vmem:[%s13813_s1 + $0x320] ss:$8 sps:$4 sm:$0xff]   ;;  %v12995_v45 = vld [vmem:[%s13813_s1 + $0x350] ss:$8 sps:$4 sm:$0xff]  }
 0x739   : > { %9730 = vmatprep.mubr.bf16.mxu1 %v5603_v10  ;;  %9763 = vmatpush3.bf16.msra.mxu1 %v12887_v56  ;;  %v5596_v10 = vld [vmem:[#allocation2 + $0x445] ss:$4 sm:$0xff] }
 0x73a   : > { %9764 = vmatprep.subr.bf16.mxu1 %v12894_v4  ;;  %v5616_v9 = vpack.c.bf16 %v5598_v46, %v5596_v10  ;;  %v13009_v46 = vld [vmem:[%s13813_s1 + $0x370] ss:$8 sps:$4 sm:$0xff]   ;;  %v13016_v10 = vld [vmem:[%s13813_s1 + $0x380] ss:$8 sps:$4 sm:$0xff]  }
 0x73b   : > { %13818 = vst [vmem:[#allocation5_spill] sm:$0xff] %v13009_v46  ;;  %13819 = vst [vmem:[#allocation6_spill] sm:$0xff] %v13016_v10 }
 0x73d   : > { %9765 = vmatpush3.bf16.msra.mxu1 %v12894_v4 }
 0x73e   : > { %9766 = vmatprep.subr.bf16.mxu1 %v12901_v50 }
 0x740   : > { %9731 = vmatmul.mubr.bf16.gmra.mrb[44].mxu1 %v5604_v60 }
 0x741   : > { %9734 = vmatprep.mubr.bf16.mxu1 %v5605_v22  ;;  %9767 = vmatpush3.bf16.msra.mxu1 %v12901_v50  ;;  %v6146_v22 = vld [vmem:[#allocation2 + $0x266] ss:$4 sm:$0xff] }
 0x742   : > { %9768 = vmatprep.subr.bf16.mxu1 %v12908_v47  ;;  %v6188_v35 = vpack.c.bf16 %v6146_v22, %v6144_v55 }
 0x745   : > { %9769 = vmatpush3.bf16.msra.mxu1 %v12908_v47 }
 0x746   : > { %9770 = vmatprep.subr.bf16.mxu1 %v12915_v54 }
 0x748   : > { %9735 = vmatmul.mubr.bf16.gmra.mrb[48].mxu1 %v5606_v49 }
 0x749   : > { %9738 = vmatprep.mubr.bf16.mxu1 %v5607_v17  ;;  %9771 = vmatpush3.bf16.msra.mxu1 %v12915_v54  ;;  %v6152_v17 = vld [vmem:[#allocation2 + $0x2c6] ss:$4 sm:$0xff] }
 0x74a   : > { %9772 = vmatprep.subr.bf16.mxu1 %v12922_v15  ;;  %v6190_v16 = vpack.c.bf16 %v6154_v6, %v6152_v17  ;;  %v13079_v6 = vld [vmem:[%s13814_s2 + $0x2] ss:$0 sm:$0xff] }
 0x74d   : > { %9773 = vmatpush3.bf16.msra.mxu1 %v12922_v15 }
 0x74e   : > { %9810 = vmatprep.subr.bf16.mxu1 %v12864_v0 }
 0x750   : > { %9739 = vmatmul.mubr.bf16.gmra.mrb[52].mxu1 %v5608_v2  ;;  %v6162_v2 = vld [vmem:[#allocation2 + $0x366] ss:$4 sm:$0xff] }
 0x751   : > { %9742 = vmatprep.mubr.bf16.mxu1 %v5609_v18  ;;  %v6160_v18 = vld [vmem:[#allocation2 + $0x346] ss:$4 sm:$0xff] }
 0x752   : > { %v6192_v19 = vpack.c.bf16 %v6162_v2, %v6160_v18 }
 0x758   : > { %9743 = vmatmul.mubr.bf16.gmra.mrb[56].mxu1 %v5610_v7  ;;  %v6170_v7 = vld [vmem:[#allocation2 + $0x3e6] ss:$4 sm:$0xff] }
 0x759   : > { %9746 = vmatprep.mubr.bf16.mxu1 %v5611_v28  ;;  %v6168_v28 = vld [vmem:[#allocation2 + $0x3c6] ss:$4 sm:$0xff] }
 0x75a   : > { %v6194_v1 = vpack.c.bf16 %v6170_v7, %v6168_v28 }
 0x760   : > { %9747 = vmatmul.mubr.bf16.gmra.mrb[60].mxu1 %v5612_v8  ;;  %v6178_v8 = vld [vmem:[#allocation2 + $0x466] ss:$4 sm:$0xff] }
 0x761   : > { %9750 = vmatprep.mubr.bf16.mxu1 %v5613_v12  ;;  %v6196_v12 = vpack.c.bf16 %v6178_v8, %v6176_v53 }
 0x768   : > { %9751 = vmatmul.mubr.bf16.gmra.mrb[64].mxu1 %v5614_v59  ;;  %v12988_v59 = vld [vmem:[%s13813_s1 + $0x340] ss:$8 sps:$4 sm:$0xff]  }
 0x769   : > { %9754 = vmatprep.mubr.bf16.mxu1 %v5615_v34  ;;  %v13002_v34 = vld [vmem:[%s13813_s1 + $0x360] ss:$8 sps:$4 sm:$0xff]  }
 0x770   : > { %9755 = vmatmul.mubr.bf16.gmra.mrb[68].mxu1 %v5616_v9 }
 0x771   : > { %9774 = vmatprep.mubr.bf16.mxu1 %v12733_v61  ;;  %v12952_v61 = vld [vmem:[#allocation2 + $0x480] sm:$0xff] }
 0x772   : > { %10263 = vmatprep.mubr.msk.f32.mxu0 %vm11121_vm2, %v12952_v61 }
 0x778   : > { %9775 = vmatmul.mubr.bf16.vlgmr.msra.gmra.mrb[0].mxu1 %v12736_v31  ;;  %v6110_v31 = vld [vmem:[#allocation2 + $0x26] ss:$4 sm:$0xff] }
 0x779   : > { %9811 = vmatpush3.bf16.msra.mxu1 %v12864_v0  ;;  %9778 = vmatprep.mubr.bf16.mxu1 %v12743_v39  ;;  %v6108_v39 = vld [vmem:[#allocation2 + $0x6] ss:$4 sm:$0xff] }
 0x77a   : > { %9812 = vmatprep.subr.bf16.mxu1 %v12880_v20  ;;  %v6134_v0 = vld [vmem:[#allocation2 + $0x1a6] ss:$4 sm:$0xff] }
 0x77d   : > { %9813 = vmatpush3.bf16.msra.mxu1 %v12880_v20 }
 0x77e   : > { %9814 = vmatprep.subr.bf16.mxu1 %v12887_v56 }
 0x780   : > { %9779 = vmatmul.mubr.bf16.gmra.mrb[4].mxu1 %v12755_v29  ;;  %v6179_v29 = vpack.c.bf16 %v6110_v31, %v6108_v39 }
 0x781   : > { %9782 = vmatprep.mubr.bf16.mxu1 %v12763_v26  ;;  %9815 = vmatpush3.bf16.msra.mxu1 %v12887_v56  ;;  %v6114_v26 = vld [vmem:[#allocation2 + $0x66] ss:$4 sm:$0xff] }
 0x782   : > { %9816 = vmatprep.subr.bf16.mxu1 %v12894_v4  ;;  %v6132_v56 = vld [vmem:[#allocation2 + $0x186] ss:$4 sm:$0xff] }
 0x785   : > { %9817 = vmatpush3.bf16.msra.mxu1 %v12894_v4  ;;  %v6185_v4 = vpack.c.bf16 %v6134_v0, %v6132_v56 }
 0x786   : > { %9818 = vmatprep.subr.bf16.mxu1 %v12901_v50 }
 0x788   : > { %9783 = vmatmul.mubr.bf16.gmra.mrb[8].mxu1 %v12775_v43  ;;  %v6118_v43 = vld [vmem:[#allocation2 + $0xa6] ss:$4 sm:$0xff] }
 0x789   : > { %9786 = vmatprep.mubr.bf16.mxu1 %v12783_v33  ;;  %9819 = vmatpush3.bf16.msra.mxu1 %v12901_v50  ;;  %v6112_v33 = vld [vmem:[#allocation2 + $0x46] ss:$4 sm:$0xff] }
 0x78a   : > { %9820 = vmatprep.subr.bf16.mxu1 %v12908_v47  ;;  %v6138_v50 = vld [vmem:[#allocation2 + $0x1e6] ss:$4 sm:$0xff] }
 0x78b   : > { %v6186_v60 = vpack.c.bf16 %v6138_v50, %v6136_v42 }
 0x78d   : > { %9821 = vmatpush3.bf16.msra.mxu1 %v12908_v47  ;;  %v6187_v47 = vpack.c.bf16 %v6142_v23, %v6140_v40 }
 0x78e   : > { %9822 = vmatprep.subr.bf16.mxu1 %v12915_v54 }
 0x790   : > { %9787 = vmatmul.mubr.bf16.gmra.mrb[12].mxu1 %v12795_v48  ;;  %v6180_v48 = vpack.c.bf16 %v6114_v26, %v6112_v33 }
 0x791   : > { %9790 = vmatprep.mubr.bf16.mxu1 %v12803_v24  ;;  %9823 = vmatpush3.bf16.msra.mxu1 %v12915_v54  ;;  %v6116_v24 = vld [vmem:[#allocation2 + $0x86] ss:$4 sm:$0xff] }
 0x792   : > { %9824 = vmatprep.subr.bf16.mxu1 %v12922_v15  ;;  %v6150_v54 = vld [vmem:[#allocation2 + $0x2a6] ss:$4 sm:$0xff] }
 0x793   : > { %v6189_v49 = vpack.c.bf16 %v6150_v54, %v6148_v25 }
 0x795   : > { %9825 = vmatpush3.bf16.msra.mxu1 %v12922_v15  ;;  %v6158_v15 = vld [vmem:[#allocation2 + $0x326] ss:$4 sm:$0xff] }
 0x796   : > { %9862 = vmatprep.subr.bf16.mxu1 %v12952_v61  ;;  %v6191_v62 = vpack.c.bf16 %v6158_v15, %v6156_v63  ;;  %v13089_v63 = vld [vmem:[%s13814_s2 + $0x3] ss:$0 sm:$0xff] }
 0x798   : > { %9791 = vmatmul.mubr.bf16.gmra.mrb[16].mxu1 %v12810_v36  ;;  %v6181_v36 = vpack.c.bf16 %v6118_v43, %v6116_v24 }
 0x799   : > { %9794 = vmatprep.mubr.bf16.mxu1 %v12813_v52  ;;  %v6122_v52 = vld [vmem:[#allocation2 + $0xe6] ss:$4 sm:$0xff] }
 0x7a0   : > { %9795 = vmatmul.mubr.bf16.gmra.mrb[20].mxu1 %v12817_v30  ;;  %v6126_v30 = vld [vmem:[#allocation2 + $0x126] ss:$4 sm:$0xff] }
 0x7a1   : > { %9798 = vmatprep.mubr.bf16.mxu1 %v12819_v51  ;;  %v6120_v51 = vld [vmem:[#allocation2 + $0xc6] ss:$4 sm:$0xff] }
 0x7a8   : > { %9799 = vmatmul.mubr.bf16.gmra.mrb[24].mxu1 %v12823_v3  ;;  %v6182_v3 = vpack.c.bf16 %v6122_v52, %v6120_v51 }
 0x7a9   : > { %9802 = vmatprep.mubr.bf16.mxu1 %v12825_v11  ;;  %v6124_v11 = vld [vmem:[#allocation2 + $0x106] ss:$4 sm:$0xff] }
 0x7b0   : > { %9803 = vmatmul.mubr.bf16.gmra.mrb[28].mxu1 %v12829_v21  ;;  %v6183_v21 = vpack.c.bf16 %v6126_v30, %v6124_v11 }
 0x7b1   : > { %9806 = vmatprep.mubr.bf16.mxu1 %v12831_v32  ;;  %v6130_v32 = vld [vmem:[#allocation2 + $0x166] ss:$4 sm:$0xff] }
 0x7b8   : > { %9807 = vmatmul.mubr.bf16.gmra.mrb[32].mxu1 %v12835_v44  ;;  %v6128_v44 = vld [vmem:[#allocation2 + $0x146] ss:$4 sm:$0xff] }
 0x7b9   : > { %9826 = vmatprep.mubr.bf16.mxu1 %v6179_v29  ;;  %v6184_v20 = vpack.c.bf16 %v6130_v32, %v6128_v44 }
 0x7c0   : > { %9827 = vmatmul.mubr.bf16.vlgmr.msra.gmra.mrb[36].mxu1 %v6180_v48 }
 0x7c1   : > { %9830 = vmatprep.mubr.bf16.mxu1 %v6181_v36  ;;  %9863 = vmatpush3.bf16.msra.mxu1 %v12967_v13 }
 0x7c2   : > { %9864 = vmatprep.subr.bf16.mxu1 %v12952_v61 }
 0x7c5   : > { %9865 = vmatpush3.bf16.msra.mxu1 %v12974_v58 }
 0x7c6   : > { %9866 = vmatprep.subr.bf16.mxu1 %v12952_v61 }
 0x7c8   : > { %9831 = vmatmul.mubr.bf16.gmra.mrb[40].mxu1 %v6182_v3 }
 0x7c9   : > { %9834 = vmatprep.mubr.bf16.mxu1 %v6183_v21  ;;  %9867 = vmatpush3.bf16.msra.mxu1 %v12981_v27 }
 0x7ca   : > { %9868 = vmatprep.subr.bf16.mxu1 %v12952_v61 }
 0x7cd   : > { %9869 = vmatpush3.bf16.msra.mxu1 %v12988_v59 }
 0x7ce   : > { %9870 = vmatprep.subr.bf16.mxu1 %v12952_v61 }
 0x7d0   : > { %9835 = vmatmul.mubr.bf16.gmra.mrb[44].mxu1 %v6184_v20 }
 0x7d1   : > { %9838 = vmatprep.mubr.bf16.mxu1 %v6185_v4  ;;  %9871 = vmatpush3.bf16.msra.mxu1 %v12995_v45 }
 0x7d2   : > { %9872 = vmatprep.subr.bf16.mxu1 %v12952_v61 }
 0x7d5   : > { %9873 = vmatpush3.bf16.msra.mxu1 %v13002_v34 }
 0x7d6   : > { %9874 = vmatprep.subr.bf16.mxu1 %v12952_v61 }
 0x7d8   : > { %9839 = vmatmul.mubr.bf16.gmra.mrb[48].mxu1 %v6186_v60 }
 0x7d9   : > { %9842 = vmatprep.mubr.bf16.mxu1 %v6187_v47  ;;  %9875 = vmatpush3.bf16.msra.mxu1 %v13009_v46 }
 0x7da   : > { %9876 = vmatprep.subr.bf16.mxu1 %v12952_v61 }
 0x7dd   : > { %9877 = vmatpush3.bf16.msra.mxu1 %v13016_v10 }
 0x7de   : > { %9898 = vmatprep.subr.bf16.mxu1 %v12952_v61 }
 0x7e0   : > { %9843 = vmatmul.mubr.bf16.gmra.mrb[52].mxu1 %v6188_v35 }
 0x7e1   : > { %9846 = vmatprep.mubr.bf16.mxu1 %v6189_v49 }
 0x7e8   : > { %9847 = vmatmul.mubr.bf16.gmra.mrb[56].mxu1 %v6190_v16 }
 0x7e9   : > { %9850 = vmatprep.mubr.bf16.mxu1 %v6191_v62 }
 0x7f0   : > { %9851 = vmatmul.mubr.bf16.gmra.mrb[60].mxu1 %v6192_v19 }
 0x7f1   : > { %9854 = vmatprep.mubr.bf16.mxu1 %v6193_v57 }
 0x7f8   : > { %9855 = vmatmul.mubr.bf16.gmra.mrb[64].mxu1 %v6194_v1 }
 0x7f9   : > { %9858 = vmatprep.mubr.bf16.mxu1 %v6195_v38 }
 0x800   : > { %9859 = vmatmul.mubr.bf16.gmra.mrb[68].mxu1 %v6196_v12 }
 0x801   : > { %9878 = vmatprep.mubr.msk.bf16.mxu1 %vm11121_vm2, %v12952_v61 }
 0x84b   : > { %v9776_v9 = vpop.f32.mrb[0].mxu1 }
 0x84c   : > { %v6279_v31 = vpop.f32.mrb[1].mxu1  ;;  %v6677_v16 = vmul.f32 %v9776_v9, %v13079_v6 }
 0x84d   : > { %v9777_v39 = vpop.f32.mrb[2].mxu1  ;;  %v6675_v62 = vmul.f32 %v13079_v6, %v6279_v31 }
 0x84e   : > { %v6282_v29 = vpop.f32.mrb[3].mxu1  ;;  %v6678_v2 = vmul.f32 %v9777_v39, %v13079_v6  ;;  %v6717_v19 = vadd.f32 %v13089_v63, %v6677_v16 }
 0x84f   : > { %v6676_v5 = vmul.f32 %v13079_v6, %v6282_v29  ;;  %v6715_v7 = vadd.f32 %v13089_v63, %v6675_v62 }
 0x850   : > { %v6718_v1 = vadd.f32 %v13089_v63, %v6678_v2  ;;  %v6753_v31 = vmax.f32 %v6717_v19, 0.0 }
 0x851   : > { %v6716_v53 = vadd.f32 %v13089_v63, %v6676_v5  ;;  %v6751_v62 = vmax.f32 %v6715_v7, 0.0 }
 0x853   : > { %v9780_v26 = vpop.f32.mrb[4].mxu1 }
 0x854   : > { %v6295_v43 = vpop.f32.mrb[5].mxu1  ;;  %v6681_v39 = vmul.f32 %v9780_v26, %v13079_v6 }
 0x855   : > { %v9781_v33 = vpop.f32.mrb[6].mxu1  ;;  %v6679_v2 = vmul.f32 %v13079_v6, %v6295_v43 }
 0x856   : > { %v6298_v48 = vpop.f32.mrb[7].mxu1 }
 0x85b   : > { %v13024_v24 = vpop.f32.mrb[8].mxu1 }
 0x85c   : > { %v13026_v36 = vpop.f32.mrb[9].mxu1 }
 0x85d   : > { %v13028_v52 = vpop.f32.mrb[10].mxu1 }
 0x85e   : > { %v13030_v30 = vpop.f32.mrb[11].mxu1 }
 0x863   : > { %v13032_v51 = vpop.f32.mrb[12].mxu1 }
 0x864   : > { %v13034_v3 = vpop.f32.mrb[13].mxu1 }
 0x865   : > { %v13036_v11 = vpop.f32.mrb[14].mxu1 }
 0x866   : > { %v13038_v21 = vpop.f32.mrb[15].mxu1 }
 0x86b   : > { %v13040_v32 = vpop.f32.mrb[16].mxu1 }
 0x86c   : > { %v13042_v0 = vpop.f32.mrb[17].mxu1 }
 0x86d   : > { %v13044_v44 = vpop.f32.mrb[18].mxu1 }
 0x86e   : > { %v13046_v20 = vpop.f32.mrb[19].mxu1 }
 0x873   : > { %v13048_v56 = vpop.f32.mrb[20].mxu1 }
 0x874   : > { %v13050_v4 = vpop.f32.mrb[21].mxu1 }
 0x875   : > { %v13052_v50 = vpop.f32.mrb[22].mxu1 }
 0x876   : > { %v13054_v23 = vpop.f32.mrb[23].mxu1 }
 0x87b   : > { %v13056_v42 = vpop.f32.mrb[24].mxu1 }
 0x87c   : > { %v13058_v60 = vpop.f32.mrb[25].mxu1 }
 0x87d   : > { %v13060_v40 = vpop.f32.mrb[26].mxu1 }
 0x87e   : > { %v13062_v47 = vpop.f32.mrb[27].mxu1 }
 0x883   : > { %v13064_v22 = vpop.f32.mrb[28].mxu1 }
 0x884   : > { %v13066_v54 = vpop.f32.mrb[29].mxu1 }
 0x885   : > { %v13068_v55 = vpop.f32.mrb[30].mxu1 }
 0x886   : > { %v13070_v35 = vpop.f32.mrb[31].mxu1 }
 0x88b   : > { %v13072_v25 = vpop.f32.mrb[32].mxu1 }
 0x88c   : > { %v13074_v49 = vpop.f32.mrb[33].mxu1 }
 0x88d   : > { %v13081_v15 = vpop.f32.mrb[34].mxu1 }
 0x88e   : > { %v13083_v17 = vpop.f32.mrb[35].mxu1 }
 0x893   : > { %v9828_v18 = vpop.f32.mrb[36].mxu1 }
 0x894   : > { %v6789_v37 = vmul.f32 %v9828_v18, %v13079_v6  ;;  %v6492_v57 = vpop.f32.mrb[37].mxu1 }
 0x895   : > { %v6787_v41 = vmul.f32 %v13079_v6, %v6492_v57  ;;  %v9829_v28 = vpop.f32.mrb[38].mxu1  ;;  %v6754_v57 = vmax.f32 %v6718_v1, 0.0 }
 0x896   : > { %v6825_v14 = vadd.f32 %v13089_v63, %v6789_v37  ;;  %v6790_v38 = vmul.f32 %v9829_v28, %v13079_v6  ;;  %v6495_v8 = vpop.f32.mrb[39].mxu1  ;;  %v6682_v28 = vmul.f32 %v9781_v33, %v13079_v6 }
 0x897   : > { %v6823_v12 = vadd.f32 %v13089_v63, %v6787_v41  ;;  %v6788_v9 = vmul.f32 %v13079_v6, %v6495_v8  ;;  %v6752_v41 = vmax.f32 %v6716_v53, 0.0  ;;  %v6680_v8 = vmul.f32 %v13079_v6, %v6298_v48 }
 0x898   : > { %v6861_v29 = vmax.f32 %v6825_v14, 0.0  ;;  %v6826_v16 = vadd.f32 %v13089_v63, %v6790_v38  ;;  %v6721_v14 = vadd.f32 %v13089_v63, %v6681_v39  ;;  %v6722_v53 = vadd.f32 %v13089_v63, %v6682_v28 }
 0x899   : > { %v6859_v18 = vmax.f32 %v6823_v12, 0.0  ;;  %v6824_v37 = vadd.f32 %v13089_v63, %v6788_v9  ;;  %v6719_v12 = vadd.f32 %v13089_v63, %v6679_v2 }
 0x89a   : > { %v6897_v5 = vmax.f32 %v6753_v31, %v6861_v29  ;;  %v6862_v10 = vmax.f32 %v6826_v16, 0.0 }
 0x89b   : > { %v6895_v19 = vmax.f32 %v6751_v62, %v6859_v18  ;;  %v6860_v46 = vmax.f32 %v6824_v37, 0.0  ;;  %v9832_v26 = vpop.f32.mrb[40].mxu1  ;;  %v6757_v62 = vmax.f32 %v6721_v14, 0.0  ;;  %v6755_v37 = vmax.f32 %v6719_v12, 0.0 }
 0x89c   : > { %6933 = vst [vmem:[#allocation3 + $0x10] sm:$0xff] %v6897_v5  ;;  %v6898_v7 = vmax.f32 %v6754_v57, %v6862_v10  ;;  %v6793_v43 = vmul.f32 %v9832_v26, %v13079_v6  ;;  %v6508_v38 = vpop.f32.mrb[41].mxu1  ;;  %v6720_v10 = vadd.f32 %v13089_v63, %v6680_v8  ;;  %v6683_v57 = vmul.f32 %v13079_v6, %v13026_v36 }
 0x89d   : > { %6931 = vst [vmem:[#allocation3] sm:$0xff] %v6895_v19  ;;  %v6896_v1 = vmax.f32 %v6752_v41, %v6860_v46  ;;  %v6791_v33 = vmul.f32 %v13079_v6, %v6508_v38  ;;  %v9833_v9 = vpop.f32.mrb[42].mxu1  ;;  %v6685_v46 = vmul.f32 %v13024_v24, %v13079_v6  ;;  %v6758_v41 = vmax.f32 %v6722_v53, 0.0 }
 0x89e   : > { %6934 = vst [vmem:[#allocation3 + $0x18] sm:$0xff] %v6898_v7  ;;  %v6829_v48 = vadd.f32 %v13089_v63, %v6793_v43  ;;  %v6794_v31 = vmul.f32 %v9833_v9, %v13079_v6  ;;  %v6511_v39 = vpop.f32.mrb[43].mxu1  ;;  %v6686_v8 = vmul.f32 %v13028_v52, %v13079_v6  ;;  %v6756_v14 = vmax.f32 %v6720_v10, 0.0 }
 0x89f   : > { %6932 = vst [vmem:[#allocation3 + $0x8] sm:$0xff] %v6896_v1  ;;  %v6827_v29 = vadd.f32 %v13089_v63, %v6791_v33  ;;  %v6792_v16 = vmul.f32 %v13079_v6, %v6511_v39  ;;  %v6684_v24 = vmul.f32 %v13079_v6, %v13030_v30  ;;  %v6725_v12 = vadd.f32 %v13089_v63, %v6685_v46 }
 0x8a0   : > { %v6865_v2 = vmax.f32 %v6829_v48, 0.0  ;;  %v6830_v18 = vadd.f32 %v13089_v63, %v6794_v31  ;;  %v6723_v9 = vadd.f32 %v13089_v63, %v6683_v57  ;;  %v6726_v31 = vadd.f32 %v13089_v63, %v6686_v8 }
 0x8a1   : > { %v6863_v28 = vmax.f32 %v6827_v29, 0.0  ;;  %v6828_v5 = vadd.f32 %v13089_v63, %v6792_v16  ;;  %v6724_v29 = vadd.f32 %v13089_v63, %v6684_v24  ;;  %v6761_v46 = vmax.f32 %v6725_v12, 0.0 }
 0x8a2   : > { %v6901_v19 = vmax.f32 %v6757_v62, %v6865_v2  ;;  %v6866_v26 = vmax.f32 %v6830_v18, 0.0  ;;  %v6689_v2 = vmul.f32 %v13032_v51, %v13079_v6  ;;  %v6759_v57 = vmax.f32 %v6723_v9, 0.0 }
 0x8a3   : > { %v6899_v7 = vmax.f32 %v6755_v37, %v6863_v28  ;;  %v6864_v43 = vmax.f32 %v6828_v5, 0.0  ;;  %v9836_v38 = vpop.f32.mrb[44].mxu1  ;;  %v6687_v28 = vmul.f32 %v13079_v6, %v13034_v3  ;;  %v6762_v8 = vmax.f32 %v6726_v31, 0.0 }
 0x8a4   : > { %6937 = vst [vmem:[#allocation3 + $0x30] sm:$0xff] %v6901_v19  ;;  %v6902_v36 = vmax.f32 %v6758_v41, %v6866_v26  ;;  %v6797_v1 = vmul.f32 %v9836_v38, %v13079_v6  ;;  %v6524_v33 = vpop.f32.mrb[45].mxu1  ;;  %v6690_v19 = vmul.f32 %v13036_v11, %v13079_v6  ;;  %v6760_v24 = vmax.f32 %v6724_v29, 0.0 }
 0x8a5   : > { %6935 = vst [vmem:[#allocation3 + $0x20] sm:$0xff] %v6899_v7  ;;  %v6900_v52 = vmax.f32 %v6756_v14, %v6864_v43  ;;  %v6795_v53 = vmul.f32 %v13079_v6, %v6524_v33  ;;  %v9837_v48 = vpop.f32.mrb[46].mxu1  ;;  %v6688_v51 = vmul.f32 %v13079_v6, %v13038_v21  ;;  %v6729_v12 = vadd.f32 %v13089_v63, %v6689_v2  ;;  %v13157_v21 = vld [vmem:[%s13813_s1 + $0x290] ss:$8 sps:$4 sm:$0xff]  }
 0x8a6   : > { %6938 = vst [vmem:[#allocation3 + $0x38] sm:$0xff] %v6902_v36  ;;  %v6833_v30 = vadd.f32 %v13089_v63, %v6797_v1  ;;  %v6798_v39 = vmul.f32 %v9837_v48, %v13079_v6  ;;  %v6527_v10 = vpop.f32.mrb[47].mxu1  ;;  %v6727_v33 = vadd.f32 %v13089_v63, %v6687_v28 }
 0x8a7   : > { %6936 = vst [vmem:[#allocation3 + $0x28] sm:$0xff] %v6900_v52  ;;  %v6831_v16 = vadd.f32 %v13089_v63, %v6795_v53  ;;  %v6796_v62 = vmul.f32 %v13079_v6, %v6527_v10  ;;  %v6730_v53 = vadd.f32 %v13089_v63, %v6690_v19  ;;  %v6728_v29 = vadd.f32 %v13089_v63, %v6688_v51 }
 0x8a8   : > { %v6869_v18 = vmax.f32 %v6833_v30, 0.0  ;;  %v6834_v37 = vadd.f32 %v13089_v63, %v6798_v39  ;;  %v7048_v39 = vld [vmem:[#allocation3 + $0x1] ss:$4 sm:$0xff]  ;;  %v6765_v2 = vmax.f32 %v6729_v12, 0.0  ;;  %v6763_v28 = vmax.f32 %v6727_v33, 0.0 }
 0x8a9   : > { %v6867_v5 = vmax.f32 %v6831_v16, 0.0  ;;  %v6832_v41 = vadd.f32 %v13089_v63, %v6796_v62  ;;  %v6766_v19 = vmax.f32 %v6730_v53, 0.0  ;;  %v6692_v51 = vmul.f32 %v13079_v6, %v13046_v20 }
 0x8aa   : > { %v6905_v26 = vmax.f32 %v6761_v46, %v6869_v18  ;;  %v6870_v14 = vmax.f32 %v6834_v37, 0.0  ;;  %v6693_v18 = vmul.f32 %v13040_v32, %v13079_v6  ;;  %v13179_v32 = vld [vmem:[%s13813_s1 + $0x2a0] ss:$8 sps:$4 sm:$0xff]  }
 0x8ab   : > { %v6903_v7 = vmax.f32 %v6759_v57, %v6867_v5  ;;  %v6868_v43 = vmax.f32 %v6832_v41, 0.0  ;;  %v9840_v38 = vpop.f32.mrb[48].mxu1  ;;  %v6691_v5 = vmul.f32 %v13079_v6, %v13042_v0  ;;  %v6764_v0 = vmax.f32 %v6728_v29, 0.0 }
 0x8ac   : > { %6941 = vst [vmem:[#allocation3 + $0x50] sm:$0xff] %v6905_v26  ;;  %v6906_v3 = vmax.f32 %v6762_v8, %v6870_v14  ;;  %v6801_v36 = vmul.f32 %v9840_v38, %v13079_v6  ;;  %v6540_v1 = vpop.f32.mrb[49].mxu1  ;;  %v6694_v26 = vmul.f32 %v13044_v44, %v13079_v6  ;;  %v6733_v44 = vadd.f32 %v13089_v63, %v6693_v18 }
 0x8ad   : > { %6939 = vst [vmem:[#allocation3 + $0x40] sm:$0xff] %v6903_v7  ;;  %v6904_v11 = vmax.f32 %v6760_v24, %v6868_v43  ;;  %v6799_v9 = vmul.f32 %v13079_v6, %v6540_v1  ;;  %v9841_v52 = vpop.f32.mrb[50].mxu1  ;;  %v6731_v1 = vadd.f32 %v13089_v63, %v6691_v5  ;;  %v6695_v18 = vmul.f32 %v13079_v6, %v13050_v4 }
 0x8ae   : > { %6942 = vst [vmem:[#allocation3 + $0x58] sm:$0xff] %v6906_v3  ;;  %v6837_v48 = vadd.f32 %v13089_v63, %v6801_v36  ;;  %v6802_v31 = vmul.f32 %v9841_v52, %v13079_v6  ;;  %v6543_v30 = vpop.f32.mrb[51].mxu1  ;;  %v7050_v10 = vld [vmem:[#allocation3 + $0x21] ss:$4 sm:$0xff]  ;;  %v6734_v20 = vadd.f32 %v13089_v63, %v6694_v26  ;;  %v6769_v29 = vmax.f32 %v6733_v44, 0.0 }
 0x8af   : > { %6940 = vst [vmem:[#allocation3 + $0x48] sm:$0xff] %v6904_v11  ;;  %v6835_v16 = vadd.f32 %v13089_v63, %v6799_v9  ;;  %v6800_v62 = vmul.f32 %v13079_v6, %v6543_v30  ;;  %v7065_v46 = vpack.c.bf16 %v7050_v10, %v7048_v39  ;;  %v6732_v30 = vadd.f32 %v13089_v63, %v6692_v51 }
 0x8b0   : > { %v6873_v37 = vmax.f32 %v6837_v48, 0.0  ;;  %v6838_v57 = vadd.f32 %v13089_v63, %v6802_v31  ;;  %v13195_v31 = vld [vmem:[%s13813_s1 + $0x2b0] ss:$8 sps:$4 sm:$0xff]   ;;  %v6698_v5 = vmul.f32 %v13052_v50, %v13079_v6  ;;  %v6696_v4 = vmul.f32 %v13079_v6, %v13054_v23 }
 0x8b1   : > { %v6871_v41 = vmax.f32 %v6835_v16, 0.0  ;;  %v6836_v8 = vadd.f32 %v13089_v63, %v6800_v62  ;;  %9879 = vmatmul.mubr.bf16.vlgmr.msra.gmra.mrb[72].mxu1 %v7065_v46  ;;  %v6697_v16 = vmul.f32 %v13048_v56, %v13079_v6  ;;  %v13213_v56 = vld [vmem:[%s13813_s1 + $0x2c0] ss:$8 sps:$4 sm:$0xff]   ;;  %v13225_v23 = vld [vmem:[%s13813_s1 + $0x2d0] ss:$8 sps:$4 sm:$0xff]  }
 0x8b2   : > { %v6909_v14 = vmax.f32 %v6765_v2, %v6873_v37  ;;  %v6874_v24 = vmax.f32 %v6838_v57, 0.0  ;;  %9882 = vmatprep.mubr.msk.bf16.mxu1 %vm11121_vm2, %v12952_v61  ;;  %9899 = vmatpush3.bf16.msra.mxu1 %v13157_v21  ;;  %v6767_v2 = vmax.f32 %v6731_v1, 0.0 }
 0x8b3   : > { %v6907_v7 = vmax.f32 %v6763_v28, %v6871_v41  ;;  %v6872_v43 = vmax.f32 %v6836_v8, 0.0  ;;  %v9844_v38 = vpop.f32.mrb[52].mxu1  ;;  %9900 = vmatprep.subr.bf16.mxu1 %v12952_v61  ;;  %v6770_v28 = vmax.f32 %v6734_v20, 0.0  ;;  %v6737_v50 = vadd.f32 %v13089_v63, %v6697_v16 }
 0x8b4   : > { %6945 = vst [vmem:[#allocation3 + $0x70] sm:$0xff] %v6909_v14  ;;  %v6910_v12 = vmax.f32 %v6766_v19, %v6874_v24  ;;  %v6805_v3 = vmul.f32 %v9844_v38, %v13079_v6  ;;  %v6556_v36 = vpop.f32.mrb[53].mxu1  ;;  %v6768_v19 = vmax.f32 %v6732_v30, 0.0  ;;  %v6736_v20 = vadd.f32 %v13089_v63, %v6696_v4 }
 0x8b5   : > { %6943 = vst [vmem:[#allocation3 + $0x60] sm:$0xff] %v6907_v7  ;;  %v6908_v33 = vmax.f32 %v6764_v0, %v6872_v43  ;;  %v6803_v11 = vmul.f32 %v13079_v6, %v6556_v36  ;;  %v9845_v9 = vpop.f32.mrb[54].mxu1  ;;  %v6735_v43 = vadd.f32 %v13089_v63, %v6695_v18  ;;  %v6773_v30 = vmax.f32 %v6737_v50, 0.0 }
 0x8b6   : > { %6946 = vst [vmem:[#allocation3 + $0x78] sm:$0xff] %v6910_v12  ;;  %v6841_v52 = vadd.f32 %v13089_v63, %v6805_v3  ;;  %v6806_v53 = vmul.f32 %v9845_v9, %v13079_v6  ;;  %v6559_v48 = vpop.f32.mrb[55].mxu1  ;;  %9901 = vmatpush3.bf16.msra.mxu1 %v13179_v32  ;;  %v6738_v3 = vadd.f32 %v13089_v63, %v6698_v5 }
 0x8b7   : > { %6944 = vst [vmem:[#allocation3 + $0x68] sm:$0xff] %v6908_v33  ;;  %v6839_v39 = vadd.f32 %v13089_v63, %v6803_v11  ;;  %v6804_v10 = vmul.f32 %v13079_v6, %v6559_v48  ;;  %9902 = vmatprep.subr.bf16.mxu1 %v12952_v61  ;;  %v7052_v11 = vld [vmem:[#allocation3 + $0x41] ss:$4 sm:$0xff]  ;;  %v6771_v16 = vmax.f32 %v6735_v43, 0.0  ;;  %v6700_v5 = vmul.f32 %v13079_v6, %v13062_v47 }
 0x8b8   : > { %v6877_v62 = vmax.f32 %v6841_v52, 0.0  ;;  %v6842_v46 = vadd.f32 %v13089_v63, %v6806_v53  ;;  %v6774_v18 = vmax.f32 %v6738_v3, 0.0 }
 0x8b9   : > { %v6875_v37 = vmax.f32 %v6839_v39, 0.0  ;;  %v6840_v57 = vadd.f32 %v13089_v63, %v6804_v10  ;;  %v6701_v39 = vmul.f32 %v13056_v42, %v13079_v6  ;;  %v13249_v42 = vld [vmem:[%s13813_s1 + $0x2e0] ss:$8 sps:$4 sm:$0xff]  }
 0x8ba   : > { %v6913_v41 = vmax.f32 %v6769_v29, %v6877_v62  ;;  %v6878_v8 = vmax.f32 %v6842_v46, 0.0  ;;  %9903 = vmatpush3.bf16.msra.mxu1 %v13195_v31  ;;  %v6699_v62 = vmul.f32 %v13079_v6, %v13058_v60  ;;  %v6772_v60 = vmax.f32 %v6736_v20, 0.0 }
 0x8bb   : > { %v6911_v26 = vmax.f32 %v6767_v2, %v6875_v37  ;;  %v6876_v14 = vmax.f32 %v6840_v57, 0.0  ;;  %v9848_v24 = vpop.f32.mrb[56].mxu1  ;;  %9904 = vmatprep.subr.bf16.mxu1 %v12952_v61  ;;  %v6702_v37 = vmul.f32 %v13060_v40, %v13079_v6  ;;  %v6741_v40 = vadd.f32 %v13089_v63, %v6701_v39 }
 0x8bc   : > { %6949 = vst [vmem:[#allocation3 + $0x90] sm:$0xff] %v6913_v41  ;;  %v6914_v0 = vmax.f32 %v6770_v28, %v6878_v8  ;;  %v6809_v51 = vmul.f32 %v9848_v24, %v13079_v6  ;;  %v6572_v7 = vpop.f32.mrb[57].mxu1  ;;  %v6739_v24 = vadd.f32 %v13089_v63, %v6699_v62  ;;  %v6706_v39 = vmul.f32 %v13068_v55, %v13079_v6 }
 0x8bd   : > { %6947 = vst [vmem:[#allocation3 + $0x80] sm:$0xff] %v6911_v26  ;;  %v6912_v38 = vmax.f32 %v6768_v19, %v6876_v14  ;;  %v6807_v44 = vmul.f32 %v13079_v6, %v6572_v7  ;;  %v9849_v12 = vpop.f32.mrb[58].mxu1  ;;  %v6742_v47 = vadd.f32 %v13089_v63, %v6702_v37 }
 0x8be   : > { %6950 = vst [vmem:[#allocation3 + $0x98] sm:$0xff] %v6914_v0  ;;  %v6845_v36 = vadd.f32 %v13089_v63, %v6809_v51  ;;  %v6810_v1 = vmul.f32 %v9849_v12, %v13079_v6  ;;  %v6575_v33 = vpop.f32.mrb[59].mxu1  ;;  %v7054_v9 = vld [vmem:[#allocation3 + $0x61] ss:$4 sm:$0xff]  ;;  %9905 = vmatpush3.bf16.msra.mxu1 %v13213_v56  ;;  %v6740_v12 = vadd.f32 %v13089_v63, %v6700_v5  ;;  %v6775_v20 = vmax.f32 %v6739_v24, 0.0 }
 0x8bf   : > { %6948 = vst [vmem:[#allocation3 + $0x88] sm:$0xff] %v6912_v38  ;;  %v6843_v52 = vadd.f32 %v13089_v63, %v6807_v44  ;;  %v6808_v53 = vmul.f32 %v13079_v6, %v6575_v33  ;;  %v7066_v48 = vpack.c.bf16 %v7054_v9, %v7052_v11  ;;  %9906 = vmatprep.subr.bf16.mxu1 %v12952_v61  ;;  %v13265_v44 = vld [vmem:[%s13813_s1 + $0x2f0] ss:$8 sps:$4 sm:$0xff]  }
 0x8c0   : > { %v6881_v10 = vmax.f32 %v6845_v36, 0.0  ;;  %v6846_v29 = vadd.f32 %v13089_v63, %v6810_v1  ;;  %v6777_v1 = vmax.f32 %v6741_v40, 0.0  ;;  %v6705_v33 = vmul.f32 %v13064_v22, %v13079_v6  ;;  %v13283_v22 = vld [vmem:[%s13813_s1 + $0x300] ss:$8 sps:$4 sm:$0xff]  }
 0x8c1   : > { %v6879_v46 = vmax.f32 %v6843_v52, 0.0  ;;  %v6844_v2 = vadd.f32 %v13089_v63, %v6808_v53  ;;  %9883 = vmatmul.mubr.bf16.gmra.mrb[76].mxu1 %v7066_v48  ;;  %v6703_v52 = vmul.f32 %v13079_v6, %v13066_v54  ;;  %v6704_v54 = vmul.f32 %v13079_v6, %v13070_v35 }
 0x8c2   : > { %v6917_v57 = vmax.f32 %v6773_v30, %v6881_v10  ;;  %v6882_v28 = vmax.f32 %v6846_v29, 0.0  ;;  %9886 = vmatprep.mubr.msk.bf16.mxu1 %vm11121_vm2, %v12952_v61  ;;  %9907 = vmatpush3.bf16.msra.mxu1 %v13225_v23  ;;  %v6778_v30 = vmax.f32 %v6742_v47, 0.0  ;;  %v6745_v55 = vadd.f32 %v13089_v63, %v6705_v33 }
 0x8c3   : > { %v6915_v41 = vmax.f32 %v6771_v16, %v6879_v46  ;;  %v6880_v8 = vmax.f32 %v6844_v2, 0.0  ;;  %v9852_v19 = vpop.f32.mrb[60].mxu1  ;;  %9908 = vmatprep.subr.bf16.mxu1 %v12952_v61  ;;  %v6776_v16 = vmax.f32 %v6740_v12, 0.0  ;;  %v6746_v35 = vadd.f32 %v13089_v63, %v6706_v39 }
 0x8c4   : > { %6953 = vst [vmem:[#allocation3 + $0xb0] sm:$0xff] %v6917_v57  ;;  %v6918_v4 = vmax.f32 %v6774_v18, %v6882_v28  ;;  %v6813_v26 = vmul.f32 %v9852_v19, %v13079_v6  ;;  %v6588_v14 = vpop.f32.mrb[61].mxu1  ;;  %v6743_v28 = vadd.f32 %v13089_v63, %v6703_v52  ;;  %v6709_v47 = vmul.f32 %v13072_v25, %v13079_v6 }
 0x8c5   : > { %6951 = vst [vmem:[#allocation3 + $0xa0] sm:$0xff] %v6915_v41  ;;  %v6916_v50 = vmax.f32 %v6772_v60, %v6880_v8  ;;  %v6811_v0 = vmul.f32 %v13079_v6, %v6588_v14  ;;  %v9853_v51 = vpop.f32.mrb[62].mxu1  ;;  %v6744_v14 = vadd.f32 %v13089_v63, %v6704_v54  ;;  %v6707_v12 = vmul.f32 %v13079_v6, %v13074_v49 }
 0x8c6   : > { %6954 = vst [vmem:[#allocation3 + $0xb8] sm:$0xff] %v6918_v4  ;;  %v6849_v7 = vadd.f32 %v13089_v63, %v6813_v26  ;;  %v6814_v43 = vmul.f32 %v9853_v51, %v13079_v6  ;;  %v6591_v38 = vpop.f32.mrb[63].mxu1  ;;  %9909 = vmatpush3.bf16.msra.mxu1 %v13249_v42  ;;  %v7056_v4 = vld [vmem:[#allocation3 + $0x81] ss:$4 sm:$0xff]  ;;  %v6781_v51 = vmax.f32 %v6745_v55, 0.0  ;;  %v6710_v33 = vmul.f32 %v13081_v15, %v13079_v6 }
 0x8c7   : > { %6952 = vst [vmem:[#allocation3 + $0xa8] sm:$0xff] %v6916_v50  ;;  %v6847_v3 = vadd.f32 %v13089_v63, %v6811_v0  ;;  %v6812_v36 = vmul.f32 %v13079_v6, %v6591_v38  ;;  %9910 = vmatprep.subr.bf16.mxu1 %v12952_v61  ;;  %v6779_v38 = vmax.f32 %v6743_v28, 0.0  ;;  %v6780_v25 = vmax.f32 %v6744_v14, 0.0 }
 0x8c8   : > { %v6885_v11 = vmax.f32 %v6849_v7, 0.0  ;;  %v6850_v9 = vadd.f32 %v13089_v63, %v6814_v43  ;;  %v6747_v15 = vadd.f32 %v13089_v63, %v6707_v12  ;;  %v6750_v54 = vadd.f32 %v13089_v63, %v6710_v33  ;;  %v6992_v12 = vld [vmem:[#allocation3 + $0x60] ss:$4 sm:$0xff] }
 0x8c9   : > { %v6883_v53 = vmax.f32 %v6847_v3, 0.0  ;;  %v6848_v48 = vadd.f32 %v13089_v63, %v6812_v36 }
 0x8ca   : > { %v6921_v10 = vmax.f32 %v6777_v1, %v6885_v11  ;;  %v6886_v29 = vmax.f32 %v6850_v9, 0.0  ;;  %9911 = vmatpush3.bf16.msra.mxu1 %v13265_v44  ;;  %v6782_v1 = vmax.f32 %v6746_v35, 0.0  ;;  %v6786_v35 = vmax.f32 %v6750_v54, 0.0  ;;  %v11073_v54 = vld [vmem:[%s13813_s1 + $0x3b0] ss:$8 sps:$4 sm:$0xff]  }
 0x8cb   : > { %v6919_v62 = vmax.f32 %v6775_v20, %v6883_v53  ;;  %v6884_v46 = vmax.f32 %v6848_v48, 0.0  ;;  %v9856_v2 = vpop.f32.mrb[64].mxu1  ;;  %9912 = vmatprep.subr.bf16.mxu1 %v12952_v61  ;;  %v6708_v20 = vmul.f32 %v13079_v6, %v13083_v17  ;;  %v6749_v48 = vadd.f32 %v13089_v63, %v6709_v47 }
 0x8cc   : > { %6957 = vst [vmem:[#allocation3 + $0xd0] sm:$0xff] %v6921_v10  ;;  %v6922_v18 = vmax.f32 %v6778_v30, %v6886_v29  ;;  %v6817_v37 = vmul.f32 %v9856_v2, %v13079_v6  ;;  %v6604_v57 = vpop.f32.mrb[65].mxu1 }
 0x8cd   : > { %6955 = vst [vmem:[#allocation3 + $0xc0] sm:$0xff] %v6919_v62  ;;  %v6920_v60 = vmax.f32 %v6776_v16, %v6884_v46  ;;  %v6815_v5 = vmul.f32 %v13079_v6, %v6604_v57  ;;  %v9857_v41 = vpop.f32.mrb[66].mxu1  ;;  %v6748_v2 = vadd.f32 %v13089_v63, %v6708_v20  ;;  %v7071_v20 = vld [vmem:[#allocation3 + $0x3] ss:$4 sm:$0xff] }
 0x8ce   : > { %6958 = vst [vmem:[#allocation3 + $0xd8] sm:$0xff] %v6922_v18  ;;  %v6853_v8 = vadd.f32 %v13089_v63, %v6817_v37  ;;  %v6818_v19 = vmul.f32 %v9857_v41, %v13079_v6  ;;  %v6607_v40 = vpop.f32.mrb[67].mxu1  ;;  %v7058_v26 = vld [vmem:[#allocation3 + $0xa1] ss:$4 sm:$0xff]  ;;  %9913 = vmatpush3.bf16.msra.mxu1 %v13283_v22  ;;  %v6785_v37 = vmax.f32 %v6749_v48, 0.0 }
 0x8cf   : > { %6956 = vst [vmem:[#allocation3 + $0xc8] sm:$0xff] %v6920_v60  ;;  %v6851_v24 = vadd.f32 %v13089_v63, %v6815_v5  ;;  %v6816_v50 = vmul.f32 %v13079_v6, %v6607_v40  ;;  %v7067_v0 = vpack.c.bf16 %v7058_v26, %v7056_v4  ;;  %9934 = vmatprep.subr.bf16.mxu1 %v12952_v61  ;;  %v6783_v60 = vmax.f32 %v6747_v15, 0.0  ;;  %v7009_v15 = vld [vmem:[#allocation3 + $0x2] ss:$4 sm:$0xff] }
 0x8d0   : > { %v6889_v7 = vmax.f32 %v6853_v8, 0.0  ;;  %v6854_v43 = vadd.f32 %v13089_v63, %v6818_v19  ;;  %v6784_v40 = vmax.f32 %v6748_v2, 0.0  ;;  %v7017_v2 = vld [vmem:[#allocation3 + $0x82] ss:$4 sm:$0xff] }
 0x8d1   : > { %v6887_v3 = vmax.f32 %v6851_v24, 0.0  ;;  %v6852_v36 = vadd.f32 %v13089_v63, %v6816_v50  ;;  %9887 = vmatmul.mubr.bf16.gmra.mrb[80].mxu1 %v7067_v0 }
 0x8d2   : > { %v6925_v11 = vmax.f32 %v6781_v51, %v6889_v7  ;;  %v6890_v9 = vmax.f32 %v6854_v43, 0.0  ;;  %9890 = vmatprep.mubr.msk.bf16.mxu1 %vm11121_vm2, %v12952_v61  ;;  %v13324_v51 = vld [vmem:[#allocation2 + $0x480] sm:$0xff] }
 0x8d3   : > { %v6923_v52 = vmax.f32 %v6779_v38, %v6887_v3  ;;  %v6888_v53 = vmax.f32 %v6852_v36, 0.0  ;;  %v9860_v49 = vpop.f32.mrb[68].mxu1  ;;  %v6988_v7 = vld [vmem:[#allocation3 + $0x20] ss:$4 sm:$0xff] }
 0x8d4   : > { %6961 = vst [vmem:[#allocation3 + $0xf0] sm:$0xff] %v6925_v11  ;;  %v6926_v30 = vmax.f32 %v6782_v1, %v6890_v9  ;;  %v6821_v39 = vmul.f32 %v9860_v49, %v13079_v6  ;;  %v6620_v10 = vpop.f32.mrb[69].mxu1  ;;  %v6986_v43 = vld [vmem:[#allocation3] ss:$4 sm:$0xff]  ;;  %v7075_v49 = vld [vmem:[#allocation3 + $0x43] ss:$4 sm:$0xff] }
 0x8d5   : > { %6959 = vst [vmem:[#allocation3 + $0xe0] sm:$0xff] %v6923_v52  ;;  %v6924_v29 = vmax.f32 %v6780_v25, %v6888_v53  ;;  %v6819_v61 = vmul.f32 %v13079_v6, %v6620_v10  ;;  %v9861_v16 = vpop.f32.mrb[70].mxu1  ;;  %v7003_v38 = vpack.c.bf16 %v6988_v7, %v6986_v43  ;;  %v6990_v3 = vld [vmem:[#allocation3 + $0x40] ss:$4 sm:$0xff]  ;;  %v7077_v53 = vld [vmem:[#allocation3 + $0x63] ss:$4 sm:$0xff] }
 0x8d6   : > { %6962 = vst [vmem:[#allocation3 + $0xf8] sm:$0xff] %v6926_v30  ;;  %v6857_v17 = vadd.f32 %v13089_v63, %v6821_v39  ;;  %v6822_v62 = vmul.f32 %v9861_v16, %v13079_v6  ;;  %v6623_v46 = vpop.f32.mrb[71].mxu1  ;;  %v7004_v36 = vpack.c.bf16 %v6992_v12, %v6990_v3  ;;  %v6994_v1 = vld [vmem:[#allocation3 + $0x80] ss:$4 sm:$0xff]  ;;  %v7089_v48 = vpack.c.bf16 %v7077_v53, %v7075_v49  ;;  %v7079_v30 = vld [vmem:[#allocation3 + $0x83] ss:$4 sm:$0xff] }
 0x8d7   : > { %6960 = vst [vmem:[#allocation3 + $0xe8] sm:$0xff] %v6924_v29  ;;  %v6855_v55 = vadd.f32 %v13089_v63, %v6819_v61  ;;  %v6820_v18 = vmul.f32 %v13079_v6, %v6623_v46  ;;  %v7060_v6 = vld [vmem:[#allocation3 + $0xc1] ss:$4 sm:$0xff]  ;;  %v7015_v61 = vld [vmem:[#allocation3 + $0x62] ss:$4 sm:$0xff] }
 0x8d8   : > { %v6893_v57 = vmax.f32 %v6857_v17, 0.0  ;;  %v6858_v28 = vadd.f32 %v13089_v63, %v6822_v62  ;;  %v13821_v9 = vld [vmem:[#allocation6_spill] sm:$0xff]  ;;  %v13455_v12 = vld [vmem:[%s13813_s1 + $0x450] ss:$8 sps:$4 sm:$0xff]  }
 0x8d9   : > { %v6891_v5 = vmax.f32 %v6855_v55, 0.0  ;;  %v6856_v41 = vadd.f32 %v13089_v63, %v6820_v18  ;;  %v7013_v16 = vld [vmem:[#allocation3 + $0x42] ss:$4 sm:$0xff] }
 0x8da   : > { %v6929_v8 = vmax.f32 %v6785_v37, %v6893_v57  ;;  %v6894_v19 = vmax.f32 %v6858_v28, 0.0  ;;  %v7027_v17 = vpack.c.bf16 %v7015_v61, %v7013_v16  ;;  %v11074_v62 = vld [vmem:[%s13813_s1 + $0x3c0] ss:$8 sps:$4 sm:$0xff]   ;;  %v11075_v55 = vld [vmem:[%s13813_s1 + $0x3d0] ss:$8 sps:$4 sm:$0xff]  }
 0x8db   : > { %v6927_v4 = vmax.f32 %v6783_v60, %v6891_v5  ;;  %v6892_v26 = vmax.f32 %v6856_v41, 0.0  ;;  %v7019_v46 = vld [vmem:[#allocation3 + $0xa2] ss:$4 sm:$0xff] }
 0x8dc   : > { %6965 = vst [vmem:[#allocation3 + $0x110] sm:$0xff] %v6929_v8  ;;  %v6930_v14 = vmax.f32 %v6786_v35, %v6894_v19  ;;  %v7028_v18 = vpack.c.bf16 %v7019_v46, %v7017_v2  ;;  %v11076_v37 = vld [vmem:[%s13813_s1 + $0x3e0] ss:$8 sps:$4 sm:$0xff]   ;;  %v11077_v60 = vld [vmem:[%s13813_s1 + $0x3f0] ss:$8 sps:$4 sm:$0xff]  }
 0x8dd   : > { %6963 = vst [vmem:[#allocation3 + $0x100] sm:$0xff] %v6927_v4  ;;  %v6928_v24 = vmax.f32 %v6784_v40, %v6892_v26  ;;  %v7021_v28 = vld [vmem:[#allocation3 + $0xc2] ss:$4 sm:$0xff]  ;;  %v7496_v19 = vld [vmem:[#allocation3 + $0x24] ss:$4 sm:$0xff] }
 0x8de   : > { %6966 = vst [vmem:[#allocation3 + $0x118] sm:$0xff] %v6930_v14  ;;  %v7062_v50 = vld [vmem:[#allocation3 + $0xe1] ss:$4 sm:$0xff]  ;;  %v7023_v57 = vld [vmem:[#allocation3 + $0xe2] ss:$4 sm:$0xff] }
 0x8df   : > { %6964 = vst [vmem:[#allocation3 + $0x108] sm:$0xff] %v6928_v24  ;;  %v7068_v0 = vpack.c.bf16 %v7062_v50, %v7060_v6  ;;  %v7029_v5 = vpack.c.bf16 %v7023_v57, %v7021_v28  ;;  %v11078_v41 = vld [vmem:[%s13813_s1 + $0x400] ss:$8 sps:$4 sm:$0xff]  }
 0x8e0   : > { %v7494_v40 = vld [vmem:[#allocation3 + $0x4] ss:$4 sm:$0xff] }
 0x8e1   : > { %9891 = vmatmul.mubr.bf16.gmra.mrb[84].mxu1 %v7068_v0  ;;  %v7511_v4 = vpack.c.bf16 %v7496_v19, %v7494_v40  ;;  %v7500_v26 = vld [vmem:[#allocation3 + $0x64] ss:$4 sm:$0xff] }
 0x8e2   : > { %9894 = vmatprep.mubr.msk.bf16.mxu1 %vm11121_vm2, %v13324_v51  ;;  %v7498_v14 = vld [vmem:[#allocation3 + $0x44] ss:$4 sm:$0xff] }
 0x8e3   : > { %v7512_v24 = vpack.c.bf16 %v7500_v26, %v7498_v14  ;;  %v7504_v6 = vld [vmem:[#allocation3 + $0xa4] ss:$4 sm:$0xff] }
 0x8e4   : > { %v7502_v50 = vld [vmem:[#allocation3 + $0x84] ss:$4 sm:$0xff] }
 0x8e5   : > { %v7513_v0 = vpack.c.bf16 %v7504_v6, %v7502_v50  ;;  %v13462_v3 = vld [vmem:[%s13813_s1 + $0x460] ss:$8 sps:$4 sm:$0xff]  }
 0x8e6   : > { %v7064_v63 = vld [vmem:[#allocation3 + $0x101] ss:$4 sm:$0xff]  ;;  %v7025_v35 = vld [vmem:[#allocation3 + $0x102] ss:$4 sm:$0xff]  ;;  %v7510_v43 = vld [vmem:[#allocation3 + $0x104] ss:$4 sm:$0xff] }
 0x8e7   : > { %v7069_v47 = vpack.c.bf16 %v7064_v63, %v7064_v63  ;;  %v7030_v8 = vpack.c.bf16 %v7025_v35, %v7025_v35  ;;  %v7508_v63 = vld [vmem:[#allocation3 + $0xe4] ss:$4 sm:$0xff] }
 0x8e9   : > { %9895 = vmatmul.mubr.bf16.gmra.mrb[88].mxu1 %v7069_v47  ;;  %v7506_v47 = vld [vmem:[#allocation3 + $0xc4] ss:$4 sm:$0xff] }
 0x8ea   : > { %9914 = vmatprep.mubr.msk.bf16.mxu1 %vm11121_vm2, %v13324_v51  ;;  %v7514_v7 = vpack.c.bf16 %v7508_v63, %v7506_v47 }
 0x8f1   : > { %9915 = vmatmul.mubr.bf16.vlgmr.msra.gmra.mrb[72].mxu1 %v7003_v38  ;;  %v7515_v38 = vpack.c.bf16 %v7510_v43, %v7510_v43 }
 0x8f2   : > { %9935 = vmatpush3.bf16.msra.mxu1 %v12967_v13  ;;  %9918 = vmatprep.mubr.msk.bf16.mxu1 %vm11121_vm2, %v13324_v51  ;;  %v6996_v13 = vld [vmem:[#allocation3 + $0xa0] ss:$4 sm:$0xff] }
 0x8f3   : > { %9936 = vmatprep.subr.bf16.mxu1 %v13324_v51  ;;  %v7005_v33 = vpack.c.bf16 %v6996_v13, %v6994_v1  ;;  %v13476_v13 = vld [vmem:[%s13813_s1 + $0x480] ss:$8 sps:$4 sm:$0xff]  }
 0x8f6   : > { %9937 = vmatpush3.bf16.msra.mxu1 %v12974_v58  ;;  %v7000_v58 = vld [vmem:[#allocation3 + $0xe0] ss:$4 sm:$0xff] }
 0x8f7   : > { %9938 = vmatprep.subr.bf16.mxu1 %v13324_v51 }
 0x8f9   : > { %9919 = vmatmul.mubr.bf16.gmra.mrb[76].mxu1 %v7004_v36  ;;  %v13469_v36 = vld [vmem:[%s13813_s1 + $0x470] ss:$8 sps:$4 sm:$0xff]  }
 0x8fa   : > { %9939 = vmatpush3.bf16.msra.mxu1 %v12981_v27  ;;  %9922 = vmatprep.mubr.msk.bf16.mxu1 %vm11121_vm2, %v13324_v51  ;;  %v6998_v27 = vld [vmem:[#allocation3 + $0xc0] ss:$4 sm:$0xff] }
 0x8fb   : > { %9940 = vmatprep.subr.bf16.mxu1 %v13324_v51  ;;  %v7006_v11 = vpack.c.bf16 %v7000_v58, %v6998_v27 }
 0x8fe   : > { %9941 = vmatpush3.bf16.msra.mxu1 %v12988_v59  ;;  %v13820_v59 = vld [vmem:[#allocation5_spill] sm:$0xff] }
 0x8ff   : > { %9942 = vmatprep.subr.bf16.mxu1 %v13324_v51 }
 0x901   : > { %9923 = vmatmul.mubr.bf16.gmra.mrb[80].mxu1 %v7005_v33 }
 0x902   : > { %9943 = vmatpush3.bf16.msra.mxu1 %v12995_v45  ;;  %9926 = vmatprep.mubr.msk.bf16.mxu1 %vm11121_vm2, %v13324_v51  ;;  %v7002_v45 = vld [vmem:[#allocation3 + $0x100] ss:$4 sm:$0xff] }
 0x903   : > { %9944 = vmatprep.subr.bf16.mxu1 %v13324_v51  ;;  %v7007_v25 = vpack.c.bf16 %v7002_v45, %v7002_v45 }
 0x906   : > { %9945 = vmatpush3.bf16.msra.mxu1 %v13002_v34  ;;  %v7073_v34 = vld [vmem:[#allocation3 + $0x23] ss:$4 sm:$0xff] }
 0x907   : > { %9946 = vmatprep.subr.bf16.mxu1 %v13324_v51  ;;  %v7088_v52 = vpack.c.bf16 %v7073_v34, %v7071_v20 }
 0x909   : > { %9927 = vmatmul.mubr.bf16.gmra.mrb[84].mxu1 %v7006_v11 }
 0x90a   : > { %9947 = vmatpush3.bf16.msra.mxu1 %v13820_v59  ;;  %9930 = vmatprep.mubr.msk.bf16.mxu1 %vm11121_vm2, %v13324_v51 }
 0x90b   : > { %9948 = vmatprep.subr.bf16.mxu1 %v13324_v51 }
 0x90e   : > { %9949 = vmatpush3.bf16.msra.mxu1 %v13821_v9 }
 0x90f   : > { %9970 = vmatprep.subr.bf16.mxu1 %v13324_v51 }
 0x911   : > { %9931 = vmatmul.mubr.bf16.gmra.mrb[88].mxu1 %v7007_v25 }
 0x912   : > { %9950 = vmatprep.mubr.msk.bf16.mxu1 %vm11121_vm2, %v13324_v51 }
 0x919   : > { %9951 = vmatmul.mubr.bf16.vlgmr.msra.gmra.mrb[92].mxu1 %v7088_v52 }
 0x91a   : > { %9971 = vmatpush3.bf16.msra.mxu1 %v13157_v21  ;;  %9954 = vmatprep.mubr.msk.bf16.mxu1 %vm11121_vm2, %v13324_v51  ;;  %v7081_v21 = vld [vmem:[#allocation3 + $0xa3] ss:$4 sm:$0xff] }
 0x91b   : > { %9972 = vmatprep.subr.bf16.mxu1 %v13324_v51  ;;  %v7090_v39 = vpack.c.bf16 %v7081_v21, %v7079_v30 }
 0x91e   : > { %9973 = vmatpush3.bf16.msra.mxu1 %v13179_v32  ;;  %v7085_v32 = vld [vmem:[#allocation3 + $0xe3] ss:$4 sm:$0xff] }
 0x91f   : > { %9974 = vmatprep.subr.bf16.mxu1 %v13324_v51 }
 0x921   : > { %9955 = vmatmul.mubr.bf16.gmra.mrb[96].mxu1 %v7089_v48 }
 0x922   : > { %9975 = vmatpush3.bf16.msra.mxu1 %v13195_v31  ;;  %9958 = vmatprep.mubr.msk.bf16.mxu1 %vm11121_vm2, %v13324_v51  ;;  %v7083_v31 = vld [vmem:[#allocation3 + $0xc3] ss:$4 sm:$0xff] }
 0x923   : > { %9976 = vmatprep.subr.bf16.mxu1 %v13324_v51  ;;  %v7091_v10 = vpack.c.bf16 %v7085_v32, %v7083_v31  ;;  %v13489_v32 = vld [vmem:[%s13814_s2 + $0x4] ss:$0 sm:$0xff] }
 0x926   : > { %9977 = vmatpush3.bf16.msra.mxu1 %v13213_v56  ;;  %v7087_v56 = vld [vmem:[#allocation3 + $0x103] ss:$4 sm:$0xff] }
 0x927   : > { %9978 = vmatprep.subr.bf16.mxu1 %v13324_v51 }
 0x929   : > { %9959 = vmatmul.mubr.bf16.gmra.mrb[100].mxu1 %v7090_v39 }
 0x92a   : > { %9979 = vmatpush3.bf16.msra.mxu1 %v13225_v23  ;;  %9962 = vmatprep.mubr.msk.bf16.mxu1 %vm11121_vm2, %v13324_v51  ;;  %v7092_v23 = vpack.c.bf16 %v7087_v56, %v7087_v56 }
 0x92b   : > { %9980 = vmatprep.subr.bf16.mxu1 %v13324_v51 }
 0x92e   : > { %9981 = vmatpush3.bf16.msra.mxu1 %v13249_v42  ;;  %v7011_v42 = vld [vmem:[#allocation3 + $0x22] ss:$4 sm:$0xff] }
 0x92f   : > { %9982 = vmatprep.subr.bf16.mxu1 %v13324_v51  ;;  %v7026_v29 = vpack.c.bf16 %v7011_v42, %v7009_v15 }
 0x931   : > { %9963 = vmatmul.mubr.bf16.gmra.mrb[104].mxu1 %v7091_v10 }
 0x932   : > { %9983 = vmatpush3.bf16.msra.mxu1 %v13265_v44  ;;  %9966 = vmatprep.mubr.msk.bf16.mxu1 %vm11121_vm2, %v13324_v51  ;;  %v11071_v44 = vld [vmem:[%s13813_s1 + $0x390] ss:$8 sps:$4 sm:$0xff]  }
 0x933   : > { %9984 = vmatprep.subr.bf16.mxu1 %v13324_v51 }
 0x936   : > { %9985 = vmatpush3.bf16.msra.mxu1 %v13283_v22  ;;  %v11072_v22 = vld [vmem:[%s13813_s1 + $0x3a0] ss:$8 sps:$4 sm:$0xff]  }
 0x937   : > { %10006 = vmatprep.subr.bf16.mxu1 %v13324_v51 }
 0x939   : > { %9967 = vmatmul.mubr.bf16.gmra.mrb[108].mxu1 %v7092_v23  ;;  %v13495_v23 = vld [vmem:[%s13814_s2 + $0x5] ss:$0 sm:$0xff] }
 0x93a   : > { %9986 = vmatprep.mubr.msk.bf16.mxu1 %vm11121_vm2, %v13324_v51 }
 0x941   : > { %9987 = vmatmul.mubr.bf16.vlgmr.msra.gmra.mrb[92].mxu1 %v7026_v29 }
 0x942   : > { %10007 = vmatpush3.bf16.msra.mxu1 %v11071_v44  ;;  %9990 = vmatprep.mubr.msk.bf16.mxu1 %vm11121_vm2, %v13324_v51 }
 0x943   : > { %10008 = vmatprep.subr.bf16.mxu1 %v13324_v51 }
 0x946   : > { %10009 = vmatpush3.bf16.msra.mxu1 %v11072_v22 }
 0x947   : > { %10010 = vmatprep.subr.bf16.mxu1 %v13324_v51 }
 0x949   : > { %9991 = vmatmul.mubr.bf16.gmra.mrb[96].mxu1 %v7027_v17 }
 0x94a   : > { %10011 = vmatpush3.bf16.msra.mxu1 %v11073_v54  ;;  %9994 = vmatprep.mubr.msk.bf16.mxu1 %vm11121_vm2, %v13324_v51 }
 0x94b   : > { %10012 = vmatprep.subr.bf16.mxu1 %v13324_v51 }
 0x94e   : > { %10013 = vmatpush3.bf16.msra.mxu1 %v11074_v62 }
 0x94f   : > { %10014 = vmatprep.subr.bf16.mxu1 %v13324_v51 }
 0x951   : > { %9995 = vmatmul.mubr.bf16.gmra.mrb[100].mxu1 %v7028_v18 }
 0x952   : > { %10015 = vmatpush3.bf16.msra.mxu1 %v11075_v55  ;;  %9998 = vmatprep.mubr.msk.bf16.mxu1 %vm11121_vm2, %v13324_v51 }
 0x953   : > { %10016 = vmatprep.subr.bf16.mxu1 %v13324_v51 }
 0x956   : > { %10017 = vmatpush3.bf16.msra.mxu1 %v11076_v37 }
 0x957   : > { %10018 = vmatprep.subr.bf16.mxu1 %v13324_v51 }
 0x959   : > { %9999 = vmatmul.mubr.bf16.gmra.mrb[104].mxu1 %v7029_v5 }
 0x95a   : > { %10019 = vmatpush3.bf16.msra.mxu1 %v11077_v60  ;;  %10002 = vmatprep.mubr.msk.bf16.mxu1 %vm11121_vm2, %v13324_v51 }
 0x95b   : > { %10020 = vmatprep.subr.bf16.mxu1 %v13324_v51 }
 0x95e   : > { %10021 = vmatpush3.bf16.msra.mxu1 %v11078_v41 }
 0x95f   : > { %10042 = vmatprep.subr.bf16.mxu1 %v13324_v51 }
 0x961   : > { %10003 = vmatmul.mubr.bf16.gmra.mrb[108].mxu1 %v7030_v8 }
 0x962   : > { %10022 = vmatprep.mubr.msk.bf16.mxu1 %vm11121_vm2, %v13324_v51 }
 0x969   : > { %10023 = vmatmul.mubr.bf16.vlgmr.msra.gmra.mrb[72].mxu1 %v7026_v29 }
 0x96a   : > { %10043 = vmatpush3.bf16.msra.mxu1 %v11071_v44  ;;  %10026 = vmatprep.mubr.msk.bf16.mxu1 %vm11121_vm2, %v13324_v51 }
 0x96b   : > { %10044 = vmatprep.subr.bf16.mxu1 %v13324_v51 }
 0x96e   : > { %10045 = vmatpush3.bf16.msra.mxu1 %v11072_v22 }
 0x96f   : > { %10046 = vmatprep.subr.bf16.mxu1 %v13324_v51 }
 0x971   : > { %10027 = vmatmul.mubr.bf16.gmra.mrb[76].mxu1 %v7027_v17 }
 0x972   : > { %10047 = vmatpush3.bf16.msra.mxu1 %v11073_v54  ;;  %10030 = vmatprep.mubr.msk.bf16.mxu1 %vm11121_vm2, %v13324_v51 }
 0x973   : > { %10048 = vmatprep.subr.bf16.mxu1 %v13324_v51 }
 0x976   : > { %10049 = vmatpush3.bf16.msra.mxu1 %v11074_v62 }
 0x977   : > { %10050 = vmatprep.subr.bf16.mxu1 %v13324_v51 }
 0x979   : > { %10031 = vmatmul.mubr.bf16.gmra.mrb[80].mxu1 %v7028_v18 }
 0x97a   : > { %10051 = vmatpush3.bf16.msra.mxu1 %v11075_v55  ;;  %10034 = vmatprep.mubr.msk.bf16.mxu1 %vm11121_vm2, %v13324_v51 }
 0x97b   : > { %10052 = vmatprep.subr.bf16.mxu1 %v13324_v51 }
 0x97e   : > { %10053 = vmatpush3.bf16.msra.mxu1 %v11076_v37 }
 0x97f   : > { %10054 = vmatprep.subr.bf16.mxu1 %v13324_v51 }
 0x981   : > { %10035 = vmatmul.mubr.bf16.gmra.mrb[84].mxu1 %v7029_v5 }
 0x982   : > { %10055 = vmatpush3.bf16.msra.mxu1 %v11077_v60  ;;  %10038 = vmatprep.mubr.msk.bf16.mxu1 %vm11121_vm2, %v13324_v51 }
 0x983   : > { %10056 = vmatprep.subr.bf16.mxu1 %v13324_v51 }
 0x986   : > { %10057 = vmatpush3.bf16.msra.mxu1 %v11078_v41 }
 0x987   : > { %10078 = vmatprep.subr.bf16.mxu1 %v13324_v51 }
 0x989   : > { %10039 = vmatmul.mubr.bf16.gmra.mrb[88].mxu1 %v7030_v8 }
 0x98a   : > { %10058 = vmatprep.mubr.msk.bf16.mxu1 %vm11121_vm2, %v13324_v51 }
 0x991   : > { %10059 = vmatmul.mubr.bf16.vlgmr.msra.gmra.mrb[92].mxu1 %v7511_v4 }
 0x992   : > { %10062 = vmatprep.mubr.msk.bf16.mxu1 %vm11121_vm2, %v13324_v51  ;;  %10079 = vmatpush3.bf16.msra.mxu1 %v13455_v12 }
 0x993   : > { %10080 = vmatprep.subr.bf16.mxu1 %v13324_v51 }
 0x996   : > { %10081 = vmatpush3.bf16.msra.mxu1 %v13462_v3 }
 0x997   : > { %10082 = vmatprep.subr.bf16.mxu1 %v13324_v51 }
 0x999   : > { %10063 = vmatmul.mubr.bf16.gmra.mrb[96].mxu1 %v7512_v24 }
 0x99a   : > { %10066 = vmatprep.mubr.msk.bf16.mxu1 %vm11121_vm2, %v13324_v51  ;;  %10083 = vmatpush3.bf16.msra.mxu1 %v13469_v36 }
 0x99b   : > { %10084 = vmatprep.subr.bf16.mxu1 %v13324_v51 }
 0x99e   : > { %10085 = vmatpush3.bf16.msra.mxu1 %v13476_v13 }
 0x99f   : > { %10090 = vmatprep.subr.bf16.mxu1 %v13324_v51 }
 0x9a1   : > { %10067 = vmatmul.mubr.bf16.gmra.mrb[100].mxu1 %v7513_v0 }
 0x9a2   : > { %10070 = vmatprep.mubr.msk.bf16.mxu1 %vm11121_vm2, %v13324_v51 }
 0x9a9   : > { %10071 = vmatmul.mubr.bf16.gmra.mrb[104].mxu1 %v7514_v7 }
 0x9aa   : > { %10074 = vmatprep.mubr.msk.bf16.mxu1 %vm11121_vm2, %v13324_v51 }
 0x9b1   : > { %10075 = vmatmul.mubr.bf16.gmra.mrb[108].mxu1 %v7515_v38 }
 0x9b2   : > { %10086 = vmatprep.mubr.msk.bf16.mxu1 %vm11121_vm2, %v13324_v51 }
 0xa3c   : > { %v7598_v1 = vpop.f32.mrb[72].mxu1 }
 0xa3d   : > { %v10024_v33 = vpop.f32.mrb[73].mxu1  ;;  %v7730_v56 = vmul.f32 %v13489_v32, %v7598_v1 }
 0xa3e   : > { %v7601_v58 = vpop.f32.mrb[74].mxu1 }
 0xa3f   : > { %v10025_v27 = vpop.f32.mrb[75].mxu1  ;;  %v7731_v42 = vmul.f32 %v13489_v32, %v7601_v58  ;;  %v7743_v44 = vadd.f32 %v13495_v23, %v7730_v56 }
 0xa41   : > { %v7744_v16 = vadd.f32 %v13495_v23, %v7731_v42  ;;  %v7752_v46 = vmax.f32 %v7743_v44, 0.0 }
 0xa43   : > { %v7753_v37 = vmax.f32 %v7744_v16, 0.0 }
 0xa44   : > { %v7606_v11 = vpop.f32.mrb[76].mxu1 }
 0xa45   : > { %v10028_v59 = vpop.f32.mrb[77].mxu1  ;;  %v7732_v2 = vmul.f32 %v13489_v32, %v7606_v11 }
 0xa46   : > { %v7609_v45 = vpop.f32.mrb[78].mxu1 }
 0xa47   : > { %v10029_v9 = vpop.f32.mrb[79].mxu1  ;;  %v7733_v57 = vmul.f32 %v13489_v32, %v7609_v45  ;;  %v7745_v41 = vadd.f32 %v13495_v23, %v7732_v2 }
 0xa49   : > { %v7746_v4 = vadd.f32 %v13495_v23, %v7733_v57  ;;  %v7754_v6 = vmax.f32 %v7745_v41, 0.0 }
 0xa4b   : > { %v7755_v47 = vmax.f32 %v7746_v4, 0.0  ;;  %v11122_v4 = vmov 0.0|0.0  }
 0xa4c   : > { %v7614_v25 = vpop.f32.mrb[80].mxu1  ;;  %10302 = vmatprep.subr.bf16.mxu0 %v11122_v4 }
 0xa4d   : > { %v10032_v34 = vpop.f32.mrb[81].mxu1  ;;  %v7734_v50 = vmul.f32 %v13489_v32, %v7614_v25 }
 0xa4e   : > { %v7617_v20 = vpop.f32.mrb[82].mxu1 }
 0xa4f   : > { %v10033_v52 = vpop.f32.mrb[83].mxu1  ;;  %v7735_v7 = vmul.f32 %v13489_v32, %v7617_v20  ;;  %v7747_v33 = vadd.f32 %v13495_v23, %v7734_v50 }
 0xa51   : > { %v7748_v45 = vadd.f32 %v13495_v23, %v7735_v7  ;;  %v7756_v20 = vmax.f32 %v7747_v33, 0.0 }
 0xa54   : > { %v13480_v53 = vpop.f32.mrb[84].mxu1 }
 0xa55   : > { %v10036_v49 = vpop.f32.mrb[85].mxu1  ;;  %v7736_v52 = vmul.f32 %v13489_v32, %v13480_v53 }
 0xa56   : > { %v13482_v48 = vpop.f32.mrb[86].mxu1 }
 0xa57   : > { %v10037_v21 = vpop.f32.mrb[87].mxu1 }
 0xa5c   : > { %v13484_v30 = vpop.f32.mrb[88].mxu1 }
 0xa5d   : > { %v10040_v39 = vpop.f32.mrb[89].mxu1 }
 0xa5e   : > { %v7633_v31 = vpop.f32.mrb[90].mxu1  ;;  %v7757_v39 = vmax.f32 %v7748_v45, 0.0 }
 0xa5f   : > { %v10041_v10 = vpop.f32.mrb[91].mxu1  ;;  %v7737_v31 = vmul.f32 %v13489_v32, %v13482_v48 }
 0xa61   : > { %v7750_v53 = vadd.f32 %v13495_v23, %v7737_v31 }
 0xa64   : > { %v7679_v15 = vpop.f32.mrb[92].mxu1 }
 0xa65   : > { %v7761_v29 = vmul.f32 %v13489_v32, %v7679_v15  ;;  %v10060_v22 = vpop.f32.mrb[93].mxu1  ;;  %v7749_v15 = vadd.f32 %v13495_v23, %v7736_v52  ;;  %v8267_v52 = vld [vmem:[%s13814_s2 + $0x30] sm:$0xff] }
 0xa66   : > { %v7682_v61 = vpop.f32.mrb[94].mxu1 }
 0xa67   : > { %v7770_v54 = vadd.f32 %v13495_v23, %v7761_v29  ;;  %v7762_v17 = vmul.f32 %v13489_v32, %v7682_v61  ;;  %v10061_v62 = vpop.f32.mrb[95].mxu1 }
 0xa68   : > { %v7738_v62 = vmul.f32 %v13489_v32, %v13484_v30 }
 0xa69   : > { %v7779_v55 = vmax.f32 %v7770_v54, 0.0  ;;  %v7771_v18 = vadd.f32 %v13495_v23, %v7762_v17  ;;  %v7758_v17 = vmax.f32 %v7749_v15, 0.0 }
 0xa6b   : > { %v7788_v28 = vmax.f32 %v7752_v46, %v7779_v55  ;;  %v7780_v60 = vmax.f32 %v7771_v18, 0.0  ;;  %v7759_v55 = vmax.f32 %v7750_v53, 0.0 }
 0xa6c   : > { %v7687_v5 = vpop.f32.mrb[96].mxu1 }
 0xa6d   : > { %7798 = vst.msk [vmem:[#allocation4] sm:$0xff] %vm7797_vm3, %v7788_v28  ;;  %v7789_v35 = vmax.f32 %v7753_v37, %v7780_v60  ;;  %v7763_v8 = vmul.f32 %v13489_v32, %v7687_v5  ;;  %v10064_v19 = vpop.f32.mrb[97].mxu1  ;;  %v7751_v28 = vadd.f32 %v13495_v23, %v7738_v62  ;;  %v8905_v62 = vld [vmem:[%s13814_s2 + $0x6] ss:$0 sm:$0xff] }
 0xa6e   : > { %v7690_v40 = vpop.f32.mrb[98].mxu1  ;;  %v8516_v19 = vld [vmem:[%s13814_s2 + $0xd8] sm:$0xff] }
 0xa6f   : > { %7799 = vst.msk [vmem:[#allocation4 + $0x8] sm:$0xff] %vm7797_vm3, %v7789_v35  ;;  %v7772_v26 = vadd.f32 %v13495_v23, %v7763_v8  ;;  %v7764_v14 = vmul.f32 %v13489_v32, %v7690_v40  ;;  %v10065_v24 = vpop.f32.mrb[99].mxu1  ;;  %v8517_v40 = vld [vmem:[%s13814_s2 + $0xe0] sm:$0xff] }
 0xa71   : > { %v7781_v0 = vmax.f32 %v7772_v26, 0.0  ;;  %v7773_v63 = vadd.f32 %v13495_v23, %v7764_v14  ;;  %v10303_v26 = vpack.c.bf16 %v8517_v40, %v8516_v19 }
 0xa73   : > { %v7790_v43 = vmax.f32 %v7754_v6, %v7781_v0  ;;  %v7782_v38 = vmax.f32 %v7773_v63, 0.0  ;;  %10304 = vmatpush3.bf16.msra.mxu0 %v10303_v26  ;;  %v13555_v6 = vld [vmem:[%s13813_s1 + $0x410] ss:$8 sps:$4 sm:$0xff]   ;;  %v13562_v0 = vld [vmem:[%s13813_s1 + $0x420] ss:$8 sps:$4 sm:$0xff]  }
 0xa74   : > { %v7695_v1 = vpop.f32.mrb[100].mxu1  ;;  %10305 = vmatprep.subr.bf16.mxu0 %v11122_v4  ;;  %v13571_v63 = vld [vmem:[%s13813_s1 + $0x430] ss:$8 sps:$4 sm:$0xff]  }
 0xa75   : > { %7800 = vst.msk [vmem:[#allocation4 + $0x10] sm:$0xff] %vm7797_vm3, %v7790_v43  ;;  %v7791_v58 = vmax.f32 %v7755_v47, %v7782_v38  ;;  %v7765_v27 = vmul.f32 %v13489_v32, %v7695_v1  ;;  %v10068_v11 = vpop.f32.mrb[101].mxu1  ;;  %v13578_v47 = vld [vmem:[%s13813_s1 + $0x440] ss:$8 sps:$4 sm:$0xff]  }
 0xa76   : > { %v7698_v59 = vpop.f32.mrb[102].mxu1 }
 0xa77   : > { %7801 = vst.msk [vmem:[#allocation4 + $0x18] sm:$0xff] %vm7797_vm3, %v7791_v58  ;;  %v7774_v9 = vadd.f32 %v13495_v23, %v7765_v27  ;;  %v7766_v25 = vmul.f32 %v13489_v32, %v7698_v59  ;;  %v10069_v34 = vpop.f32.mrb[103].mxu1 }
 0xa79   : > { %v7783_v49 = vmax.f32 %v7774_v9, 0.0  ;;  %v7775_v21 = vadd.f32 %v13495_v23, %v7766_v25 }
 0xa7b   : > { %v7792_v10 = vmax.f32 %v7756_v20, %v7783_v49  ;;  %v7784_v56 = vmax.f32 %v7775_v21, 0.0  ;;  %v8266_v20 = vld [vmem:[%s13814_s2 + $0x28] sm:$0xff]  ;;  %v8268_v21 = vld [vmem:[%s13814_s2 + $0x38] sm:$0xff] }
 0xa7c   : > { %v7703_v42 = vpop.f32.mrb[104].mxu1  ;;  %v10267_v49 = vpack.c.bf16 %v8267_v52, %v8266_v20  ;;  %v8430_v20 = vld [vmem:[%s13814_s2 + $0x80] sm:$0xff] }
 0xa7d   : > { %7802 = vst.msk [vmem:[#allocation4 + $0x20] sm:$0xff] %vm7797_vm3, %v7792_v10  ;;  %v7793_v44 = vmax.f32 %v7757_v39, %v7784_v56  ;;  %v7767_v29 = vmul.f32 %v13489_v32, %v7703_v42  ;;  %v10072_v22 = vpop.f32.mrb[105].mxu1  ;;  %v8269_v39 = vld [vmem:[%s13814_s2 + $0x40] sm:$0xff]  ;;  %v8520_v10 = vld [vmem:[%s13814_s2 + $0xf8] sm:$0xff]  ;;  %v8522_v42 = vld [vmem:[%s13814_s2 + $0x108] sm:$0xff] }
 0xa7e   : > { %v7706_v61 = vpop.f32.mrb[106].mxu1  ;;  %v10270_v31 = vpack.c.bf16 %v8269_v39, %v8268_v21  ;;  %v8521_v56 = vld [vmem:[%s13814_s2 + $0x100] sm:$0xff]  ;;  %v8524_v22 = vld [vmem:[%s13814_s2 + $0x118] sm:$0xff] }
 0xa7f   : > { %7803 = vst.msk [vmem:[#allocation4 + $0x28] sm:$0xff] %vm7797_vm3, %v7793_v44  ;;  %v7776_v16 = vadd.f32 %v13495_v23, %v7767_v29  ;;  %v7768_v48 = vmul.f32 %v13489_v32, %v7706_v61  ;;  %v10073_v54 = vpop.f32.mrb[107].mxu1  ;;  %v10309_v15 = vpack.c.bf16 %v8521_v56, %v8520_v10  ;;  %v8523_v44 = vld [vmem:[%s13814_s2 + $0x110] sm:$0xff]  ;;  %v8525_v61 = vld [vmem:[%s13814_s2 + $0x120] sm:$0xff]  ;;  %v8433_v21 = vld [vmem:[%s13814_s2 + $0x98] sm:$0xff] }
 0xa80   : > { %v10312_v29 = vpack.c.bf16 %v8523_v44, %v8522_v42  ;;  %v10315_v53 = vpack.c.bf16 %v8525_v61, %v8524_v22  ;;  %v8435_v10 = vld [vmem:[%s13814_s2 + $0xa8] sm:$0xff]  ;;  %v8436_v42 = vld [vmem:[%s13814_s2 + $0xb0] sm:$0xff] }
 0xa81   : > { %v7785_v46 = vmax.f32 %v7776_v16, 0.0  ;;  %v7777_v2 = vadd.f32 %v13495_v23, %v7768_v48  ;;  %v8439_v22 = vld [vmem:[%s13814_s2 + $0xc8] sm:$0xff] }
 0xa83   : > { %v7794_v18 = vmax.f32 %v7758_v17, %v7785_v46  ;;  %v7786_v37 = vmax.f32 %v7777_v2, 0.0  ;;  %v8906_v2 = vld [vmem:[%s13814_s2 + $0x7] ss:$0 sm:$0xff] }
 0xa84   : > { %v7711_v57 = vpop.f32.mrb[108].mxu1 }
 0xa85   : > { %7804 = vst.msk [vmem:[#allocation4 + $0x30] sm:$0xff] %vm7797_vm3, %v7794_v18  ;;  %v7795_v60 = vmax.f32 %v7759_v55, %v7786_v37  ;;  %v7769_v5 = vmul.f32 %v13489_v32, %v7711_v57  ;;  %v10076_v41 = vpop.f32.mrb[109].mxu1  ;;  %v7760_v32 = vmax.f32 %v7751_v28, 0.0 }
 0xa86   : > { %v7714_v35 = vpop.f32.mrb[110].mxu1 }
 0xa87   : > { %7805 = vst.msk [vmem:[#allocation4 + $0x38] sm:$0xff] %vm7797_vm3, %v7795_v60  ;;  %v7778_v30 = vadd.f32 %v13495_v23, %v7769_v5  ;;  %v10077_v8 = vpop.f32.mrb[111].mxu1 }
 0xa89   : > { %v7787_v14 = vmax.f32 %v7778_v30, 0.0 }
 0xa8b   : > { %v7796_v24 = vmax.f32 %v7760_v32, %v7787_v14 }
 0xa8d   : > { %7806 = vst.msk [vmem:[#allocation4 + $0x40] sm:$0xff] %vm7797_vm3, %v7796_v24 }
 0xa8e   : > { %v7817_v7 = vld [vmem:[#allocation4] ss:$9 sm:$0xff] }
 0xa8f   : > { %v7818_v43 = vpack.c.bf16 %v7817_v7, %v7817_v7  ;;  %v8263_v7 = vld [vmem:[%s13814_s2 + $0x10] sm:$0xff] }
 0xa94   : > { %v7828_v23 = vld [vmem:[#allocation4 + $0x1] ss:$9 sm:$0xff]  ;;  %v7979_v38 = vld [vmem:[#allocation4 + $0x3] ss:$9 sm:$0xff] }
 0xa95   : > { %v7829_v50 = vpack.c.bf16 %v7828_v23, %v7828_v23  ;;  %v7980_v1 = vpack.c.bf16 %v7979_v38, %v7979_v38  ;;  %v7976_v33 = vld [vmem:[#allocation4 + $0x2] ss:$9 sm:$0xff]  ;;  %v8075_v27 = vld [vmem:[#allocation4 + $0x5] ss:$9 sm:$0xff] }
 0xa96   : > { %v7977_v58 = vpack.c.bf16 %v7976_v33, %v7976_v33  ;;  %v8076_v11 = vpack.c.bf16 %v8075_v27, %v8075_v27  ;;  %v8072_v59 = vld [vmem:[#allocation4 + $0x4] ss:$9 sm:$0xff]  ;;  %v8170_v9 = vld [vmem:[#allocation4 + $0x7] ss:$9 sm:$0xff] }
 0xa97   : > { %10087 = vmatmul.mubr.msk.bf16.vlgmr.msra.gmra.mrb[112].mxu1 %vm7797_vm3, %v7829_v50  ;;  %v8073_v45 = vpack.c.bf16 %v8072_v59, %v8072_v59  ;;  %v8171_v25 = vpack.c.bf16 %v8170_v9, %v8170_v9  ;;  %v8265_v27 = vld [vmem:[%s13814_s2 + $0x20] sm:$0xff]  ;;  %v8424_v59 = vld [vmem:[%s13814_s2 + $0x50] sm:$0xff] }
 0xa98   : > { %10091 = vmatpush3.bf16.msra.mxu1 %v13555_v6  ;;  %10098 = vmatprep.mubr.msk.bf16.mxu1 %vm11121_vm2, %v13324_v51 }
 0xa99   : > { %10092 = vmatprep.subr.bf16.mxu1 %v13324_v51 }
 0xa9c   : > { %10093 = vmatpush3.bf16.msra.mxu1 %v13562_v0 }
 0xa9d   : > { %10094 = vmatprep.subr.bf16.mxu1 %v13324_v51 }
 0xaa0   : > { %10095 = vmatpush3.bf16.msra.mxu1 %v13571_v63 }
 0xaa1   : > { %10096 = vmatprep.subr.bf16.mxu1 %v13324_v51 }
 0xaa4   : > { %10097 = vmatpush3.bf16.msra.mxu1 %v13578_v47 }
 0xaa5   : > { %10102 = vmatprep.subr.bf16.mxu1 %v13324_v51 }
 0xaa7   : > { %10099 = vmatmul.mubr.msk.bf16.vlgmr.msra.gmra.mrb[112].mxu1 %vm7797_vm3, %v7818_v43 }
 0xaa8   : > { %10103 = vmatpush3.bf16.msra.mxu1 %v13455_v12  ;;  %10110 = vmatprep.mubr.msk.bf16.mxu1 %vm11121_vm2, %v13324_v51 }
 0xaa9   : > { %10104 = vmatprep.subr.bf16.mxu1 %v13324_v51 }
 0xaac   : > { %10105 = vmatpush3.bf16.msra.mxu1 %v13462_v3 }
 0xaad   : > { %10106 = vmatprep.subr.bf16.mxu1 %v13324_v51 }
 0xab0   : > { %10107 = vmatpush3.bf16.msra.mxu1 %v13469_v36 }
 0xab1   : > { %10108 = vmatprep.subr.bf16.mxu1 %v13324_v51 }
 0xab4   : > { %10109 = vmatpush3.bf16.msra.mxu1 %v13476_v13 }
 0xab5   : > { %10114 = vmatprep.subr.bf16.mxu1 %v13324_v51 }
 0xab7   : > { %10111 = vmatmul.mubr.msk.bf16.vlgmr.msra.gmra.mrb[116].mxu1 %vm7797_vm3, %v7980_v1 }
 0xab8   : > { %10115 = vmatpush3.bf16.msra.mxu1 %v13555_v6  ;;  %10122 = vmatprep.mubr.msk.bf16.mxu1 %vm11121_vm2, %v13324_v51 }
 0xab9   : > { %10116 = vmatprep.subr.bf16.mxu1 %v13324_v51 }
 0xabc   : > { %10117 = vmatpush3.bf16.msra.mxu1 %v13562_v0 }
 0xabd   : > { %10118 = vmatprep.subr.bf16.mxu1 %v13324_v51 }
 0xac0   : > { %10119 = vmatpush3.bf16.msra.mxu1 %v13571_v63 }
 0xac1   : > { %10120 = vmatprep.subr.bf16.mxu1 %v13324_v51 }
 0xac4   : > { %10121 = vmatpush3.bf16.msra.mxu1 %v13578_v47 }
 0xac5   : > { %10126 = vmatprep.subr.bf16.mxu1 %v13324_v51 }
 0xac7   : > { %10123 = vmatmul.mubr.msk.bf16.vlgmr.msra.gmra.mrb[116].mxu1 %vm7797_vm3, %v7977_v58  ;;  %v8264_v58 = vld [vmem:[%s13814_s2 + $0x18] sm:$0xff] }
 0xac8   : > { %10127 = vmatpush3.bf16.msra.mxu1 %v13455_v12  ;;  %10134 = vmatprep.mubr.msk.bf16.mxu1 %vm11121_vm2, %v13324_v51 }
 0xac9   : > { %10128 = vmatprep.subr.bf16.mxu1 %v13324_v51 }
 0xacc   : > { %10129 = vmatpush3.bf16.msra.mxu1 %v13462_v3 }
 0xacd   : > { %10130 = vmatprep.subr.bf16.mxu1 %v13324_v51 }
 0xad0   : > { %10131 = vmatpush3.bf16.msra.mxu1 %v13469_v36 }
 0xad1   : > { %10132 = vmatprep.subr.bf16.mxu1 %v13324_v51 }
 0xad4   : > { %10133 = vmatpush3.bf16.msra.mxu1 %v13476_v13 }
 0xad5   : > { %10138 = vmatprep.subr.bf16.mxu1 %v13324_v51 }
 0xad7   : > { %10135 = vmatmul.mubr.msk.bf16.vlgmr.msra.gmra.mrb[120].mxu1 %vm7797_vm3, %v8076_v11  ;;  %v10276_v11 = vpack.c.bf16 %v8265_v27, %v8264_v58 }
 0xad8   : > { %10139 = vmatpush3.bf16.msra.mxu1 %v13555_v6  ;;  %10146 = vmatprep.mubr.msk.bf16.mxu1 %vm11121_vm2, %v13324_v51 }
 0xad9   : > { %10140 = vmatprep.subr.bf16.mxu1 %v13324_v51 }
 0xadc   : > { %10141 = vmatpush3.bf16.msra.mxu1 %v13562_v0 }
 0xadd   : > { %10142 = vmatprep.subr.bf16.mxu1 %v13324_v51 }
 0xae0   : > { %10143 = vmatpush3.bf16.msra.mxu1 %v13571_v63 }
 0xae1   : > { %10144 = vmatprep.subr.bf16.mxu1 %v13324_v51 }
 0xae4   : > { %10145 = vmatpush3.bf16.msra.mxu1 %v13578_v47 }
 0xae5   : > { %10150 = vmatprep.subr.bf16.mxu1 %v13324_v51 }
 0xae7   : > { %10147 = vmatmul.mubr.msk.bf16.vlgmr.msra.gmra.mrb[120].mxu1 %vm7797_vm3, %v8073_v45  ;;  %v8425_v45 = vld [vmem:[%s13814_s2 + $0x58] sm:$0xff] }
 0xae8   : > { %10151 = vmatpush3.bf16.msra.mxu1 %v13455_v12  ;;  %10158 = vmatprep.mubr.msk.bf16.mxu1 %vm11121_vm2, %v13324_v51  ;;  %v8167_v12 = vld [vmem:[#allocation4 + $0x6] ss:$9 sm:$0xff]  ;;  %v10279_v9 = vpack.c.bf16 %v8425_v45, %v8424_v59 }
 0xae9   : > { %10152 = vmatprep.subr.bf16.mxu1 %v13324_v51 }
 0xaec   : > { %10153 = vmatpush3.bf16.msra.mxu1 %v13462_v3  ;;  %v8168_v3 = vpack.c.bf16 %v8167_v12, %v8167_v12  ;;  %v8427_v12 = vld [vmem:[%s13814_s2 + $0x68] sm:$0xff] }
 0xaed   : > { %10154 = vmatprep.subr.bf16.mxu1 %v13324_v51 }
 0xaf0   : > { %10155 = vmatpush3.bf16.msra.mxu1 %v13469_v36  ;;  %v8518_v36 = vld [vmem:[%s13814_s2 + $0xe8] sm:$0xff] }
 0xaf1   : > { %10156 = vmatprep.subr.bf16.mxu1 %v13324_v51 }
 0xaf4   : > { %10157 = vmatpush3.bf16.msra.mxu1 %v13476_v13  ;;  %v8519_v13 = vld [vmem:[%s13814_s2 + $0xf0] sm:$0xff] }
 0xaf5   : > { %10162 = vmatprep.subr.bf16.mxu1 %v13324_v51  ;;  %v10306_v34 = vpack.c.bf16 %v8519_v13, %v8518_v36  ;;  %v8428_v36 = vld [vmem:[%s13814_s2 + $0x70] sm:$0xff]  ;;  %v8429_v13 = vld [vmem:[%s13814_s2 + $0x78] sm:$0xff] }
 0xaf7   : > { %10159 = vmatmul.mubr.msk.bf16.vlgmr.msra.gmra.mrb[124].mxu1 %vm7797_vm3, %v8171_v25  ;;  %10307 = vmatpush3.bf16.msra.mxu0 %v10306_v34  ;;  %v8426_v25 = vld [vmem:[%s13814_s2 + $0x60] sm:$0xff]  ;;  %v10285_v34 = vpack.c.bf16 %v8429_v13, %v8428_v36 }
 0xaf8   : > { %10163 = vmatpush3.bf16.msra.mxu1 %v13555_v6  ;;  %10170 = vmatprep.mubr.msk.bf16.mxu1 %vm11121_vm2, %v13324_v51 }
 0xaf9   : > { %10164 = vmatprep.subr.bf16.mxu1 %v13324_v51  ;;  %10308 = vmatprep.subr.bf16.mxu0 %v11122_v4 }
 0xafb   : > { %10310 = vmatpush3.bf16.msra.mxu0 %v10309_v15  ;;  %v8437_v15 = vld [vmem:[%s13814_s2 + $0xb8] sm:$0xff] }
 0xafc   : > { %10165 = vmatpush3.bf16.msra.mxu1 %v13562_v0  ;;  %10311 = vmatprep.subr.bf16.mxu0 %v11122_v4  ;;  %v10297_v44 = vpack.c.bf16 %v8437_v15, %v8436_v42 }
 0xafd   : > { %10166 = vmatprep.subr.bf16.mxu1 %v13324_v51 }
 0xaff   : > { %10313 = vmatpush3.bf16.msra.mxu0 %v10312_v29  ;;  %v8438_v29 = vld [vmem:[%s13814_s2 + $0xc0] sm:$0xff] }
 0xb00   : > { %10167 = vmatpush3.bf16.msra.mxu1 %v13571_v63  ;;  %10314 = vmatprep.subr.bf16.mxu0 %v11122_v4  ;;  %v10300_v61 = vpack.c.bf16 %v8439_v22, %v8438_v29 }
 0xb01   : > { %10168 = vmatprep.subr.bf16.mxu1 %v13324_v51 }
 0xb03   : > { %10316 = vmatpush3.bf16.msra.mxu0 %v10315_v53  ;;  %v8526_v53 = vld [vmem:[%s13814_s2 + $0x128] sm:$0xff] }
 0xb04   : > { %10169 = vmatpush3.bf16.msra.mxu1 %v13578_v47  ;;  %10317 = vmatprep.subr.bf16.mxu0 %v11122_v4  ;;  %v8262_v47 = vld [vmem:[%s13814_s2 + $0x8] sm:$0xff] }
 0xb05   : > { %10266 = vmatprep.subr.bf16.mxu1 %v11122_v4  ;;  %v10273_v1 = vpack.c.bf16 %v8263_v7, %v8262_v47 }
 0xb07   : > { %10171 = vmatmul.mubr.msk.bf16.vlgmr.msra.gmra.mrb[124].mxu1 %vm7797_vm3, %v8168_v3  ;;  %v10282_v3 = vpack.c.bf16 %v8427_v12, %v8426_v25 }
 0xb08   : > { %10182 = vmatprep.mubr.msk.f32.mxu1 %vm11121_vm2, %v13324_v51  ;;  %10268 = vmatpush3.bf16.msra.mxu1 %v10267_v49  ;;  %v8432_v49 = vld [vmem:[%s13814_s2 + $0x90] sm:$0xff] }
 0xb09   : > { %10269 = vmatprep.subr.bf16.mxu1 %v11122_v4  ;;  %v10291_v39 = vpack.c.bf16 %v8433_v21, %v8432_v49 }
 0xb0c   : > { %10271 = vmatpush3.bf16.msra.mxu1 %v10270_v31  ;;  %v8434_v31 = vld [vmem:[%s13814_s2 + $0xa0] sm:$0xff] }
 0xb0d   : > { %10272 = vmatprep.subr.bf16.mxu1 %v11122_v4  ;;  %v10294_v56 = vpack.c.bf16 %v8435_v10, %v8434_v31 }
 0xb7a   : > { %v7958_v16 = vpop.f32.mrb[112].mxu1 }
 0xb7b   : > { %v10100_v48 = vpop.f32.mrb[113].mxu1  ;;  %v7968_v46 = vmul.f32 %v8905_v62, %v7958_v16  ;;  %v8527_v16 = vld [vmem:[%s13814_s2 + $0x130] sm:$0xff] }
 0xb7c   : > { %v7961_v54 = vpop.f32.mrb[114].mxu1  ;;  %v8528_v48 = vld [vmem:[%s13814_s2 + $0x138] sm:$0xff] }
 0xb7d   : > { %v10101_v17 = vpop.f32.mrb[115].mxu1  ;;  %v7973_v18 = vadd.f32 %v8906_v2, %v7968_v46  ;;  %v10318_v54 = vpack.c.bf16 %v8527_v16, %v8526_v53  ;;  %v8530_v46 = vld [vmem:[%s13814_s2 + $0x148] sm:$0xff] }
 0xb7e   : > { %v8529_v17 = vld [vmem:[%s13814_s2 + $0x140] sm:$0xff] }
 0xb7f   : > { %v7974_v41 = vmax.f32 %v7973_v18, 0.0  ;;  %10319 = vmatpush3.bf16.msra.mxu0 %v10318_v54 }
 0xb80   : > { %10320 = vmatprep.subr.bf16.mxu0 %v11122_v4 }
 0xb9a   : > { %v8061_v55 = vpop.f32.mrb[116].mxu1 }
 0xb9b   : > { %v8067_v37 = vmul.f32 %v8905_v62, %v8061_v55  ;;  %v10124_v57 = vpop.f32.mrb[117].mxu1 }
 0xb9c   : > { %v8064_v28 = vpop.f32.mrb[118].mxu1 }
 0xb9d   : > { %v8068_v60 = vadd.f32 %v8906_v2, %v8067_v37  ;;  %v10125_v5 = vpop.f32.mrb[119].mxu1  ;;  %v8915_v28 = vld [vmem:[%s13814_s2 + $0x48] ss:$0 sm:$0xff] }
 0xb9f   : > { %v8069_v35 = vmax.f32 %v8068_v60, 0.0 }
 0xba1   : > { %v8070_v30 = vmax.f32 %v7974_v41, %v8069_v35 }
 0xbba   : > { %v8157_v8 = vpop.f32.mrb[120].mxu1 }
 0xbbb   : > { %v10148_v19 = vpop.f32.mrb[121].mxu1  ;;  %v8163_v32 = vmul.f32 %v8905_v62, %v8157_v8 }
 0xbbc   : > { %v8160_v40 = vpop.f32.mrb[122].mxu1 }
 0xbbd   : > { %v10149_v26 = vpop.f32.mrb[123].mxu1  ;;  %v8164_v24 = vadd.f32 %v8906_v2, %v8163_v32 }
 0xbbe   : > { %v8917_v26 = vld [vmem:[%s13814_s2 + $0x158] ss:$0 sm:$0xff] }
 0xbbf   : > { %v8165_v43 = vmax.f32 %v8164_v24, 0.0 }
 0xbda   : > { %v8252_v14 = vpop.f32.mrb[124].mxu1 }
 0xbdb   : > { %v8258_v23 = vmul.f32 %v8905_v62, %v8252_v14  ;;  %v10172_v6 = vpop.f32.mrb[125].mxu1  ;;  %v10321_v62 = vpack.c.bf16 %v8529_v17, %v8528_v48 }
 0xbdc   : > { %v8255_v50 = vpop.f32.mrb[126].mxu1 }
 0xbdd   : > { %v8259_v0 = vadd.f32 %v8906_v2, %v8258_v23  ;;  %v10173_v63 = vpop.f32.mrb[127].mxu1  ;;  %v8531_v2 = vld [vmem:[%s13814_s2 + $0x150] sm:$0xff]  ;;  %10322 = vmatpush3.bf16.msra.mxu0 %v10321_v62 }
 0xbde   : > { %v10324_v55 = vpack.c.bf16 %v8531_v2, %v8530_v46  ;;  %10323 = vmatprep.subr.bf16.mxu0 %v11122_v4 }
 0xbdf   : > { %v8260_v38 = vmax.f32 %v8259_v0, 0.0 }
 0xbe1   : > { %v8261_v33 = vmax.f32 %v8165_v43, %v8260_v38  ;;  %10325 = vmatpush3.bf16.msra.mxu0 %v10324_v55 }
 0xbe3   : > { %10183 = vmatmul.mubr.msk.f32.vlgmr.msra.gmra.mrb[128].mxu1 %vm8270_vm4, %v8261_v33 }
 0xbe4   : > { %10274 = vmatpush3.bf16.msra.mxu1 %v10273_v1  ;;  %10193 = vmatprep.mubr.msk.f32.mxu1 %vm11121_vm2, %v13324_v51 }
 0xbe5   : > { %10275 = vmatprep.subr.bf16.mxu1 %v11122_v4 }
 0xbe8   : > { %10277 = vmatpush3.bf16.msra.mxu1 %v10276_v11 }
 0xbe9   : > { %10278 = vmatprep.subr.bf16.mxu1 %v11122_v4 }
 0xbeb   : > { %10194 = vmatmul.mubr.msk.f32.vlgmr.msra.gmra.mrb[130].mxu1 %vm8270_vm4, %v8070_v30  ;;  %v8916_v30 = vld [vmem:[%s13814_s2 + $0xd0] ss:$0 sm:$0xff] }
 0xbec   : > { %10280 = vmatpush3.bf16.msra.mxu1 %v10279_v9  ;;  %10228 = vmatprep.mubr.msk.f32.mxu1 %vm11121_vm2, %v13324_v51  ;;  %v8431_v51 = vld [vmem:[%s13814_s2 + $0x88] sm:$0xff] }
 0xbed   : > { %10281 = vmatprep.subr.bf16.mxu1 %v11122_v4  ;;  %v10288_v52 = vpack.c.bf16 %v8431_v51, %v8430_v20 }
 0xbf0   : > { %10283 = vmatpush3.bf16.msra.mxu1 %v10282_v3 }
 0xbf1   : > { %10284 = vmatprep.subr.bf16.mxu1 %v11122_v4 }
 0xbf4   : > { %10286 = vmatpush3.bf16.msra.mxu1 %v10285_v34 }
 0xbf5   : > { %10287 = vmatprep.subr.bf16.mxu1 %v11122_v4 }
 0xbf8   : > { %10289 = vmatpush3.bf16.msra.mxu1 %v10288_v52 }
 0xbf9   : > { %10290 = vmatprep.subr.bf16.mxu1 %v11122_v4 }
 0xbfc   : > { %10292 = vmatpush3.bf16.msra.mxu1 %v10291_v39 }
 0xbfd   : > { %10293 = vmatprep.subr.bf16.mxu1 %v11122_v4 }
 0xc00   : > { %10295 = vmatpush3.bf16.msra.mxu1 %v10294_v56 }
 0xc01   : > { %10296 = vmatprep.subr.bf16.mxu1 %v11122_v4 }
 0xc04   : > { %10298 = vmatpush3.bf16.msra.mxu1 %v10297_v44 }
 0xc05   : > { %10299 = vmatprep.subr.bf16.mxu1 %v11122_v4 }
 0xc08   : > { %10301 = vmatpush3.bf16.msra.mxu1 %v10300_v61 }
 0xcb6   : > { %v8340_v18 = vpop.f32.mrb[128].mxu1 }
 0xcb7   : > { %v10184_v37 = vpop.f32.mrb[129].mxu1 }
 0xcbe   : > { %v8413_v57 = vpop.f32.mrb[130].mxu1 }
 0xcbf   : > { %v8414_v60 = vadd.f32 %v8413_v57, %v8340_v18  ;;  %v10195_v5 = vpop.f32.mrb[131].mxu1 }
 0xcc1   : > { %v8422_v41 = vadd.f32 %v8915_v28, %v8414_v60 }
 0xcc3   : > { %v8423_v35 = vmax.f32 %v8422_v41, 0.0 }
 0xcc5   : > { %10229 = vmatmul.mubr.f32.vlgmr.msra.gmra.mrb[132].mxu1 %v8423_v35 }
 0xd98   : > { %v8511_v8 = vpop.f32.mrb[132].mxu1 }
 0xd99   : > { %v8512_v4 = vadd.f32 %v8916_v30, %v8511_v8  ;;  %v10230_v19 = vpop.f32.mrb[133].mxu1 }
 0xd9b   : > { %v8515_v40 = vmax.f32 %v8512_v4, 0.0 }
 0xd9d   : > { %10264 = vmatmul.mubr.f32.vlgmr.msra.gmra.mrb[32].mxu0 %v8515_v40 }
 0xe70   : > { %v8603_v32 = vpop.f32.mrb[32].mxu0 }
 0xe71   : > { %v8604_v14 = vadd.f32 %v8917_v26, %v8603_v32  ;;  %v10265_v24 = vpop.f32.mrb[33].mxu0 }
 0xe73   : > { %v8607_v23 = vsub.f32 0.0, %v8604_v14 }
 0xe75   : > { %v8608_v6 = vmul.f32 1.442695, %v8607_v23 }
 0xe77   : > { %11087 = vpow2.f32 %v8608_v6 }
 0xe81   : > { %v11088_v50 = vpop.eup %11087 }
 0xe82   : > { %v8610_v0 = vadd.f32 1.0, %v11088_v50 }
 0xe84   : > { %11089 = vrcp.f32 %v8610_v0 }
 0xe8e   : > { %v11090_v63 = vpop.eup %11089 }
 0xe8f   : > { %8613 = vst [vmem:[%s173_s6] sm:$0xff] %v11090_v63 }
 0xe90 PF: > { %s13_s12 = sadd.s32 1, %s11117_s12  }
 0xe91   : > { %p10_p5 = scmp.ge.s32.totalorder %s13_s12, 4  }
 0xe93   :  { %12 = sbr.rel (!%p10_p5) target bundleno = 1 (0x1), region = 364 }

</bundles_post_ra>
